<compile_context>
chip_gen: v5e
topology: v5e:2x2
jax: 0.10.0
libtpu: 0.0.40
codegen_flags: <defaults>
</compile_context>

<pallas_src>
import math
from functools import partial

import jax
import jax.numpy as jnp
from jax.experimental import pallas as pl
from jax.experimental.pallas import tpu as pltpu

DIM = 32
NUM_HEADS = 4
HEAD_DIM = DIM // NUM_HEADS
LN_EPS = 1e-5

# Packed-operand segment orders (host packer and kernel share these).
_W_SEGS = ("swin_qkv_w", "swin_wo", "mlp_w1", "mlp_w2", "ca_q_w", "ca_kv_w",
           "ca_wo", "fuse_wx", "fuse_wa", "fuse_wm")
_B_SEGS = ("ln_g", "ln_b", "swin_qkv_b", "swin_bo", "mlp_b1", "mlp_b2",
           "ca_q_b", "ca_kv_b", "ca_bo", "fuse_b")
_LANE_ALIGN = 128   # each weight segment starts on a 128-lane boundary


# ----------------------------------------------------------------------------
# In-kernel math helpers (pure jnp/lax, traced inside the Pallas body)
# ----------------------------------------------------------------------------
def _recip(x):
    # EUP approximate reciprocal + one Newton step (keeps ~1e-7 rel error
    # while staying off the VALU divide path).
    r = pl.reciprocal(x, approx=True)
    return r * (2.0 - x * r)


def _erf(x):
    # Abramowitz & Stegun 7.1.26 rational approximation (max abs err ~1.5e-7).
    a1, a2, a3, a4, a5 = (0.254829592, -0.284496736, 1.421413741,
                          -1.453152027, 1.061405429)
    p = 0.3275911
    ax = jnp.abs(x)
    t = _recip(1.0 + p * ax)                       # EUP instead of VALU divide
    poly = ((((a5 * t + a4) * t + a3) * t + a2) * t + a1) * t
    y = 1.0 - poly * jnp.exp(-ax * ax)
    return jnp.where(x >= 0, y, -y)


def _gelu_exact(x):
    # nn.GELU() default (erf-based).
    return 0.5 * x * (1.0 + _erf(x * 0.7071067811865476))


def _sigmoid(x):
    return _recip(1.0 + jnp.exp(-x))


# ----------------------------------------------------------------------------
# Single fused Pallas kernel (whole problem resident in VMEM, no grid)
# ----------------------------------------------------------------------------
def catm_kernel(skip_ref, dec_ref, w_ref, b_ref, out_ref, *,
                B, nh, w_off, b_off):
    BS, D = skip_ref.shape                # (B*S, D) sequence-major, stacked
    S = BS // B
    dh = D // nh

    def wseg(name):                       # static, 128-aligned lane slice
        off, width = w_off[name]
        return w_ref[:, off:off + width]

    def bseg(name):                       # one bias per slab row
        row, width = b_off[name]
        return b_ref[row:row + 1, 0:width]

    skip = skip_ref[...]                  # (B*S, D)
    dec = dec_ref[...]                    # (B*S, D)

    # Head mask (nh*S, D): sublane-block h keeps only head-h columns.
    # Built once with iota compares (no vector integer division needed).
    col = jax.lax.broadcasted_iota(jnp.int32, (S, D), 1)
    head_mask = jnp.concatenate(
        [((col >= h * dh) & (col < (h + 1) * dh)).astype(jnp.float32)
         for h in range(nh)], axis=0)

    def mha(q, k, v, wo, bo):
        """torch MultiheadAttention core for one batch element.

        q, k, v: (S, D) f32 post-in-projection; q is pre-scaled by
        1/sqrt(head_dim) (scale folded into the weights host-side).
        wo: (D, D) out_proj weight^T; bo: (1, D) bias.
        """
        # One (nh*S, D) x (S, D) NT score matmul instead of 4 K=8 matmuls;
        # the head mask zeroes cross-head contributions.
        q_stack = jnp.concatenate([q] * nh, axis=0) * head_mask     # (nh*S, D)
        s_all = jax.lax.dot_general(q_stack, k, (((1,), (1,)), ((), ())),
                                    preferred_element_type=jnp.float32)
        m = jnp.max(s_all, axis=-1, keepdims=True)
        e = jnp.exp(s_all - m)
        p = e * _recip(jnp.sum(e, axis=-1, keepdims=True))

        # One PV matmul (extra columns free), head-masked block-sum on the
        # VPU, then a single full out-projection matmul.
        pv = jnp.dot(p, v, preferred_element_type=jnp.float32) * head_mask
        cat = pv[0:S]
        for h in range(1, nh):
            cat = cat + pv[h * S:(h + 1) * S]                       # (S, D)
        return jnp.dot(cat, wo, preferred_element_type=jnp.float32) + bo

    # ---- SwinTransformerBlock on decoder features (batch-stacked) ----
    mu = jnp.mean(dec, axis=-1, keepdims=True)
    var = jnp.mean(jnp.square(dec - mu), axis=-1, keepdims=True)
    xn = (dec - mu) * jax.lax.rsqrt(var + LN_EPS) * bseg("ln_g") + bseg("ln_b")

    qkv = (jnp.dot(xn, wseg("swin_qkv_w"), preferred_element_type=jnp.float32)
           + bseg("swin_qkv_b"))                                    # (B*S, 3D)
    swo, sbo = wseg("swin_wo"), bseg("swin_bo")
    attn = jnp.concatenate(
        [mha(qkv[b * S:(b + 1) * S, 0:D],
             qkv[b * S:(b + 1) * S, D:2 * D],
             qkv[b * S:(b + 1) * S, 2 * D:3 * D], swo, sbo)
         for b in range(B)], axis=0)                                # (B*S, D)
    x1 = dec + attn
    h1 = _gelu_exact(jnp.dot(x1, wseg("mlp_w1"),
                             preferred_element_type=jnp.float32) + bseg("mlp_b1"))
    # Second MLP matmul: NT contraction against the torch-layout (D, 4D)
    # weight — no transpose materialized.
    dec_feat = x1 + jax.lax.dot_general(h1, wseg("mlp_w2"),
                                        (((1,), (1,)), ((), ())),
                                        preferred_element_type=jnp.float32) \
                  + bseg("mlp_b2")

    # ---- cross attention (q/k/v Linear pre-composed into in_proj) ----
    cq = (jnp.dot(skip, wseg("ca_q_w"), preferred_element_type=jnp.float32)
          + bseg("ca_q_b"))                                         # (B*S, D)
    ckv = (jnp.dot(dec_feat, wseg("ca_kv_w"), preferred_element_type=jnp.float32)
           + bseg("ca_kv_b"))                                       # (B*S, 2D)
    cwo, cbo = wseg("ca_wo"), bseg("ca_bo")
    y = jnp.concatenate(
        [mha(cq[b * S:(b + 1) * S],
             ckv[b * S:(b + 1) * S, 0:D],
             ckv[b * S:(b + 1) * S, D:2 * D], cwo, cbo) + skip[b * S:(b + 1) * S]
         for b in range(B)], axis=0)                                # (B*S, D)

    # ---- SharedSA gate (batch-stacked) ----
    # Max-pool term uses batch-0 stats only (torch adaptive_max_pool2d(...)[0]).
    mx_term = jnp.dot(jnp.max(y[0:S], axis=0, keepdims=True), wseg("fuse_wm"),
                      preferred_element_type=jnp.float32)           # (1, D)
    avg_rows = jnp.concatenate(
        [jnp.mean(y[b * S:(b + 1) * S], axis=0, keepdims=True) for b in range(B)],
        axis=0)                                                     # (B, D)
    avg_terms = jnp.dot(avg_rows, wseg("fuse_wa"),
                        preferred_element_type=jnp.float32)         # (B, D)
    avg_bcast = jnp.concatenate(
        [jnp.broadcast_to(avg_terms[b:b + 1, :], (S, D)) for b in range(B)],
        axis=0)                                                     # (B*S, D)
    logits = (jnp.dot(y, wseg("fuse_wx"), preferred_element_type=jnp.float32)
              + avg_bcast + mx_term + bseg("fuse_b"))
    gated = _sigmoid(logits) * y                                    # (B*S, D)

    # Lane-dense store: one (D, B*S) = (32, 128) unmasked write.
    out_ref[...] = jnp.transpose(gated)


# ----------------------------------------------------------------------------
# Wrapper (single pallas_call, no grid: everything resident in VMEM)
# ----------------------------------------------------------------------------
def catm_forward(x_skip, x_decoder, w_slab, b_slab, *, w_off, b_off):
    """x_skip, x_decoder: NCHW (B, C=dim, H, W) like the PyTorch module."""
    B, C, H, W = x_skip.shape
    S = H * W
    # Tiny wrapper-side permutes to sequence-major (layout plumbing only).
    skip_sc = x_skip.reshape(B, C, S).transpose(0, 2, 1).reshape(B * S, C)
    dec_sc = x_decoder.reshape(B, C, S).transpose(0, 2, 1).reshape(B * S, C)

    vmem = pl.BlockSpec(memory_space=pltpu.MemorySpace.VMEM)
    kernel = partial(catm_kernel, B=B, nh=NUM_HEADS, w_off=w_off, b_off=b_off)

    out_ct = pl.pallas_call(
        kernel,
        out_shape=jax.ShapeDtypeStruct((C, B * S), jnp.float32),
        in_specs=[vmem] * 4,
        out_specs=vmem,
    )(skip_sc, dec_sc, w_slab, b_slab)

    # (C, B*S) -> (B, C, H, W): trivial 16 KiB permute in the wrapper.
    return out_ct.reshape(C, B, S).transpose(1, 0, 2).reshape(B, C, H, W)


# ----------------------------------------------------------------------------
# Deterministic parameter construction (synthetic torch-layout weights, then
# host-side composition: fused QKV/KV, q/k/v Linear folded into the cross-attn
# in-projection, 1/sqrt(head_dim) folded into Q) and slab packing.
# ----------------------------------------------------------------------------
def init_params(key, dim=DIM, num_heads=NUM_HEADS):
    keys = iter(jax.random.split(key, 24))

    def nrm(shape, scale=0.05):
        return scale * jax.random.normal(next(keys), shape, dtype=jnp.float32)

    sc = 1.0 / math.sqrt(dim // num_heads)
    p = {}

    # SwinTransformerBlock: LayerNorm
    p["ln_g"] = jnp.ones((1, dim), jnp.float32)
    p["ln_b"] = jnp.zeros((1, dim), jnp.float32)

    # Swin self-attention: in_proj (3d,d)+(3d,), out_proj (d,d)+(d,)
    swin_in_w = nrm((3 * dim, dim))
    swin_in_b = nrm((3 * dim,))
    p["swin_qkv_w"] = jnp.concatenate(
        [swin_in_w[0:dim].T * sc,              # fold 1/sqrt(dh) into Q
         swin_in_w[dim:2 * dim].T,
         swin_in_w[2 * dim:].T], axis=1)
    p["swin_qkv_b"] = jnp.concatenate(
        [swin_in_b[0:dim] * sc, swin_in_b[dim:2 * dim], swin_in_b[2 * dim:]]
    ).reshape(1, 3 * dim)
    p["swin_wo"] = nrm((dim, dim)).T
    p["swin_bo"] = nrm((dim,)).reshape(1, dim)

    # Swin MLP (W2 kept in torch layout (d, 4d) for the in-kernel NT matmul)
    p["mlp_w1"] = nrm((4 * dim, dim)).T
    p["mlp_b1"] = nrm((4 * dim,)).reshape(1, 4 * dim)
    p["mlp_w2"] = nrm((dim, 4 * dim))
    p["mlp_b2"] = nrm((dim,)).reshape(1, dim)

    # CATM q/k/v Linear projections composed with the cross-attn in-proj:
    # y = x @ (P_t @ W_t) + (p_b @ W_t + w_b), with the score scale in Q.
    qp_w_t, qp_b = nrm((dim, dim)).T, nrm((dim,)).reshape(1, dim)
    kp_w_t, kp_b = nrm((dim, dim)).T, nrm((dim,)).reshape(1, dim)
    vp_w_t, vp_b = nrm((dim, dim)).T, nrm((dim,)).reshape(1, dim)
    ca_in_w = nrm((3 * dim, dim))
    ca_in_b = nrm((3 * dim,))
    ca_wq_t = ca_in_w[0:dim].T * sc
    ca_wk_t = ca_in_w[dim:2 * dim].T
    ca_wv_t = ca_in_w[2 * dim:].T
    ca_bq = ca_in_b[0:dim].reshape(1, dim) * sc
    ca_bk = ca_in_b[dim:2 * dim].reshape(1, dim)
    ca_bv = ca_in_b[2 * dim:].reshape(1, dim)

    p["ca_q_w"] = qp_w_t @ ca_wq_t
    p["ca_q_b"] = qp_b @ ca_wq_t + ca_bq
    ca_k_w, ca_k_b = kp_w_t @ ca_wk_t, kp_b @ ca_wk_t + ca_bk
    ca_v_w, ca_v_b = vp_w_t @ ca_wv_t, vp_b @ ca_wv_t + ca_bv
    p["ca_kv_w"] = jnp.concatenate([ca_k_w, ca_v_w], axis=1)
    p["ca_kv_b"] = jnp.concatenate([ca_k_b, ca_v_b], axis=1)
    p["ca_wo"] = nrm((dim, dim)).T
    p["ca_bo"] = nrm((dim,)).reshape(1, dim)

    # fuse: Conv2d(3*dim, dim, 1) -> weight (dim, 3*dim) squeezed & split
    fuse_w = nrm((dim, 3 * dim))
    p["fuse_wx"] = fuse_w[:, 0:dim].T            # x channels
    p["fuse_wa"] = fuse_w[:, dim:2 * dim].T      # avg-pool channels
    p["fuse_wm"] = fuse_w[:, 2 * dim:].T         # max-pool channels
    p["fuse_b"] = nrm((dim,)).reshape(1, dim)
    return p


def pack_params(p):
    """Pack 20 weight/bias tensors into 2 slabs (fewer prologue DMAs)."""
    # Weight slab: all (D, X) matmul weights, each segment 128-lane aligned.
    w_cols, w_off, off = [], {}, 0
    for name in _W_SEGS:
        m = p[name]
        width = m.shape[1]
        pad = (-width) % _LANE_ALIGN
        w_off[name] = (off, width)
        w_cols.append(jnp.pad(m, ((0, 0), (0, pad))) if pad else m)
        off += width + pad
    w_slab = jnp.concatenate(w_cols, axis=1)

    # Bias slab: one (1, <=128) bias per row, zero-padded to 128 lanes.
    b_rows, b_off = [], {}
    for i, name in enumerate(_B_SEGS):
        v = p[name]
        width = v.shape[1]
        b_off[name] = (i, width)
        b_rows.append(jnp.pad(v, ((0, 0), (0, _LANE_ALIGN - width)))
                      if width < _LANE_ALIGN else v)
    b_slab = jnp.concatenate(b_rows, axis=0)
    return w_slab, w_off, b_slab, b_off


if __name__ == "__main__":
    key = jax.random.PRNGKey(0)
    kp, kx1, kx2 = jax.random.split(key, 3)

    params = init_params(kp)
    w_slab, w_off, b_slab, b_off = pack_params(params)

    B, C, H, W = 2, DIM, 8, 8
    x_skip = jax.random.normal(kx1, (B, C, H, W), dtype=jnp.float32)
    x_decoder = jax.random.normal(kx2, (B, C, H, W), dtype=jnp.float32)

    fwd = jax.jit(partial(catm_forward, w_off=w_off, b_off=b_off))
    out = jax.block_until_ready(fwd(x_skip, x_decoder, w_slab, b_slab))

    assert out.shape == (B, C, H, W), out.shape
    assert bool(jnp.all(jnp.isfinite(out)))
    print("KERNEL_OK")
</pallas_src>

<mosaic_0001>
module attributes {stable_mosaic.version = 11 : i64} {
  func.func @catm_kernel(%arg0: memref<128x32xf32, #tpu.memory_space<vmem>>, %arg1: memref<128x32xf32, #tpu.memory_space<vmem>>, %arg2: memref<32x1280xf32, #tpu.memory_space<vmem>>, %arg3: memref<10x128xf32, #tpu.memory_space<vmem>>, %arg4: memref<32x128xf32, #tpu.memory_space<vmem>>) attributes {dimension_semantics = [], scalar_prefetch = 0 : i64, scratch_operands = 0 : i64, tpu.core_type = #tpu.core_type<tc>} {
    %c0 = arith.constant 0 : index
    %c0_0 = arith.constant 0 : index
    %0 = vector.load %arg0[%c0, %c0_0] : memref<128x32xf32, #tpu.memory_space<vmem>>, vector<128x32xf32>
    %c0_1 = arith.constant 0 : index
    %c0_2 = arith.constant 0 : index
    %1 = vector.load %arg1[%c0_1, %c0_2] : memref<128x32xf32, #tpu.memory_space<vmem>>, vector<128x32xf32>
    %2 = tpu.iota {dimensions = array<i32: 1>} : vector<64x32xi32>
    %c0_i32 = arith.constant 0 : i32
    %3 = vector.broadcast %c0_i32 : i32 to vector<64x32xi32>
    %4 = arith.cmpi sge, %2, %3 : vector<64x32xi32>
    %c8_i32 = arith.constant 8 : i32
    %5 = vector.broadcast %c8_i32 : i32 to vector<64x32xi32>
    %6 = arith.cmpi slt, %2, %5 : vector<64x32xi32>
    %7 = arith.andi %4, %6 : vector<64x32xi1>
    %8 = arith.extui %7 : vector<64x32xi1> to vector<64x32xi32>
    %9 = arith.sitofp %8 : vector<64x32xi32> to vector<64x32xf32>
    %c8_i32_3 = arith.constant 8 : i32
    %10 = vector.broadcast %c8_i32_3 : i32 to vector<64x32xi32>
    %11 = arith.cmpi sge, %2, %10 : vector<64x32xi32>
    %c16_i32 = arith.constant 16 : i32
    %12 = vector.broadcast %c16_i32 : i32 to vector<64x32xi32>
    %13 = arith.cmpi slt, %2, %12 : vector<64x32xi32>
    %14 = arith.andi %11, %13 : vector<64x32xi1>
    %15 = arith.extui %14 : vector<64x32xi1> to vector<64x32xi32>
    %16 = arith.sitofp %15 : vector<64x32xi32> to vector<64x32xf32>
    %c16_i32_4 = arith.constant 16 : i32
    %17 = vector.broadcast %c16_i32_4 : i32 to vector<64x32xi32>
    %18 = arith.cmpi sge, %2, %17 : vector<64x32xi32>
    %c24_i32 = arith.constant 24 : i32
    %19 = vector.broadcast %c24_i32 : i32 to vector<64x32xi32>
    %20 = arith.cmpi slt, %2, %19 : vector<64x32xi32>
    %21 = arith.andi %18, %20 : vector<64x32xi1>
    %22 = arith.extui %21 : vector<64x32xi1> to vector<64x32xi32>
    %23 = arith.sitofp %22 : vector<64x32xi32> to vector<64x32xf32>
    %c24_i32_5 = arith.constant 24 : i32
    %24 = vector.broadcast %c24_i32_5 : i32 to vector<64x32xi32>
    %25 = arith.cmpi sge, %2, %24 : vector<64x32xi32>
    %c32_i32 = arith.constant 32 : i32
    %26 = vector.broadcast %c32_i32 : i32 to vector<64x32xi32>
    %27 = arith.cmpi slt, %2, %26 : vector<64x32xi32>
    %28 = arith.andi %25, %27 : vector<64x32xi1>
    %29 = arith.extui %28 : vector<64x32xi1> to vector<64x32xi32>
    %30 = arith.sitofp %29 : vector<64x32xi32> to vector<64x32xf32>
    %31 = tpu.concatenate %9, %16, %23, %30 in 0 : vector<64x32xf32>, vector<64x32xf32>, vector<64x32xf32>, vector<64x32xf32> -> vector<256x32xf32>
    %cst = arith.constant dense<0.000000e+00> : vector<128xf32>
    %32 = vector.multi_reduction <add>, %1, %cst [1] : vector<128x32xf32> to vector<128xf32>
    %33 = vector.shape_cast %32 : vector<128xf32> to vector<128x1xf32>
    %cst_6 = arith.constant 3.200000e+01 : f32
    %34 = vector.broadcast %cst_6 : f32 to vector<128x1xf32>
    %35 = arith.divf %33, %34 : vector<128x1xf32>
    %36 = vector.broadcast %35 : vector<128x1xf32> to vector<128x32xf32>
    %37 = arith.subf %1, %36 : vector<128x32xf32>
    %38 = arith.mulf %37, %37 : vector<128x32xf32>
    %cst_7 = arith.constant dense<0.000000e+00> : vector<128xf32>
    %39 = vector.multi_reduction <add>, %38, %cst_7 [1] : vector<128x32xf32> to vector<128xf32>
    %40 = vector.shape_cast %39 : vector<128xf32> to vector<128x1xf32>
    %cst_8 = arith.constant 3.200000e+01 : f32
    %41 = vector.broadcast %cst_8 : f32 to vector<128x1xf32>
    %42 = arith.divf %40, %41 : vector<128x1xf32>
    %43 = vector.broadcast %35 : vector<128x1xf32> to vector<128x32xf32>
    %44 = arith.subf %1, %43 : vector<128x32xf32>
    %cst_9 = arith.constant 9.99999974E-6 : f32
    %45 = vector.broadcast %cst_9 : f32 to vector<128x1xf32>
    %46 = arith.addf %42, %45 : vector<128x1xf32>
    %47 = math.rsqrt %46 : vector<128x1xf32>
    %48 = vector.broadcast %47 : vector<128x1xf32> to vector<128x32xf32>
    %49 = arith.mulf %44, %48 : vector<128x32xf32>
    %c0_10 = arith.constant 0 : index
    %c0_11 = arith.constant 0 : index
    %50 = vector.load %arg3[%c0_10, %c0_11] : memref<10x128xf32, #tpu.memory_space<vmem>>, vector<1x32xf32>
    %51 = vector.broadcast %50 : vector<1x32xf32> to vector<128x32xf32>
    %52 = arith.mulf %49, %51 : vector<128x32xf32>
    %c1 = arith.constant 1 : index
    %c0_12 = arith.constant 0 : index
    %53 = vector.load %arg3[%c1, %c0_12] : memref<10x128xf32, #tpu.memory_space<vmem>>, vector<1x32xf32>
    %54 = vector.broadcast %53 : vector<1x32xf32> to vector<128x32xf32>
    %55 = arith.addf %52, %54 : vector<128x32xf32>
    %c0_13 = arith.constant 0 : index
    %c0_14 = arith.constant 0 : index
    %56 = vector.load %arg2[%c0_13, %c0_14] : memref<32x1280xf32, #tpu.memory_space<vmem>>, vector<32x96xf32>
    %cst_15 = arith.constant dense<0.000000e+00> : vector<128x96xf32>
    %57 = tpu.matmul %55, %56, %cst_15 {dimension_numbers = #tpu.dot_dimension_numbers<[1], [0], [0], [1], [0, 0, 1, 1], [], []>} : vector<128x32xf32>, vector<32x96xf32>, vector<128x96xf32> -> vector<128x96xf32>
    %c2 = arith.constant 2 : index
    %c0_16 = arith.constant 0 : index
    %58 = vector.load %arg3[%c2, %c0_16] : memref<10x128xf32, #tpu.memory_space<vmem>>, vector<1x96xf32>
    %59 = vector.broadcast %58 : vector<1x96xf32> to vector<128x96xf32>
    %60 = arith.addf %57, %59 : vector<128x96xf32>
    %c0_17 = arith.constant 0 : index
    %c128 = arith.constant 128 : index
    %61 = vector.load %arg2[%c0_17, %c128] : memref<32x1280xf32, #tpu.memory_space<vmem>>, vector<32x32xf32>
    %c3 = arith.constant 3 : index
    %c0_18 = arith.constant 0 : index
    %62 = vector.load %arg3[%c3, %c0_18] : memref<10x128xf32, #tpu.memory_space<vmem>>, vector<1x32xf32>
    %63 = vector.extract_strided_slice %60 {offsets = [0, 0], sizes = [64, 32], strides = [1, 1]} : vector<128x96xf32> to vector<64x32xf32>
    %64 = vector.extract_strided_slice %60 {offsets = [0, 32], sizes = [64, 32], strides = [1, 1]} : vector<128x96xf32> to vector<64x32xf32>
    %65 = vector.extract_strided_slice %60 {offsets = [0, 64], sizes = [64, 32], strides = [1, 1]} : vector<128x96xf32> to vector<64x32xf32>
    %66 = tpu.concatenate %63, %63, %63, %63 in 0 : vector<64x32xf32>, vector<64x32xf32>, vector<64x32xf32>, vector<64x32xf32> -> vector<256x32xf32>
    %67 = arith.mulf %66, %31 : vector<256x32xf32>
    %cst_19 = arith.constant dense<0.000000e+00> : vector<256x64xf32>
    %68 = tpu.matmul %67, %64, %cst_19 {dimension_numbers = #tpu.dot_dimension_numbers<[1], [1], [0], [0], [0, 0, 1, 0], [], []>} : vector<256x32xf32>, vector<64x32xf32>, vector<256x64xf32> -> vector<256x64xf32>
    %cst_20 = arith.constant dense<0xFF800000> : vector<256xf32>
    %69 = vector.multi_reduction <maximumf>, %68, %cst_20 [1] : vector<256x64xf32> to vector<256xf32>
    %70 = vector.shape_cast %69 : vector<256xf32> to vector<256x1xf32>
    %71 = vector.broadcast %70 : vector<256x1xf32> to vector<256x64xf32>
    %72 = arith.subf %68, %71 : vector<256x64xf32>
    %73 = math.exp %72 : vector<256x64xf32>
    %cst_21 = arith.constant dense<0.000000e+00> : vector<256xf32>
    %74 = vector.multi_reduction <add>, %73, %cst_21 [1] : vector<256x64xf32> to vector<256xf32>
    %75 = vector.shape_cast %74 : vector<256xf32> to vector<256x1xf32>
    %76 = tpu.reciprocal %75 {approx = true} : vector<256x1xf32> -> vector<256x1xf32>
    %77 = arith.mulf %75, %76 : vector<256x1xf32>
    %cst_22 = arith.constant 2.000000e+00 : f32
    %78 = vector.broadcast %cst_22 : f32 to vector<256x1xf32>
    %79 = arith.subf %78, %77 : vector<256x1xf32>
    %80 = arith.mulf %76, %79 : vector<256x1xf32>
    %81 = vector.broadcast %80 : vector<256x1xf32> to vector<256x64xf32>
    %82 = arith.mulf %73, %81 : vector<256x64xf32>
    %cst_23 = arith.constant dense<0.000000e+00> : vector<256x32xf32>
    %83 = tpu.matmul %82, %65, %cst_23 {dimension_numbers = #tpu.dot_dimension_numbers<[1], [0], [0], [1], [0, 0, 1, 1], [], []>} : vector<256x64xf32>, vector<64x32xf32>, vector<256x32xf32> -> vector<256x32xf32>
    %84 = arith.mulf %83, %31 : vector<256x32xf32>
    %85 = vector.extract_strided_slice %84 {offsets = [0, 0], sizes = [64, 32], strides = [1, 1]} : vector<256x32xf32> to vector<64x32xf32>
    %86 = vector.extract_strided_slice %84 {offsets = [64, 0], sizes = [64, 32], strides = [1, 1]} : vector<256x32xf32> to vector<64x32xf32>
    %87 = arith.addf %85, %86 : vector<64x32xf32>
    %88 = vector.extract_strided_slice %84 {offsets = [128, 0], sizes = [64, 32], strides = [1, 1]} : vector<256x32xf32> to vector<64x32xf32>
    %89 = arith.addf %87, %88 : vector<64x32xf32>
    %90 = vector.extract_strided_slice %84 {offsets = [192, 0], sizes = [64, 32], strides = [1, 1]} : vector<256x32xf32> to vector<64x32xf32>
    %91 = arith.addf %89, %90 : vector<64x32xf32>
    %cst_24 = arith.constant dense<0.000000e+00> : vector<64x32xf32>
    %92 = tpu.matmul %91, %61, %cst_24 {dimension_numbers = #tpu.dot_dimension_numbers<[1], [0], [0], [1], [0, 0, 1, 1], [], []>} : vector<64x32xf32>, vector<32x32xf32>, vector<64x32xf32> -> vector<64x32xf32>
    %93 = vector.broadcast %62 : vector<1x32xf32> to vector<64x32xf32>
    %94 = arith.addf %92, %93 : vector<64x32xf32>
    %95 = vector.extract_strided_slice %60 {offsets = [64, 0], sizes = [64, 32], strides = [1, 1]} : vector<128x96xf32> to vector<64x32xf32>
    %96 = vector.extract_strided_slice %60 {offsets = [64, 32], sizes = [64, 32], strides = [1, 1]} : vector<128x96xf32> to vector<64x32xf32>
    %97 = vector.extract_strided_slice %60 {offsets = [64, 64], sizes = [64, 32], strides = [1, 1]} : vector<128x96xf32> to vector<64x32xf32>
    %98 = tpu.concatenate %95, %95, %95, %95 in 0 : vector<64x32xf32>, vector<64x32xf32>, vector<64x32xf32>, vector<64x32xf32> -> vector<256x32xf32>
    %99 = arith.mulf %98, %31 : vector<256x32xf32>
    %cst_25 = arith.constant dense<0.000000e+00> : vector<256x64xf32>
    %100 = tpu.matmul %99, %96, %cst_25 {dimension_numbers = #tpu.dot_dimension_numbers<[1], [1], [0], [0], [0, 0, 1, 0], [], []>} : vector<256x32xf32>, vector<64x32xf32>, vector<256x64xf32> -> vector<256x64xf32>
    %cst_26 = arith.constant dense<0xFF800000> : vector<256xf32>
    %101 = vector.multi_reduction <maximumf>, %100, %cst_26 [1] : vector<256x64xf32> to vector<256xf32>
    %102 = vector.shape_cast %101 : vector<256xf32> to vector<256x1xf32>
    %103 = vector.broadcast %102 : vector<256x1xf32> to vector<256x64xf32>
    %104 = arith.subf %100, %103 : vector<256x64xf32>
    %105 = math.exp %104 : vector<256x64xf32>
    %cst_27 = arith.constant dense<0.000000e+00> : vector<256xf32>
    %106 = vector.multi_reduction <add>, %105, %cst_27 [1] : vector<256x64xf32> to vector<256xf32>
    %107 = vector.shape_cast %106 : vector<256xf32> to vector<256x1xf32>
    %108 = tpu.reciprocal %107 {approx = true} : vector<256x1xf32> -> vector<256x1xf32>
    %109 = arith.mulf %107, %108 : vector<256x1xf32>
    %cst_28 = arith.constant 2.000000e+00 : f32
    %110 = vector.broadcast %cst_28 : f32 to vector<256x1xf32>
    %111 = arith.subf %110, %109 : vector<256x1xf32>
    %112 = arith.mulf %108, %111 : vector<256x1xf32>
    %113 = vector.broadcast %112 : vector<256x1xf32> to vector<256x64xf32>
    %114 = arith.mulf %105, %113 : vector<256x64xf32>
    %cst_29 = arith.constant dense<0.000000e+00> : vector<256x32xf32>
    %115 = tpu.matmul %114, %97, %cst_29 {dimension_numbers = #tpu.dot_dimension_numbers<[1], [0], [0], [1], [0, 0, 1, 1], [], []>} : vector<256x64xf32>, vector<64x32xf32>, vector<256x32xf32> -> vector<256x32xf32>
    %116 = arith.mulf %115, %31 : vector<256x32xf32>
    %117 = vector.extract_strided_slice %116 {offsets = [0, 0], sizes = [64, 32], strides = [1, 1]} : vector<256x32xf32> to vector<64x32xf32>
    %118 = vector.extract_strided_slice %116 {offsets = [64, 0], sizes = [64, 32], strides = [1, 1]} : vector<256x32xf32> to vector<64x32xf32>
    %119 = arith.addf %117, %118 : vector<64x32xf32>
    %120 = vector.extract_strided_slice %116 {offsets = [128, 0], sizes = [64, 32], strides = [1, 1]} : vector<256x32xf32> to vector<64x32xf32>
    %121 = arith.addf %119, %120 : vector<64x32xf32>
    %122 = vector.extract_strided_slice %116 {offsets = [192, 0], sizes = [64, 32], strides = [1, 1]} : vector<256x32xf32> to vector<64x32xf32>
    %123 = arith.addf %121, %122 : vector<64x32xf32>
    %cst_30 = arith.constant dense<0.000000e+00> : vector<64x32xf32>
    %124 = tpu.matmul %123, %61, %cst_30 {dimension_numbers = #tpu.dot_dimension_numbers<[1], [0], [0], [1], [0, 0, 1, 1], [], []>} : vector<64x32xf32>, vector<32x32xf32>, vector<64x32xf32> -> vector<64x32xf32>
    %125 = vector.broadcast %62 : vector<1x32xf32> to vector<64x32xf32>
    %126 = arith.addf %124, %125 : vector<64x32xf32>
    %127 = tpu.concatenate %94, %126 in 0 : vector<64x32xf32>, vector<64x32xf32> -> vector<128x32xf32>
    %128 = arith.addf %1, %127 : vector<128x32xf32>
    %c0_31 = arith.constant 0 : index
    %c256 = arith.constant 256 : index
    %129 = vector.load %arg2[%c0_31, %c256] : memref<32x1280xf32, #tpu.memory_space<vmem>>, vector<32x128xf32>
    %cst_32 = arith.constant dense<0.000000e+00> : vector<128x128xf32>
    %130 = tpu.matmul %128, %129, %cst_32 {dimension_numbers = #tpu.dot_dimension_numbers<[1], [0], [0], [1], [0, 0, 1, 1], [], []>} : vector<128x32xf32>, vector<32x128xf32>, vector<128x128xf32> -> vector<128x128xf32>
    %c4 = arith.constant 4 : index
    %c0_33 = arith.constant 0 : index
    %131 = vector.load %arg3[%c4, %c0_33] : memref<10x128xf32, #tpu.memory_space<vmem>>, vector<1x128xf32>
    %132 = vector.broadcast %131 : vector<1x128xf32> to vector<128x128xf32>
    %133 = arith.addf %130, %132 : vector<128x128xf32>
    %cst_34 = arith.constant 5.000000e-01 : f32
    %134 = vector.broadcast %cst_34 : f32 to vector<128x128xf32>
    %135 = arith.mulf %134, %133 : vector<128x128xf32>
    %cst_35 = arith.constant 0.707106769 : f32
    %136 = vector.broadcast %cst_35 : f32 to vector<128x128xf32>
    %137 = arith.mulf %133, %136 : vector<128x128xf32>
    %138 = math.absf %137 : vector<128x128xf32>
    %cst_36 = arith.constant 0.327591091 : f32
    %139 = vector.broadcast %cst_36 : f32 to vector<128x128xf32>
    %140 = arith.mulf %139, %138 : vector<128x128xf32>
    %cst_37 = arith.constant 1.000000e+00 : f32
    %141 = vector.broadcast %cst_37 : f32 to vector<128x128xf32>
    %142 = arith.addf %141, %140 : vector<128x128xf32>
    %143 = tpu.reciprocal %142 {approx = true} : vector<128x128xf32> -> vector<128x128xf32>
    %144 = arith.mulf %142, %143 : vector<128x128xf32>
    %cst_38 = arith.constant 2.000000e+00 : f32
    %145 = vector.broadcast %cst_38 : f32 to vector<128x128xf32>
    %146 = arith.subf %145, %144 : vector<128x128xf32>
    %147 = arith.mulf %143, %146 : vector<128x128xf32>
    %cst_39 = arith.constant 1.06140542 : f32
    %148 = vector.broadcast %cst_39 : f32 to vector<128x128xf32>
    %149 = arith.mulf %148, %147 : vector<128x128xf32>
    %cst_40 = arith.constant -1.45315206 : f32
    %150 = vector.broadcast %cst_40 : f32 to vector<128x128xf32>
    %151 = arith.addf %149, %150 : vector<128x128xf32>
    %152 = arith.mulf %151, %147 : vector<128x128xf32>
    %cst_41 = arith.constant 1.42141378 : f32
    %153 = vector.broadcast %cst_41 : f32 to vector<128x128xf32>
    %154 = arith.addf %152, %153 : vector<128x128xf32>
    %155 = arith.mulf %154, %147 : vector<128x128xf32>
    %cst_42 = arith.constant -0.284496725 : f32
    %156 = vector.broadcast %cst_42 : f32 to vector<128x128xf32>
    %157 = arith.addf %155, %156 : vector<128x128xf32>
    %158 = arith.mulf %157, %147 : vector<128x128xf32>
    %cst_43 = arith.constant 0.254829586 : f32
    %159 = vector.broadcast %cst_43 : f32 to vector<128x128xf32>
    %160 = arith.addf %158, %159 : vector<128x128xf32>
    %161 = arith.mulf %160, %147 : vector<128x128xf32>
    %cst_44 = arith.constant 0.000000e+00 : f32
    %162 = vector.broadcast %cst_44 : f32 to vector<128x128xf32>
    %163 = arith.subf %162, %138 : vector<128x128xf32>
    %164 = arith.mulf %163, %138 : vector<128x128xf32>
    %165 = math.exp %164 : vector<128x128xf32>
    %166 = arith.mulf %161, %165 : vector<128x128xf32>
    %cst_45 = arith.constant 1.000000e+00 : f32
    %167 = vector.broadcast %cst_45 : f32 to vector<128x128xf32>
    %168 = arith.subf %167, %166 : vector<128x128xf32>
    %cst_46 = arith.constant 0.000000e+00 : f32
    %169 = vector.broadcast %cst_46 : f32 to vector<128x128xf32>
    %170 = arith.cmpf oge, %137, %169 : vector<128x128xf32>
    %cst_47 = arith.constant 0.000000e+00 : f32
    %171 = vector.broadcast %cst_47 : f32 to vector<128x128xf32>
    %172 = arith.subf %171, %168 : vector<128x128xf32>
    %173 = arith.select %170, %168, %172 : vector<128x128xi1>, vector<128x128xf32>
    %cst_48 = arith.constant 1.000000e+00 : f32
    %174 = vector.broadcast %cst_48 : f32 to vector<128x128xf32>
    %175 = arith.addf %174, %173 : vector<128x128xf32>
    %176 = arith.mulf %135, %175 : vector<128x128xf32>
    %c0_49 = arith.constant 0 : index
    %c384 = arith.constant 384 : index
    %177 = vector.load %arg2[%c0_49, %c384] : memref<32x1280xf32, #tpu.memory_space<vmem>>, vector<32x128xf32>
    %cst_50 = arith.constant dense<0.000000e+00> : vector<128x32xf32>
    %178 = tpu.matmul %176, %177, %cst_50 {dimension_numbers = #tpu.dot_dimension_numbers<[1], [1], [0], [0], [0, 0, 1, 0], [], []>} : vector<128x128xf32>, vector<32x128xf32>, vector<128x32xf32> -> vector<128x32xf32>
    %179 = arith.addf %128, %178 : vector<128x32xf32>
    %c5 = arith.constant 5 : index
    %c0_51 = arith.constant 0 : index
    %180 = vector.load %arg3[%c5, %c0_51] : memref<10x128xf32, #tpu.memory_space<vmem>>, vector<1x32xf32>
    %181 = vector.broadcast %180 : vector<1x32xf32> to vector<128x32xf32>
    %182 = arith.addf %179, %181 : vector<128x32xf32>
    %c0_52 = arith.constant 0 : index
    %c512 = arith.constant 512 : index
    %183 = vector.load %arg2[%c0_52, %c512] : memref<32x1280xf32, #tpu.memory_space<vmem>>, vector<32x32xf32>
    %cst_53 = arith.constant dense<0.000000e+00> : vector<128x32xf32>
    %184 = tpu.matmul %0, %183, %cst_53 {dimension_numbers = #tpu.dot_dimension_numbers<[1], [0], [0], [1], [0, 0, 1, 1], [], []>} : vector<128x32xf32>, vector<32x32xf32>, vector<128x32xf32> -> vector<128x32xf32>
    %c6 = arith.constant 6 : index
    %c0_54 = arith.constant 0 : index
    %185 = vector.load %arg3[%c6, %c0_54] : memref<10x128xf32, #tpu.memory_space<vmem>>, vector<1x32xf32>
    %186 = vector.broadcast %185 : vector<1x32xf32> to vector<128x32xf32>
    %187 = arith.addf %184, %186 : vector<128x32xf32>
    %c0_55 = arith.constant 0 : index
    %c640 = arith.constant 640 : index
    %188 = vector.load %arg2[%c0_55, %c640] : memref<32x1280xf32, #tpu.memory_space<vmem>>, vector<32x64xf32>
    %cst_56 = arith.constant dense<0.000000e+00> : vector<128x64xf32>
    %189 = tpu.matmul %182, %188, %cst_56 {dimension_numbers = #tpu.dot_dimension_numbers<[1], [0], [0], [1], [0, 0, 1, 1], [], []>} : vector<128x32xf32>, vector<32x64xf32>, vector<128x64xf32> -> vector<128x64xf32>
    %c7 = arith.constant 7 : index
    %c0_57 = arith.constant 0 : index
    %190 = vector.load %arg3[%c7, %c0_57] : memref<10x128xf32, #tpu.memory_space<vmem>>, vector<1x64xf32>
    %191 = vector.broadcast %190 : vector<1x64xf32> to vector<128x64xf32>
    %192 = arith.addf %189, %191 : vector<128x64xf32>
    %c0_58 = arith.constant 0 : index
    %c768 = arith.constant 768 : index
    %193 = vector.load %arg2[%c0_58, %c768] : memref<32x1280xf32, #tpu.memory_space<vmem>>, vector<32x32xf32>
    %c8 = arith.constant 8 : index
    %c0_59 = arith.constant 0 : index
    %194 = vector.load %arg3[%c8, %c0_59] : memref<10x128xf32, #tpu.memory_space<vmem>>, vector<1x32xf32>
    %195 = vector.extract_strided_slice %187 {offsets = [0, 0], sizes = [64, 32], strides = [1, 1]} : vector<128x32xf32> to vector<64x32xf32>
    %196 = vector.extract_strided_slice %192 {offsets = [0, 0], sizes = [64, 32], strides = [1, 1]} : vector<128x64xf32> to vector<64x32xf32>
    %197 = vector.extract_strided_slice %192 {offsets = [0, 32], sizes = [64, 32], strides = [1, 1]} : vector<128x64xf32> to vector<64x32xf32>
    %198 = tpu.concatenate %195, %195, %195, %195 in 0 : vector<64x32xf32>, vector<64x32xf32>, vector<64x32xf32>, vector<64x32xf32> -> vector<256x32xf32>
    %199 = arith.mulf %198, %31 : vector<256x32xf32>
    %cst_60 = arith.constant dense<0.000000e+00> : vector<256x64xf32>
    %200 = tpu.matmul %199, %196, %cst_60 {dimension_numbers = #tpu.dot_dimension_numbers<[1], [1], [0], [0], [0, 0, 1, 0], [], []>} : vector<256x32xf32>, vector<64x32xf32>, vector<256x64xf32> -> vector<256x64xf32>
    %cst_61 = arith.constant dense<0xFF800000> : vector<256xf32>
    %201 = vector.multi_reduction <maximumf>, %200, %cst_61 [1] : vector<256x64xf32> to vector<256xf32>
    %202 = vector.shape_cast %201 : vector<256xf32> to vector<256x1xf32>
    %203 = vector.broadcast %202 : vector<256x1xf32> to vector<256x64xf32>
    %204 = arith.subf %200, %203 : vector<256x64xf32>
    %205 = math.exp %204 : vector<256x64xf32>
    %cst_62 = arith.constant dense<0.000000e+00> : vector<256xf32>
    %206 = vector.multi_reduction <add>, %205, %cst_62 [1] : vector<256x64xf32> to vector<256xf32>
    %207 = vector.shape_cast %206 : vector<256xf32> to vector<256x1xf32>
    %208 = tpu.reciprocal %207 {approx = true} : vector<256x1xf32> -> vector<256x1xf32>
    %209 = arith.mulf %207, %208 : vector<256x1xf32>
    %cst_63 = arith.constant 2.000000e+00 : f32
    %210 = vector.broadcast %cst_63 : f32 to vector<256x1xf32>
    %211 = arith.subf %210, %209 : vector<256x1xf32>
    %212 = arith.mulf %208, %211 : vector<256x1xf32>
    %213 = vector.broadcast %212 : vector<256x1xf32> to vector<256x64xf32>
    %214 = arith.mulf %205, %213 : vector<256x64xf32>
    %cst_64 = arith.constant dense<0.000000e+00> : vector<256x32xf32>
    %215 = tpu.matmul %214, %197, %cst_64 {dimension_numbers = #tpu.dot_dimension_numbers<[1], [0], [0], [1], [0, 0, 1, 1], [], []>} : vector<256x64xf32>, vector<64x32xf32>, vector<256x32xf32> -> vector<256x32xf32>
    %216 = arith.mulf %215, %31 : vector<256x32xf32>
    %217 = vector.extract_strided_slice %216 {offsets = [0, 0], sizes = [64, 32], strides = [1, 1]} : vector<256x32xf32> to vector<64x32xf32>
    %218 = vector.extract_strided_slice %216 {offsets = [64, 0], sizes = [64, 32], strides = [1, 1]} : vector<256x32xf32> to vector<64x32xf32>
    %219 = arith.addf %217, %218 : vector<64x32xf32>
    %220 = vector.extract_strided_slice %216 {offsets = [128, 0], sizes = [64, 32], strides = [1, 1]} : vector<256x32xf32> to vector<64x32xf32>
    %221 = arith.addf %219, %220 : vector<64x32xf32>
    %222 = vector.extract_strided_slice %216 {offsets = [192, 0], sizes = [64, 32], strides = [1, 1]} : vector<256x32xf32> to vector<64x32xf32>
    %223 = arith.addf %221, %222 : vector<64x32xf32>
    %cst_65 = arith.constant dense<0.000000e+00> : vector<64x32xf32>
    %224 = tpu.matmul %223, %193, %cst_65 {dimension_numbers = #tpu.dot_dimension_numbers<[1], [0], [0], [1], [0, 0, 1, 1], [], []>} : vector<64x32xf32>, vector<32x32xf32>, vector<64x32xf32> -> vector<64x32xf32>
    %225 = vector.broadcast %194 : vector<1x32xf32> to vector<64x32xf32>
    %226 = arith.addf %224, %225 : vector<64x32xf32>
    %227 = vector.extract_strided_slice %0 {offsets = [0, 0], sizes = [64, 32], strides = [1, 1]} : vector<128x32xf32> to vector<64x32xf32>
    %228 = arith.addf %226, %227 : vector<64x32xf32>
    %229 = vector.extract_strided_slice %187 {offsets = [64, 0], sizes = [64, 32], strides = [1, 1]} : vector<128x32xf32> to vector<64x32xf32>
    %230 = vector.extract_strided_slice %192 {offsets = [64, 0], sizes = [64, 32], strides = [1, 1]} : vector<128x64xf32> to vector<64x32xf32>
    %231 = vector.extract_strided_slice %192 {offsets = [64, 32], sizes = [64, 32], strides = [1, 1]} : vector<128x64xf32> to vector<64x32xf32>
    %232 = tpu.concatenate %229, %229, %229, %229 in 0 : vector<64x32xf32>, vector<64x32xf32>, vector<64x32xf32>, vector<64x32xf32> -> vector<256x32xf32>
    %233 = arith.mulf %232, %31 : vector<256x32xf32>
    %cst_66 = arith.constant dense<0.000000e+00> : vector<256x64xf32>
    %234 = tpu.matmul %233, %230, %cst_66 {dimension_numbers = #tpu.dot_dimension_numbers<[1], [1], [0], [0], [0, 0, 1, 0], [], []>} : vector<256x32xf32>, vector<64x32xf32>, vector<256x64xf32> -> vector<256x64xf32>
    %cst_67 = arith.constant dense<0xFF800000> : vector<256xf32>
    %235 = vector.multi_reduction <maximumf>, %234, %cst_67 [1] : vector<256x64xf32> to vector<256xf32>
    %236 = vector.shape_cast %235 : vector<256xf32> to vector<256x1xf32>
    %237 = vector.broadcast %236 : vector<256x1xf32> to vector<256x64xf32>
    %238 = arith.subf %234, %237 : vector<256x64xf32>
    %239 = math.exp %238 : vector<256x64xf32>
    %cst_68 = arith.constant dense<0.000000e+00> : vector<256xf32>
    %240 = vector.multi_reduction <add>, %239, %cst_68 [1] : vector<256x64xf32> to vector<256xf32>
    %241 = vector.shape_cast %240 : vector<256xf32> to vector<256x1xf32>
    %242 = tpu.reciprocal %241 {approx = true} : vector<256x1xf32> -> vector<256x1xf32>
    %243 = arith.mulf %241, %242 : vector<256x1xf32>
    %cst_69 = arith.constant 2.000000e+00 : f32
    %244 = vector.broadcast %cst_69 : f32 to vector<256x1xf32>
    %245 = arith.subf %244, %243 : vector<256x1xf32>
    %246 = arith.mulf %242, %245 : vector<256x1xf32>
    %247 = vector.broadcast %246 : vector<256x1xf32> to vector<256x64xf32>
    %248 = arith.mulf %239, %247 : vector<256x64xf32>
    %cst_70 = arith.constant dense<0.000000e+00> : vector<256x32xf32>
    %249 = tpu.matmul %248, %231, %cst_70 {dimension_numbers = #tpu.dot_dimension_numbers<[1], [0], [0], [1], [0, 0, 1, 1], [], []>} : vector<256x64xf32>, vector<64x32xf32>, vector<256x32xf32> -> vector<256x32xf32>
    %250 = arith.mulf %249, %31 : vector<256x32xf32>
    %251 = vector.extract_strided_slice %250 {offsets = [0, 0], sizes = [64, 32], strides = [1, 1]} : vector<256x32xf32> to vector<64x32xf32>
    %252 = vector.extract_strided_slice %250 {offsets = [64, 0], sizes = [64, 32], strides = [1, 1]} : vector<256x32xf32> to vector<64x32xf32>
    %253 = arith.addf %251, %252 : vector<64x32xf32>
    %254 = vector.extract_strided_slice %250 {offsets = [128, 0], sizes = [64, 32], strides = [1, 1]} : vector<256x32xf32> to vector<64x32xf32>
    %255 = arith.addf %253, %254 : vector<64x32xf32>
    %256 = vector.extract_strided_slice %250 {offsets = [192, 0], sizes = [64, 32], strides = [1, 1]} : vector<256x32xf32> to vector<64x32xf32>
    %257 = arith.addf %255, %256 : vector<64x32xf32>
    %cst_71 = arith.constant dense<0.000000e+00> : vector<64x32xf32>
    %258 = tpu.matmul %257, %193, %cst_71 {dimension_numbers = #tpu.dot_dimension_numbers<[1], [0], [0], [1], [0, 0, 1, 1], [], []>} : vector<64x32xf32>, vector<32x32xf32>, vector<64x32xf32> -> vector<64x32xf32>
    %259 = vector.broadcast %194 : vector<1x32xf32> to vector<64x32xf32>
    %260 = arith.addf %258, %259 : vector<64x32xf32>
    %261 = vector.extract_strided_slice %0 {offsets = [64, 0], sizes = [64, 32], strides = [1, 1]} : vector<128x32xf32> to vector<64x32xf32>
    %262 = arith.addf %260, %261 : vector<64x32xf32>
    %263 = tpu.concatenate %228, %262 in 0 : vector<64x32xf32>, vector<64x32xf32> -> vector<128x32xf32>
    %264 = vector.extract_strided_slice %263 {offsets = [0, 0], sizes = [64, 32], strides = [1, 1]} : vector<128x32xf32> to vector<64x32xf32>
    %cst_72 = arith.constant dense<0xFF800000> : vector<32xf32>
    %265 = vector.multi_reduction <maximumf>, %264, %cst_72 [0] : vector<64x32xf32> to vector<32xf32>
    %266 = vector.shape_cast %265 : vector<32xf32> to vector<1x32xf32>
    %c0_73 = arith.constant 0 : index
    %c1152 = arith.constant 1152 : index
    %267 = vector.load %arg2[%c0_73, %c1152] : memref<32x1280xf32, #tpu.memory_space<vmem>>, vector<32x32xf32>
    %cst_74 = arith.constant dense<0.000000e+00> : vector<1x32xf32>
    %268 = tpu.matmul %266, %267, %cst_74 {dimension_numbers = #tpu.dot_dimension_numbers<[1], [0], [0], [1], [0, 0, 1, 1], [], []>} : vector<1x32xf32>, vector<32x32xf32>, vector<1x32xf32> -> vector<1x32xf32>
    %269 = vector.extract_strided_slice %263 {offsets = [0, 0], sizes = [64, 32], strides = [1, 1]} : vector<128x32xf32> to vector<64x32xf32>
    %cst_75 = arith.constant dense<0.000000e+00> : vector<32xf32>
    %270 = vector.multi_reduction <add>, %269, %cst_75 [0] : vector<64x32xf32> to vector<32xf32>
    %271 = vector.shape_cast %270 : vector<32xf32> to vector<1x32xf32>
    %cst_76 = arith.constant 6.400000e+01 : f32
    %272 = vector.broadcast %cst_76 : f32 to vector<1x32xf32>
    %273 = arith.divf %271, %272 : vector<1x32xf32>
    %274 = vector.extract_strided_slice %263 {offsets = [64, 0], sizes = [64, 32], strides = [1, 1]} : vector<128x32xf32> to vector<64x32xf32>
    %cst_77 = arith.constant dense<0.000000e+00> : vector<32xf32>
    %275 = vector.multi_reduction <add>, %274, %cst_77 [0] : vector<64x32xf32> to vector<32xf32>
    %276 = vector.shape_cast %275 : vector<32xf32> to vector<1x32xf32>
    %cst_78 = arith.constant 6.400000e+01 : f32
    %277 = vector.broadcast %cst_78 : f32 to vector<1x32xf32>
    %278 = arith.divf %276, %277 : vector<1x32xf32>
    %279 = tpu.concatenate %273, %278 in 0 : vector<1x32xf32>, vector<1x32xf32> -> vector<2x32xf32>
    %c0_79 = arith.constant 0 : index
    %c1024 = arith.constant 1024 : index
    %280 = vector.load %arg2[%c0_79, %c1024] : memref<32x1280xf32, #tpu.memory_space<vmem>>, vector<32x32xf32>
    %cst_80 = arith.constant dense<0.000000e+00> : vector<2x32xf32>
    %281 = tpu.matmul %279, %280, %cst_80 {dimension_numbers = #tpu.dot_dimension_numbers<[1], [0], [0], [1], [0, 0, 1, 1], [], []>} : vector<2x32xf32>, vector<32x32xf32>, vector<2x32xf32> -> vector<2x32xf32>
    %282 = vector.extract_strided_slice %281 {offsets = [0, 0], sizes = [1, 32], strides = [1, 1]} : vector<2x32xf32> to vector<1x32xf32>
    %283 = vector.shape_cast %282 : vector<1x32xf32> to vector<1x32xf32>
    %284 = vector.broadcast %283 : vector<1x32xf32> to vector<64x32xf32>
    %285 = vector.extract_strided_slice %281 {offsets = [1, 0], sizes = [1, 32], strides = [1, 1]} : vector<2x32xf32> to vector<1x32xf32>
    %286 = vector.shape_cast %285 : vector<1x32xf32> to vector<1x32xf32>
    %287 = vector.broadcast %286 : vector<1x32xf32> to vector<64x32xf32>
    %288 = tpu.concatenate %284, %287 in 0 : vector<64x32xf32>, vector<64x32xf32> -> vector<128x32xf32>
    %c0_81 = arith.constant 0 : index
    %c896 = arith.constant 896 : index
    %289 = vector.load %arg2[%c0_81, %c896] : memref<32x1280xf32, #tpu.memory_space<vmem>>, vector<32x32xf32>
    %cst_82 = arith.constant dense<0.000000e+00> : vector<128x32xf32>
    %290 = tpu.matmul %263, %289, %cst_82 {dimension_numbers = #tpu.dot_dimension_numbers<[1], [0], [0], [1], [0, 0, 1, 1], [], []>} : vector<128x32xf32>, vector<32x32xf32>, vector<128x32xf32> -> vector<128x32xf32>
    %291 = arith.addf %290, %288 : vector<128x32xf32>
    %292 = vector.broadcast %268 : vector<1x32xf32> to vector<128x32xf32>
    %293 = arith.addf %291, %292 : vector<128x32xf32>
    %c9 = arith.constant 9 : index
    %c0_83 = arith.constant 0 : index
    %294 = vector.load %arg3[%c9, %c0_83] : memref<10x128xf32, #tpu.memory_space<vmem>>, vector<1x32xf32>
    %295 = vector.broadcast %294 : vector<1x32xf32> to vector<128x32xf32>
    %296 = arith.addf %293, %295 : vector<128x32xf32>
    %cst_84 = arith.constant 0.000000e+00 : f32
    %297 = vector.broadcast %cst_84 : f32 to vector<128x32xf32>
    %298 = arith.subf %297, %296 : vector<128x32xf32>
    %299 = math.exp %298 : vector<128x32xf32>
    %cst_85 = arith.constant 1.000000e+00 : f32
    %300 = vector.broadcast %cst_85 : f32 to vector<128x32xf32>
    %301 = arith.addf %300, %299 : vector<128x32xf32>
    %302 = tpu.reciprocal %301 {approx = true} : vector<128x32xf32> -> vector<128x32xf32>
    %303 = arith.mulf %301, %302 : vector<128x32xf32>
    %cst_86 = arith.constant 2.000000e+00 : f32
    %304 = vector.broadcast %cst_86 : f32 to vector<128x32xf32>
    %305 = arith.subf %304, %303 : vector<128x32xf32>
    %306 = arith.mulf %302, %305 : vector<128x32xf32>
    %307 = arith.mulf %306, %263 : vector<128x32xf32>
    %308 = tpu.transpose %307, [1, 0] : vector<128x32xf32> -> vector<32x128xf32>
    %c0_87 = arith.constant 0 : index
    %c0_88 = arith.constant 0 : index
    %309 = vector.load %arg4[%c0_87, %c0_88] : memref<32x128xf32, #tpu.memory_space<vmem>>, vector<32x128xf32>
    tpu.vector_store %arg4[%c0_87, %c0_88], %308 {strides = array<i32>} : memref<32x128xf32, #tpu.memory_space<vmem>>, vector<32x128xf32>,
    return
  }
}

</mosaic_0001>

<bundles_post_ra>
// kernel: catm_forward.1
= control target key start
LH: loop header
LB: loop body
LE: loop exit
PB: predicated region body
PF: predicated region fallthrough
CT: control target
= control target key end

     0   :  { %9 = vsyncpa [#allocation3], 0  ;;  %s11311_s0 = inlined_call_operand.hbm [shape: f32[128,32], index: 0, kind: input, shape index: {}]   ;;  %s11312_s1 = inlined_call_operand.hbm [shape: f32[128,32], index: 1, kind: input, shape index: {}]   ;;  %s11313_s2 = inlined_call_operand.hbm [shape: f32[32,1280], index: 2, kind: input, shape index: {}]   ;;  %s11314_s3 = inlined_call_operand.hbm [shape: f32[10,128], index: 3, kind: input, shape index: {}]   ;;  %s11315_s4 = inlined_call_operand.vmem [shape: f32[32,128], index: 4, kind: output, shape index: {}]  }
   0x1   :  { %10 = vsyncpa [#allocation5], 0 }
   0x2   :  { %11 = vsyncpa [#allocation8], 0  ;;  %s29_s17 = sshll.u32 %s11312_s1, 4  ;;  %s7723_s18 = smov [#allocation4]   ;;  %s30_s17 = int_to_ptr.hbm [resolvable:$true] %s29_s17 }
   0x3   :  { %s31_s19 = sshll.u32 %s7723_s18, 4  ;;  %s16_s22 = sshll.u32 %s11311_s0, 4  ;;  %s32_s19 = int_to_ptr.vmem [resolvable:$true] %s31_s19  ;;  %s17_s22 = int_to_ptr.hbm [resolvable:$true] %s16_s22 }
   0x4   :  { %s7724_s23 = smov 128   ;;  %s7725_s24 = smov 8  }
   0x5   :  { %37 = dma.hbm_to_vmem [thread:$0]  %s30_s17, 2048, %s32_s19, [#allocation5], %s7724_s23, %s7724_s23, %s7725_s24  }
   0x6   :  { %s7726_s25 = smov [#allocation2]   ;;  %s42_s29 = sshll.u32 %s11313_s2, 4  ;;  %s43_s29 = int_to_ptr.hbm [resolvable:$true] %s42_s29 }
   0x7   :  { %s18_s26 = sshll.u32 %s7726_s25, 4  ;;  %s7727_s1 = smov [#allocation6]   ;;  %s19_s26 = int_to_ptr.vmem [resolvable:$true] %s18_s26 }
   0x8   :  { %24 = dma.hbm_to_vmem [thread:$0]  %s17_s22, 2048, %s19_s26, [#allocation3], %s7724_s23, %s7724_s23, %s7725_s24  }
   0x9   :  { %s44_s30 = sshll.u32 %s7727_s1, 4  ;;  %s55_s0 = sshll.u32 %s11314_s3, 4  ;;  %s45_s30 = int_to_ptr.vmem [resolvable:$true] %s44_s30  ;;  %s56_s0 = int_to_ptr.hbm [resolvable:$true] %s55_s0 }
   0xa   :  { %s7728_s7 = smov 1280   ;;  %s7729_s8 = smov 80  }
   0xb   :  { %50 = dma.hbm_to_vmem [thread:$0]  %s43_s29, 5120, %s45_s30, [#allocation5], %s7728_s7, %s7728_s7, %s7729_s8  }
   0xc   :  { %s7730_s9 = smov [#allocation7]  }
   0xd   :  { %s57_s10 = sshll.u32 %s7730_s9, 4  ;;  %s58_s10 = int_to_ptr.vmem [resolvable:$true] %s57_s10 }
   0xe   :  { %63 = dma.hbm_to_vmem [thread:$0]  %s56_s0, 256, %s58_s10, [#allocation8], %s7724_s23, %s7724_s23, %s7725_s24  }
   0xf   :  { %7717 = dma.done.wait [#allocation3], 2048  }
  0x10   :  { %7718 = vsyncadd [#allocation3], 4294965248 }
  0x11   :  { %7719 = dma.done.wait [#allocation5], 7168  }
  0x12   :  { %7720 = vsyncadd [#allocation5], 4294960128 }
  0x13   :  { %7721 = dma.done.wait [#allocation8], 256  }
  0x14   :  { %7722 = vsyncadd [#allocation8], 4294967040  ;;  %vm134_vm0 = vcmask 261120   ;;  %v100_v0 = vld [vmem:[#allocation4 + $0x20] sm:$0xff]  ;;  %v98_v1 = vld [vmem:[#allocation4 + $0x10] sm:$0xff]  ;;  %v7731_v14 = vmov 32.0  }
  0x15   :  { %v96_v2 = vld [vmem:[#allocation4] sm:$0xff]  ;;  %v147_v3 = vsel %vm134_vm0, %v100_v0, 0.0  ;;  %v141_v4 = vsel %vm134_vm0, %v98_v1, 0.0  ;;  %v101_v6 = vld [vmem:[#allocation4 + $0x28] sm:$0xff]  ;;  %v99_v8 = vld [vmem:[#allocation4 + $0x18] sm:$0xff]  ;;  %6908 = vrcp.f32 %v7731_v14  ;;  %s7733_s2 = smov 96  }
  0x16   :  { %v135_v5 = vsel %vm134_vm0, %v96_v2, 0.0  ;;  %148 = vadd.xlane.f32.xlu2 %v147_v3  ;;  %142 = vadd.xlane.f32.xlu1 %v141_v4  ;;  %v97_v7 = vld [vmem:[#allocation4 + $0x8] sm:$0xff]  ;;  %v150_v9 = vsel %vm134_vm0, %v101_v6, 0.0  ;;  %v144_v10 = vsel %vm134_vm0, %v99_v8, 0.0  ;;  %v102_v12 = vld [vmem:[#allocation4 + $0x30] sm:$0xff]  ;;  %v103_v40 = vld [vmem:[#allocation4 + $0x38] sm:$0xff] }
  0x17   :  { %136 = vadd.xlane.f32.xlu0 %v135_v5  ;;  %v138_v11 = vsel %vm134_vm0, %v97_v7, 0.0  ;;  %v153_v13 = vsel %vm134_vm0, %v102_v12, 0.0  ;;  %v156_v45 = vsel %vm134_vm0, %v103_v40, 0.0  ;;  %v533_v58 = vld [vmem:[#allocation6 + $0xf0] sm:$0xff]  ;;  %v532_v59 = vld [vmem:[#allocation6 + $0xa0] sm:$0xff]  ;;  %s7734_s3 = smov 64  }
  0x18   :  { %596 = vmatpush.msra.mxu0 %v533_v58  ;;  %v531_v60 = vld [vmem:[#allocation6 + $0x50] sm:$0xff]  ;;  %v530_v61 = vld [vmem:[#allocation6] sm:$0xff] }
  0x1a   :  { %597 = vmatpush.msra.mxu0 %v532_v59 }
  0x1b   :  { %v6909_v15 = vpop.eup %6908 }
  0x1c   :  { %v184_v16 = vmul.f32 32.0, %v6909_v15  ;;  %vm188_vm1 = vweird.f32 %v6909_v15  ;;  %598 = vmatpush.msra.mxu0 %v531_v60 }
  0x1e   :  { %151 = vadd.xlane.f32.xlu2 %v150_v9  ;;  %145 = vadd.xlane.f32.xlu1 %v144_v10  ;;  %v185_v17 = vsub.f32 1.0, %v184_v16 }
  0x1f   :  { %139 = vadd.xlane.f32.xlu0 %v138_v11  ;;  %599 = vmatpush.msra.mxu0 %v530_v61 }
  0x20   :  { %v186_v18 = vmul.f32 %v6909_v15, %v185_v17 }
  0x22   :  { %v187_v19 = vadd.f32 %v6909_v15, %v186_v18 }
  0x24   :  { %v7780_v20 = vsel %vm188_vm1, %v6909_v15, %v187_v19 }
  0x26   :  { %154 = vadd.xlane.f32.xlu1 %v153_v13 }
  0x89   :  { %v149_v21 = vpop.xlane.xlu2 %148  ;;  %v143_v22 = vpop.xlane.xlu1 %142 }
  0x8a   :  { %v192_v23 = vmul.f32 %v7780_v20, %v143_v22  ;;  %v137_v24 = vpop.xlane.xlu0 %136  ;;  %v194_v36 = vmul.f32 %v7780_v20, %v149_v21 }
  0x8b   :  { %v190_v25 = vmul.f32 %v7780_v20, %v137_v24 }
  0x8c   :  { %v7784_v26 = vsub.f32 %v98_v1, %v192_v23  ;;  %v7804_v43 = vsub.f32 %v100_v0, %v194_v36 }
  0x8d   :  { %v7786_v27 = vsub.f32 %v96_v2, %v190_v25 }
  0x8e   :  { %v224_v28 = vmul.f32 %v7784_v26, %v7784_v26  ;;  %v226_v51 = vmul.f32 %v7804_v43, %v7804_v43 }
  0x8f   :  { %v222_v29 = vmul.f32 %v7786_v27, %v7786_v27 }
  0x90   :  { %v244_v30 = vsel %vm134_vm0, %v224_v28, 0.0  ;;  %v250_v54 = vsel %vm134_vm0, %v226_v51, 0.0 }
  0x91   :  { %v152_v31 = vpop.xlane.xlu2 %151  ;;  %245 = vadd.xlane.f32.xlu1 %v244_v30  ;;  %v238_v32 = vsel %vm134_vm0, %v222_v29, 0.0  ;;  %v146_v33 = vpop.xlane.xlu1 %145 }
  0x92   :  { %v195_v34 = vmul.f32 %v7780_v20, %v152_v31  ;;  %239 = vadd.xlane.f32.xlu0 %v238_v32  ;;  %v140_v35 = vpop.xlane.xlu0 %139  ;;  %v193_v38 = vmul.f32 %v7780_v20, %v146_v33 }
  0x93   :  { %v191_v37 = vmul.f32 %v7780_v20, %v140_v35  ;;  %v7847_v35 = vld [vmem:[#allocation7] ss:$0 sm:$0xff] }
  0x94   :  { %v7798_v39 = vsub.f32 %v101_v6, %v195_v34  ;;  %v7806_v44 = vsub.f32 %v99_v8, %v193_v38 }
  0x95   :  { %v7800_v41 = vsub.f32 %v97_v7, %v191_v37 }
  0x96   :  { %v227_v42 = vmul.f32 %v7798_v39, %v7798_v39  ;;  %v225_v52 = vmul.f32 %v7806_v44, %v7806_v44 }
  0x97   :  { %v223_v46 = vmul.f32 %v7800_v41, %v7800_v41 }
  0x98   :  { %v253_v47 = vsel %vm134_vm0, %v227_v42, 0.0  ;;  %v247_v55 = vsel %vm134_vm0, %v225_v52, 0.0  ;;  %v7853_v42 = vld [vmem:[#allocation7 + $0x1] ss:$0 sm:$0xff] }
  0x99   :  { %254 = vadd.xlane.f32.xlu1 %v253_v47  ;;  %v241_v48 = vsel %vm134_vm0, %v223_v46, 0.0  ;;  %v155_v49 = vpop.xlane.xlu1 %154 }
  0x9a   :  { %157 = vadd.xlane.f32.xlu0 %v156_v45  ;;  %242 = vadd.xlane.f32.xlu2 %v241_v48  ;;  %v196_v50 = vmul.f32 %v7780_v20, %v155_v49 }
  0x9c   :  { %v7818_v53 = vsub.f32 %v102_v12, %v196_v50 }
  0x9e   :  { %v228_v56 = vmul.f32 %v7818_v53, %v7818_v53 }
  0xa0   :  { %v256_v57 = vsel %vm134_vm0, %v228_v56, 0.0 }
  0xa2   :  { %251 = vadd.xlane.f32.xlu0 %v250_v54  ;;  %248 = vadd.xlane.f32.xlu2 %v247_v55 }
  0xaa   :  { %257 = vadd.xlane.f32.xlu2 %v256_v57 }
 0x104   :  { %v246_v62 = vpop.xlane.xlu1 %245 }
 0x105   :  { %v288_v63 = vmul.f32 %v246_v62, %v7780_v20  ;;  %v240_v0 = vpop.xlane.xlu0 %239 }
 0x106   :  { %v286_v1 = vmul.f32 %v240_v0, %v7780_v20 }
 0x107   :  { %v7827_v2 = vadd.f32 1e-05, %v288_v63 }
 0x108   :  { %v302_v3 = vadd.f32 1e-05, %v286_v1 }
 0x109   :  { %6910 = vrsqrt.f32 %v7827_v2  ;;  %vm344_vm7 = vweird.f32 %v7827_v2 }
 0x10a   :  { %6912 = vrsqrt.f32 %v302_v3  ;;  %vm324_vm3 = vweird.f32 %v302_v3 }
 0x10c   :  { %v255_v16 = vpop.xlane.xlu1 %254 }
 0x10d   :  { %v243_v4 = vpop.xlane.xlu2 %242  ;;  %v158_v5 = vpop.xlane.xlu0 %157  ;;  %v291_v29 = vmul.f32 %v255_v16, %v7780_v20 }
 0x10e   :  { %v287_v6 = vmul.f32 %v243_v4, %v7780_v20  ;;  %v197_v7 = vmul.f32 %v7780_v20, %v158_v5 }
 0x10f   :  { %v7832_v8 = vpop.eup %6910  ;;  %v7850_v38 = vadd.f32 1e-05, %v291_v29 }
 0x110   :  { %v6913_v9 = vpop.eup %6912  ;;  %v303_v10 = vadd.f32 1e-05, %v287_v6  ;;  %v7834_v11 = vsub.f32 %v103_v40, %v197_v7  ;;  %v339_v12 = vmul.f32 %v7832_v8, %v7827_v2  ;;  %vm345_vm8 = vweird.f32 %v7832_v8 }
 0x111   :  { %v319_v13 = vmul.f32 %v6913_v9, %v302_v3  ;;  %vm325_vm2 = vweird.f32 %v6913_v9  ;;  %vm7862_vm10 = vmor %vm344_vm7, %vm345_vm8 }
 0x112   :  { %6914 = vrsqrt.f32 %v303_v10  ;;  %v229_v14 = vmul.f32 %v7834_v11, %v7834_v11  ;;  %v340_v18 = vmul.f32 %v7832_v8, %v339_v12  ;;  %vm326_vm4 = vmor %vm324_vm3, %vm325_vm2  ;;  %vm334_vm5 = vweird.f32 %v303_v10 }
 0x113   :  { %v320_v15 = vmul.f32 %v6913_v9, %v319_v13  ;;  %vm374_vm2 = vweird.f32 %v7850_v38 }
 0x114   :  { %v259_v17 = vsel %vm134_vm0, %v229_v14, 0.0  ;;  %v341_v31 = vmul.f32 0.5, %v340_v18 }
 0x115   :  { %v321_v19 = vmul.f32 0.5, %v320_v15  ;;  %v249_v21 = vpop.xlane.xlu2 %248  ;;  %260 = vadd.xlane.f32.xlu0 %v259_v17  ;;  %v252_v22 = vpop.xlane.xlu0 %251 }
 0x116   :  { %v289_v23 = vmul.f32 %v249_v21, %v7780_v20  ;;  %v290_v24 = vmul.f32 %v252_v22, %v7780_v20  ;;  %v342_v45 = vsub.f32 1.5, %v341_v31 }
 0x117   :  { %v322_v25 = vsub.f32 1.5, %v321_v19 }
 0x118   :  { %v6915_v28 = vpop.eup %6914  ;;  %v305_v30 = vadd.f32 1e-05, %v289_v23  ;;  %v7845_v34 = vadd.f32 1e-05, %v290_v24  ;;  %v343_v54 = vmul.f32 %v7832_v8, %v342_v45 }
 0x119   :  { %v323_v32 = vmul.f32 %v6913_v9, %v322_v25  ;;  %v329_v33 = vmul.f32 %v6915_v28, %v303_v10  ;;  %vm335_vm6 = vweird.f32 %v6915_v28 }
 0x11a   :  { %6916 = vrsqrt.f32 %v305_v30  ;;  %vm336_vm9 = vmor %vm334_vm5, %vm335_vm6  ;;  %v347_v1 = vsel %vm7862_vm10, %v7832_v8, %v343_v54  ;;  %vm354_vm11 = vweird.f32 %v305_v30  ;;  %vm364_vm14 = vweird.f32 %v7845_v34 }
 0x11b   :  { %v330_v36 = vmul.f32 %v6915_v28, %v329_v33  ;;  %6918 = vrsqrt.f32 %v7845_v34  ;;  %v327_v37 = vsel %vm326_vm4, %v6913_v9, %v323_v32  ;;  %v480_v6 = vmul.f32 %v347_v1, %v7784_v26 }
 0x11c   :  { %v478_v40 = vmul.f32 %v327_v37, %v7786_v27  ;;  %6920 = vrsqrt.f32 %v7850_v38 }
 0x11d   :  { %v331_v46 = vmul.f32 0.5, %v330_v36  ;;  %v258_v47 = vpop.xlane.xlu2 %257  ;;  %v498_v8 = vmul.f32 %v7847_v35, %v480_v6 }
 0x11e   :  { %v496_v48 = vmul.f32 %v7847_v35, %v478_v40  ;;  %v292_v27 = vmul.f32 %v258_v47, %v7780_v20 }
 0x11f   :  { %v332_v49 = vsub.f32 1.5, %v331_v46  ;;  %v516_v15 = vadd.f32 %v7853_v42, %v498_v8 }
 0x120   :  { %v6917_v50 = vpop.eup %6916  ;;  %v514_v51 = vadd.f32 %v7853_v42, %v496_v48  ;;  %v308_v61 = vadd.f32 1e-05, %v292_v27 }
 0x121   :  { %v6919_v52 = vpop.eup %6918  ;;  %v333_v55 = vmul.f32 %v6915_v28, %v332_v49  ;;  %v349_v56 = vmul.f32 %v6917_v50, %v305_v30  ;;  %vm355_vm12 = vweird.f32 %v6917_v50 }
 0x122   :  { %v359_v58 = vmul.f32 %v6919_v52, %v7845_v34  ;;  %6391 = vmatmul.msk.f32.vlgmr.msra.gmra.mxu0 %vm134_vm0, %v514_v51  ;;  %v6921_v2 = vpop.eup %6920  ;;  %6922 = vrsqrt.f32 %v308_v61  ;;  %vm356_vm13 = vmor %vm354_vm11, %vm355_vm12  ;;  %vm365_vm15 = vweird.f32 %v6919_v52  ;;  %vm384_vm5 = vweird.f32 %v308_v61 }
 0x123   :  { %v350_v59 = vmul.f32 %v6917_v50, %v349_v56  ;;  %v337_v60 = vsel %vm336_vm9, %v6915_v28, %v333_v55  ;;  %v369_v7 = vmul.f32 %v6921_v2, %v7850_v38  ;;  %vm366_vm1 = vmor %vm364_vm14, %vm365_vm15  ;;  %vm375_vm3 = vweird.f32 %v6921_v2 }
 0x124   :  { %v479_v62 = vmul.f32 %v337_v60, %v7800_v41  ;;  %v360_v0 = vmul.f32 %v6919_v52, %v359_v58  ;;  %vm376_vm4 = vmor %vm374_vm2, %vm375_vm3 }
 0x125   :  { %v351_v63 = vmul.f32 0.5, %v350_v59  ;;  %v370_v10 = vmul.f32 %v6921_v2, %v369_v7 }
 0x126   :  { %v497_v3 = vmul.f32 %v7847_v35, %v479_v62  ;;  %v361_v9 = vmul.f32 0.5, %v360_v0 }
 0x127   :  { %v352_v4 = vsub.f32 1.5, %v351_v63  ;;  %v371_v16 = vmul.f32 0.5, %v370_v10 }
 0x128   :  { %v515_v5 = vadd.f32 %v7853_v42, %v497_v3  ;;  %v362_v12 = vsub.f32 1.5, %v361_v9  ;;  %v6923_v14 = vpop.eup %6922 }
 0x129   :  { %v353_v41 = vmul.f32 %v6917_v50, %v352_v4  ;;  %v379_v18 = vmul.f32 %v6923_v14, %v308_v61  ;;  %v372_v21 = vsub.f32 1.5, %v371_v16  ;;  %vm385_vm6 = vweird.f32 %v6923_v14  ;;  %v6900_v4 = vld [vmem:[#allocation7 + $0x2] ss:$0 sm:$0xff] }
 0x12a   :  { %6392 = vmatmul.msk.f32.gmra.mxu0 %vm134_vm0, %v515_v5  ;;  %v363_v17 = vmul.f32 %v6919_v52, %v362_v12  ;;  %vm386_vm7 = vmor %vm384_vm5, %vm385_vm6  ;;  %vm935_vm6 = vcmask 523264  }
 0x12b   :  { %v357_v13 = vsel %vm356_vm13, %v6917_v50, %v353_v41  ;;  %v380_v22 = vmul.f32 %v6923_v14, %v379_v18  ;;  %v373_v28 = vmul.f32 %v6921_v2, %v372_v21 }
 0x12c   :  { %v481_v26 = vmul.f32 %v357_v13, %v7806_v44  ;;  %v367_v23 = vsel %vm366_vm1, %v6919_v52, %v363_v17 }
 0x12d   :  { %v482_v25 = vmul.f32 %v367_v23, %v7804_v43  ;;  %v381_v44 = vmul.f32 0.5, %v380_v22  ;;  %v377_v31 = vsel %vm376_vm4, %v6921_v2, %v373_v28 }
 0x12e   :  { %v499_v19 = vmul.f32 %v7847_v35, %v481_v26  ;;  %v483_v33 = vmul.f32 %v377_v31, %v7798_v39  ;;  %v112_v39 = vlaneseq }
 0x12f   :  { %v500_v29 = vmul.f32 %v7847_v35, %v482_v25  ;;  %v382_v30 = vsub.f32 1.5, %v381_v44 }
 0x130   :  { %v517_v24 = vadd.f32 %v7853_v42, %v499_v19  ;;  %v501_v43 = vmul.f32 %v7847_v35, %v483_v33  ;;  %v7898_v46 = vand.u32 127, %v112_v39 }
 0x131   :  { %v518_v32 = vadd.f32 %v7853_v42, %v500_v29  ;;  %v383_v34 = vmul.f32 %v6923_v14, %v382_v30 }
 0x132   :  { %6393 = vmatmul.msk.f32.gmra.mxu0 %vm134_vm0, %v516_v15  ;;  %v519_v37 = vadd.f32 %v7853_v42, %v501_v43  ;;  %vm119_vm8 = vcmp.ge.s32.totalorder %v7898_v46, 8  ;;  %vm120_vm9 = vcmp.lt.s32.totalorder %v7898_v46, 16  ;;  %vm124_vm10 = vcmp.ge.s32.totalorder %v7898_v46, 16 }
 0x133   :  { %v387_v36 = vsel %vm386_vm7, %v6923_v14, %v383_v34  ;;  %vm125_vm11 = vcmp.lt.s32.totalorder %v7898_v46, 24  ;;  %vm121_vm12 = vmand %vm119_vm8, %vm120_vm9  ;;  %vm129_vm13 = vcmp.ge.s32.totalorder %v7898_v46, 24  ;;  %vm130_vm14 = vcmp.lt.s32.totalorder %v7898_v46, 32 }
 0x134   :  { %v484_v38 = vmul.f32 %v387_v36, %v7818_v53  ;;  %v7732_v53 = vmov 0.0   ;;  %vm126_vm15 = vmand %vm124_vm10, %vm125_vm11  ;;  %vm115_vm5 = vcmp.lt.s32.totalorder %v7898_v46, 8 }
 0x135   :  { %v7907_v47 = vsel %vm121_vm12, 1.0, %v7732_v53  ;;  %v7910_v48 = vsel %vm126_vm15, 1.0, %v7732_v53  ;;  %vm131_vm1 = vmand %vm129_vm13, %vm130_vm14  ;;  %v7963_v21 = vsel %vm115_vm5, 1.0, %v7732_v53 }
 0x136   :  { %v502_v40 = vmul.f32 %v7847_v35, %v484_v38  ;;  %11328 = vst [vmem:[#allocation12_spill] sm:$0xff] %v7907_v47  ;;  %v7913_v49 = vsel %vm131_vm1, 1.0, %v7732_v53 }
 0x137   :  { %11329 = vst [vmem:[#allocation13_spill] sm:$0xff] %v7910_v48 }
 0x138   :  { %v520_v45 = vadd.f32 %v7853_v42, %v502_v40  ;;  %11330 = vst [vmem:[#allocation14_spill] sm:$0xff] %v7913_v49 }
 0x139   :  { %11331 = vst [vmem:[#allocation15_spill] sm:$0xff] %v7963_v21 }
 0x13a   :  { %6394 = vmatmul.msk.f32.gmra.mxu0 %vm134_vm0, %v517_v24 }
 0x142   :  { %6395 = vmatmul.msk.f32.gmra.mxu0 %vm134_vm0, %v518_v32 }
 0x14a   :  { %6396 = vmatmul.msk.f32.gmra.mxu0 %vm134_vm0, %v519_v37 }
 0x152   :  { %6397 = vmatmul.msk.f32.gmra.mxu0 %vm134_vm0, %v520_v45 }
 0x188   :  { %v261_v50 = vpop.xlane.xlu0 %260 }
 0x189   :  { %v293_v27 = vmul.f32 %v261_v50, %v7780_v20 }
 0x18b   :  { %v309_v51 = vadd.f32 1e-05, %v293_v27 }
 0x18d   :  { %6924 = vrsqrt.f32 %v309_v51  ;;  %vm394_vm3 = vweird.f32 %v309_v51 }
 0x193   :  { %v6925_v52 = vpop.eup %6924 }
 0x194   :  { %v389_v54 = vmul.f32 %v6925_v52, %v309_v51  ;;  %vm395_vm2 = vweird.f32 %v6925_v52 }
 0x195   :  { %vm396_vm4 = vmor %vm394_vm3, %vm395_vm2 }
 0x196   :  { %v390_v55 = vmul.f32 %v6925_v52, %v389_v54 }
 0x198   :  { %v391_v56 = vmul.f32 0.5, %v390_v55 }
 0x19a   :  { %v392_v57 = vsub.f32 1.5, %v391_v56 }
 0x19c   :  { %v393_v58 = vmul.f32 %v6925_v52, %v392_v57 }
 0x19e   :  { %v397_v59 = vsel %vm396_vm4, %v6925_v52, %v393_v58 }
 0x19f   :  { %v601_v60 = vpop.f32.mrf.mxu0  ;;  %v485_v61 = vmul.f32 %v397_v59, %v7834_v11 }
 0x1a0   :  { %v7950_v13 = vadd.f32 %v6900_v4, %v601_v60 }
 0x1a1   :  { %v503_v62 = vmul.f32 %v7847_v35, %v485_v61 }
 0x1a2   :  { %v654_v23 = vmul.f32 %v7963_v21, %v7950_v13  ;;  %v662_v32 = vmul.f32 %v7907_v47, %v7950_v13  ;;  %v670_v46 = vmul.f32 %v7910_v48, %v7950_v13 }
 0x1a3   :  { %v521_v63 = vadd.f32 %v7853_v42, %v503_v62 }
 0x1a5   :  { %6398 = vmatmul.msk.f32.gmra.mxu0 %vm134_vm0, %v521_v63 }
 0x1a7   :  { %v604_v0 = vpop.f32.mrf.mxu0 }
 0x1a8   :  { %v7938_v9 = vadd.f32 %v6900_v4, %v604_v0 }
 0x1aa   :  { %v655_v24 = vmul.f32 %v7963_v21, %v7938_v9  ;;  %v663_v33 = vmul.f32 %v7907_v47, %v7938_v9  ;;  %v671_v27 = vmul.f32 %v7910_v48, %v7938_v9 }
 0x1af   :  { %v607_v1 = vpop.f32.mrf.mxu0 }
 0x1b0   :  { %v7928_v42 = vadd.f32 %v6900_v4, %v607_v1 }
 0x1b2   :  { %v656_v25 = vmul.f32 %v7963_v21, %v7928_v42  ;;  %v664_v34 = vmul.f32 %v7907_v47, %v7928_v42  ;;  %v672_v54 = vmul.f32 %v7910_v48, %v7928_v42 }
 0x1b7   :  { %v610_v2 = vpop.f32.mrf.mxu0 }
 0x1b8   :  { %v7946_v12 = vadd.f32 %v6900_v4, %v610_v2 }
 0x1ba   :  { %v657_v28 = vmul.f32 %v7963_v21, %v7946_v12  ;;  %v665_v43 = vmul.f32 %v7907_v47, %v7946_v12  ;;  %v673_v57 = vmul.f32 %v7910_v48, %v7946_v12  ;;  %v6828_v0 = vpack.i.bf16 %v7928_v42, %v7946_v12 }
 0x1bf   :  { %v613_v3 = vpop.f32.mrf.mxu0 }
 0x1c0   :  { %v7920_v6 = vadd.f32 %v6900_v4, %v613_v3  ;;  %v678_v3 = vmul.f32 %v7913_v49, %v7950_v13 }
 0x1c2   :  { %v658_v44 = vmul.f32 %v7963_v21, %v7920_v6  ;;  %v666_v36 = vmul.f32 %v7907_v47, %v7920_v6  ;;  %v674_v60 = vmul.f32 %v7910_v48, %v7920_v6 }
 0x1c7   :  { %v616_v5 = vpop.f32.mrf.mxu0 }
 0x1c8   :  { %v7922_v7 = vadd.f32 %v6900_v4, %v616_v5  ;;  %v679_v5 = vmul.f32 %v7913_v49, %v7938_v9 }
 0x1ca   :  { %704 = vrot.lane.b32.xlu0 %v7922_v7, %s7733_s2  ;;  %v6823_v11 = vpack.i.bf16 %v7920_v6, %v7922_v7  ;;  %v659_v29 = vmul.f32 %v7963_v21, %v7922_v7  ;;  %v667_v37 = vmul.f32 %v7907_v47, %v7922_v7  ;;  %v675_v63 = vmul.f32 %v7910_v48, %v7922_v7 }
 0x1cf   :  { %v619_v35 = vpop.f32.mrf.mxu0 }
 0x1d0   :  { %v7930_v41 = vadd.f32 %v6900_v4, %v619_v35 }
 0x1d2   :  { %706 = vrot.lane.b32.xlu2 %v7930_v41, %s7733_s2  ;;  %698 = vrot.lane.b32.xlu0 %v7928_v42, %s7733_s2  ;;  %v660_v30 = vmul.f32 %v7963_v21, %v7930_v41  ;;  %v668_v38 = vmul.f32 %v7907_v47, %v7930_v41  ;;  %v676_v1 = vmul.f32 %v7910_v48, %v7930_v41 }
 0x1da   :  { %702 = vrot.lane.b32.xlu2 %v7920_v6, %s7733_s2 }
 0x1e2   :  { %696 = vrot.lane.b32.xlu2 %v7938_v9, %s7733_s2 }
 0x222   :  { %v622_v8 = vpop.f32.mrf.mxu0 }
 0x223   :  { %v7942_v10 = vadd.f32 %v6900_v4, %v622_v8 }
 0x225   :  { %708 = vrot.lane.b32.xlu1 %v7942_v10, %s7733_s2  ;;  %v661_v31 = vmul.f32 %v7963_v21, %v7942_v10  ;;  %v669_v40 = vmul.f32 %v7907_v47, %v7942_v10  ;;  %v677_v2 = vmul.f32 %v7910_v48, %v7942_v10  ;;  %v6818_v4 = vpack.i.bf16 %v7930_v41, %v7942_v10 }
 0x22c   :  { %v707_v15 = vpop.permute.xlu2 %706 }
 0x22d   :  { %700 = vrot.lane.b32.xlu1 %v7946_v12, %s7733_s2 }
 0x234   :  { %v703_v16 = vpop.permute.xlu2 %702 }
 0x235   :  { %694 = vrot.lane.b32.xlu1 %v7950_v13, %s7733_s2 }
 0x23c   :  { %v705_v26 = vpop.permute.xlu0 %704  ;;  %v697_v19 = vpop.permute.xlu2 %696 }
 0x244   :  { %v699_v18 = vpop.permute.xlu0 %698 }
 0x297   :  { %v709_v14 = vpop.permute.xlu1 %708 }
 0x298   :  { %6407 = vmatpush.xpose.msk.msra.mxu1 %vm134_vm0, %v709_v14  ;;  %v681_v14 = vmul.f32 %v7913_v49, %v7946_v12 }
 0x29c   :  { %6408 = vmatpush.xpose.msk.msra.mxu1 %vm134_vm0, %v707_v15 }
 0x29f   :  { %v701_v17 = vpop.permute.xlu1 %700 }
 0x2a0   :  { %6409 = vmatpush.xpose.msk.msra.mxu1 %vm134_vm0, %v705_v26 }
 0x2a4   :  { %6410 = vmatpush.xpose.msk.msra.mxu1 %vm134_vm0, %v703_v16 }
 0x2a7   :  { %v695_v22 = vpop.permute.xlu1 %694 }
 0x2a8   :  { %6411 = vmatpush.xpose.msk.msra.mxu1 %vm134_vm0, %v701_v17  ;;  %v683_v17 = vmul.f32 %v7913_v49, %v7922_v7 }
 0x2ac   :  { %6412 = vmatpush.xpose.msk.msra.mxu1 %vm134_vm0, %v699_v18 }
 0x2b0   :  { %6413 = vmatpush.xpose.msk.msra.mxu1 %vm134_vm0, %v697_v19  ;;  %v684_v19 = vmul.f32 %v7913_v49, %v7930_v41 }
 0x2b4   :  { %6414 = vmatpush.xpose.msk.msra.mxu1 %vm134_vm0, %v695_v22 }
 0x2b7   :  { %6415 = vmatmul.msk.f32.vlgmr.msra.gmra.mxu1 %vm134_vm0, %v654_v23 }
 0x2bf   :  { %6416 = vmatmul.msk.f32.gmra.mxu1 %vm134_vm0, %v655_v24  ;;  %v685_v24 = vmul.f32 %v7913_v49, %v7942_v10  ;;  %v8122_v10 = vld [vmem:[#allocation4 + $0x40] sm:$0xff] }
 0x2c7   :  { %6417 = vmatmul.msk.f32.gmra.mxu1 %vm134_vm0, %v656_v25 }
 0x2cf   :  { %6418 = vmatmul.msk.f32.gmra.mxu1 %vm134_vm0, %v657_v28 }
 0x2d7   :  { %6419 = vmatmul.msk.f32.gmra.mxu1 %vm134_vm0, %v658_v44 }
 0x2df   :  { %6420 = vmatmul.msk.f32.gmra.mxu1 %vm134_vm0, %v659_v29 }
 0x2e7   :  { %6421 = vmatmul.msk.f32.gmra.mxu1 %vm134_vm0, %v660_v30 }
 0x2ef   :  { %6422 = vmatmul.msk.f32.gmra.mxu1 %vm134_vm0, %v661_v31 }
 0x2f7   :  { %6423 = vmatmul.msk.f32.gmra.mxu1 %vm134_vm0, %v662_v32 }
 0x2ff   :  { %6424 = vmatmul.msk.f32.gmra.mxu1 %vm134_vm0, %v663_v33 }
 0x307   :  { %6425 = vmatmul.msk.f32.gmra.mxu1 %vm134_vm0, %v664_v34 }
 0x30f   :  { %6426 = vmatmul.msk.f32.gmra.mxu1 %vm134_vm0, %v665_v43  ;;  %v159_v43 = vsel %vm134_vm0, %v8122_v10, 0.0 }
 0x317   :  { %6427 = vmatmul.msk.f32.gmra.mxu1 %vm134_vm0, %v666_v36 }
 0x31f   :  { %6428 = vmatmul.msk.f32.gmra.mxu1 %vm134_vm0, %v667_v37 }
 0x327   :  { %6429 = vmatmul.msk.f32.gmra.mxu1 %vm134_vm0, %v668_v38 }
 0x32f   :  { %6430 = vmatmul.msk.f32.gmra.mxu1 %vm134_vm0, %v669_v40 }
 0x334   :  { %v8014_v45 = vpop.f32.mrf.mxu1 }
 0x335   :  { %v936_v39 = vsel %vm935_vm6, %v8014_v45, -inf }
 0x336   :  { %937 = vmax.xlane.f32.xlu0 %v936_v39 }
 0x337   :  { %6431 = vmatmul.msk.f32.gmra.mxu1 %vm134_vm0, %v670_v46  ;;  %v6833_v46 = vpack.i.bf16 %v7950_v13, %v7938_v9 }
 0x33c   :  { %v8021_v53 = vpop.f32.mrf.mxu1 }
 0x33d   :  { %v939_v50 = vsel %vm935_vm6, %v8021_v53, -inf }
 0x33e   :  { %940 = vmax.xlane.f32.xlu2 %v939_v50 }
 0x33f   :  { %6432 = vmatmul.msk.f32.gmra.mxu1 %vm134_vm0, %v671_v27 }
 0x344   :  { %v8028_v51 = vpop.f32.mrf.mxu1 }
 0x345   :  { %v942_v52 = vsel %vm935_vm6, %v8028_v51, -inf }
 0x346   :  { %943 = vmax.xlane.f32.xlu1 %v942_v52 }
 0x347   :  { %6433 = vmatmul.msk.f32.gmra.mxu1 %vm134_vm0, %v672_v54 }
 0x34c   :  { %v8035_v55 = vpop.f32.mrf.mxu1 }
 0x34d   :  { %v945_v56 = vsel %vm935_vm6, %v8035_v55, -inf }
 0x34e   :  { %946 = vmax.xlane.f32.xlu0 %v945_v56 }
 0x34f   :  { %6434 = vmatmul.msk.f32.gmra.mxu1 %vm134_vm0, %v673_v57 }
 0x354   :  { %v8042_v58 = vpop.f32.mrf.mxu1 }
 0x355   :  { %v948_v59 = vsel %vm935_vm6, %v8042_v58, -inf }
 0x356   :  { %949 = vmax.xlane.f32.xlu2 %v948_v59 }
 0x357   :  { %6435 = vmatmul.msk.f32.gmra.mxu1 %vm134_vm0, %v674_v60 }
 0x35c   :  { %v8049_v61 = vpop.f32.mrf.mxu1 }
 0x35d   :  { %v951_v62 = vsel %vm935_vm6, %v8049_v61, -inf }
 0x35e   :  { %952 = vmax.xlane.f32.xlu1 %v951_v62 }
 0x35f   :  { %6436 = vmatmul.msk.f32.gmra.mxu1 %vm134_vm0, %v675_v63 }
 0x362   :  { %6829 = vrot.lane.b32.xlu0 %v6828_v0, %s7734_s3 }
 0x364   :  { %v8080_v35 = vpop.f32.mrf.mxu1 }
 0x365   :  { %v954_v8 = vsel %vm935_vm6, %v8080_v35, -inf }
 0x367   :  { %6437 = vmatmul.msk.f32.gmra.mxu1 %vm134_vm0, %v676_v1 }
 0x36c   :  { %v8088_v15 = vpop.f32.mrf.mxu1 }
 0x36d   :  { %v957_v26 = vsel %vm935_vm6, %v8088_v15, -inf }
 0x36e   :  { %6824 = vrot.lane.b32.xlu2 %v6823_v11, %s7734_s3  ;;  %v680_v11 = vmul.f32 %v7913_v49, %v7928_v42  ;;  %v682_v42 = vmul.f32 %v7913_v49, %v7920_v6 }
 0x36f   :  { %6438 = vmatmul.msk.f32.gmra.mxu1 %vm134_vm0, %v677_v2 }
 0x374   :  { %v8095_v16 = vpop.f32.mrf.mxu1 }
 0x375   :  { %v960_v12 = vsel %vm935_vm6, %v8095_v16, -inf }
 0x377   :  { %6439 = vmatmul.msk.f32.gmra.mxu1 %vm134_vm0, %v678_v3  ;;  %6819 = vrot.lane.b32.xlu1 %v6818_v4, %s7734_s3 }
 0x37c   :  { %v8102_v18 = vpop.f32.mrf.mxu1 }
 0x37d   :  { %v963_v6 = vsel %vm935_vm6, %v8102_v18, -inf }
 0x37f   :  { %6440 = vmatmul.msk.f32.gmra.mxu1 %vm134_vm0, %v679_v5 }
 0x384   :  { %v8125_v34 = vpop.f32.mrf.mxu1 }
 0x385   :  { %v966_v27 = vsel %vm935_vm6, %v8125_v34, -inf }
 0x387   :  { %6441 = vmatmul.msk.f32.gmra.mxu1 %vm134_vm0, %v680_v11 }
 0x38c   :  { %955 = vmax.xlane.f32.xlu0 %v954_v8 }
 0x38f   :  { %6442 = vmatmul.msk.f32.gmra.mxu1 %vm134_vm0, %v681_v14 }
 0x394   :  { %958 = vmax.xlane.f32.xlu0 %v957_v26 }
 0x397   :  { %6443 = vmatmul.msk.f32.gmra.mxu1 %vm134_vm0, %v682_v42 }
 0x39f   :  { %6444 = vmatmul.msk.f32.gmra.mxu1 %vm134_vm0, %v683_v17 }
 0x3a1   :  { %961 = vmax.xlane.f32.xlu1 %v960_v12 }
 0x3a7   :  { %6445 = vmatmul.msk.f32.gmra.mxu1 %vm134_vm0, %v684_v19  ;;  %v8169_v19 = vld [vmem:[#allocation4 + $0x48] sm:$0xff] }
 0x3a9   :  { %v938_v22 = vpop.xlane.xlu0 %937  ;;  %964 = vmax.xlane.f32.xlu1 %v963_v6  ;;  %v162_v6 = vsel %vm134_vm0, %v8169_v19, 0.0 }
 0x3aa   :  { %v1032_v7 = vsub.f32 %v8014_v45, %v938_v22 }
 0x3ac   :  { %v1064_v23 = vmul.f32 1.442695, %v1032_v7 }
 0x3ae   :  { %6926 = vpow2.f32 %v1064_v23  ;;  %v8174_v23 = vld [vmem:[#allocation4 + $0x50] sm:$0xff] }
 0x3af   :  { %6446 = vmatmul.msk.f32.gmra.mxu1 %vm134_vm0, %v685_v24 }
 0x3b1   :  { %v941_v25 = vpop.xlane.xlu2 %940 }
 0x3b2   :  { %v1033_v28 = vsub.f32 %v8021_v53, %v941_v25  ;;  %v8134_v53 = vpop.f32.mrf.mxu1  ;;  %v165_v25 = vsel %vm134_vm0, %v8174_v23, 0.0 }
 0x3b3   :  { %v969_v13 = vsel %vm935_vm6, %v8134_v53, -inf }
 0x3b4   :  { %v8114_v41 = vpop.eup %6926  ;;  %v1066_v44 = vmul.f32 1.442695, %v1033_v28  ;;  %v8178_v28 = vld [vmem:[#allocation4 + $0x70] sm:$0xff] }
 0x3b5   :  { %v1128_v29 = vsel %vm935_vm6, %v8114_v41, 0.0 }
 0x3b6   :  { %6928 = vpow2.f32 %v1066_v44  ;;  %1129 = vadd.xlane.f32.xlu2 %v1128_v29  ;;  %v177_v44 = vsel %vm134_vm0, %v8178_v28, 0.0 }
 0x3b9   :  { %v944_v37 = vpop.xlane.xlu1 %943 }
 0x3ba   :  { %v8148_v57 = vpop.f32.mrf.mxu1  ;;  %v1034_v62 = vsub.f32 %v8028_v51, %v944_v37  ;;  %v8191_v37 = vld [vmem:[#allocation4 + $0x60] sm:$0xff] }
 0x3bb   :  { %v972_v60 = vsel %vm935_vm6, %v8148_v57, -inf }
 0x3bc   :  { %v8118_v30 = vpop.eup %6928  ;;  %v1068_v0 = vmul.f32 1.442695, %v1034_v62 }
 0x3bd   :  { %v1131_v31 = vsel %vm935_vm6, %v8118_v30, 0.0 }
 0x3be   :  { %1132 = vadd.xlane.f32.xlu0 %v1131_v31 }
 0x3c1   :  { %v947_v32 = vpop.xlane.xlu0 %946 }
 0x3c2   :  { %v1035_v33 = vsub.f32 %v8035_v55, %v947_v32  ;;  %v8183_v32 = vld [vmem:[#allocation4 + $0x58] sm:$0xff] }
 0x3c4   :  { %v1070_v36 = vmul.f32 1.442695, %v1035_v33 }
 0x3c6   :  { %6930 = vpow2.f32 %v1070_v36  ;;  %160 = vadd.xlane.f32.xlu0 %v159_v43  ;;  %v168_v36 = vsel %vm134_vm0, %v8183_v32, 0.0 }
 0x3c9   :  { %v950_v38 = vpop.xlane.xlu2 %949 }
 0x3ca   :  { %v1036_v40 = vsub.f32 %v8042_v58, %v950_v38 }
 0x3cc   :  { %v8130_v45 = vpop.eup %6930  ;;  %v1072_v39 = vmul.f32 1.442695, %v1036_v40 }
 0x3cd   :  { %v1137_v50 = vsel %vm935_vm6, %v8130_v45, 0.0 }
 0x3ce   :  { %6932 = vpow2.f32 %v1072_v39  ;;  %6834 = vrot.lane.b32.xlu2 %v6833_v46, %s7734_s3  ;;  %1138 = vadd.xlane.f32.xlu1 %v1137_v50  ;;  %v171_v39 = vsel %vm134_vm0, %v8191_v37, 0.0 }
 0x3cf   :  { %967 = vmax.xlane.f32.xlu0 %v966_v27  ;;  %v8200_v27 = vld [vmem:[#allocation4 + $0x68] sm:$0xff] }
 0x3d1   :  { %v953_v52 = vpop.xlane.xlu1 %952  ;;  %v6825_v4 = vpop.permute.xlu2 %6824 }
 0x3d2   :  { %v1037_v54 = vsub.f32 %v8049_v61, %v953_v52  ;;  %v8156_v61 = vpop.f32.mrf.mxu1  ;;  %v6826_v8 = vunpack.i.l.bf16 %v6825_v4  ;;  %v6827_v51 = vunpack.i.h.bf16 %v6825_v4  ;;  %v174_v52 = vsel %vm134_vm0, %v8200_v27, 0.0 }
 0x3d3   :  { %v975_v63 = vsel %vm935_vm6, %v8156_v61, -inf }
 0x3d4   :  { %v8142_v55 = vpop.eup %6932  ;;  %v1074_v56 = vmul.f32 1.442695, %v1037_v54  ;;  %v6830_v14 = vpop.permute.xlu0 %6829 }
 0x3d5   :  { %v1140_v9 = vsel %vm935_vm6, %v8142_v55, 0.0  ;;  %v6831_v26 = vunpack.i.l.bf16 %v6830_v14  ;;  %v6832_v17 = vunpack.i.h.bf16 %v6830_v14 }
 0x3d6   :  { %6934 = vpow2.f32 %v1074_v56  ;;  %1141 = vadd.xlane.f32.xlu1 %v1140_v9 }
 0x3d7   :  { %970 = vmax.xlane.f32.xlu0 %v969_v13  ;;  %6936 = vpow2.f32 %v1068_v0 }
 0x3da   :  { %v8161_v3 = vpop.f32.mrf.mxu1 }
 0x3db   :  { %v978_v11 = vsel %vm935_vm6, %v8161_v3, -inf }
 0x3dc   :  { %v8150_v58 = vpop.eup %6934 }
 0x3dd   :  { %v1143_v59 = vsel %vm935_vm6, %v8150_v58, 0.0  ;;  %v8165_v42 = vpop.eup %6936 }
 0x3de   :  { %1144 = vadd.xlane.f32.xlu1 %v1143_v59  ;;  %v1134_v12 = vsel %vm935_vm6, %v8165_v42, 0.0  ;;  %v8212_v59 = vld [vmem:[#allocation4 + $0x78] sm:$0xff] }
 0x3df   :  { %973 = vmax.xlane.f32.xlu0 %v972_v60  ;;  %v180_v60 = vsel %vm134_vm0, %v8212_v59, 0.0 }
 0x3e2   :  { %v8208_v9 = vpop.f32.mrf.mxu1 }
 0x3e7   :  { %976 = vmax.xlane.f32.xlu0 %v975_v63 }
 0x3e9   :  { %v6820_v1 = vpop.permute.xlu1 %6819 }
 0x3ea   :  { %v6821_v2 = vunpack.i.l.bf16 %v6820_v1  ;;  %v6822_v5 = vunpack.i.h.bf16 %v6820_v1 }
 0x3ec   :  { %1512 = vmatpush.msra.mxu2 %v6821_v2 }
 0x3ee   :  { %1513 = vmatpush.msra.mxu2 %v6822_v5 }
 0x3ef   :  { %979 = vmax.xlane.f32.xlu0 %v978_v11 }
 0x3f0   :  { %1514 = vmatpush.msra.mxu2 %v6826_v8 }
 0x3f2   :  { %1515 = vmatpush.msra.mxu2 %v6827_v51 }
 0x3f4   :  { %1516 = vmatpush.msra.mxu2 %v6831_v26 }
 0x3f6   :  { %1517 = vmatpush.msra.mxu2 %v6832_v17 }
 0x3f7   :  { %1135 = vadd.xlane.f32.xlu2 %v1134_v12  ;;  %178 = vadd.xlane.f32.xlu0 %v177_v44 }
 0x3ff   :  { %163 = vadd.xlane.f32.xlu2 %v162_v6  ;;  %v956_v22 = vpop.xlane.xlu0 %955 }
 0x400   :  { %v1038_v7 = vsub.f32 %v8080_v35, %v956_v22 }
 0x402   :  { %v1076_v24 = vmul.f32 1.442695, %v1038_v7 }
 0x404   :  { %6938 = vpow2.f32 %v1076_v24 }
 0x407   :  { %166 = vadd.xlane.f32.xlu2 %v165_v25  ;;  %v959_v29 = vpop.xlane.xlu0 %958 }
 0x408   :  { %v1039_v31 = vsub.f32 %v8088_v15, %v959_v29 }
 0x40a   :  { %v8185_v35 = vpop.eup %6938  ;;  %v1078_v33 = vmul.f32 1.442695, %v1039_v31 }
 0x40b   :  { %v1146_v43 = vsel %vm935_vm6, %v8185_v35, 0.0 }
 0x40c   :  { %6940 = vpow2.f32 %v1078_v33  ;;  %1147 = vadd.xlane.f32.xlu1 %v1146_v43 }
 0x40f   :  { %169 = vadd.xlane.f32.xlu2 %v168_v36 }
 0x412   :  { %v8193_v38 = vpop.eup %6940 }
 0x413   :  { %v1149_v15 = vsel %vm935_vm6, %v8193_v38, 0.0 }
 0x414   :  { %v962_v40 = vpop.xlane.xlu1 %961  ;;  %1150 = vadd.xlane.f32.xlu1 %v1149_v15 }
 0x415   :  { %v1040_v46 = vsub.f32 %v8095_v16, %v962_v40  ;;  %v981_v16 = vsel %vm935_vm6, %v8208_v9, -inf }
 0x417   :  { %v1080_v50 = vmul.f32 1.442695, %v1040_v46  ;;  %172 = vadd.xlane.f32.xlu2 %v171_v39 }
 0x419   :  { %6942 = vpow2.f32 %v1080_v50 }
 0x41c   :  { %v965_v5 = vpop.xlane.xlu1 %964 }
 0x41d   :  { %v1041_v14 = vsub.f32 %v8102_v18, %v965_v5 }
 0x41f   :  { %v8204_v54 = vpop.eup %6942  ;;  %175 = vadd.xlane.f32.xlu2 %v174_v52  ;;  %v1082_v22 = vmul.f32 1.442695, %v1041_v14 }
 0x420   :  { %v1152_v56 = vsel %vm935_vm6, %v8204_v54, 0.0 }
 0x421   :  { %1153 = vadd.xlane.f32.xlu1 %v1152_v56 }
 0x429   :  { %v1130_v13 = vpop.xlane.xlu2 %1129  ;;  %982 = vmax.xlane.f32.xlu1 %v981_v16 }
 0x42a   :  { %6944 = vrcp.f32 %v1130_v13 }
 0x430   :  { %v6945_v62 = vpop.eup %6944 }
 0x431   :  { %v1256_v63 = vmul.f32 %v6945_v62, %v1130_v13  ;;  %v6835_v0 = vpop.permute.xlu2 %6834  ;;  %v1133_v1 = vpop.xlane.xlu0 %1132  ;;  %181 = vadd.xlane.f32.xlu1 %v180_v60 }
 0x432   :  { %6946 = vrcp.f32 %v1133_v1  ;;  %v6836_v2 = vunpack.i.l.bf16 %v6835_v0  ;;  %v6837_v11 = vunpack.i.h.bf16 %v6835_v0 }
 0x433   :  { %v1288_v4 = vsub.f32 2.0, %v1256_v63  ;;  %6948 = vpow2.f32 %v1082_v22 }
 0x434   :  { %1518 = vmatpush.msra.mxu2 %v6836_v2 }
 0x435   :  { %v1320_v8 = vmul.f32 %v6945_v62, %v1288_v4 }
 0x436   :  { %1519 = vmatpush.msra.mxu2 %v6837_v11 }
 0x437   :  { %v1352_v51 = vmul.f32 %v8114_v41, %v1320_v8  ;;  %v8226_v41 = vpop.f32.mrf.mxu1 }
 0x438   :  { %v6947_v26 = vpop.eup %6946  ;;  %v984_v43 = vsel %vm935_vm6, %v8226_v41, -inf }
 0x439   :  { %v1257_v17 = vmul.f32 %v6947_v26, %v1133_v1  ;;  %6447 = vmatmul.msk.f32.vlgmr.msra.gmra.mxu2 %vm935_vm6, %v1352_v51  ;;  %v161_v12 = vpop.xlane.xlu0 %160  ;;  %v8230_v31 = vpop.eup %6948 }
 0x43a   :  { %v198_v6 = vmul.f32 %v7780_v20, %v161_v12 }
 0x43b   :  { %v1289_v7 = vsub.f32 2.0, %v1257_v17 }
 0x43c   :  { %v8221_v24 = vsub.f32 %v8122_v10, %v198_v6  ;;  %v1155_v10 = vsel %vm935_vm6, %v8230_v31, 0.0 }
 0x43d   :  { %v1321_v25 = vmul.f32 %v6947_v26, %v1289_v7 }
 0x43e   :  { %v230_v44 = vmul.f32 %v8221_v24, %v8221_v24 }
 0x43f   :  { %v1353_v18 = vmul.f32 %v8118_v30, %v1321_v25  ;;  %v8234_v33 = vpop.f32.mrf.mxu1 }
 0x440   :  { %v262_v29 = vsel %vm134_vm0, %v230_v44, 0.0  ;;  %v987_v36 = vsel %vm935_vm6, %v8234_v33, -inf }
 0x441   :  { %6448 = vmatmul.msk.f32.gmra.mxu2 %vm935_vm6, %v1353_v18  ;;  %263 = vadd.xlane.f32.xlu2 %v262_v29  ;;  %v1139_v46 = vpop.xlane.xlu1 %1138 }
 0x442   :  { %v968_v39 = vpop.xlane.xlu0 %967  ;;  %6950 = vrcp.f32 %v1139_v46 }
 0x443   :  { %v1042_v62 = vsub.f32 %v8125_v34, %v968_v39 }
 0x445   :  { %v1084_v8 = vmul.f32 1.442695, %v1042_v62 }
 0x447   :  { %v8238_v30 = vpop.f32.mrf.mxu1 }
 0x448   :  { %v990_v40 = vsel %vm935_vm6, %v8238_v30, -inf  ;;  %v6951_v60 = vpop.eup %6950 }
 0x449   :  { %1156 = vadd.xlane.f32.xlu2 %v1155_v10  ;;  %v1142_v13 = vpop.xlane.xlu1 %1141  ;;  %v1259_v11 = vmul.f32 %v6951_v60, %v1139_v46 }
 0x44a   :  { %v971_v16 = vpop.xlane.xlu0 %970 }
 0x44b   :  { %v1291_v22 = vsub.f32 2.0, %v1259_v11  ;;  %v1043_v7 = vsub.f32 %v8134_v53, %v971_v16 }
 0x44f   :  { %v8242_v15 = vpop.f32.mrf.mxu1 }
 0x450   :  { %v993_v52 = vsel %vm935_vm6, %v8242_v15, -inf }
 0x451   :  { %985 = vmax.xlane.f32.xlu2 %v984_v43  ;;  %v1145_v17 = vpop.xlane.xlu1 %1144 }
 0x452   :  { %v974_v51 = vpop.xlane.xlu0 %973 }
 0x453   :  { %v1044_v62 = vsub.f32 %v8148_v57, %v974_v51 }
 0x457   :  { %v8246_v50 = vpop.f32.mrf.mxu1 }
 0x458   :  { %v996_v63 = vsel %vm935_vm6, %v8246_v50, -inf }
 0x459   :  { %988 = vmax.xlane.f32.xlu2 %v987_v36  ;;  %v1086_v36 = vmul.f32 1.442695, %v1043_v7 }
 0x45a   :  { %v977_v39 = vpop.xlane.xlu0 %976 }
 0x45b   :  { %v1045_v51 = vsub.f32 %v8156_v61, %v977_v39 }
 0x45f   :  { %v8253_v1 = vpop.f32.mrf.mxu1 }
 0x460   :  { %v999_v12 = vsel %vm935_vm6, %v8253_v1, -inf }
 0x461   :  { %991 = vmax.xlane.f32.xlu2 %v990_v40  ;;  %v1323_v40 = vmul.f32 %v6951_v60, %v1291_v22 }
 0x462   :  { %v980_v22 = vpop.xlane.xlu0 %979 }
 0x467   :  { %v8268_v10 = vpop.f32.mrf.mxu1 }
 0x469   :  { %994 = vmax.xlane.f32.xlu2 %v993_v52  ;;  %v1002_v52 = vsel %vm935_vm6, %v8268_v10, -inf }
 0x46a   :  { %v1136_v56 = vpop.xlane.xlu2 %1135 }
 0x46b   :  { %6952 = vrcp.f32 %v1136_v56 }
 0x46c   :  { %6954 = vrcp.f32 %v1142_v13 }
 0x46d   :  { %6956 = vpow2.f32 %v1084_v8 }
 0x46e   :  { %6958 = vrcp.f32 %v1145_v17 }
 0x46f   :  { %6960 = vpow2.f32 %v1086_v36 }
 0x471   :  { %v6953_v0 = vpop.eup %6952  ;;  %997 = vmax.xlane.f32.xlu2 %v996_v63 }
 0x472   :  { %v1258_v2 = vmul.f32 %v6953_v0, %v1136_v56  ;;  %v164_v4 = vpop.xlane.xlu2 %163  ;;  %v6955_v44 = vpop.eup %6954 }
 0x473   :  { %v199_v5 = vmul.f32 %v7780_v20, %v164_v4  ;;  %v1260_v43 = vmul.f32 %v6955_v44, %v1142_v13  ;;  %v1355_v13 = vmul.f32 %v8130_v45, %v1323_v40 }
 0x474   :  { %v1290_v14 = vsub.f32 2.0, %v1258_v2 }
 0x475   :  { %v8257_v26 = vsub.f32 %v8169_v19, %v199_v5  ;;  %v1292_v16 = vsub.f32 2.0, %v1260_v43  ;;  %v1088_v5 = vmul.f32 1.442695, %v1044_v62  ;;  %v1046_v43 = vsub.f32 %v8161_v3, %v980_v22 }
 0x476   :  { %v1322_v34 = vmul.f32 %v6953_v0, %v1290_v14 }
 0x477   :  { %v231_v6 = vmul.f32 %v8257_v26, %v8257_v26  ;;  %v1324_v57 = vmul.f32 %v6955_v44, %v1292_v16  ;;  %v1090_v44 = vmul.f32 1.442695, %v1045_v51  ;;  %v1092_v62 = vmul.f32 1.442695, %v1046_v43 }
 0x478   :  { %v1354_v25 = vmul.f32 %v8165_v42, %v1322_v34  ;;  %v8273_v42 = vpop.eup %6956 }
 0x479   :  { %1000 = vmax.xlane.f32.xlu2 %v999_v12  ;;  %v265_v18 = vsel %vm134_vm0, %v231_v6, 0.0  ;;  %v6959_v60 = vpop.eup %6958  ;;  %v1356_v12 = vmul.f32 %v8142_v55, %v1324_v57 }
 0x47a   :  { %v167_v19 = vpop.xlane.xlu2 %166  ;;  %6449 = vmatmul.msk.f32.gmra.mxu2 %vm935_vm6, %v1354_v25  ;;  %266 = vadd.xlane.f32.xlu0 %v265_v18  ;;  %v1261_v4 = vmul.f32 %v6959_v60, %v1145_v17  ;;  %v8289_v11 = vpop.eup %6960 }
 0x47b   :  { %v200_v29 = vmul.f32 %v7780_v20, %v167_v19  ;;  %v1161_v17 = vsel %vm935_vm6, %v8289_v11, 0.0 }
 0x47c   :  { %v1293_v14 = vsub.f32 2.0, %v1261_v4 }
 0x47d   :  { %v8271_v53 = vsub.f32 %v8174_v23, %v200_v29  ;;  %v1158_v23 = vsel %vm935_vm6, %v8273_v42, 0.0 }
 0x47e   :  { %v1325_v18 = vmul.f32 %v6959_v60, %v1293_v14 }
 0x47f   :  { %v1148_v46 = vpop.xlane.xlu1 %1147  ;;  %v232_v56 = vmul.f32 %v8271_v53, %v8271_v53 }
 0x480   :  { %6962 = vrcp.f32 %v1148_v46  ;;  %v1357_v40 = vmul.f32 %v8150_v58, %v1325_v18 }
 0x481   :  { %1003 = vmax.xlane.f32.xlu2 %v1002_v52  ;;  %v268_v63 = vsel %vm134_vm0, %v232_v56, 0.0  ;;  %6964 = vpow2.f32 %v1088_v5  ;;  %v179_v56 = vpop.xlane.xlu0 %178 }
 0x482   :  { %v170_v0 = vpop.xlane.xlu2 %169  ;;  %6450 = vmatmul.msk.f32.gmra.mxu2 %vm935_vm6, %v1355_v13  ;;  %1159 = vadd.xlane.f32.xlu0 %v1158_v23  ;;  %v204_v58 = vmul.f32 %v7780_v20, %v179_v56 }
 0x483   :  { %v201_v2 = vmul.f32 %v7780_v20, %v170_v0  ;;  %269 = vadd.xlane.f32.xlu1 %v268_v63 }
 0x484   :  { %v8324_v5 = vsub.f32 %v8178_v28, %v204_v58 }
 0x485   :  { %v8287_v45 = vsub.f32 %v8183_v32, %v201_v2 }
 0x486   :  { %v6963_v6 = vpop.eup %6962 }
 0x487   :  { %v233_v8 = vmul.f32 %v8287_v45, %v8287_v45  ;;  %v1151_v34 = vpop.xlane.xlu1 %1150  ;;  %v1262_v61 = vmul.f32 %v6963_v6, %v1148_v46  ;;  %v8303_v19 = vpop.eup %6964 }
 0x488   :  { %6966 = vrcp.f32 %v1151_v34  ;;  %v1164_v52 = vsel %vm935_vm6, %v8303_v19, 0.0 }
 0x489   :  { %v271_v32 = vsel %vm134_vm0, %v233_v8, 0.0  ;;  %6968 = vpow2.f32 %v1090_v44  ;;  %v1294_v36 = vsub.f32 2.0, %v1262_v61 }
 0x48a   :  { %v173_v7 = vpop.xlane.xlu2 %172  ;;  %6451 = vmatmul.msk.f32.gmra.mxu2 %vm935_vm6, %v1356_v12  ;;  %1162 = vadd.xlane.f32.xlu0 %v1161_v17  ;;  %v236_v12 = vmul.f32 %v8324_v5, %v8324_v5 }
 0x48b   :  { %v202_v25 = vmul.f32 %v7780_v20, %v173_v7  ;;  %272 = vadd.xlane.f32.xlu1 %v271_v32  ;;  %v1326_v60 = vmul.f32 %v6963_v6, %v1294_v36 }
 0x48c   :  { %v280_v32 = vsel %vm134_vm0, %v236_v12, 0.0 }
 0x48d   :  { %v8301_v55 = vsub.f32 %v8191_v37, %v202_v25  ;;  %v1358_v4 = vmul.f32 %v8185_v35, %v1326_v60 }
 0x48e   :  { %v6967_v39 = vpop.eup %6966 }
 0x48f   :  { %v234_v29 = vmul.f32 %v8301_v55, %v8301_v55  ;;  %v1263_v13 = vmul.f32 %v6967_v39, %v1151_v34  ;;  %v8318_v63 = vpop.eup %6968 }
 0x490   :  { %v1167_v57 = vsel %vm935_vm6, %v8318_v63, 0.0 }
 0x491   :  { %v274_v46 = vsel %vm134_vm0, %v234_v29, 0.0  ;;  %v1295_v2 = vsub.f32 2.0, %v1263_v13 }
 0x492   :  { %v176_v37 = vpop.xlane.xlu2 %175  ;;  %6452 = vmatmul.msk.f32.gmra.mxu2 %vm935_vm6, %v1357_v40  ;;  %1165 = vadd.xlane.f32.xlu0 %v1164_v52  ;;  %v8353_v40 = vpop.f32.mrf.mxu1 }
 0x493   :  { %v203_v16 = vmul.f32 %v7780_v20, %v176_v37  ;;  %275 = vadd.xlane.f32.xlu1 %v274_v46  ;;  %v1327_v34 = vmul.f32 %v6967_v39, %v1295_v2 }
 0x494   :  { %v1154_v3 = vpop.xlane.xlu1 %1153 }
 0x495   :  { %v8316_v23 = vsub.f32 %v8200_v27, %v203_v16  ;;  %6970 = vrcp.f32 %v1154_v3  ;;  %v1359_v17 = vmul.f32 %v8193_v38, %v1327_v34 }
 0x496   :  { %6972 = vpow2.f32 %v1092_v62 }
 0x497   :  { %v235_v0 = vmul.f32 %v8316_v23, %v8316_v23 }
 0x499   :  { %v277_v8 = vsel %vm134_vm0, %v235_v0, 0.0 }
 0x49a   :  { %6453 = vmatmul.msk.f32.gmra.mxu2 %vm935_vm6, %v1358_v4  ;;  %1168 = vadd.xlane.f32.xlu0 %v1167_v57 }
 0x49b   :  { %v6971_v27 = vpop.eup %6970  ;;  %278 = vadd.xlane.f32.xlu1 %v277_v8 }
 0x49c   :  { %v1264_v14 = vmul.f32 %v6971_v27, %v1154_v3  ;;  %v983_v51 = vpop.xlane.xlu1 %982  ;;  %v8333_v28 = vpop.eup %6972 }
 0x49d   :  { %v1047_v35 = vsub.f32 %v8208_v9, %v983_v51  ;;  %v1170_v7 = vsel %vm935_vm6, %v8333_v28, 0.0 }
 0x49e   :  { %v1296_v22 = vsub.f32 2.0, %v1264_v14 }
 0x49f   :  { %v1094_v6 = vmul.f32 1.442695, %v1047_v35 }
 0x4a0   :  { %v1328_v44 = vmul.f32 %v6971_v27, %v1296_v22  ;;  %v8359_v27 = vpop.f32.mrf.mxu1 }
 0x4a1   :  { %6974 = vpow2.f32 %v1094_v6 }
 0x4a2   :  { %6454 = vmatmul.msk.f32.gmra.mxu2 %vm935_vm6, %v1359_v17  ;;  %1171 = vadd.xlane.f32.xlu0 %v1170_v7  ;;  %v1360_v38 = vmul.f32 %v8204_v54, %v1328_v44 }
 0x4a3   :  { %281 = vadd.xlane.f32.xlu1 %v280_v32  ;;  %v8370_v32 = vld [vmem:[#allocation7 + $0x1] ss:$0 sm:$0xff] }
 0x4a4   :  { %v182_v25 = vpop.xlane.xlu1 %181 }
 0x4a5   :  { %v205_v9 = vmul.f32 %v7780_v20, %v182_v25 }
 0x4a7   :  { %v8341_v61 = vpop.eup %6974  ;;  %v8344_v18 = vsub.f32 %v8212_v59, %v205_v9  ;;  %v1005_v59 = vsel %vm935_vm6, %v8353_v40, -inf }
 0x4a8   :  { %v1173_v29 = vsel %vm935_vm6, %v8341_v61, 0.0 }
 0x4a9   :  { %v237_v43 = vmul.f32 %v8344_v18, %v8344_v18 }
 0x4aa   :  { %6455 = vmatmul.msk.f32.gmra.mxu2 %vm935_vm6, %v1360_v38  ;;  %1174 = vadd.xlane.f32.xlu0 %v1173_v29  ;;  %v1008_v29 = vsel %vm935_vm6, %v8359_v27, -inf }
 0x4ab   :  { %v283_v36 = vsel %vm134_vm0, %v237_v43, 0.0 }
 0x4ac   :  { %284 = vadd.xlane.f32.xlu1 %v283_v36 }
 0x4b4   :  { %v264_v39 = vpop.xlane.xlu2 %263  ;;  %1006 = vmax.xlane.f32.xlu1 %v1005_v59 }
 0x4b5   :  { %v294_v54 = vmul.f32 %v264_v39, %v7780_v20 }
 0x4b7   :  { %v310_v52 = vadd.f32 1e-05, %v294_v54 }
 0x4b9   :  { %6976 = vrsqrt.f32 %v310_v52  ;;  %vm404_vm7 = vweird.f32 %v310_v52 }
 0x4bc   :  { %v1157_v46 = vpop.xlane.xlu2 %1156 }
 0x4bd   :  { %6978 = vrcp.f32 %v1157_v46 }
 0x4bf   :  { %v6977_v56 = vpop.eup %6976 }
 0x4c0   :  { %v399_v37 = vmul.f32 %v6977_v56, %v310_v52  ;;  %vm405_vm8 = vweird.f32 %v6977_v56 }
 0x4c1   :  { %vm406_vm9 = vmor %vm404_vm7, %vm405_vm8 }
 0x4c2   :  { %v400_v16 = vmul.f32 %v6977_v56, %v399_v37 }
 0x4c3   :  { %v6979_v62 = vpop.eup %6978 }
 0x4c4   :  { %v401_v13 = vmul.f32 0.5, %v400_v16  ;;  %v1265_v3 = vmul.f32 %v6979_v62, %v1157_v46  ;;  %v986_v60 = vpop.xlane.xlu2 %985 }
 0x4c5   :  { %v1048_v58 = vsub.f32 %v8226_v41, %v986_v60  ;;  %v8365_v41 = vld [vmem:[#allocation7] ss:$0 sm:$0xff] }
 0x4c6   :  { %v402_v0 = vsub.f32 1.5, %v401_v13  ;;  %v1297_v2 = vsub.f32 2.0, %v1265_v3 }
 0x4c7   :  { %v1096_v4 = vmul.f32 1.442695, %v1048_v58 }
 0x4c8   :  { %v403_v57 = vmul.f32 %v6977_v56, %v402_v0  ;;  %v1329_v8 = vmul.f32 %v6979_v62, %v1297_v2 }
 0x4c9   :  { %6980 = vpow2.f32 %v1096_v4 }
 0x4ca   :  { %v1361_v14 = vmul.f32 %v8230_v31, %v1329_v8  ;;  %v407_v51 = vsel %vm406_vm9, %v6977_v56, %v403_v57 }
 0x4cb   :  { %v486_v34 = vmul.f32 %v407_v51, %v8221_v24  ;;  %v8376_v24 = vpop.f32.mrf.mxu1 }
 0x4cc   :  { %6456 = vmatmul.msk.f32.gmra.mxu2 %vm935_vm6, %v1361_v14  ;;  %v989_v12 = vpop.xlane.xlu2 %988  ;;  %v1011_v52 = vsel %vm935_vm6, %v8376_v24, -inf }
 0x4cd   :  { %v1049_v35 = vsub.f32 %v8234_v33, %v989_v12  ;;  %v504_v6 = vmul.f32 %v8365_v41, %v486_v34 }
 0x4cf   :  { %v8368_v22 = vpop.eup %6980  ;;  %v1098_v17 = vmul.f32 1.442695, %v1049_v35  ;;  %v522_v7 = vadd.f32 %v8370_v32, %v504_v6 }
 0x4d0   :  { %v1176_v31 = vsel %vm935_vm6, %v8368_v22, 0.0 }
 0x4d1   :  { %6982 = vpow2.f32 %v1098_v17  ;;  %6399 = vmatmul.msk.f32.gmra.mxu0 %vm134_vm0, %v522_v7  ;;  %1177 = vadd.xlane.f32.xlu0 %v1176_v31 }
 0x4d3   :  { %v8385_v36 = vpop.f32.mrf.mxu1 }
 0x4d4   :  { %v992_v33 = vpop.xlane.xlu2 %991  ;;  %v1014_v13 = vsel %vm935_vm6, %v8385_v36, -inf }
 0x4d5   :  { %v1050_v25 = vsub.f32 %v8238_v30, %v992_v33 }
 0x4d7   :  { %v8379_v44 = vpop.eup %6982  ;;  %v1100_v9 = vmul.f32 1.442695, %v1050_v25 }
 0x4d8   :  { %v1179_v38 = vsel %vm935_vm6, %v8379_v44, 0.0 }
 0x4d9   :  { %6984 = vpow2.f32 %v1100_v9  ;;  %1180 = vadd.xlane.f32.xlu2 %v1179_v38  ;;  %1009 = vmax.xlane.f32.xlu0 %v1008_v29 }
 0x4db   :  { %v8397_v16 = vpop.f32.mrf.mxu1 }
 0x4dc   :  { %v995_v43 = vpop.xlane.xlu2 %994  ;;  %v1017_v8 = vsel %vm935_vm6, %v8397_v16, -inf }
 0x4dd   :  { %v1051_v59 = vsub.f32 %v8242_v15, %v995_v43 }
 0x4df   :  { %v8388_v39 = vpop.eup %6984  ;;  %v1102_v30 = vmul.f32 1.442695, %v1051_v59 }
 0x4e0   :  { %v1182_v54 = vsel %vm935_vm6, %v8388_v39, 0.0 }
 0x4e1   :  { %6986 = vpow2.f32 %v1102_v30  ;;  %1183 = vadd.xlane.f32.xlu1 %v1182_v54  ;;  %1012 = vmax.xlane.f32.xlu2 %v1011_v52 }
 0x4e3   :  { %v8411_v14 = vpop.f32.mrf.mxu1 }
 0x4e4   :  { %v998_v46 = vpop.xlane.xlu2 %997  ;;  %v1020_v33 = vsel %vm935_vm6, %v8411_v14, -inf }
 0x4e5   :  { %v1052_v56 = vsub.f32 %v8246_v50, %v998_v46 }
 0x4e7   :  { %v8395_v37 = vpop.eup %6986  ;;  %v1104_v15 = vmul.f32 1.442695, %v1052_v56 }
 0x4e8   :  { %v1185_v62 = vsel %vm935_vm6, %v8395_v37, 0.0 }
 0x4e9   :  { %6988 = vpow2.f32 %v1104_v15  ;;  %1186 = vadd.xlane.f32.xlu0 %v1185_v62  ;;  %1015 = vmax.xlane.f32.xlu1 %v1014_v13 }
 0x4ec   :  { %v1001_v3 = vpop.xlane.xlu2 %1000 }
 0x4ed   :  { %v1053_v60 = vsub.f32 %v8253_v1, %v1001_v3  ;;  %v267_v58 = vpop.xlane.xlu0 %266 }
 0x4ee   :  { %v295_v50 = vmul.f32 %v267_v58, %v7780_v20 }
 0x4ef   :  { %v8405_v0 = vpop.eup %6988  ;;  %v1106_v2 = vmul.f32 1.442695, %v1053_v60 }
 0x4f0   :  { %v311_v4 = vadd.f32 1e-05, %v295_v50  ;;  %v1188_v57 = vsel %vm935_vm6, %v8405_v0, 0.0 }
 0x4f1   :  { %6990 = vpow2.f32 %v1106_v2  ;;  %1189 = vadd.xlane.f32.xlu2 %v1188_v57  ;;  %1018 = vmax.xlane.f32.xlu0 %v1017_v8 }
 0x4f2   :  { %6992 = vrsqrt.f32 %v311_v4  ;;  %vm414_vm11 = vweird.f32 %v311_v4 }
 0x4f4   :  { %v1004_v1 = vpop.xlane.xlu2 %1003 }
 0x4f5   :  { %v1054_v51 = vsub.f32 %v8268_v10, %v1004_v1  ;;  %v1160_v34 = vpop.xlane.xlu0 %1159  ;;  %v8421_v10 = vpop.f32.mrf.mxu1 }
 0x4f6   :  { %6994 = vrcp.f32 %v1160_v34  ;;  %v270_v12 = vpop.xlane.xlu1 %269  ;;  %v1023_v13 = vsel %vm935_vm6, %v8421_v10, -inf }
 0x4f7   :  { %v8414_v35 = vpop.eup %6990  ;;  %v1108_v6 = vmul.f32 1.442695, %v1054_v51  ;;  %v296_v17 = vmul.f32 %v270_v12, %v7780_v20 }
 0x4f8   :  { %v6993_v7 = vpop.eup %6992  ;;  %v1191_v31 = vsel %vm935_vm6, %v8414_v35, 0.0 }
 0x4f9   :  { %v409_v25 = vmul.f32 %v6993_v7, %v311_v4  ;;  %6996 = vpow2.f32 %v1108_v6  ;;  %v312_v9 = vadd.f32 1e-05, %v296_v17  ;;  %1192 = vadd.xlane.f32.xlu1 %v1191_v31  ;;  %1021 = vmax.xlane.f32.xlu2 %v1020_v33  ;;  %vm415_vm10 = vweird.f32 %v6993_v7 }
 0x4fa   :  { %vm416_vm12 = vmor %vm414_vm11, %vm415_vm10 }
 0x4fb   :  { %v410_v38 = vmul.f32 %v6993_v7, %v409_v25  ;;  %6998 = vrsqrt.f32 %v312_v9  ;;  %vm424_vm14 = vweird.f32 %v312_v9 }
 0x4fc   :  { %v6995_v29 = vpop.eup %6994 }
 0x4fd   :  { %v411_v43 = vmul.f32 0.5, %v410_v38  ;;  %v1266_v59 = vmul.f32 %v6995_v29, %v1160_v34  ;;  %v1163_v30 = vpop.xlane.xlu0 %1162  ;;  %v8432_v12 = vpop.f32.mrf.mxu1 }
 0x4fe   :  { %7000 = vrcp.f32 %v1163_v30  ;;  %v273_v54 = vpop.xlane.xlu1 %272 }
 0x4ff   :  { %v8423_v52 = vpop.eup %6996  ;;  %v412_v46 = vsub.f32 1.5, %v411_v43  ;;  %v1298_v56 = vsub.f32 2.0, %v1266_v59  ;;  %v297_v15 = vmul.f32 %v273_v54, %v7780_v20 }
 0x500   :  { %v1194_v62 = vsel %vm935_vm6, %v8423_v52, 0.0 }
 0x501   :  { %v6999_v3 = vpop.eup %6998  ;;  %v413_v60 = vmul.f32 %v6993_v7, %v412_v46  ;;  %v313_v58 = vadd.f32 1e-05, %v297_v15  ;;  %1195 = vadd.xlane.f32.xlu0 %v1194_v62  ;;  %1024 = vmax.xlane.f32.xlu1 %v1023_v13  ;;  %v1330_v50 = vmul.f32 %v6995_v29, %v1298_v56 }
 0x502   :  { %v419_v2 = vmul.f32 %v6999_v3, %v312_v9  ;;  %vm425_vm13 = vweird.f32 %v6999_v3 }
 0x503   :  { %7002 = vrsqrt.f32 %v313_v58  ;;  %v1362_v57 = vmul.f32 %v8273_v42, %v1330_v50  ;;  %v417_v8 = vsel %vm416_vm12, %v6993_v7, %v413_v60  ;;  %v1026_v7 = vsel %vm935_vm6, %v8432_v12, -inf  ;;  %vm426_vm15 = vmor %vm424_vm14, %vm425_vm13 }
 0x504   :  { %v7001_v1 = vpop.eup %7000  ;;  %v420_v51 = vmul.f32 %v6999_v3, %v419_v2  ;;  %v487_v34 = vmul.f32 %v417_v8, %v8257_v26  ;;  %vm434_vm2 = vweird.f32 %v313_v58 }
 0x505   :  { %v1267_v6 = vmul.f32 %v7001_v1, %v1163_v30  ;;  %6457 = vmatmul.msk.f32.gmra.mxu2 %vm935_vm6, %v1362_v57  ;;  %v1166_v4 = vpop.xlane.xlu0 %1165 }
 0x506   :  { %v421_v17 = vmul.f32 0.5, %v420_v51  ;;  %7004 = vrcp.f32 %v1166_v4  ;;  %v276_v31 = vpop.xlane.xlu1 %275  ;;  %v505_v33 = vmul.f32 %v8365_v41, %v487_v34 }
 0x507   :  { %v1299_v25 = vsub.f32 2.0, %v1267_v6  ;;  %v298_v38 = vmul.f32 %v276_v31, %v7780_v20 }
 0x508   :  { %v422_v42 = vsub.f32 1.5, %v421_v17  ;;  %v523_v26 = vadd.f32 %v8370_v32, %v505_v33 }
 0x509   :  { %v7003_v29 = vpop.eup %7002  ;;  %v314_v43 = vadd.f32 1e-05, %v298_v38  ;;  %1027 = vmax.xlane.f32.xlu0 %v1026_v7  ;;  %v1331_v59 = vmul.f32 %v7001_v1, %v1299_v25 }
 0x50a   :  { %v423_v30 = vmul.f32 %v6999_v3, %v422_v42  ;;  %v429_v54 = vmul.f32 %v7003_v29, %v313_v58  ;;  %6400 = vmatmul.msk.f32.gmra.mxu0 %vm134_vm0, %v523_v26  ;;  %vm435_vm1 = vweird.f32 %v7003_v29 }
 0x50b   :  { %7006 = vrsqrt.f32 %v314_v43  ;;  %v1363_v46 = vmul.f32 %v8289_v11, %v1331_v59  ;;  %vm436_vm3 = vmor %vm434_vm2, %vm435_vm1  ;;  %vm444_vm5 = vweird.f32 %v314_v43 }
 0x50c   :  { %v7005_v56 = vpop.eup %7004  ;;  %v430_v15 = vmul.f32 %v7003_v29, %v429_v54  ;;  %v427_v62 = vsel %vm426_vm15, %v6999_v3, %v423_v30 }
 0x50d   :  { %v1268_v13 = vmul.f32 %v7005_v56, %v1166_v4  ;;  %6458 = vmatmul.msk.f32.gmra.mxu2 %vm935_vm6, %v1363_v46  ;;  %v1169_v60 = vpop.xlane.xlu0 %1168  ;;  %v488_v50 = vmul.f32 %v427_v62, %v8271_v53 }
 0x50e   :  { %v431_v2 = vmul.f32 0.5, %v430_v15  ;;  %7008 = vrcp.f32 %v1169_v60  ;;  %v279_v57 = vpop.xlane.xlu1 %278 }
 0x50f   :  { %v1300_v9 = vsub.f32 2.0, %v1268_v13  ;;  %v299_v8 = vmul.f32 %v279_v57, %v7780_v20  ;;  %v506_v1 = vmul.f32 %v8365_v41, %v488_v50 }
 0x510   :  { %v432_v51 = vsub.f32 1.5, %v431_v2 }
 0x511   :  { %v7007_v11 = vpop.eup %7006  ;;  %v315_v34 = vadd.f32 1e-05, %v299_v8  ;;  %v524_v3 = vadd.f32 %v8370_v32, %v506_v1  ;;  %v1332_v6 = vmul.f32 %v7005_v56, %v1300_v9 }
 0x512   :  { %v433_v4 = vmul.f32 %v7003_v29, %v432_v51  ;;  %v439_v17 = vmul.f32 %v7007_v11, %v314_v43  ;;  %vm445_vm4 = vweird.f32 %v7007_v11 }
 0x513   :  { %7010 = vrsqrt.f32 %v315_v34  ;;  %6401 = vmatmul.msk.f32.gmra.mxu0 %vm134_vm0, %v524_v3  ;;  %v1364_v53 = vmul.f32 %v8303_v19, %v1332_v6  ;;  %vm446_vm7 = vmor %vm444_vm5, %vm445_vm4  ;;  %vm454_vm9 = vweird.f32 %v315_v34 }
 0x514   :  { %v7009_v31 = vpop.eup %7008  ;;  %v440_v33 = vmul.f32 %v7007_v11, %v439_v17  ;;  %v437_v25 = vsel %vm436_vm3, %v7003_v29, %v433_v4 }
 0x515   :  { %v1269_v38 = vmul.f32 %v7009_v31, %v1169_v60  ;;  %6459 = vmatmul.msk.f32.gmra.mxu2 %vm935_vm6, %v1364_v53  ;;  %v1172_v42 = vpop.xlane.xlu0 %1171  ;;  %v489_v7 = vmul.f32 %v437_v25, %v8287_v45 }
 0x516   :  { %v441_v26 = vmul.f32 0.5, %v440_v33  ;;  %7012 = vrcp.f32 %v1172_v42  ;;  %v282_v59 = vpop.xlane.xlu1 %281 }
 0x517   :  { %v1301_v58 = vsub.f32 2.0, %v1269_v38  ;;  %v300_v30 = vmul.f32 %v282_v59, %v7780_v20  ;;  %v507_v54 = vmul.f32 %v8365_v41, %v489_v7 }
 0x518   :  { %v442_v46 = vsub.f32 1.5, %v441_v26 }
 0x519   :  { %v7011_v19 = vpop.eup %7010  ;;  %v316_v56 = vadd.f32 1e-05, %v300_v30  ;;  %v525_v29 = vadd.f32 %v8370_v32, %v507_v54  ;;  %v1333_v15 = vmul.f32 %v7009_v31, %v1301_v58 }
 0x51a   :  { %v443_v62 = vmul.f32 %v7007_v11, %v442_v46  ;;  %v449_v13 = vmul.f32 %v7011_v19, %v315_v34  ;;  %vm455_vm8 = vweird.f32 %v7011_v19 }
 0x51b   :  { %7014 = vrsqrt.f32 %v316_v56  ;;  %6402 = vmatmul.msk.f32.gmra.mxu0 %vm134_vm0, %v525_v29  ;;  %v1365_v45 = vmul.f32 %v8318_v63, %v1333_v15  ;;  %vm456_vm10 = vmor %vm454_vm9, %vm455_vm8  ;;  %vm464_vm12 = vweird.f32 %v316_v56 }
 0x51c   :  { %v7013_v60 = vpop.eup %7012  ;;  %v450_v50 = vmul.f32 %v7011_v19, %v449_v13  ;;  %v447_v2 = vsel %vm446_vm7, %v7007_v11, %v443_v62 }
 0x51d   :  { %v1270_v57 = vmul.f32 %v7013_v60, %v1172_v42  ;;  %6460 = vmatmul.msk.f32.gmra.mxu2 %vm935_vm6, %v1365_v45  ;;  %v1175_v9 = vpop.xlane.xlu0 %1174  ;;  %v490_v8 = vmul.f32 %v447_v2, %v8301_v55 }
 0x51e   :  { %v451_v1 = vmul.f32 0.5, %v450_v50  ;;  %7016 = vrcp.f32 %v1175_v9 }
 0x51f   :  { %v1302_v51 = vsub.f32 2.0, %v1270_v57  ;;  %v285_v43 = vpop.xlane.xlu1 %284  ;;  %v508_v3 = vmul.f32 %v8365_v41, %v490_v8 }
 0x520   :  { %v452_v6 = vsub.f32 1.5, %v451_v1  ;;  %v301_v4 = vmul.f32 %v285_v43, %v7780_v20  ;;  %v8480_v1 = vpop.f32.mrf.mxu1 }
 0x521   :  { %v7015_v63 = vpop.eup %7014  ;;  %v526_v17 = vadd.f32 %v8370_v32, %v508_v3  ;;  %v1334_v11 = vmul.f32 %v7013_v60, %v1302_v51  ;;  %v1029_v3 = vsel %vm935_vm6, %v8480_v1, -inf }
 0x522   :  { %v453_v53 = vmul.f32 %v7011_v19, %v452_v6  ;;  %v459_v31 = vmul.f32 %v7015_v63, %v316_v56  ;;  %v317_v33 = vadd.f32 1e-05, %v301_v4  ;;  %vm465_vm11 = vweird.f32 %v7015_v63 }
 0x523   :  { %6403 = vmatmul.msk.f32.gmra.mxu0 %vm134_vm0, %v526_v17  ;;  %v1366_v55 = vmul.f32 %v8333_v28, %v1334_v11  ;;  %vm466_vm13 = vmor %vm464_vm12, %vm465_vm11 }
 0x524   :  { %v7017_v25 = vpop.eup %7016  ;;  %v460_v38 = vmul.f32 %v7015_v63, %v459_v31  ;;  %7018 = vrsqrt.f32 %v317_v33  ;;  %v457_v42 = vsel %vm456_vm10, %v7011_v19, %v453_v53  ;;  %vm474_vm15 = vweird.f32 %v317_v33 }
 0x525   :  { %v1271_v7 = vmul.f32 %v7017_v25, %v1175_v9  ;;  %6461 = vmatmul.msk.f32.gmra.mxu2 %vm935_vm6, %v1366_v55  ;;  %v491_v20 = vmul.f32 %v457_v42, %v8316_v23 }
 0x526   :  { %v461_v26 = vmul.f32 0.5, %v460_v38 }
 0x527   :  { %v1303_v59 = vsub.f32 2.0, %v1271_v7  ;;  %v1007_v58 = vpop.xlane.xlu1 %1006  ;;  %v509_v34 = vmul.f32 %v8365_v41, %v491_v20 }
 0x528   :  { %v462_v30 = vsub.f32 1.5, %v461_v26  ;;  %v1055_v54 = vsub.f32 %v8353_v40, %v1007_v58 }
 0x529   :  { %v527_v28 = vadd.f32 %v8370_v32, %v509_v34  ;;  %v1335_v46 = vmul.f32 %v7017_v25, %v1303_v59 }
 0x52a   :  { %v7019_v29 = vpop.eup %7018  ;;  %v463_v15 = vmul.f32 %v7015_v63, %v462_v30  ;;  %v1110_v19 = vmul.f32 1.442695, %v1055_v54 }
 0x52b   :  { %v469_v62 = vmul.f32 %v7019_v29, %v317_v33  ;;  %6404 = vmatmul.msk.f32.gmra.mxu0 %vm134_vm0, %v527_v28  ;;  %v1367_v23 = vmul.f32 %v8341_v61, %v1335_v46  ;;  %vm475_vm14 = vweird.f32 %v7019_v29 }
 0x52c   :  { %7020 = vpow2.f32 %v1110_v19  ;;  %v467_v13 = vsel %vm466_vm13, %v7015_v63, %v463_v15  ;;  %vm476_vm1 = vmor %vm474_vm15, %vm475_vm14 }
 0x52d   :  { %v470_v45 = vmul.f32 %v7019_v29, %v469_v62  ;;  %6462 = vmatmul.msk.f32.gmra.mxu2 %vm935_vm6, %v1367_v23  ;;  %v492_v40 = vmul.f32 %v467_v13, %v8324_v5 }
 0x52f   :  { %v471_v60 = vmul.f32 0.5, %v470_v45  ;;  %v510_v50 = vmul.f32 %v8365_v41, %v492_v40 }
 0x531   :  { %v472_v2 = vsub.f32 1.5, %v471_v60  ;;  %v528_v56 = vadd.f32 %v8370_v32, %v510_v50 }
 0x532   :  { %v8474_v57 = vpop.eup %7020 }
 0x533   :  { %v473_v9 = vmul.f32 %v7019_v29, %v472_v2  ;;  %6405 = vmatmul.msk.f32.gmra.mxu0 %vm134_vm0, %v528_v56  ;;  %v1197_v61 = vsel %vm935_vm6, %v8474_v57, 0.0 }
 0x534   :  { %1198 = vadd.xlane.f32.xlu2 %v1197_v61 }
 0x535   :  { %v477_v8 = vsel %vm476_vm1, %v7019_v29, %v473_v9 }
 0x536   :  { %v493_v5 = vmul.f32 %v477_v8, %v8344_v18 }
 0x538   :  { %v511_v51 = vmul.f32 %v8365_v41, %v493_v5 }
 0x53a   :  { %v529_v43 = vadd.f32 %v8370_v32, %v511_v51 }
 0x53c   :  { %6406 = vmatmul.msk.f32.gmra.mxu0 %vm134_vm0, %v529_v43  ;;  %1030 = vmax.xlane.f32.xlu2 %v1029_v3 }
 0x544   :  { %v1178_v6 = vpop.xlane.xlu0 %1177 }
 0x545   :  { %7022 = vrcp.f32 %v1178_v6 }
 0x54b   :  { %v7023_v4 = vpop.eup %7022 }
 0x54c   :  { %v1272_v63 = vmul.f32 %v7023_v4, %v1178_v6  ;;  %v1181_v17 = vpop.xlane.xlu2 %1180  ;;  %v1010_v11 = vpop.xlane.xlu0 %1009 }
 0x54d   :  { %7024 = vrcp.f32 %v1181_v17  ;;  %v1056_v18 = vsub.f32 %v8359_v27, %v1010_v11 }
 0x54e   :  { %v1304_v53 = vsub.f32 2.0, %v1272_v63 }
 0x54f   :  { %v1112_v31 = vmul.f32 1.442695, %v1056_v18 }
 0x550   :  { %v1336_v41 = vmul.f32 %v7023_v4, %v1304_v53 }
 0x551   :  { %7026 = vpow2.f32 %v1112_v31 }
 0x552   :  { %v1368_v32 = vmul.f32 %v8368_v22, %v1336_v41 }
 0x553   :  { %v7025_v33 = vpop.eup %7024 }
 0x554   :  { %v1273_v55 = vmul.f32 %v7025_v33, %v1181_v17  ;;  %6463 = vmatmul.msk.f32.gmra.mxu2 %vm935_vm6, %v1368_v32  ;;  %v1184_v25 = vpop.xlane.xlu1 %1183  ;;  %v1013_v38 = vpop.xlane.xlu2 %1012 }
 0x555   :  { %7028 = vrcp.f32 %v1184_v25  ;;  %v1057_v42 = vsub.f32 %v8376_v24, %v1013_v38 }
 0x556   :  { %v1305_v7 = vsub.f32 2.0, %v1273_v55 }
 0x557   :  { %v8491_v20 = vpop.eup %7026  ;;  %v1114_v26 = vmul.f32 1.442695, %v1057_v42 }
 0x558   :  { %v1200_v27 = vsel %vm935_vm6, %v8491_v20, 0.0  ;;  %v1337_v59 = vmul.f32 %v7025_v33, %v1305_v7 }
 0x559   :  { %7030 = vpow2.f32 %v1114_v26  ;;  %1201 = vadd.xlane.f32.xlu1 %v1200_v27  ;;  %v8530_v27 = vpop.f32.mrf.mxu0 }
 0x55a   :  { %v1369_v22 = vmul.f32 %v8379_v44, %v1337_v59 }
 0x55b   :  { %v7029_v58 = vpop.eup %7028 }
 0x55c   :  { %v1274_v34 = vmul.f32 %v7029_v58, %v1184_v25  ;;  %6464 = vmatmul.msk.f32.gmra.mxu2 %vm935_vm6, %v1369_v22  ;;  %v1187_v30 = vpop.xlane.xlu0 %1186  ;;  %v1016_v54 = vpop.xlane.xlu1 %1015 }
 0x55d   :  { %7032 = vrcp.f32 %v1187_v30  ;;  %v1058_v24 = vsub.f32 %v8385_v36, %v1016_v54  ;;  %v8524_v25 = vpop.f32.mrf.mxu2 }
 0x55e   :  { %v1306_v28 = vsub.f32 2.0, %v1274_v34 }
 0x55f   :  { %v8498_v46 = vpop.eup %7030  ;;  %v1116_v29 = vmul.f32 1.442695, %v1058_v24 }
 0x560   :  { %v1203_v15 = vsel %vm935_vm6, %v8498_v46, 0.0  ;;  %v1338_v19 = vmul.f32 %v7029_v58, %v1306_v28 }
 0x561   :  { %7034 = vpow2.f32 %v1116_v29  ;;  %1204 = vadd.xlane.f32.xlu0 %v1203_v15 }
 0x562   :  { %v1370_v44 = vmul.f32 %v8388_v39, %v1338_v19  ;;  %v7586_v19 = vld [vmem:[#allocation7 + $0x2] ss:$0 sm:$0xff] }
 0x563   :  { %v7033_v62 = vpop.eup %7032 }
 0x564   :  { %v1275_v23 = vmul.f32 %v7033_v62, %v1187_v30  ;;  %6465 = vmatmul.msk.f32.gmra.mxu2 %vm935_vm6, %v1370_v44  ;;  %v1190_v13 = vpop.xlane.xlu2 %1189  ;;  %v1019_v45 = vpop.xlane.xlu0 %1018 }
 0x565   :  { %7036 = vrcp.f32 %v1190_v13  ;;  %v1059_v36 = vsub.f32 %v8397_v16, %v1019_v45  ;;  %v8536_v34 = vpop.f32.mrf.mxu2 }
 0x566   :  { %v1307_v40 = vsub.f32 2.0, %v1275_v23 }
 0x567   :  { %v8505_v60 = vpop.eup %7034  ;;  %v1118_v50 = vmul.f32 1.442695, %v1059_v36 }
 0x568   :  { %v1206_v2 = vsel %vm935_vm6, %v8505_v60, 0.0  ;;  %v1339_v56 = vmul.f32 %v7033_v62, %v1307_v40 }
 0x569   :  { %7038 = vpow2.f32 %v1118_v50  ;;  %1207 = vadd.xlane.f32.xlu1 %v1206_v2 }
 0x56a   :  { %v1371_v39 = vmul.f32 %v8395_v37, %v1339_v56 }
 0x56b   :  { %v7037_v9 = vpop.eup %7036 }
 0x56c   :  { %v1276_v61 = vmul.f32 %v7037_v9, %v1190_v13  ;;  %6466 = vmatmul.msk.f32.gmra.mxu2 %vm935_vm6, %v1371_v39  ;;  %v1193_v8 = vpop.xlane.xlu1 %1192  ;;  %v1022_v5 = vpop.xlane.xlu2 %1021 }
 0x56d   :  { %7040 = vrcp.f32 %v1193_v8  ;;  %v1060_v16 = vsub.f32 %v8411_v14, %v1022_v5  ;;  %v8542_v24 = vpop.f32.mrf.mxu2 }
 0x56e   :  { %v1308_v51 = vsub.f32 2.0, %v1276_v61 }
 0x56f   :  { %v8512_v43 = vpop.eup %7038  ;;  %v1120_v3 = vmul.f32 1.442695, %v1060_v16 }
 0x570   :  { %v1209_v6 = vsel %vm935_vm6, %v8512_v43, 0.0  ;;  %v1340_v4 = vmul.f32 %v7037_v9, %v1308_v51 }
 0x571   :  { %7042 = vpow2.f32 %v1120_v3  ;;  %1210 = vadd.xlane.f32.xlu2 %v1209_v6 }
 0x572   :  { %v1372_v37 = vmul.f32 %v8405_v0, %v1340_v4 }
 0x573   :  { %v7041_v63 = vpop.eup %7040 }
 0x574   :  { %v1277_v17 = vmul.f32 %v7041_v63, %v1193_v8  ;;  %6467 = vmatmul.msk.f32.gmra.mxu2 %vm935_vm6, %v1372_v37  ;;  %v1196_v11 = vpop.xlane.xlu0 %1195  ;;  %v1025_v18 = vpop.xlane.xlu1 %1024 }
 0x575   :  { %7044 = vrcp.f32 %v1196_v11  ;;  %v1061_v14 = vsub.f32 %v8421_v10, %v1025_v18  ;;  %v8544_v29 = vpop.f32.mrf.mxu2 }
 0x576   :  { %v1309_v53 = vsub.f32 2.0, %v1277_v17 }
 0x577   :  { %v8519_v31 = vpop.eup %7042  ;;  %v1122_v41 = vmul.f32 1.442695, %v1061_v14 }
 0x578   :  { %v1212_v32 = vsel %vm935_vm6, %v8519_v31, 0.0  ;;  %v1341_v33 = vmul.f32 %v7041_v63, %v1309_v53 }
 0x579   :  { %7046 = vpow2.f32 %v1122_v41  ;;  %1213 = vadd.xlane.f32.xlu0 %v1212_v32 }
 0x57a   :  { %v1373_v0 = vmul.f32 %v8414_v35, %v1341_v33 }
 0x57b   :  { %v7045_v55 = vpop.eup %7044 }
 0x57c   :  { %v1278_v38 = vmul.f32 %v7045_v55, %v1196_v11  ;;  %6468 = vmatmul.msk.f32.gmra.mxu2 %vm935_vm6, %v1373_v0  ;;  %v1028_v42 = vpop.xlane.xlu0 %1027 }
 0x57d   :  { %v1062_v10 = vsub.f32 %v8432_v12, %v1028_v42  ;;  %v8552_v13 = vpop.f32.mrf.mxu2 }
 0x57e   :  { %v1310_v7 = vsub.f32 2.0, %v1278_v38 }
 0x57f   :  { %v8528_v26 = vpop.eup %7046  ;;  %v1124_v59 = vmul.f32 1.442695, %v1062_v10 }
 0x580   :  { %v1215_v22 = vsel %vm935_vm6, %v8528_v26, 0.0  ;;  %v1342_v58 = vmul.f32 %v7045_v55, %v1310_v7 }
 0x581   :  { %7048 = vpow2.f32 %v1124_v59  ;;  %1216 = vadd.xlane.f32.xlu1 %v1215_v22 }
 0x582   :  { %v1374_v35 = vmul.f32 %v8423_v52, %v1342_v58 }
 0x584   :  { %6469 = vmatmul.msk.f32.gmra.mxu2 %vm935_vm6, %v1374_v35  ;;  %v8604_v35 = vadd.f32 %v7586_v19, %v8530_v27 }
 0x585   :  { %v8558_v2 = vpop.f32.mrf.mxu2 }
 0x587   :  { %v8538_v30 = vpop.eup %7048  ;;  %v628_v12 = vpop.f32.mrf.mxu0 }
 0x588   :  { %v1218_v54 = vsel %vm935_vm6, %v8538_v30, 0.0  ;;  %v8589_v53 = vadd.f32 %v7586_v19, %v628_v12 }
 0x589   :  { %1219 = vadd.xlane.f32.xlu2 %v1218_v54 }
 0x58d   :  { %v8567_v4 = vpop.f32.mrf.mxu2 }
 0x590   :  { %v631_v28 = vpop.f32.mrf.mxu0 }
 0x591   :  { %v8548_v52 = vadd.f32 %v7586_v19, %v631_v28 }
 0x595   :  { %v8583_v18 = vpop.f32.mrf.mxu2 }
 0x598   :  { %v634_v15 = vpop.f32.mrf.mxu0 }
 0x599   :  { %v8546_v44 = vadd.f32 %v7586_v19, %v634_v15 }
 0x59b   :  { %v6848_v62 = vpack.i.bf16 %v8548_v52, %v8546_v44 }
 0x59d   :  { %v8587_v14 = vpop.f32.mrf.mxu2 }
 0x5a0   :  { %v637_v23 = vpop.f32.mrf.mxu0 }
 0x5a1   :  { %v8554_v40 = vadd.f32 %v7586_v19, %v637_v23 }
 0x5a5   :  { %v8595_v32 = vpop.f32.mrf.mxu2 }
 0x5a7   :  { %v1199_v45 = vpop.xlane.xlu2 %1198 }
 0x5a8   :  { %v640_v36 = vpop.f32.mrf.mxu0  ;;  %7050 = vrcp.f32 %v1199_v45 }
 0x5a9   :  { %v8556_v50 = vadd.f32 %v7586_v19, %v640_v36 }
 0x5ab   :  { %v6843_v56 = vpack.i.bf16 %v8554_v40, %v8556_v50 }
 0x5ad   :  { %v8599_v10 = vpop.f32.mrf.mxu2 }
 0x5ae   :  { %v7051_v39 = vpop.eup %7050 }
 0x5af   :  { %v1279_v9 = vmul.f32 %v7051_v39, %v1199_v45  ;;  %v1031_v61 = vpop.xlane.xlu2 %1030 }
 0x5b0   :  { %v643_v8 = vpop.f32.mrf.mxu0  ;;  %v1063_v5 = vsub.f32 %v8480_v1, %v1031_v61 }
 0x5b1   :  { %v1311_v16 = vsub.f32 2.0, %v1279_v9  ;;  %v8563_v51 = vadd.f32 %v7586_v19, %v643_v8 }
 0x5b2   :  { %v1126_v3 = vmul.f32 1.442695, %v1063_v5 }
 0x5b3   :  { %1791 = vrot.lane.b32.xlu2 %v8563_v51, %s7733_s2  ;;  %v1343_v6 = vmul.f32 %v7051_v39, %v1311_v16 }
 0x5b4   :  { %7052 = vpow2.f32 %v1126_v3 }
 0x5b5   :  { %v1375_v37 = vmul.f32 %v8474_v57, %v1343_v6  ;;  %v8609_v23 = vpop.f32.mrf.mxu2 }
 0x5b7   :  { %6470 = vmatmul.msk.f32.gmra.mxu2 %vm935_vm6, %v1375_v37 }
 0x5b9   :  { %v646_v63 = vpop.f32.mrf.mxu0 }
 0x5ba   :  { %v8571_v17 = vpop.eup %7052  ;;  %v8573_v11 = vadd.f32 %v7586_v19, %v646_v63  ;;  %v652_v63 = vld [vmem:[#allocation6 + $0xf8] sm:$0xff] }
 0x5bb   :  { %1783 = vrot.lane.b32.xlu2 %v8548_v52, %s7733_s2  ;;  %v1221_v1 = vsel %vm935_vm6, %v8571_v17, 0.0  ;;  %1710 = vmatpush.msra.mxu3 %v652_v63 }
 0x5bc   :  { %1793 = vrot.lane.b32.xlu1 %v8573_v11, %s7733_s2  ;;  %1222 = vadd.xlane.f32.xlu0 %v1221_v1  ;;  %v6838_v57 = vpack.i.bf16 %v8563_v51, %v8573_v11 }
 0x5bd   :  { %v8614_v8 = vpop.f32.mrf.mxu2  ;;  %2793 = vmatpush.msrb.mxu2 %v652_v63 }
 0x5c4   :  { %1787 = vrot.lane.b32.xlu1 %v8554_v40, %s7733_s2 }
 0x5cc   :  { %1781 = vrot.lane.b32.xlu1 %v8589_v53, %s7733_s2  ;;  %v1202_v41 = vpop.xlane.xlu1 %1201 }
 0x5cd   :  { %7054 = vrcp.f32 %v1202_v41 }
 0x5d0   :  { %1789 = vrot.lane.b32.xlu0 %v8556_v50, %s7733_s2 }
 0x5d3   :  { %v7055_v33 = vpop.eup %7054 }
 0x5d4   :  { %v1280_v0 = vmul.f32 %v7055_v33, %v1202_v41  ;;  %v1205_v55 = vpop.xlane.xlu0 %1204  ;;  %v8618_v41 = vpop.f32.mrf.mxu2 }
 0x5d5   :  { %7056 = vrcp.f32 %v1205_v55 }
 0x5d6   :  { %v1312_v38 = vsub.f32 2.0, %v1280_v0 }
 0x5d8   :  { %v1344_v42 = vmul.f32 %v7055_v33, %v1312_v38  ;;  %1785 = vrot.lane.b32.xlu0 %v8546_v44, %s7733_s2  ;;  %v650_v33 = vld [vmem:[#allocation6 + $0x58] sm:$0xff] }
 0x5da   :  { %v1376_v7 = vmul.f32 %v8491_v20, %v1344_v42 }
 0x5db   :  { %v7057_v59 = vpop.eup %7056 }
 0x5dc   :  { %v1281_v22 = vmul.f32 %v7057_v59, %v1205_v55  ;;  %6471 = vmatmul.msk.f32.gmra.mxu2 %vm935_vm6, %v1376_v7  ;;  %v1208_v58 = vpop.xlane.xlu1 %1207  ;;  %v649_v55 = vld [vmem:[#allocation6 + $0x8] sm:$0xff] }
 0x5dd   :  { %7058 = vrcp.f32 %v1208_v58 }
 0x5de   :  { %v1313_v12 = vsub.f32 2.0, %v1281_v22 }
 0x5e0   :  { %v1345_v54 = vmul.f32 %v7057_v59, %v1313_v12  ;;  %1779 = vrot.lane.b32.xlu0 %v8604_v35, %s7733_s2 }
 0x5e2   :  { %v1377_v28 = vmul.f32 %v8498_v46, %v1345_v54 }
 0x5e3   :  { %v7059_v15 = vpop.eup %7058 }
 0x5e4   :  { %v1282_v20 = vmul.f32 %v7059_v15, %v1208_v58  ;;  %6472 = vmatmul.msk.f32.gmra.mxu2 %vm935_vm6, %v1377_v28  ;;  %v1211_v45 = vpop.xlane.xlu2 %1210  ;;  %v8622_v58 = vpop.f32.mrf.mxu2 }
 0x5e5   :  { %7060 = vrcp.f32 %v1211_v45 }
 0x5e6   :  { %v1314_v36 = vsub.f32 2.0, %v1282_v20 }
 0x5e8   :  { %v1346_v39 = vmul.f32 %v7059_v15, %v1314_v36 }
 0x5ea   :  { %v1378_v27 = vmul.f32 %v8505_v60, %v1346_v39  ;;  %v651_v60 = vld [vmem:[#allocation6 + $0xa8] sm:$0xff] }
 0x5eb   :  { %v7061_v19 = vpop.eup %7060  ;;  %1711 = vmatpush.msra.mxu3 %v651_v60  ;;  %2794 = vmatpush.msrb.mxu2 %v651_v60 }
 0x5ec   :  { %v1283_v9 = vmul.f32 %v7061_v19, %v1211_v45  ;;  %6473 = vmatmul.msk.f32.gmra.mxu2 %vm935_vm6, %v1378_v27  ;;  %v1214_v61 = vpop.xlane.xlu0 %1213  ;;  %v8627_v45 = vpop.f32.mrf.mxu2 }
 0x5ed   :  { %7062 = vrcp.f32 %v1214_v61  ;;  %1712 = vmatpush.msra.mxu3 %v650_v33  ;;  %2795 = vmatpush.msrb.mxu2 %v650_v33 }
 0x5ee   :  { %v1315_v46 = vsub.f32 2.0, %v1283_v9 }
 0x5ef   :  { %1713 = vmatpush.msra.mxu3 %v649_v55  ;;  %2796 = vmatpush.msrb.mxu2 %v649_v55 }
 0x5f0   :  { %v1347_v5 = vmul.f32 %v7061_v19, %v1315_v46 }
 0x5f2   :  { %v1379_v16 = vmul.f32 %v8512_v43, %v1347_v5 }
 0x5f3   :  { %v7063_v3 = vpop.eup %7062 }
 0x5f4   :  { %v1284_v6 = vmul.f32 %v7063_v3, %v1214_v61  ;;  %v1217_v37 = vpop.xlane.xlu1 %1216  ;;  %6474 = vmatmul.msk.f32.gmra.mxu2 %vm935_vm6, %v1379_v16  ;;  %v1569_v36 = vpop.f32.mrf.mxu2 }
 0x5f5   :  { %7064 = vrcp.f32 %v1217_v37 }
 0x5f6   :  { %v1316_v1 = vsub.f32 2.0, %v1284_v6 }
 0x5f8   :  { %v1348_v0 = vmul.f32 %v7063_v3, %v1316_v1 }
 0x5fa   :  { %v1380_v43 = vmul.f32 %v8519_v31, %v1348_v0 }
 0x5fb   :  { %v7065_v38 = vpop.eup %7064 }
 0x5fc   :  { %v1285_v42 = vmul.f32 %v7065_v38, %v1217_v37  ;;  %6475 = vmatmul.msk.f32.gmra.mxu2 %vm935_vm6, %v1380_v43  ;;  %v1220_v7 = vpop.xlane.xlu2 %1219  ;;  %v1572_v39 = vpop.f32.mrf.mxu2 }
 0x5fd   :  { %7066 = vrcp.f32 %v1220_v7 }
 0x5fe   :  { %v1317_v59 = vsub.f32 2.0, %v1285_v42  ;;  %v1625_v42 = vmul.f32 %v7907_v47, %v8587_v14  ;;  %v1618_v14 = vmul.f32 %v7963_v21, %v8536_v34  ;;  %v1619_v34 = vmul.f32 %v7963_v21, %v8542_v24 }
 0x5ff   :  { %v1620_v24 = vmul.f32 %v7963_v21, %v8544_v29  ;;  %v1621_v29 = vmul.f32 %v7963_v21, %v8552_v13  ;;  %v1622_v13 = vmul.f32 %v7963_v21, %v8558_v2  ;;  %v1623_v2 = vmul.f32 %v7963_v21, %v8567_v4 }
 0x600   :  { %v1349_v22 = vmul.f32 %v7065_v38, %v1317_v59  ;;  %v1739_v38 = vmul.f32 %v7963_v21, %v8604_v35  ;;  %v1633_v59 = vmul.f32 %v7910_v48, %v1569_v36  ;;  %v1632_v4 = vmul.f32 %v7907_v47, %v8627_v45 }
 0x601   :  { %v1747_v45 = vmul.f32 %v7907_v47, %v8604_v35 }
 0x602   :  { %v1381_v12 = vmul.f32 %v8528_v26, %v1349_v22 }
 0x603   :  { %v7067_v54 = vpop.eup %7066 }
 0x604   :  { %v1286_v28 = vmul.f32 %v7067_v54, %v1220_v7  ;;  %6476 = vmatmul.msk.f32.gmra.mxu2 %vm935_vm6, %v1381_v12  ;;  %v8630_v27 = vpop.f32.mrf.mxu2  ;;  %v1617_v7 = vmul.f32 %v7963_v21, %v8524_v25  ;;  %v1634_v25 = vmul.f32 %v7910_v48, %v1572_v39 }
 0x605   :  { %v1635_v39 = vmul.f32 %v7910_v48, %v8630_v27 }
 0x606   :  { %v1318_v31 = vsub.f32 2.0, %v1286_v28  ;;  %v1649_v22 = vadd.f32 %v1625_v42, %v1617_v7  ;;  %v1743_v42 = vmul.f32 %v7963_v21, %v8554_v40 }
 0x608   :  { %v1350_v15 = vmul.f32 %v7067_v54, %v1318_v31  ;;  %v1657_v54 = vadd.f32 %v1649_v22, %v1633_v59  ;;  %v1740_v31 = vmul.f32 %v7963_v21, %v8589_v53 }
 0x60a   :  { %v1382_v20 = vmul.f32 %v8538_v30, %v1350_v15  ;;  %v1626_v15 = vmul.f32 %v7907_v47, %v8595_v32  ;;  %v1627_v32 = vmul.f32 %v7907_v47, %v8599_v10  ;;  %v1628_v10 = vmul.f32 %v7907_v47, %v8609_v23 }
 0x60b   :  { %v1629_v23 = vmul.f32 %v7907_v47, %v8614_v8  ;;  %v1630_v8 = vmul.f32 %v7907_v47, %v8618_v41  ;;  %v1631_v41 = vmul.f32 %v7907_v47, %v8622_v58 }
 0x60c   :  { %6477 = vmatmul.msk.f32.gmra.mxu2 %vm935_vm6, %v1382_v20  ;;  %v8634_v9 = vpop.f32.mrf.mxu2  ;;  %v1650_v36 = vadd.f32 %v1626_v15, %v1618_v14 }
 0x60d   :  { %v1792_v61 = vpop.permute.xlu2 %1791  ;;  %v1636_v27 = vmul.f32 %v7910_v48, %v8634_v9  ;;  %v1653_v59 = vadd.f32 %v1629_v23, %v1621_v29  ;;  %v1654_v15 = vadd.f32 %v1630_v8, %v1622_v13  ;;  %v1751_v29 = vmul.f32 %v7907_v47, %v8554_v40 }
 0x614   :  { %v8638_v16 = vpop.f32.mrf.mxu2 }
 0x615   :  { %v1637_v9 = vmul.f32 %v7910_v48, %v8638_v16 }
 0x61c   :  { %v8644_v63 = vpop.f32.mrf.mxu2 }
 0x61d   :  { %v1638_v16 = vmul.f32 %v7910_v48, %v8644_v63 }
 0x61f   :  { %v1662_v14 = vadd.f32 %v1654_v15, %v1638_v16 }
 0x624   :  { %v8650_v33 = vpop.f32.mrf.mxu2 }
 0x625   :  { %v1639_v63 = vmul.f32 %v7910_v48, %v8650_v33  ;;  %v1624_v33 = vmul.f32 %v7963_v21, %v8583_v18  ;;  %v8752_v18 = vld [vmem:[#allocation6 + $0xb0] sm:$0xff] }
 0x62e   :  { %v1794_v19 = vpop.permute.xlu1 %1793 }
 0x62f   :  { %6487 = vmatpush.xpose.msk.msrb.mxu1 %vm134_vm0, %v1794_v19  ;;  %6793 = vmatpush.xpose.msk.msrb.mxu3 %vm134_vm0, %v1794_v19  ;;  %v1223_v26 = vpop.xlane.xlu0 %1222 }
 0x630   :  { %7068 = vrcp.f32 %v1223_v26 }
 0x633   :  { %6488 = vmatpush.xpose.msk.msrb.mxu1 %vm134_vm0, %v1792_v61  ;;  %6794 = vmatpush.xpose.msk.msrb.mxu3 %vm134_vm0, %v1792_v61 }
 0x636   :  { %v7069_v30 = vpop.eup %7068  ;;  %v1788_v60 = vpop.permute.xlu1 %1787 }
 0x637   :  { %v1287_v46 = vmul.f32 %v7069_v30, %v1223_v26  ;;  %v1658_v26 = vadd.f32 %v1650_v36, %v1634_v25  ;;  %v1745_v36 = vmul.f32 %v7963_v21, %v8563_v51 }
 0x639   :  { %v1319_v5 = vsub.f32 2.0, %v1287_v46 }
 0x63a   :  { %v8656_v43 = vpop.f32.mrf.mxu2 }
 0x63b   :  { %v1351_v3 = vmul.f32 %v7069_v30, %v1319_v5  ;;  %v1741_v30 = vmul.f32 %v7963_v21, %v8548_v52  ;;  %v1651_v5 = vadd.f32 %v1627_v32, %v1619_v34  ;;  %v1640_v34 = vmul.f32 %v7910_v48, %v8656_v43  ;;  %v8755_v43 = vld [vmem:[#allocation6 + $0x60] sm:$0xff] }
 0x63d   :  { %v1383_v6 = vmul.f32 %v8571_v17, %v1351_v3  ;;  %v1784_v17 = vpop.permute.xlu2 %1783 }
 0x63e   :  { %v1782_v0 = vpop.permute.xlu1 %1781 }
 0x63f   :  { %6478 = vmatmul.msk.f32.gmra.mxu2 %vm935_vm6, %v1383_v6  ;;  %v1659_v6 = vadd.f32 %v1651_v5, %v1635_v39  ;;  %v1656_v39 = vadd.f32 %v1632_v4, %v1624_v33  ;;  %v7590_v33 = vld [vmem:[#allocation4 + $0x20] sm:$0xff] }
 0x642   :  { %v1790_v37 = vpop.permute.xlu0 %1789 }
 0x643   :  { %6489 = vmatpush.xpose.msk.msrb.mxu1 %vm134_vm0, %v1790_v37  ;;  %6795 = vmatpush.xpose.msk.msrb.mxu3 %vm134_vm0, %v1790_v37 }
 0x647   :  { %6490 = vmatpush.xpose.msk.msrb.mxu1 %vm134_vm0, %v1788_v60  ;;  %6796 = vmatpush.xpose.msk.msrb.mxu3 %vm134_vm0, %v1788_v60  ;;  %v1742_v60 = vmul.f32 %v7963_v21, %v8546_v44 }
 0x64a   :  { %v1786_v1 = vpop.permute.xlu0 %1785 }
 0x64b   :  { %6491 = vmatpush.xpose.msk.msrb.mxu1 %vm134_vm0, %v1786_v1  ;;  %6797 = vmatpush.xpose.msk.msrb.mxu3 %vm134_vm0, %v1786_v1 }
 0x64f   :  { %6492 = vmatpush.xpose.msk.msrb.mxu1 %vm134_vm0, %v1784_v17  ;;  %6798 = vmatpush.xpose.msk.msrb.mxu3 %vm134_vm0, %v1784_v17  ;;  %v1652_v17 = vadd.f32 %v1628_v10, %v1620_v24  ;;  %v8758_v10 = vld [vmem:[#allocation6 + $0x10] sm:$0xff] }
 0x652   :  { %v1780_v55 = vpop.permute.xlu0 %1779 }
 0x653   :  { %6493 = vmatpush.xpose.msk.msrb.mxu1 %vm134_vm0, %v1782_v0  ;;  %6799 = vmatpush.xpose.msk.msrb.mxu3 %vm134_vm0, %v1782_v0 }
 0x657   :  { %6494 = vmatpush.xpose.msk.msrb.mxu1 %vm134_vm0, %v1780_v55  ;;  %6800 = vmatpush.xpose.msk.msrb.mxu3 %vm134_vm0, %v1780_v55  ;;  %v1660_v55 = vadd.f32 %v1652_v17, %v1636_v27  ;;  %v1749_v17 = vmul.f32 %v7907_v47, %v8548_v52 }
 0x65a   :  { %6495 = vmatmul.msk.f32.vlgmr.msrb.gmra.mxu1 %vm134_vm0, %v1739_v38 }
 0x65f   :  { %v1593_v12 = vpop.f32.mrf.mxu2 }
 0x660   :  { %v1641_v28 = vmul.f32 %v7913_v49, %v1593_v12  ;;  %v1661_v12 = vadd.f32 %v1653_v59, %v1637_v9  ;;  %v8786_v9 = vld [vmem:[#allocation7 + $0x3] ss:$0 sm:$0xff] }
 0x662   :  { %v1665_v20 = vadd.f32 %v1657_v54, %v1641_v28  ;;  %6496 = vmatmul.msk.f32.gmra.mxu1 %vm134_vm0, %v1740_v31  ;;  %v1744_v28 = vmul.f32 %v7963_v21, %v8556_v50 }
 0x664   :  { %6479 = vmatmul.msk.f32.vlgmr.msra.gmra.mxu3 %vm134_vm0, %v1665_v20 }
 0x667   :  { %v1596_v19 = vpop.f32.mrf.mxu2 }
 0x668   :  { %v1642_v61 = vmul.f32 %v7913_v49, %v1596_v19 }
 0x66a   :  { %v1666_v46 = vadd.f32 %v1658_v26, %v1642_v61  ;;  %6497 = vmatmul.msk.f32.gmra.mxu1 %vm134_vm0, %v1741_v30  ;;  %v1655_v26 = vadd.f32 %v1631_v41, %v1623_v2 }
 0x66c   :  { %6480 = vmatmul.msk.f32.gmra.mxu3 %vm134_vm0, %v1666_v46  ;;  %v1663_v30 = vadd.f32 %v1655_v26, %v1639_v63  ;;  %v1746_v46 = vmul.f32 %v7963_v21, %v8573_v11  ;;  %v7589_v26 = vld [vmem:[#allocation4 + $0x18] sm:$0xff] }
 0x66f   :  { %v1599_v3 = vpop.f32.mrf.mxu2 }
 0x670   :  { %v1643_v37 = vmul.f32 %v7913_v49, %v1599_v3  ;;  %v1664_v3 = vadd.f32 %v1656_v39, %v1640_v34  ;;  %v1755_v39 = vmul.f32 %v7910_v48, %v8604_v35 }
 0x672   :  { %v1667_v1 = vadd.f32 %v1659_v6, %v1643_v37  ;;  %6498 = vmatmul.msk.f32.gmra.mxu1 %vm134_vm0, %v1742_v60  ;;  %v8746_v60 = vld [vmem:[#allocation6 + $0x100] sm:$0xff] }
 0x673   :  { %6801 = vmatpush.msra.mxu1 %v8746_v60 }
 0x674   :  { %6481 = vmatmul.msk.f32.gmra.mxu3 %vm134_vm0, %v1667_v1  ;;  %v1748_v1 = vmul.f32 %v7907_v47, %v8589_v53 }
 0x675   :  { %6802 = vmatpush.msra.mxu1 %v8752_v18 }
 0x677   :  { %v1602_v0 = vpop.f32.mrf.mxu2  ;;  %6803 = vmatpush.msra.mxu1 %v8755_v43 }
 0x678   :  { %v1644_v38 = vmul.f32 %v7913_v49, %v1602_v0 }
 0x679   :  { %6804 = vmatpush.msra.mxu1 %v8758_v10 }
 0x67a   :  { %v1668_v7 = vadd.f32 %v1660_v55, %v1644_v38  ;;  %6499 = vmatmul.msk.f32.gmra.mxu1 %vm134_vm0, %v1743_v42  ;;  %v1750_v38 = vmul.f32 %v7907_v47, %v8546_v44 }
 0x67c   :  { %6482 = vmatmul.msk.f32.gmra.mxu3 %vm134_vm0, %v1668_v7 }
 0x67f   :  { %v1605_v22 = vpop.f32.mrf.mxu2 }
 0x680   :  { %v1645_v54 = vmul.f32 %v7913_v49, %v1605_v22 }
 0x682   :  { %v1669_v31 = vadd.f32 %v1661_v12, %v1645_v54  ;;  %6500 = vmatmul.msk.f32.gmra.mxu1 %vm134_vm0, %v1744_v28  ;;  %v7587_v28 = vld [vmem:[#allocation4 + $0x8] sm:$0xff] }
 0x684   :  { %6483 = vmatmul.msk.f32.gmra.mxu3 %vm134_vm0, %v1669_v31  ;;  %v1752_v31 = vmul.f32 %v7907_v47, %v8556_v50 }
 0x687   :  { %v1608_v20 = vpop.f32.mrf.mxu2 }
 0x688   :  { %v1646_v25 = vmul.f32 %v7913_v49, %v1608_v20 }
 0x68a   :  { %v1670_v19 = vadd.f32 %v1662_v14, %v1646_v25  ;;  %6501 = vmatmul.msk.f32.gmra.mxu1 %vm134_vm0, %v1745_v36  ;;  %v7588_v14 = vld [vmem:[#allocation4 + $0x10] sm:$0xff]  ;;  %v1753_v36 = vmul.f32 %v7907_v47, %v8563_v51 }
 0x68c   :  { %6484 = vmatmul.msk.f32.gmra.mxu3 %vm134_vm0, %v1670_v19 }
 0x68f   :  { %v1611_v61 = vpop.f32.mrf.mxu2 }
 0x690   :  { %v1647_v32 = vmul.f32 %v7913_v49, %v1611_v61 }
 0x692   :  { %v1671_v58 = vadd.f32 %v1663_v30, %v1647_v32  ;;  %6502 = vmatmul.msk.f32.gmra.mxu1 %vm134_vm0, %v1746_v46  ;;  %v1754_v30 = vmul.f32 %v7907_v47, %v8573_v11 }
 0x694   :  { %6485 = vmatmul.msk.f32.gmra.mxu3 %vm134_vm0, %v1671_v58 }
 0x6c2   :  { %v1614_v5 = vpop.f32.mrf.mxu2 }
 0x6c3   :  { %v1648_v6 = vmul.f32 %v7913_v49, %v1614_v5 }
 0x6c5   :  { %v1672_v37 = vadd.f32 %v1664_v3, %v1648_v6 }
 0x6c7   :  { %6486 = vmatmul.msk.f32.gmra.mxu3 %vm134_vm0, %v1672_v37 }
 0x6cf   :  { %6503 = vmatmul.msk.f32.vlgmr.msrb.gmra.mxu3 %vm134_vm0, %v1747_v45  ;;  %v7591_v45 = vld [vmem:[#allocation4 + $0x28] sm:$0xff] }
 0x6d7   :  { %v8763_v24 = vpop.f32.mrf.mxu1  ;;  %6504 = vmatmul.msk.f32.gmra.mxu3 %vm134_vm0, %v1748_v1 }
 0x6d8   :  { %v2020_v27 = vsel %vm935_vm6, %v8763_v24, -inf }
 0x6d9   :  { %2021 = vmax.xlane.f32.xlu2 %v2020_v27  ;;  %v1756_v27 = vmul.f32 %v7910_v48, %v8589_v53 }
 0x6df   :  { %v8770_v0 = vpop.f32.mrf.mxu1  ;;  %6505 = vmatmul.msk.f32.gmra.mxu3 %vm134_vm0, %v1749_v17 }
 0x6e0   :  { %v2023_v55 = vsel %vm935_vm6, %v8770_v0, -inf }
 0x6e1   :  { %2024 = vmax.xlane.f32.xlu1 %v2023_v55 }
 0x6e7   :  { %v8777_v42 = vpop.f32.mrf.mxu3  ;;  %v8779_v23 = vpop.f32.mrf.mxu1  ;;  %6506 = vmatmul.msk.f32.gmra.mxu3 %vm134_vm0, %v1750_v38  ;;  %v7592_v38 = vld [vmem:[#allocation4 + $0x30] sm:$0xff] }
 0x6e8   :  { %v2026_v7 = vsel %vm935_vm6, %v8779_v23, -inf }
 0x6e9   :  { %2027 = vmax.xlane.f32.xlu0 %v2026_v7 }
 0x6ef   :  { %v1718_v59 = vpop.f32.mrf.mxu3  ;;  %v8788_v22 = vpop.f32.mrf.mxu1  ;;  %6507 = vmatmul.msk.f32.gmra.mxu3 %vm134_vm0, %v1751_v29  ;;  %v1759_v29 = vmul.f32 %v7910_v48, %v8554_v40 }
 0x6f0   :  { %v1719_v12 = vadd.f32 %v8786_v9, %v1718_v59  ;;  %v2029_v54 = vsel %vm935_vm6, %v8788_v22, -inf  ;;  %v1760_v59 = vmul.f32 %v7910_v48, %v8556_v50 }
 0x6f1   :  { %2030 = vmax.xlane.f32.xlu2 %v2029_v54  ;;  %v1762_v54 = vmul.f32 %v7910_v48, %v8573_v11 }
 0x6f2   :  { %v8794_v8 = vadd.f32 %v7587_v28, %v1719_v12  ;;  %v1761_v12 = vmul.f32 %v7910_v48, %v8563_v51 }
 0x6f4   :  { %6568 = vmatmul.msk.f32.vlgmr.msra.gmra.mxu1 %vm134_vm0, %v8794_v8 }
 0x6f7   :  { %v1721_v13 = vpop.f32.mrf.mxu3  ;;  %v8800_v16 = vpop.f32.mrf.mxu1  ;;  %6508 = vmatmul.msk.f32.gmra.mxu3 %vm134_vm0, %v1752_v31 }
 0x6f8   :  { %v1722_v15 = vadd.f32 %v8786_v9, %v1721_v13  ;;  %v2032_v20 = vsel %vm935_vm6, %v8800_v16, -inf }
 0x6f9   :  { %2033 = vmax.xlane.f32.xlu1 %v2032_v20 }
 0x6fa   :  { %v8806_v25 = vadd.f32 %v7588_v14, %v1722_v15  ;;  %v7593_v15 = vld [vmem:[#allocation4 + $0x38] sm:$0xff] }
 0x6fc   :  { %6569 = vmatmul.msk.f32.gmra.mxu1 %vm134_vm0, %v8806_v25 }
 0x6ff   :  { %v1724_v41 = vpop.f32.mrf.mxu3  ;;  %v8812_v19 = vpop.f32.mrf.mxu1  ;;  %6509 = vmatmul.msk.f32.gmra.mxu3 %vm134_vm0, %v1753_v36  ;;  %v1763_v36 = vmul.f32 %v7913_v49, %v8604_v35 }
 0x700   :  { %v1725_v2 = vadd.f32 %v8786_v9, %v1724_v41  ;;  %v2035_v63 = vsel %vm935_vm6, %v8812_v19, -inf }
 0x701   :  { %2036 = vmax.xlane.f32.xlu0 %v2035_v63 }
 0x702   :  { %v8818_v61 = vadd.f32 %v7589_v26, %v1725_v2 }
 0x704   :  { %6570 = vmatmul.msk.f32.gmra.mxu1 %vm134_vm0, %v8818_v61 }
 0x707   :  { %v1727_v32 = vpop.f32.mrf.mxu3  ;;  %v8824_v46 = vpop.f32.mrf.mxu1  ;;  %6510 = vmatmul.msk.f32.gmra.mxu3 %vm134_vm0, %v1754_v30 }
 0x708   :  { %v1728_v58 = vadd.f32 %v8786_v9, %v1727_v32  ;;  %v2038_v4 = vsel %vm935_vm6, %v8824_v46, -inf }
 0x709   :  { %2039 = vmax.xlane.f32.xlu2 %v2038_v4 }
 0x70a   :  { %v8830_v34 = vadd.f32 %v7590_v33, %v1728_v58  ;;  %v1765_v33 = vmul.f32 %v7913_v49, %v8548_v52 }
 0x70c   :  { %6571 = vmatmul.msk.f32.gmra.mxu1 %vm134_vm0, %v8830_v34 }
 0x70f   :  { %v1730_v5 = vpop.f32.mrf.mxu3  ;;  %v8836_v3 = vpop.f32.mrf.mxu1  ;;  %6511 = vmatmul.msk.f32.gmra.mxu3 %vm134_vm0, %v1755_v39 }
 0x710   :  { %v1731_v6 = vadd.f32 %v8786_v9, %v1730_v5  ;;  %v2041_v37 = vsel %vm935_vm6, %v8836_v3, -inf }
 0x711   :  { %2042 = vmax.xlane.f32.xlu2 %v2041_v37 }
 0x712   :  { %v8842_v1 = vadd.f32 %v7591_v45, %v1731_v6  ;;  %6844 = vrot.lane.b32.xlu1 %v6843_v56, %s7734_s3  ;;  %v1757_v56 = vmul.f32 %v7910_v48, %v8548_v52  ;;  %v1766_v45 = vmul.f32 %v7913_v49, %v8546_v44 }
 0x714   :  { %6572 = vmatmul.msk.f32.gmra.mxu1 %vm134_vm0, %v8842_v1 }
 0x715   :  { %6839 = vrot.lane.b32.xlu0 %v6838_v57, %s7734_s3  ;;  %v1758_v57 = vmul.f32 %v7910_v48, %v8546_v44  ;;  %v1770_v44 = vmul.f32 %v7913_v49, %v8573_v11 }
 0x717   :  { %v1733_v17 = vpop.f32.mrf.mxu3  ;;  %6512 = vmatmul.msk.f32.gmra.mxu3 %vm134_vm0, %v1756_v27 }
 0x718   :  { %v1734_v55 = vadd.f32 %v8786_v9, %v1733_v17 }
 0x71a   :  { %v8858_v7 = vadd.f32 %v7592_v38, %v1734_v55  ;;  %v1767_v38 = vmul.f32 %v7913_v49, %v8554_v40 }
 0x71c   :  { %6573 = vmatmul.msk.f32.gmra.mxu1 %vm134_vm0, %v8858_v7 }
 0x71f   :  { %6513 = vmatmul.msk.f32.gmra.mxu3 %vm134_vm0, %v1757_v56 }
 0x727   :  { %6514 = vmatmul.msk.f32.gmra.mxu3 %vm134_vm0, %v1758_v57 }
 0x72f   :  { %6515 = vmatmul.msk.f32.gmra.mxu3 %vm134_vm0, %v1759_v29  ;;  %v6853_v29 = vpack.i.bf16 %v8604_v35, %v8589_v53 }
 0x737   :  { %6516 = vmatmul.msk.f32.gmra.mxu3 %vm134_vm0, %v1760_v59 }
 0x73f   :  { %6517 = vmatmul.msk.f32.gmra.mxu3 %vm134_vm0, %v1761_v12  ;;  %v1768_v12 = vmul.f32 %v7913_v49, %v8556_v50  ;;  %v1769_v50 = vmul.f32 %v7913_v49, %v8563_v51 }
 0x747   :  { %6518 = vmatmul.msk.f32.gmra.mxu3 %vm134_vm0, %v1762_v54 }
 0x74a   :  { %v1736_v28 = vpop.f32.mrf.mxu3 }
 0x74b   :  { %v1737_v31 = vadd.f32 %v8786_v9, %v1736_v28 }
 0x74c   :  { %v2022_v13 = vpop.xlane.xlu2 %2021 }
 0x74d   :  { %v8881_v20 = vadd.f32 %v7593_v15, %v1737_v31  ;;  %v2116_v14 = vsub.f32 %v8763_v24, %v2022_v13  ;;  %v1764_v24 = vmul.f32 %v7913_v49, %v8589_v53 }
 0x74f   :  { %11332 = vst [vmem:[#allocation16_spill] sm:$0xff] %v8881_v20  ;;  %v2148_v41 = vmul.f32 1.442695, %v2116_v14  ;;  %6519 = vmatmul.msk.f32.gmra.mxu3 %vm134_vm0, %v1763_v36  ;;  %6574 = vmatmul.msk.f32.gmra.mxu1 %vm134_vm0, %v8881_v20 }
 0x751   :  { %7070 = vpow2.f32 %v2148_v41 }
 0x752   :  { %v8889_v2 = vpop.f32.mrf.mxu3 }
 0x753   :  { %v2044_v9 = vsel %vm935_vm6, %v8889_v2, -inf }
 0x754   :  { %v2025_v63 = vpop.xlane.xlu1 %2024  ;;  %2045 = vmax.xlane.f32.xlu0 %v2044_v9 }
 0x755   :  { %v2117_v26 = vsub.f32 %v8770_v0, %v2025_v63 }
 0x757   :  { %v8896_v30 = vpop.eup %7070  ;;  %v2150_v32 = vmul.f32 1.442695, %v2117_v26  ;;  %6520 = vmatmul.msk.f32.gmra.mxu3 %vm134_vm0, %v1764_v24 }
 0x758   :  { %v2212_v58 = vsel %vm935_vm6, %v8896_v30, 0.0 }
 0x759   :  { %7072 = vpow2.f32 %v2150_v32  ;;  %2213 = vadd.xlane.f32.xlu1 %v2212_v58 }
 0x75a   :  { %v8901_v4 = vpop.f32.mrf.mxu3 }
 0x75c   :  { %v2028_v40 = vpop.xlane.xlu0 %2027 }
 0x75d   :  { %v2118_v9 = vsub.f32 %v8779_v23, %v2028_v40 }
 0x75f   :  { %v8905_v39 = vpop.eup %7072  ;;  %6521 = vmatmul.msk.f32.gmra.mxu3 %vm134_vm0, %v1765_v33  ;;  %v2152_v11 = vmul.f32 1.442695, %v2118_v9 }
 0x760   :  { %v2215_v0 = vsel %vm935_vm6, %v8905_v39, 0.0 }
 0x761   :  { %2216 = vadd.xlane.f32.xlu2 %v2215_v0 }
 0x762   :  { %v8910_v5 = vpop.f32.mrf.mxu3 }
 0x764   :  { %v2031_v6 = vpop.xlane.xlu2 %2030 }
 0x765   :  { %v2119_v37 = vsub.f32 %v8788_v22, %v2031_v6 }
 0x767   :  { %v2154_v27 = vmul.f32 1.442695, %v2119_v37  ;;  %6522 = vmatmul.msk.f32.gmra.mxu3 %vm134_vm0, %v1766_v45 }
 0x769   :  { %7074 = vpow2.f32 %v2154_v27 }
 0x76a   :  { %v8916_v55 = vpop.f32.mrf.mxu3 }
 0x76c   :  { %v2034_v17 = vpop.xlane.xlu1 %2033 }
 0x76d   :  { %v2120_v57 = vsub.f32 %v8800_v16, %v2034_v17  ;;  %v2050_v16 = vsel %vm935_vm6, %v8910_v5, -inf }
 0x76f   :  { %v8920_v56 = vpop.eup %7074  ;;  %6523 = vmatmul.msk.f32.gmra.mxu3 %vm134_vm0, %v1767_v38  ;;  %v2156_v59 = vmul.f32 1.442695, %v2120_v57  ;;  %v2047_v38 = vsel %vm935_vm6, %v8901_v4, -inf }
 0x770   :  { %v2221_v22 = vsel %vm935_vm6, %v8920_v56, 0.0 }
 0x771   :  { %2222 = vadd.xlane.f32.xlu0 %v2221_v22  ;;  %7076 = vpow2.f32 %v2156_v59 }
 0x772   :  { %6854 = vrot.lane.b32.xlu1 %v6853_v29, %s7734_s3  ;;  %v8931_v54 = vpop.f32.mrf.mxu3 }
 0x773   :  { %v2056_v51 = vsel %vm935_vm6, %v8931_v54, -inf }
 0x774   :  { %v2037_v28 = vpop.xlane.xlu0 %2036 }
 0x775   :  { %v2121_v0 = vsub.f32 %v8812_v19, %v2037_v28  ;;  %v2053_v19 = vsel %vm935_vm6, %v8916_v55, -inf }
 0x777   :  { %6524 = vmatmul.msk.f32.gmra.mxu3 %vm134_vm0, %v1768_v12  ;;  %v8940_v35 = vpop.eup %7076  ;;  %v2158_v27 = vmul.f32 1.442695, %v2121_v0 }
 0x778   :  { %v2224_v31 = vsel %vm935_vm6, %v8940_v35, 0.0 }
 0x779   :  { %2051 = vmax.xlane.f32.xlu0 %v2050_v16  ;;  %6849 = vrot.lane.b32.xlu2 %v6848_v62, %s7734_s3 }
 0x77a   :  { %v8947_v13 = vpop.f32.mrf.mxu3 }
 0x77b   :  { %v2059_v59 = vsel %vm935_vm6, %v8947_v13, -inf }
 0x77c   :  { %v2040_v53 = vpop.xlane.xlu2 %2039 }
 0x77d   :  { %v2122_v37 = vsub.f32 %v8824_v46, %v2040_v53 }
 0x77f   :  { %6525 = vmatmul.msk.f32.gmra.mxu3 %vm134_vm0, %v1769_v50  ;;  %v2160_v17 = vmul.f32 1.442695, %v2122_v37 }
 0x781   :  { %2225 = vadd.xlane.f32.xlu0 %v2224_v31 }
 0x782   :  { %v8956_v26 = vpop.f32.mrf.mxu3 }
 0x783   :  { %v2062_v12 = vsel %vm935_vm6, %v8956_v26, -inf }
 0x784   :  { %v2043_v15 = vpop.xlane.xlu2 %2042  ;;  %v6845_v41 = vpop.permute.xlu1 %6844 }
 0x785   :  { %v2123_v14 = vsub.f32 %v8836_v3, %v2043_v15  ;;  %v6846_v3 = vunpack.i.l.bf16 %v6845_v41  ;;  %v6847_v24 = vunpack.i.h.bf16 %v6845_v41 }
 0x787   :  { %v2162_v52 = vmul.f32 1.442695, %v2123_v14  ;;  %6526 = vmatmul.msk.f32.gmra.mxu3 %vm134_vm0, %v1770_v44  ;;  %v6840_v62 = vpop.permute.xlu0 %6839 }
 0x788   :  { %v6841_v36 = vunpack.i.l.bf16 %v6840_v62  ;;  %v6842_v63 = vunpack.i.h.bf16 %v6840_v62 }
 0x789   :  { %7078 = vpow2.f32 %v2162_v52  ;;  %2057 = vmax.xlane.f32.xlu0 %v2056_v51 }
 0x78a   :  { %2596 = vmatpush.msrb.mxu0 %v6841_v36  ;;  %7080 = vpow2.f32 %v2152_v11  ;;  %v8962_v33 = vpop.f32.mrf.mxu3 }
 0x78b   :  { %v2065_v6 = vsel %vm935_vm6, %v8962_v33, -inf  ;;  %7082 = vpow2.f32 %v2158_v27 }
 0x78c   :  { %2597 = vmatpush.msrb.mxu0 %v6842_v63  ;;  %7084 = vpow2.f32 %v2160_v17 }
 0x78e   :  { %2598 = vmatpush.msrb.mxu0 %v6846_v3 }
 0x78f   :  { %v8958_v32 = vpop.eup %7078 }
 0x790   :  { %2599 = vmatpush.msrb.mxu0 %v6847_v24  ;;  %v2233_v58 = vsel %vm935_vm6, %v8958_v32, 0.0  ;;  %v8964_v23 = vpop.eup %7080 }
 0x791   :  { %2234 = vadd.xlane.f32.xlu0 %v2233_v58  ;;  %v2218_v45 = vsel %vm935_vm6, %v8964_v23, 0.0  ;;  %v8976_v57 = vpop.eup %7082 }
 0x792   :  { %v8978_v22 = vpop.eup %7084  ;;  %v2227_v46 = vsel %vm935_vm6, %v8976_v57, 0.0  ;;  %v8993_v14 = vpop.f32.mrf.mxu3 }
 0x793   :  { %v2230_v29 = vsel %vm935_vm6, %v8978_v22, 0.0  ;;  %v2068_v52 = vsel %vm935_vm6, %v8993_v14, -inf }
 0x799   :  { %2066 = vmax.xlane.f32.xlu0 %v2065_v6 }
 0x79c   :  { %2219 = vadd.xlane.f32.xlu1 %v2218_v45 }
 0x7a2   :  { %2048 = vmax.xlane.f32.xlu2 %v2047_v38 }
 0x7a4   :  { %2054 = vmax.xlane.f32.xlu1 %v2053_v19 }
 0x7aa   :  { %2228 = vadd.xlane.f32.xlu2 %v2227_v46 }
 0x7ac   :  { %2231 = vadd.xlane.f32.xlu1 %v2230_v29 }
 0x7b2   :  { %2060 = vmax.xlane.f32.xlu2 %v2059_v59 }
 0x7b4   :  { %2063 = vmax.xlane.f32.xlu1 %v2062_v12 }
 0x7c7   :  { %v2046_v40 = vpop.xlane.xlu0 %2045 }
 0x7c8   :  { %v2124_v16 = vsub.f32 %v8889_v2, %v2046_v40 }
 0x7ca   :  { %v2164_v53 = vmul.f32 1.442695, %v2124_v16 }
 0x7cc   :  { %7086 = vpow2.f32 %v2164_v53  ;;  %v2214_v50 = vpop.xlane.xlu1 %2213 }
 0x7cd   :  { %7088 = vrcp.f32 %v2214_v50 }
 0x7d2   :  { %v8989_v28 = vpop.eup %7086 }
 0x7d3   :  { %v2236_v31 = vsel %vm935_vm6, %v8989_v28, 0.0  ;;  %v7089_v44 = vpop.eup %7088 }
 0x7d4   :  { %2237 = vadd.xlane.f32.xlu2 %v2236_v31  ;;  %v2217_v15 = vpop.xlane.xlu2 %2216  ;;  %v2340_v62 = vmul.f32 %v7089_v44, %v2214_v50 }
 0x7d5   :  { %7090 = vrcp.f32 %v2217_v15 }
 0x7d6   :  { %v2372_v41 = vsub.f32 2.0, %v2340_v62 }
 0x7d8   :  { %v2404_v63 = vmul.f32 %v7089_v44, %v2372_v41 }
 0x7da   :  { %v2436_v37 = vmul.f32 %v8896_v30, %v2404_v63  ;;  %v9006_v30 = vpop.f32.mrf.mxu3 }
 0x7db   :  { %v7091_v9 = vpop.eup %7090 }
 0x7dc   :  { %2069 = vmax.xlane.f32.xlu2 %v2068_v52  ;;  %v6850_v2 = vpop.permute.xlu2 %6849  ;;  %v2341_v3 = vmul.f32 %v7091_v9, %v2217_v15 }
 0x7dd   :  { %v6851_v51 = vunpack.i.l.bf16 %v6850_v2  ;;  %v6852_v36 = vunpack.i.h.bf16 %v6850_v2 }
 0x7de   :  { %v2373_v6 = vsub.f32 2.0, %v2341_v3 }
 0x7df   :  { %2600 = vmatpush.msrb.mxu0 %v6851_v51 }
 0x7e0   :  { %v2405_v27 = vmul.f32 %v7091_v9, %v2373_v6 }
 0x7e1   :  { %2601 = vmatpush.msrb.mxu0 %v6852_v36 }
 0x7e2   :  { %v2437_v19 = vmul.f32 %v8905_v39, %v2405_v27 }
 0x7e4   :  { %v6855_v11 = vpop.permute.xlu1 %6854  ;;  %v2223_v24 = vpop.xlane.xlu0 %2222 }
 0x7e5   :  { %v6856_v58 = vunpack.i.l.bf16 %v6855_v11  ;;  %v6857_v0 = vunpack.i.h.bf16 %v6855_v11 }
 0x7e7   :  { %2602 = vmatpush.msrb.mxu0 %v6856_v58 }
 0x7e9   :  { %2603 = vmatpush.msrb.mxu0 %v6857_v0 }
 0x7ea   :  { %6527 = vmatmul.msk.f32.vlgmr.msrb.gmra.mxu0 %vm935_vm6, %v2436_v37 }
 0x7eb   :  { %2904 = vmatpush.msra.mxu0 %v8746_v60 }
 0x7ec   :  { %v2052_v45 = vpop.xlane.xlu0 %2051 }
 0x7ed   :  { %v2126_v17 = vsub.f32 %v8910_v5, %v2052_v45  ;;  %2905 = vmatpush.msra.mxu0 %v8752_v18  ;;  %v9012_v5 = vpop.f32.mrf.mxu3 }
 0x7ee   :  { %v2074_v18 = vsel %vm935_vm6, %v9012_v5, -inf }
 0x7ef   :  { %v2168_v38 = vmul.f32 1.442695, %v2126_v17  ;;  %2906 = vmatpush.msra.mxu0 %v8755_v43 }
 0x7f1   :  { %7092 = vpow2.f32 %v2168_v38  ;;  %2907 = vmatpush.msra.mxu0 %v8758_v10 }
 0x7f2   :  { %6528 = vmatmul.msk.f32.gmra.mxu0 %vm935_vm6, %v2437_v19  ;;  %7094 = vrcp.f32 %v2223_v24 }
 0x7f4   :  { %v2226_v43 = vpop.xlane.xlu0 %2225 }
 0x7f5   :  { %v9018_v52 = vpop.f32.mrf.mxu3 }
 0x7f7   :  { %v9008_v46 = vpop.eup %7092 }
 0x7f8   :  { %v2242_v60 = vsel %vm935_vm6, %v9008_v46, 0.0  ;;  %v7095_v10 = vpop.eup %7094 }
 0x7f9   :  { %2243 = vadd.xlane.f32.xlu0 %v2242_v60  ;;  %v2343_v31 = vmul.f32 %v7095_v10, %v2223_v24 }
 0x7fb   :  { %v2375_v51 = vsub.f32 2.0, %v2343_v31 }
 0x7fc   :  { %v2058_v15 = vpop.xlane.xlu0 %2057 }
 0x7fd   :  { %v2128_v9 = vsub.f32 %v8931_v54, %v2058_v15  ;;  %v2407_v24 = vmul.f32 %v7095_v10, %v2375_v51  ;;  %v9031_v54 = vpop.f32.mrf.mxu3 }
 0x7ff   :  { %v2172_v0 = vmul.f32 1.442695, %v2128_v9  ;;  %v2439_v27 = vmul.f32 %v8920_v56, %v2407_v24  ;;  %v2077_v56 = vsel %vm935_vm6, %v9018_v52, -inf }
 0x801   :  { %2075 = vmax.xlane.f32.xlu0 %v2074_v18 }
 0x804   :  { %v2235_v6 = vpop.xlane.xlu0 %2234 }
 0x80f   :  { %v2220_v39 = vpop.xlane.xlu1 %2219 }
 0x810   :  { %7096 = vrcp.f32 %v2220_v39 }
 0x811   :  { %7098 = vrcp.f32 %v2226_v43 }
 0x815   :  { %v2049_v29 = vpop.xlane.xlu2 %2048 }
 0x816   :  { %v7097_v59 = vpop.eup %7096  ;;  %v2125_v12 = vsub.f32 %v8901_v4, %v2049_v29 }
 0x817   :  { %v2342_v40 = vmul.f32 %v7097_v59, %v2220_v39  ;;  %v2055_v16 = vpop.xlane.xlu1 %2054  ;;  %v7099_v4 = vpop.eup %7098  ;;  %v2071_v39 = vsel %vm935_vm6, %v9006_v30, -inf }
 0x818   :  { %v2166_v53 = vmul.f32 1.442695, %v2125_v12  ;;  %v2127_v50 = vsub.f32 %v8916_v55, %v2055_v16  ;;  %v2344_v3 = vmul.f32 %v7099_v4, %v2226_v43  ;;  %v9044_v16 = vpop.f32.mrf.mxu3 }
 0x819   :  { %v2374_v44 = vsub.f32 2.0, %v2342_v40 }
 0x81a   :  { %7100 = vpow2.f32 %v2166_v53  ;;  %v2170_v62 = vmul.f32 1.442695, %v2127_v50  ;;  %v2376_v37 = vsub.f32 2.0, %v2344_v3  ;;  %v2083_v3 = vsel %vm935_vm6, %v9044_v16, -inf }
 0x81b   :  { %v2406_v2 = vmul.f32 %v7097_v59, %v2374_v44  ;;  %v2067_v59 = vpop.xlane.xlu0 %2066 }
 0x81c   :  { %7102 = vpow2.f32 %v2170_v62  ;;  %v2408_v10 = vmul.f32 %v7099_v4, %v2376_v37  ;;  %v2131_v50 = vsub.f32 %v8962_v33, %v2067_v59 }
 0x81d   :  { %v2229_v36 = vpop.xlane.xlu2 %2228  ;;  %v2438_v41 = vmul.f32 %v8964_v23, %v2406_v2 }
 0x81e   :  { %7104 = vrcp.f32 %v2229_v36  ;;  %v2440_v40 = vmul.f32 %v8940_v35, %v2408_v10  ;;  %v2178_v51 = vmul.f32 1.442695, %v2131_v50 }
 0x81f   :  { %v2232_v63 = vpop.xlane.xlu1 %2231  ;;  %6529 = vmatmul.msk.f32.gmra.mxu0 %vm935_vm6, %v2438_v41  ;;  %7106 = vpow2.f32 %v2172_v0 }
 0x820   :  { %v9023_v55 = vpop.eup %7100  ;;  %7108 = vrcp.f32 %v2232_v63  ;;  %v9060_v4 = vpop.f32.mrf.mxu3 }
 0x821   :  { %v2239_v11 = vsel %vm935_vm6, %v9023_v55, 0.0  ;;  %v2086_v24 = vsel %vm935_vm6, %v9060_v4, -inf }
 0x822   :  { %v9027_v58 = vpop.eup %7102  ;;  %2240 = vadd.xlane.f32.xlu1 %v2239_v11 }
 0x823   :  { %v2245_v23 = vsel %vm935_vm6, %v9027_v58, 0.0 }
 0x824   :  { %2246 = vadd.xlane.f32.xlu2 %v2245_v23  ;;  %v7105_v17 = vpop.eup %7104 }
 0x825   :  { %v2061_v45 = vpop.xlane.xlu2 %2060  ;;  %v2345_v43 = vmul.f32 %v7105_v17, %v2229_v36 }
 0x826   :  { %v2129_v38 = vsub.f32 %v8947_v13, %v2061_v45  ;;  %v9041_v13 = vpop.eup %7106 }
 0x827   :  { %v2064_v19 = vpop.xlane.xlu1 %2063  ;;  %6530 = vmatmul.msk.f32.gmra.mxu0 %vm935_vm6, %v2439_v27  ;;  %v2377_v12 = vsub.f32 2.0, %v2345_v43  ;;  %v2248_v15 = vsel %vm935_vm6, %v9041_v13, 0.0 }
 0x828   :  { %v2174_v60 = vmul.f32 1.442695, %v2129_v38  ;;  %v2130_v18 = vsub.f32 %v8956_v26, %v2064_v19  ;;  %v7109_v26 = vpop.eup %7108  ;;  %v9075_v27 = vpop.f32.mrf.mxu3 }
 0x829   :  { %v2346_v31 = vmul.f32 %v7109_v26, %v2232_v63  ;;  %v2409_v62 = vmul.f32 %v7105_v17, %v2377_v12  ;;  %v2080_v63 = vsel %vm935_vm6, %v9031_v54, -inf }
 0x82a   :  { %7110 = vpow2.f32 %v2174_v60  ;;  %v2176_v29 = vmul.f32 1.442695, %v2130_v18  ;;  %2072 = vmax.xlane.f32.xlu1 %v2071_v39 }
 0x82b   :  { %v2378_v36 = vsub.f32 2.0, %v2346_v31  ;;  %v2441_v33 = vmul.f32 %v8976_v57, %v2409_v62 }
 0x82c   :  { %7112 = vpow2.f32 %v2176_v29  ;;  %2078 = vmax.xlane.f32.xlu2 %v2077_v56 }
 0x82d   :  { %7114 = vrcp.f32 %v2235_v6  ;;  %v2410_v11 = vmul.f32 %v7109_v26, %v2378_v36 }
 0x82e   :  { %7116 = vpow2.f32 %v2178_v51 }
 0x82f   :  { %6531 = vmatmul.msk.f32.gmra.mxu0 %vm935_vm6, %v2440_v40  ;;  %v2442_v0 = vmul.f32 %v8978_v22, %v2410_v11  ;;  %v2089_v22 = vsel %vm935_vm6, %v9075_v27, -inf }
 0x830   :  { %v9047_v53 = vpop.eup %7110  ;;  %v9087_v59 = vpop.f32.mrf.mxu3 }
 0x831   :  { %v2251_v44 = vsel %vm935_vm6, %v9047_v53, 0.0  ;;  %v2092_v12 = vsel %vm935_vm6, %v9087_v59, -inf }
 0x832   :  { %v9054_v2 = vpop.eup %7112  ;;  %2249 = vadd.xlane.f32.xlu1 %v2248_v15  ;;  %2252 = vadd.xlane.f32.xlu0 %v2251_v44 }
 0x833   :  { %v2254_v35 = vsel %vm935_vm6, %v9054_v2, 0.0  ;;  %v7115_v41 = vpop.eup %7114 }
 0x834   :  { %2255 = vadd.xlane.f32.xlu2 %v2254_v35  ;;  %v2347_v9 = vmul.f32 %v7115_v41, %v2235_v6  ;;  %v9069_v23 = vpop.eup %7116 }
 0x835   :  { %v2257_v6 = vsel %vm935_vm6, %v9069_v23, 0.0 }
 0x836   :  { %v2379_v57 = vsub.f32 2.0, %v2347_v9 }
 0x837   :  { %6532 = vmatmul.msk.f32.gmra.mxu0 %vm935_vm6, %v2441_v33 }
 0x838   :  { %v2411_v37 = vmul.f32 %v7115_v41, %v2379_v57 }
 0x83a   :  { %2081 = vmax.xlane.f32.xlu1 %v2080_v63  ;;  %2084 = vmax.xlane.f32.xlu0 %v2083_v3  ;;  %v2443_v45 = vmul.f32 %v8958_v32, %v2411_v37 }
 0x83c   :  { %2087 = vmax.xlane.f32.xlu2 %v2086_v24 }
 0x83f   :  { %6533 = vmatmul.msk.f32.gmra.mxu0 %vm935_vm6, %v2442_v0 }
 0x842   :  { %2258 = vadd.xlane.f32.xlu1 %v2257_v6 }
 0x847   :  { %v2238_v17 = vpop.xlane.xlu2 %2237  ;;  %6534 = vmatmul.msk.f32.gmra.mxu0 %vm935_vm6, %v2443_v45 }
 0x848   :  { %7118 = vrcp.f32 %v2238_v17 }
 0x84a   :  { %2090 = vmax.xlane.f32.xlu1 %v2089_v22 }
 0x84e   :  { %v7119_v38 = vpop.eup %7118 }
 0x84f   :  { %v2348_v19 = vmul.f32 %v7119_v38, %v2238_v17  ;;  %v2070_v60 = vpop.xlane.xlu2 %2069 }
 0x850   :  { %v2132_v18 = vsub.f32 %v8993_v14, %v2070_v60 }
 0x851   :  { %v2380_v43 = vsub.f32 2.0, %v2348_v19 }
 0x852   :  { %v2180_v39 = vmul.f32 1.442695, %v2132_v18 }
 0x853   :  { %v2412_v10 = vmul.f32 %v7119_v38, %v2380_v43 }
 0x854   :  { %7120 = vpow2.f32 %v2180_v39 }
 0x855   :  { %v2444_v32 = vmul.f32 %v8989_v28, %v2412_v10  ;;  %v9092_v28 = vpop.f32.mrf.mxu3 }
 0x857   :  { %6535 = vmatmul.msk.f32.gmra.mxu0 %vm935_vm6, %v2444_v32 }
 0x85a   :  { %v9083_v29 = vpop.eup %7120 }
 0x85b   :  { %v2260_v56 = vsel %vm935_vm6, %v9083_v29, 0.0 }
 0x85c   :  { %2261 = vadd.xlane.f32.xlu0 %v2260_v56 }
 0x85d   :  { %v9098_v44 = vpop.f32.mrf.mxu3 }
 0x85e   :  { %v2098_v62 = vsel %vm935_vm6, %v9098_v44, -inf }
 0x864   :  { %2093 = vmax.xlane.f32.xlu0 %v2092_v12 }
 0x865   :  { %v9104_v6 = vpop.f32.mrf.mxu3 }
 0x86c   :  { %v2244_v14 = vpop.xlane.xlu0 %2243 }
 0x86d   :  { %v9117_v12 = vpop.f32.mrf.mxu3 }
 0x874   :  { %v2076_v40 = vpop.xlane.xlu0 %2075 }
 0x875   :  { %v2134_v26 = vsub.f32 %v9012_v5, %v2076_v40 }
 0x877   :  { %v2184_v50 = vmul.f32 1.442695, %v2134_v26 }
 0x879   :  { %7122 = vpow2.f32 %v2184_v50 }
 0x87a   :  { %7124 = vrcp.f32 %v2244_v14 }
 0x87f   :  { %v9094_v31 = vpop.eup %7122 }
 0x880   :  { %v2266_v15 = vsel %vm935_vm6, %v9094_v31, 0.0  ;;  %v7125_v51 = vpop.eup %7124 }
 0x881   :  { %2267 = vadd.xlane.f32.xlu1 %v2266_v15  ;;  %v2350_v63 = vmul.f32 %v7125_v51, %v2244_v14 }
 0x883   :  { %v2382_v45 = vsub.f32 2.0, %v2350_v63 }
 0x889   :  { %2099 = vmax.xlane.f32.xlu1 %v2098_v62 }
 0x895   :  { %v2241_v35 = vpop.xlane.xlu1 %2240 }
 0x896   :  { %7126 = vrcp.f32 %v2241_v35 }
 0x897   :  { %v2247_v5 = vpop.xlane.xlu2 %2246 }
 0x898   :  { %7128 = vrcp.f32 %v2247_v5 }
 0x89c   :  { %v7127_v36 = vpop.eup %7126 }
 0x89d   :  { %v2349_v33 = vmul.f32 %v7127_v36, %v2241_v35  ;;  %v2073_v41 = vpop.xlane.xlu1 %2072 }
 0x89e   :  { %v2133_v9 = vsub.f32 %v9006_v30, %v2073_v41  ;;  %v7129_v22 = vpop.eup %7128  ;;  %v2414_v30 = vmul.f32 %v7125_v51, %v2382_v45 }
 0x89f   :  { %v2381_v3 = vsub.f32 2.0, %v2349_v33  ;;  %v2079_v11 = vpop.xlane.xlu2 %2078  ;;  %v2351_v60 = vmul.f32 %v7129_v22, %v2247_v5 }
 0x8a0   :  { %v2182_v24 = vmul.f32 1.442695, %v2133_v9  ;;  %v2135_v57 = vsub.f32 %v9018_v52, %v2079_v11  ;;  %v2446_v32 = vmul.f32 %v9008_v46, %v2414_v30 }
 0x8a1   :  { %v2413_v0 = vmul.f32 %v7127_v36, %v2381_v3  ;;  %v2383_v10 = vsub.f32 2.0, %v2351_v60  ;;  %v2095_v36 = vsel %vm935_vm6, %v9092_v28, -inf }
 0x8a2   :  { %7130 = vpow2.f32 %v2182_v24  ;;  %v2186_v37 = vmul.f32 1.442695, %v2135_v57 }
 0x8a3   :  { %v2445_v17 = vmul.f32 %v9023_v55, %v2413_v0  ;;  %v2415_v15 = vmul.f32 %v7129_v22, %v2383_v10 }
 0x8a4   :  { %7132 = vpow2.f32 %v2186_v37 }
 0x8a5   :  { %v2250_v38 = vpop.xlane.xlu1 %2249  ;;  %v2253_v19 = vpop.xlane.xlu0 %2252  ;;  %6536 = vmatmul.msk.f32.gmra.mxu0 %vm935_vm6, %v2445_v17 }
 0x8a6   :  { %7134 = vrcp.f32 %v2250_v38 }
 0x8a7   :  { %v2256_v18 = vpop.xlane.xlu2 %2255  ;;  %7136 = vrcp.f32 %v2253_v19 }
 0x8a8   :  { %v9108_v43 = vpop.eup %7130 }
 0x8a9   :  { %v2263_v52 = vsel %vm935_vm6, %v9108_v43, 0.0 }
 0x8aa   :  { %v9112_v39 = vpop.eup %7132  ;;  %2264 = vadd.xlane.f32.xlu2 %v2263_v52 }
 0x8ab   :  { %v2269_v55 = vsel %vm935_vm6, %v9112_v39, 0.0 }
 0x8ac   :  { %v7135_v56 = vpop.eup %7134  ;;  %2270 = vadd.xlane.f32.xlu0 %v2269_v55 }
 0x8ad   :  { %v2082_v14 = vpop.xlane.xlu1 %2081  ;;  %v2085_v40 = vpop.xlane.xlu0 %2084  ;;  %6537 = vmatmul.msk.f32.gmra.mxu0 %vm935_vm6, %v2446_v32  ;;  %v2352_v62 = vmul.f32 %v7135_v56, %v2250_v38  ;;  %v2104_v32 = vsel %vm935_vm6, %v9117_v12, -inf }
 0x8ae   :  { %v2136_v26 = vsub.f32 %v9031_v54, %v2082_v14  ;;  %v2137_v50 = vsub.f32 %v9044_v16, %v2085_v40  ;;  %v2101_v54 = vsel %vm935_vm6, %v9104_v6, -inf  ;;  %v2447_v16 = vmul.f32 %v9027_v58, %v2415_v15  ;;  %v7137_v9 = vpop.eup %7136 }
 0x8af   :  { %v2088_v35 = vpop.xlane.xlu2 %2087  ;;  %v2384_v41 = vsub.f32 2.0, %v2352_v62  ;;  %v2353_v11 = vmul.f32 %v7137_v9, %v2253_v19 }
 0x8b0   :  { %v2188_v5 = vmul.f32 1.442695, %v2136_v26  ;;  %v2190_v51 = vmul.f32 1.442695, %v2137_v50  ;;  %v2138_v46 = vsub.f32 %v9060_v4, %v2088_v35  ;;  %v9129_v4 = vpop.f32.mrf.mxu3 }
 0x8b1   :  { %v2416_v3 = vmul.f32 %v7135_v56, %v2384_v41  ;;  %v2385_v45 = vsub.f32 2.0, %v2353_v11 }
 0x8b2   :  { %7138 = vpow2.f32 %v2188_v5  ;;  %v2192_v33 = vmul.f32 1.442695, %v2138_v46  ;;  %2096 = vmax.xlane.f32.xlu2 %v2095_v36 }
 0x8b3   :  { %7140 = vpow2.f32 %v2190_v51  ;;  %v2448_v22 = vmul.f32 %v9041_v13, %v2416_v3  ;;  %v2417_v60 = vmul.f32 %v7137_v9, %v2385_v45  ;;  %v2107_v13 = vsel %vm935_vm6, %v9129_v4, -inf }
 0x8b4   :  { %7142 = vpow2.f32 %v2192_v33  ;;  %2102 = vmax.xlane.f32.xlu0 %v2101_v54 }
 0x8b5   :  { %v2259_v63 = vpop.xlane.xlu1 %2258  ;;  %6538 = vmatmul.msk.f32.gmra.mxu0 %vm935_vm6, %v2447_v16  ;;  %7144 = vrcp.f32 %v2256_v18 }
 0x8b6   :  { %7146 = vrcp.f32 %v2259_v63 }
 0x8b8   :  { %v9131_v24 = vpop.eup %7138  ;;  %v9146_v10 = vpop.f32.mrf.mxu3 }
 0x8b9   :  { %v9133_v57 = vpop.eup %7140  ;;  %v2272_v0 = vsel %vm935_vm6, %v9131_v24, 0.0  ;;  %v2110_v14 = vsel %vm935_vm6, %v9146_v10, -inf }
 0x8ba   :  { %v9137_v37 = vpop.eup %7142  ;;  %2273 = vadd.xlane.f32.xlu2 %v2272_v0  ;;  %v2275_v58 = vsel %vm935_vm6, %v9133_v57, 0.0 }
 0x8bb   :  { %2276 = vadd.xlane.f32.xlu1 %v2275_v58  ;;  %v2278_v17 = vsel %vm935_vm6, %v9137_v37, 0.0  ;;  %v7145_v38 = vpop.eup %7144 }
 0x8bc   :  { %2279 = vadd.xlane.f32.xlu0 %v2278_v17  ;;  %v2354_v52 = vmul.f32 %v7145_v38, %v2256_v18  ;;  %v7147_v40 = vpop.eup %7146 }
 0x8bd   :  { %v2091_v19 = vpop.xlane.xlu1 %2090  ;;  %6539 = vmatmul.msk.f32.gmra.mxu0 %vm935_vm6, %v2448_v22  ;;  %v2355_v26 = vmul.f32 %v7147_v40, %v2259_v63 }
 0x8be   :  { %v2139_v30 = vsub.f32 %v9075_v27, %v2091_v19  ;;  %v2386_v56 = vsub.f32 2.0, %v2354_v52  ;;  %v2449_v27 = vmul.f32 %v9047_v53, %v2417_v60 }
 0x8bf   :  { %v2387_v62 = vsub.f32 2.0, %v2355_v26 }
 0x8c0   :  { %v2194_v55 = vmul.f32 1.442695, %v2139_v30  ;;  %v2418_v18 = vmul.f32 %v7145_v38, %v2386_v56  ;;  %v9162_v5 = vpop.f32.mrf.mxu3 }
 0x8c1   :  { %v2419_v53 = vmul.f32 %v7147_v40, %v2387_v62  ;;  %v2113_v46 = vsel %vm935_vm6, %v9162_v5, -inf }
 0x8c2   :  { %7148 = vpow2.f32 %v2194_v55  ;;  %2105 = vmax.xlane.f32.xlu2 %v2104_v32  ;;  %v2450_v35 = vmul.f32 %v9054_v2, %v2418_v18 }
 0x8c3   :  { %2108 = vmax.xlane.f32.xlu1 %v2107_v13  ;;  %v2451_v36 = vmul.f32 %v9069_v23, %v2419_v53 }
 0x8c4   :  { %2111 = vmax.xlane.f32.xlu0 %v2110_v14 }
 0x8c5   :  { %6540 = vmatmul.msk.f32.gmra.mxu0 %vm935_vm6, %v2449_v27 }
 0x8c8   :  { %v9156_v50 = vpop.eup %7148 }
 0x8c9   :  { %v2281_v15 = vsel %vm935_vm6, %v9156_v50, 0.0 }
 0x8ca   :  { %2282 = vadd.xlane.f32.xlu2 %v2281_v15 }
 0x8cd   :  { %6541 = vmatmul.msk.f32.gmra.mxu0 %vm935_vm6, %v2450_v35 }
 0x8cf   :  { %v2262_v51 = vpop.xlane.xlu0 %2261 }
 0x8d0   :  { %7150 = vrcp.f32 %v2262_v51 }
 0x8d2   :  { %2114 = vmax.xlane.f32.xlu2 %v2113_v46 }
 0x8d5   :  { %6542 = vmatmul.msk.f32.gmra.mxu0 %vm935_vm6, %v2451_v36 }
 0x8d6   :  { %v7151_v33 = vpop.eup %7150 }
 0x8d7   :  { %v2356_v41 = vmul.f32 %v7151_v33, %v2262_v51  ;;  %v2094_v54 = vpop.xlane.xlu0 %2093 }
 0x8d8   :  { %v2140_v2 = vsub.f32 %v9087_v59, %v2094_v54 }
 0x8d9   :  { %v2388_v16 = vsub.f32 2.0, %v2356_v41 }
 0x8da   :  { %v2196_v9 = vmul.f32 1.442695, %v2140_v2 }
 0x8db   :  { %v2420_v63 = vmul.f32 %v7151_v33, %v2388_v16 }
 0x8dc   :  { %7152 = vpow2.f32 %v2196_v9 }
 0x8dd   :  { %v2452_v3 = vmul.f32 %v9083_v29, %v2420_v63  ;;  %v9180_v29 = vpop.f32.mrf.mxu0 }
 0x8df   :  { %6543 = vmatmul.msk.f32.gmra.mxu0 %vm935_vm6, %v2452_v3 }
 0x8e2   :  { %v9171_v11 = vpop.eup %7152 }
 0x8e3   :  { %v2284_v23 = vsel %vm935_vm6, %v9171_v11, 0.0 }
 0x8e4   :  { %2285 = vadd.xlane.f32.xlu1 %v2284_v23 }
 0x8e5   :  { %v9182_v38 = vpop.f32.mrf.mxu0 }
 0x8ed   :  { %v9184_v19 = vpop.f32.mrf.mxu0 }
 0x8f4   :  { %v2268_v0 = vpop.xlane.xlu1 %2267 }
 0x8f5   :  { %v9186_v13 = vpop.f32.mrf.mxu0 }
 0x8fc   :  { %v2100_v58 = vpop.xlane.xlu1 %2099 }
 0x8fd   :  { %v2142_v45 = vsub.f32 %v9098_v44, %v2100_v58  ;;  %v9194_v2 = vpop.f32.mrf.mxu0 }
 0x8ff   :  { %v2200_v17 = vmul.f32 1.442695, %v2142_v45 }
 0x901   :  { %7154 = vpow2.f32 %v2200_v17 }
 0x902   :  { %7156 = vrcp.f32 %v2268_v0 }
 0x907   :  { %v9176_v59 = vpop.eup %7154 }
 0x908   :  { %v2290_v22 = vsel %vm935_vm6, %v9176_v59, 0.0  ;;  %v7157_v52 = vpop.eup %7156 }
 0x909   :  { %2291 = vadd.xlane.f32.xlu1 %v2290_v22  ;;  %v2358_v14 = vmul.f32 %v7157_v52, %v2268_v0 }
 0x90b   :  { %v2390_v35 = vsub.f32 2.0, %v2358_v14 }
 0x91d   :  { %v2265_v30 = vpop.xlane.xlu2 %2264 }
 0x91e   :  { %7158 = vrcp.f32 %v2265_v30 }
 0x91f   :  { %v2271_v60 = vpop.xlane.xlu0 %2270 }
 0x920   :  { %7160 = vrcp.f32 %v2271_v60 }
 0x924   :  { %v7159_v44 = vpop.eup %7158 }
 0x925   :  { %v2357_v55 = vmul.f32 %v7159_v44, %v2265_v30  ;;  %v2097_v32 = vpop.xlane.xlu2 %2096 }
 0x926   :  { %v2141_v56 = vsub.f32 %v9092_v28, %v2097_v32  ;;  %v7161_v51 = vpop.eup %7160  ;;  %v2422_v28 = vmul.f32 %v7157_v52, %v2390_v35 }
 0x927   :  { %v2389_v27 = vsub.f32 2.0, %v2357_v55  ;;  %v2103_v40 = vpop.xlane.xlu0 %2102  ;;  %v2359_v33 = vmul.f32 %v7161_v51, %v2271_v60  ;;  %v9207_v55 = vpop.f32.mrf.mxu0 }
 0x928   :  { %v2198_v18 = vmul.f32 1.442695, %v2141_v56  ;;  %v2143_v26 = vsub.f32 %v9104_v6, %v2103_v40  ;;  %v2454_v63 = vmul.f32 %v9094_v31, %v2422_v28 }
 0x929   :  { %v2421_v15 = vmul.f32 %v7159_v44, %v2389_v27 }
 0x92a   :  { %7162 = vpow2.f32 %v2198_v18  ;;  %v2202_v62 = vmul.f32 1.442695, %v2143_v26 }
 0x92b   :  { %v2453_v53 = vmul.f32 %v9108_v43, %v2421_v15  ;;  %v2391_v43 = vsub.f32 2.0, %v2359_v33 }
 0x92c   :  { %7164 = vpow2.f32 %v2202_v62 }
 0x92d   :  { %v2274_v46 = vpop.xlane.xlu2 %2273  ;;  %6544 = vmatmul.msk.f32.gmra.mxu0 %vm935_vm6, %v2453_v53  ;;  %v2423_v45 = vmul.f32 %v7161_v51, %v2391_v43 }
 0x92e   :  { %v2277_v36 = vpop.xlane.xlu1 %2276  ;;  %7166 = vrcp.f32 %v2274_v46 }
 0x92f   :  { %v2280_v41 = vpop.xlane.xlu0 %2279  ;;  %7168 = vrcp.f32 %v2277_v36  ;;  %v2455_v56 = vmul.f32 %v9112_v39, %v2423_v45  ;;  %v9224_v51 = vpop.f32.mrf.mxu0 }
 0x930   :  { %v9192_v54 = vpop.eup %7162 }
 0x931   :  { %v2287_v6 = vsel %vm935_vm6, %v9192_v54, 0.0 }
 0x932   :  { %v9198_v16 = vpop.eup %7164  ;;  %2288 = vadd.xlane.f32.xlu0 %v2287_v6 }
 0x933   :  { %v2293_v9 = vsel %vm935_vm6, %v9198_v16, 0.0 }
 0x934   :  { %v7167_v3 = vpop.eup %7166  ;;  %2294 = vadd.xlane.f32.xlu2 %v2293_v9 }
 0x935   :  { %v2106_v23 = vpop.xlane.xlu2 %2105  ;;  %6545 = vmatmul.msk.f32.gmra.mxu0 %vm935_vm6, %v2454_v63  ;;  %v2360_v17 = vmul.f32 %v7167_v3, %v2274_v46  ;;  %v7169_v14 = vpop.eup %7168 }
 0x936   :  { %v2109_v0 = vpop.xlane.xlu1 %2108  ;;  %v2144_v58 = vsub.f32 %v9117_v12, %v2106_v23 }
 0x937   :  { %v2145_v22 = vsub.f32 %v9129_v4, %v2109_v0  ;;  %v2112_v30 = vpop.xlane.xlu0 %2111  ;;  %v2392_v32 = vsub.f32 2.0, %v2360_v17  ;;  %v2361_v4 = vmul.f32 %v7169_v14, %v2277_v36  ;;  %v9230_v63 = vpop.f32.mrf.mxu0 }
 0x938   :  { %v2204_v60 = vmul.f32 1.442695, %v2144_v58  ;;  %v2146_v52 = vsub.f32 %v9146_v10, %v2112_v30 }
 0x939   :  { %v2206_v44 = vmul.f32 1.442695, %v2145_v22  ;;  %v2424_v27 = vmul.f32 %v7167_v3, %v2392_v32  ;;  %v2393_v15 = vsub.f32 2.0, %v2361_v4 }
 0x93a   :  { %7170 = vpow2.f32 %v2204_v60  ;;  %v2208_v31 = vmul.f32 1.442695, %v2146_v52 }
 0x93b   :  { %7172 = vpow2.f32 %v2206_v44  ;;  %v2456_v62 = vmul.f32 %v9131_v24, %v2424_v27  ;;  %v2425_v28 = vmul.f32 %v7169_v14, %v2393_v15 }
 0x93c   :  { %7174 = vpow2.f32 %v2208_v31 }
 0x93d   :  { %v2283_v12 = vpop.xlane.xlu2 %2282  ;;  %6546 = vmatmul.msk.f32.gmra.mxu0 %vm935_vm6, %v2455_v56  ;;  %7176 = vrcp.f32 %v2280_v41  ;;  %v2457_v24 = vmul.f32 %v9133_v57, %v2425_v28 }
 0x93e   :  { %7178 = vrcp.f32 %v2283_v12 }
 0x93f   :  { %v9238_v45 = vpop.f32.mrf.mxu0 }
 0x940   :  { %v9211_v40 = vpop.eup %7170 }
 0x941   :  { %v9213_v10 = vpop.eup %7172  ;;  %v2296_v18 = vsel %vm935_vm6, %v9211_v40, 0.0 }
 0x942   :  { %v9217_v26 = vpop.eup %7174  ;;  %v2299_v39 = vsel %vm935_vm6, %v9213_v10, 0.0  ;;  %2297 = vadd.xlane.f32.xlu0 %v2296_v18 }
 0x943   :  { %2300 = vadd.xlane.f32.xlu1 %v2299_v39  ;;  %v2302_v35 = vsel %vm935_vm6, %v9217_v26, 0.0  ;;  %v7177_v53 = vpop.eup %7176 }
 0x944   :  { %2303 = vadd.xlane.f32.xlu2 %v2302_v35  ;;  %v2362_v33 = vmul.f32 %v7177_v53, %v2280_v41  ;;  %v7179_v9 = vpop.eup %7178 }
 0x945   :  { %v2115_v46 = vpop.xlane.xlu2 %2114  ;;  %6547 = vmatmul.msk.f32.gmra.mxu0 %vm935_vm6, %v2456_v62  ;;  %v2363_v23 = vmul.f32 %v7179_v9, %v2283_v12 }
 0x946   :  { %v2147_v36 = vsub.f32 %v9162_v5, %v2115_v46  ;;  %v2394_v43 = vsub.f32 2.0, %v2362_v33 }
 0x947   :  { %v2395_v41 = vsub.f32 2.0, %v2363_v23  ;;  %v9242_v60 = vpop.f32.mrf.mxu0 }
 0x948   :  { %v2210_v6 = vmul.f32 1.442695, %v2147_v36  ;;  %v2426_v3 = vmul.f32 %v7177_v53, %v2394_v43 }
 0x949   :  { %v2427_v57 = vmul.f32 %v7179_v9, %v2395_v41 }
 0x94a   :  { %7180 = vpow2.f32 %v2210_v6  ;;  %v2458_v5 = vmul.f32 %v9137_v37, %v2426_v3 }
 0x94b   :  { %v2459_v22 = vmul.f32 %v9156_v50, %v2427_v57 }
 0x94d   :  { %6548 = vmatmul.msk.f32.gmra.mxu0 %vm935_vm6, %v2457_v24 }
 0x94f   :  { %v9246_v32 = vpop.f32.mrf.mxu0 }
 0x950   :  { %v9232_v0 = vpop.eup %7180 }
 0x951   :  { %v2305_v58 = vsel %vm935_vm6, %v9232_v0, 0.0 }
 0x952   :  { %2306 = vadd.xlane.f32.xlu0 %v2305_v58 }
 0x955   :  { %6549 = vmatmul.msk.f32.gmra.mxu0 %vm935_vm6, %v2458_v5 }
 0x957   :  { %v2286_v17 = vpop.xlane.xlu1 %2285  ;;  %v9248_v56 = vpop.f32.mrf.mxu0 }
 0x958   :  { %7182 = vrcp.f32 %v2286_v17 }
 0x95d   :  { %6550 = vmatmul.msk.f32.gmra.mxu0 %vm935_vm6, %v2459_v22 }
 0x95e   :  { %v7183_v30 = vpop.eup %7182 }
 0x95f   :  { %v2364_v52 = vmul.f32 %v7183_v30, %v2286_v17  ;;  %v9250_v14 = vpop.f32.mrf.mxu0 }
 0x961   :  { %v2396_v44 = vsub.f32 2.0, %v2364_v52 }
 0x963   :  { %v2428_v31 = vmul.f32 %v7183_v30, %v2396_v44 }
 0x965   :  { %v2460_v37 = vmul.f32 %v9171_v11, %v2428_v31 }
 0x967   :  { %6551 = vmatmul.msk.f32.gmra.mxu0 %vm935_vm6, %v2460_v37  ;;  %v9252_v12 = vpop.f32.mrf.mxu0 }
 0x96f   :  { %v9254_v50 = vpop.f32.mrf.mxu0 }
 0x977   :  { %v9256_v4 = vpop.f32.mrf.mxu0 }
 0x97c   :  { %v2292_v18 = vpop.xlane.xlu1 %2291 }
 0x97d   :  { %7184 = vrcp.f32 %v2292_v18 }
 0x97f   :  { %v9258_v27 = vpop.f32.mrf.mxu0 }
 0x983   :  { %v7185_v15 = vpop.eup %7184 }
 0x984   :  { %v2366_v46 = vmul.f32 %v7185_v15, %v2292_v18 }
 0x986   :  { %v2398_v6 = vsub.f32 2.0, %v2366_v46 }
 0x988   :  { %v2430_v3 = vmul.f32 %v7185_v15, %v2398_v6 }
 0x98a   :  { %v2462_v57 = vmul.f32 %v9176_v59, %v2430_v3 }
 0x9a5   :  { %v2289_v39 = vpop.xlane.xlu0 %2288 }
 0x9a6   :  { %7186 = vrcp.f32 %v2289_v39 }
 0x9a7   :  { %v2295_v62 = vpop.xlane.xlu2 %2294 }
 0x9a8   :  { %7188 = vrcp.f32 %v2295_v62 }
 0x9aa   :  { %v9260_v11 = vpop.f32.mrf.mxu0 }
 0x9ac   :  { %v7187_v35 = vpop.eup %7186 }
 0x9ad   :  { %v2365_v53 = vmul.f32 %v7187_v35, %v2289_v39 }
 0x9ae   :  { %v7189_v24 = vpop.eup %7188 }
 0x9af   :  { %v2397_v36 = vsub.f32 2.0, %v2365_v53  ;;  %v2367_v23 = vmul.f32 %v7189_v24, %v2295_v62 }
 0x9b1   :  { %v2429_v28 = vmul.f32 %v7187_v35, %v2397_v36  ;;  %v2399_v5 = vsub.f32 2.0, %v2367_v23 }
 0x9b2   :  { %v9262_v33 = vpop.f32.mrf.mxu0 }
 0x9b3   :  { %v2461_v43 = vmul.f32 %v9192_v54, %v2429_v28  ;;  %v2431_v22 = vmul.f32 %v7189_v24, %v2399_v5  ;;  %v2709_v5 = vmul.f32 %v7907_v47, %v9238_v45 }
 0x9b5   :  { %v2298_v9 = vpop.xlane.xlu0 %2297  ;;  %6552 = vmatmul.msk.f32.gmra.mxu0 %vm935_vm6, %v2461_v43  ;;  %v2463_v52 = vmul.f32 %v9198_v16, %v2431_v22 }
 0x9b6   :  { %7190 = vrcp.f32 %v2298_v9  ;;  %v2301_v41 = vpop.xlane.xlu1 %2300 }
 0x9b7   :  { %7192 = vrcp.f32 %v2301_v41  ;;  %v2304_v31 = vpop.xlane.xlu2 %2303 }
 0x9b8   :  { %7194 = vrcp.f32 %v2304_v31 }
 0x9ba   :  { %v9266_v58 = vpop.f32.mrf.mxu0 }
 0x9bc   :  { %v7191_v17 = vpop.eup %7190 }
 0x9bd   :  { %6553 = vmatmul.msk.f32.gmra.mxu0 %vm935_vm6, %v2462_v57  ;;  %v2368_v30 = vmul.f32 %v7191_v17, %v2298_v9  ;;  %v7193_v37 = vpop.eup %7192  ;;  %v2701_v57 = vmul.f32 %v7963_v21, %v9180_v29  ;;  %v7595_v29 = vld [vmem:[#allocation4] sm:$0xff] }
 0x9be   :  { %v2369_v18 = vmul.f32 %v7193_v37, %v2301_v41  ;;  %v7195_v53 = vpop.eup %7194 }
 0x9bf   :  { %v2400_v44 = vsub.f32 2.0, %v2368_v30  ;;  %v2370_v16 = vmul.f32 %v7195_v53, %v2304_v31 }
 0x9c0   :  { %v2401_v59 = vsub.f32 2.0, %v2369_v18  ;;  %v2718_v18 = vmul.f32 %v7910_v48, %v9260_v11 }
 0x9c1   :  { %v2432_v39 = vmul.f32 %v7191_v17, %v2400_v44  ;;  %v2402_v28 = vsub.f32 2.0, %v2370_v16  ;;  %v2733_v17 = vadd.f32 %v2709_v5, %v2701_v57  ;;  %v9295_v44 = vld [vmem:[#allocation7 + $0x3] ss:$0 sm:$0xff] }
 0x9c2   :  { %v9270_v54 = vpop.f32.mrf.mxu0  ;;  %v2433_v46 = vmul.f32 %v7193_v37, %v2401_v59  ;;  %v1716_v45 = vadd.f32 %v9295_v44, %v8777_v42 }
 0x9c3   :  { %v2464_v62 = vmul.f32 %v9211_v40, %v2432_v39  ;;  %v2434_v24 = vmul.f32 %v7195_v53, %v2402_v28 }
 0x9c4   :  { %v2465_v6 = vmul.f32 %v9213_v10, %v2433_v46  ;;  %v2717_v10 = vmul.f32 %v7910_v48, %v9258_v27  ;;  %v9300_v37 = vadd.f32 %v7595_v29, %v1716_v45  ;;  %v2702_v27 = vmul.f32 %v7963_v21, %v9182_v38  ;;  %v2912_v38 = vpop.f32.mrf.mxu1 }
 0x9c5   :  { %6554 = vmatmul.msk.f32.gmra.mxu0 %vm935_vm6, %v2463_v52  ;;  %v2307_v35 = vpop.xlane.xlu0 %2306  ;;  %v2466_v3 = vmul.f32 %v9217_v26, %v2434_v24  ;;  %v2703_v46 = vmul.f32 %v7963_v21, %v9184_v19  ;;  %v2704_v19 = vmul.f32 %v7963_v21, %v9186_v13  ;;  %v2713_v13 = vmul.f32 %v7907_v47, %v9250_v14 }
 0x9c6   :  { %7196 = vrcp.f32 %v2307_v35  ;;  %v2741_v26 = vadd.f32 %v2733_v17, %v2717_v10  ;;  %v2721_v17 = vmul.f32 %v7910_v48, %v9270_v54 }
 0x9ca   :  { %v9274_v15 = vpop.f32.mrf.mxu0 }
 0x9cc   :  { %v7197_v43 = vpop.eup %7196 }
 0x9cd   :  { %6555 = vmatmul.msk.f32.gmra.mxu0 %vm935_vm6, %v2464_v62  ;;  %v2371_v9 = vmul.f32 %v7197_v43, %v2307_v35  ;;  %v2711_v35 = vmul.f32 %v7907_v47, %v9246_v32  ;;  %v2712_v32 = vmul.f32 %v7907_v47, %v9248_v56 }
 0x9cf   :  { %v2403_v40 = vsub.f32 2.0, %v2371_v9  ;;  %v2735_v16 = vadd.f32 %v2711_v35, %v2703_v46 }
 0x9d1   :  { %v2435_v41 = vmul.f32 %v7197_v43, %v2403_v40  ;;  %v9319_v43 = vld [vmem:[#allocation7 + $0x4] ss:$0 sm:$0xff]  ;;  %v2915_v40 = vpop.f32.mrf.mxu1 }
 0x9d2   :  { %v9278_v36 = vpop.f32.mrf.mxu0  ;;  %v9329_v9 = vadd.f32 %v9319_v43, %v2912_v38 }
 0x9d3   :  { %v2467_v22 = vmul.f32 %v9232_v0, %v2435_v41  ;;  %v2710_v0 = vmul.f32 %v7907_v47, %v9242_v60  ;;  %v2719_v60 = vmul.f32 %v7910_v48, %v9262_v33  ;;  %v2720_v33 = vmul.f32 %v7910_v48, %v9266_v58 }
 0x9d4   :  { %v9333_v56 = vmul.f32 0.70710677, %v9329_v9  ;;  %v2705_v58 = vmul.f32 %v7963_v21, %v9194_v2  ;;  %v2714_v2 = vmul.f32 %v7907_v47, %v9252_v12 }
 0x9d5   :  { %6556 = vmatmul.msk.f32.gmra.mxu0 %vm935_vm6, %v2465_v6  ;;  %v2734_v39 = vadd.f32 %v2710_v0, %v2702_v27  ;;  %v2743_v28 = vadd.f32 %v2735_v16, %v2719_v60  ;;  %v2706_v27 = vmul.f32 %v7963_v21, %v9207_v55  ;;  %v2715_v55 = vmul.f32 %v7907_v47, %v9254_v50 }
 0x9d6   :  { %v2707_v16 = vmul.f32 %v7963_v21, %v9224_v51  ;;  %v2716_v51 = vmul.f32 %v7907_v47, %v9256_v4  ;;  %vm3342_vm3 = vcmp.ge.f32.partialorder %v9333_v56, 0.0 }
 0x9d7   :  { %v2742_v59 = vadd.f32 %v2734_v39, %v2718_v18  ;;  %v2722_v18 = vmul.f32 %v7910_v48, %v9274_v15 }
 0x9da   :  { %v9283_v23 = vpop.f32.mrf.mxu0 }
 0x9dd   :  { %6557 = vmatmul.msk.f32.gmra.mxu0 %vm935_vm6, %v2466_v3  ;;  %v2736_v3 = vadd.f32 %v2712_v32, %v2704_v19 }
 0x9df   :  { %v2744_v41 = vadd.f32 %v2736_v3, %v2720_v33 }
 0x9e4   :  { %v2677_v30 = vpop.f32.mrf.mxu0 }
 0x9e5   :  { %v2725_v52 = vmul.f32 %v7913_v49, %v2677_v30  ;;  %6558 = vmatmul.msk.f32.gmra.mxu0 %vm935_vm6, %v2467_v22  ;;  %v9343_v22 = vand.u32 2147483647, %v9333_v56  ;;  %v2737_v30 = vadd.f32 %v2713_v13, %v2705_v58 }
 0x9e7   :  { %v2749_v31 = vadd.f32 %v2741_v26, %v2725_v52  ;;  %v9346_v52 = vadd.f32 %v9319_v43, %v2915_v40  ;;  %v2745_v45 = vadd.f32 %v2737_v30, %v2721_v17  ;;  %v3006_v29 = vmul.f32 0.3275911, %v9343_v22 }
 0x9e9   :  { %6559 = vmatmul.msk.f32.vlgmr.msrb.gmra.mxu2 %vm134_vm0, %v2749_v31  ;;  %v2918_v31 = vpop.f32.mrf.mxu1  ;;  %v9353_v0 = vmul.f32 0.70710677, %v9346_v52  ;;  %v3022_v39 = vadd.f32 1.0, %v3006_v29 }
 0x9ea   :  { %v9364_v12 = vadd.f32 %v9319_v43, %v2918_v31 }
 0x9eb   :  { %7198 = vrcp.f32 %v3022_v39  ;;  %vm3343_vm4 = vcmp.ge.f32.partialorder %v9353_v0, 0.0 }
 0x9ec   :  { %v9371_v38 = vmul.f32 0.70710677, %v9364_v12 }
 0x9ed   :  { %6567 = vmatmul.msk.f32.vlgmr.msra.gmra.mxu0 %vm134_vm0, %v9300_v37 }
 0x9ee   :  { %v9379_v50 = vand.u32 2147483647, %v9371_v38  ;;  %vm3344_vm5 = vcmp.ge.f32.partialorder %v9371_v38, 0.0  ;;  %v2960_v38 = vmul.f32 0.5, %v9364_v12 }
 0x9f1   :  { %v2921_v15 = vpop.f32.mrf.mxu1  ;;  %v7199_v32 = vpop.eup %7198 }
 0x9f2   :  { %v9383_v3 = vadd.f32 %v9319_v43, %v2921_v15 }
 0x9f4   :  { %v9394_v13 = vmul.f32 0.70710677, %v9383_v3 }
 0x9f6   :  { %vm3345_vm7 = vcmp.ge.f32.partialorder %v9394_v13, 0.0 }
 0xa32   :  { %v2680_v42 = vpop.f32.mrf.mxu0 }
 0xa33   :  { %v2726_v62 = vmul.f32 %v7913_v49, %v2680_v42  ;;  %v2738_v42 = vadd.f32 %v2714_v2, %v2706_v27 }
 0xa35   :  { %v2750_v53 = vadd.f32 %v2742_v59, %v2726_v62  ;;  %v9361_v62 = vand.u32 2147483647, %v9353_v0  ;;  %v2746_v35 = vadd.f32 %v2738_v42, %v2722_v18 }
 0xa37   :  { %6560 = vmatmul.msk.f32.gmra.mxu2 %vm134_vm0, %v2750_v53  ;;  %v3007_v60 = vmul.f32 0.3275911, %v9361_v62 }
 0xa3a   :  { %v2683_v11 = vpop.f32.mrf.mxu0 }
 0xa3b   :  { %v2727_v6 = vmul.f32 %v7913_v49, %v2683_v11  ;;  %v2723_v11 = vmul.f32 %v7910_v48, %v9278_v36  ;;  %v3054_v36 = vmul.f32 %v7199_v32, %v3022_v39 }
 0xa3d   :  { %v2751_v24 = vadd.f32 %v2743_v28, %v2727_v6  ;;  %v2739_v28 = vadd.f32 %v2715_v55, %v2707_v16  ;;  %v3070_v4 = vsub.f32 2.0, %v3054_v36 }
 0xa3f   :  { %6561 = vmatmul.msk.f32.gmra.mxu2 %vm134_vm0, %v2751_v24  ;;  %v3023_v24 = vadd.f32 1.0, %v3007_v60  ;;  %v2747_v19 = vadd.f32 %v2739_v28, %v2723_v11  ;;  %v9403_v29 = vmul.f32 %v7199_v32, %v3070_v4 }
 0xa41   :  { %7200 = vrcp.f32 %v3023_v24 }
 0xa42   :  { %v2686_v5 = vpop.f32.mrf.mxu0 }
 0xa43   :  { %v2728_v57 = vmul.f32 %v7913_v49, %v2686_v5  ;;  %v3008_v5 = vmul.f32 0.3275911, %v9379_v50 }
 0xa45   :  { %v2752_v10 = vadd.f32 %v2744_v41, %v2728_v57  ;;  %v2708_v41 = vmul.f32 %v7963_v21, %v9230_v63  ;;  %v2724_v57 = vmul.f32 %v7910_v48, %v9283_v23  ;;  %v3024_v30 = vadd.f32 1.0, %v3008_v5  ;;  %v3424_v5 = vld [vmem:[#allocation6 + $0x108] sm:$0xff] }
 0xa46   :  { %3437 = vmatpush.xpose.msra.mxu3 %v3424_v5  ;;  %v3421_v5 = vld [vmem:[#allocation6 + $0x18] sm:$0xff] }
 0xa47   :  { %6562 = vmatmul.msk.f32.gmra.mxu2 %vm134_vm0, %v2752_v10  ;;  %v2924_v10 = vpop.f32.mrf.mxu1  ;;  %v2740_v58 = vadd.f32 %v2716_v51, %v2708_v41  ;;  %v7201_v23 = vpop.eup %7200  ;;  %7202 = vrcp.f32 %v3024_v30 }
 0xa48   :  { %v9401_v63 = vadd.f32 %v9319_v43, %v2924_v10  ;;  %v3055_v2 = vmul.f32 %v7201_v23, %v3023_v24 }
 0xa4a   :  { %v2689_v26 = vpop.f32.mrf.mxu0  ;;  %v9408_v27 = vmul.f32 0.70710677, %v9401_v63 }
 0xa4b   :  { %v2729_v14 = vmul.f32 %v7913_v49, %v2689_v26  ;;  %v2748_v26 = vadd.f32 %v2740_v58, %v2724_v57 }
 0xa4c   :  { %v9415_v55 = vand.u32 2147483647, %v9408_v27  ;;  %vm3346_vm8 = vcmp.ge.f32.partialorder %v9408_v27, 0.0 }
 0xa4d   :  { %v2753_v54 = vadd.f32 %v2745_v45, %v2729_v14  ;;  %v9398_v14 = vand.u32 2147483647, %v9394_v13  ;;  %v7203_v15 = vpop.eup %7202 }
 0xa4e   :  { %v3010_v51 = vmul.f32 0.3275911, %v9415_v55 }
 0xa4f   :  { %6563 = vmatmul.msk.f32.gmra.mxu2 %vm134_vm0, %v2753_v54  ;;  %v3009_v54 = vmul.f32 0.3275911, %v9398_v14  ;;  %v2927_v18 = vpop.f32.mrf.mxu1 }
 0xa50   :  { %v9418_v60 = vadd.f32 %v9319_v43, %v2927_v18  ;;  %v3026_v4 = vadd.f32 1.0, %v3010_v51 }
 0xa52   :  { %v2692_v59 = vpop.f32.mrf.mxu0 }
 0xa53   :  { %v2730_v53 = vmul.f32 %v7913_v49, %v2692_v59  ;;  %v3102_v59 = vmul.f32 1.0614054, %v9403_v29 }
 0xa55   :  { %v2754_v46 = vadd.f32 %v2746_v35, %v2730_v53  ;;  %v3071_v35 = vsub.f32 2.0, %v3055_v2  ;;  %v3025_v53 = vadd.f32 1.0, %v3009_v54  ;;  %v3118_v24 = vadd.f32 -1.4531521, %v3102_v59 }
 0xa57   :  { %6564 = vmatmul.msk.f32.gmra.mxu2 %vm134_vm0, %v2754_v46  ;;  %7204 = vrcp.f32 %v3025_v53  ;;  %v2930_v41 = vpop.f32.mrf.mxu1  ;;  %v3134_v58 = vmul.f32 %v3118_v24, %v9403_v29 }
 0xa59   :  { %v3150_v2 = vadd.f32 1.4214138, %v3134_v58 }
 0xa5a   :  { %v2695_v6 = vpop.f32.mrf.mxu0 }
 0xa5b   :  { %v2731_v33 = vmul.f32 %v7913_v49, %v2695_v6  ;;  %v7596_v6 = vld [vmem:[#allocation4 + $0x40] sm:$0xff]  ;;  %v3166_v24 = vmul.f32 %v3150_v2, %v9403_v29 }
 0xa5d   :  { %v2755_v40 = vadd.f32 %v2747_v19, %v2731_v33  ;;  %v9429_v19 = vmul.f32 %v7201_v23, %v3071_v35  ;;  %v3056_v33 = vmul.f32 %v7203_v15, %v3024_v30  ;;  %v7205_v23 = vpop.eup %7204  ;;  %v3422_v35 = vld [vmem:[#allocation6 + $0x68] sm:$0xff] }
 0xa5e   :  { %v3057_v18 = vmul.f32 %v7205_v23, %v3025_v53 }
 0xa5f   :  { %6565 = vmatmul.msk.f32.gmra.mxu2 %vm134_vm0, %v2755_v40  ;;  %v9433_v40 = vmul.f32 0.70710677, %v9418_v60  ;;  %v3072_v10 = vsub.f32 2.0, %v3056_v33 }
 0xa60   :  { %v3073_v51 = vsub.f32 2.0, %v3057_v18 }
 0xa61   :  { %v9441_v30 = vand.u32 2147483647, %v9433_v40  ;;  %vm3347_vm9 = vcmp.ge.f32.partialorder %v9433_v40, 0.0  ;;  %v7599_v40 = vld [vmem:[#allocation4 + $0x58] sm:$0xff] }
 0xa62   :  { %v2698_v17 = vpop.f32.mrf.mxu0  ;;  %v9460_v2 = vmul.f32 %v7205_v23, %v3073_v51 }
 0xa63   :  { %v2732_v45 = vmul.f32 %v7913_v49, %v2698_v17  ;;  %v3103_v17 = vmul.f32 1.0614054, %v9429_v19 }
 0xa65   :  { %v2756_v31 = vadd.f32 %v2748_v26, %v2732_v45  ;;  %v9444_v26 = vadd.f32 %v9319_v43, %v2930_v41  ;;  %v3423_v45 = vld [vmem:[#allocation6 + $0xb8] sm:$0xff]  ;;  %v3119_v54 = vadd.f32 -1.4531521, %v3103_v17 }
 0xa66   :  { %3438 = vmatpush.xpose.msra.mxu3 %v3423_v45  ;;  %v3182_v45 = vadd.f32 -0.28449672, %v3166_v24  ;;  %v3105_v24 = vmul.f32 1.0614054, %v9460_v2 }
 0xa67   :  { %6566 = vmatmul.msk.f32.gmra.mxu2 %vm134_vm0, %v2756_v31  ;;  %v9446_v31 = vmul.f32 %v7203_v15, %v3072_v10  ;;  %v9450_v59 = vmul.f32 0.70710677, %v9444_v26  ;;  %v3135_v15 = vmul.f32 %v3119_v54, %v9429_v19 }
 0xa68   :  { %v3198_v47 = vmul.f32 %v3182_v45, %v9403_v29 }
 0xa69   :  { %v3104_v33 = vmul.f32 1.0614054, %v9446_v31  ;;  %vm3348_vm10 = vcmp.ge.f32.partialorder %v9450_v59, 0.0 }
 0xa6a   :  { %v2909_v39 = vpop.f32.mrf.mxu0  ;;  %3439 = vmatpush.xpose.msra.mxu3 %v3422_v35 }
 0xa6b   :  { %v9411_v42 = vadd.f32 %v9319_v43, %v2909_v39  ;;  %v3011_v39 = vmul.f32 0.3275911, %v9441_v30  ;;  %v3120_v35 = vadd.f32 -1.4531521, %v3104_v33 }
 0xa6c   :  { %v2798_v46 = vpop.f32.mrf.mxu2 }
 0xa6d   :  { %v9421_v16 = vmul.f32 0.70710677, %v9411_v42  ;;  %v2799_v11 = vadd.f32 %v9295_v44, %v2798_v46  ;;  %v3027_v53 = vadd.f32 1.0, %v3011_v39  ;;  %v3136_v23 = vmul.f32 %v3120_v35, %v9446_v31 }
 0xa6e   :  { %3440 = vmatpush.xpose.msra.mxu3 %v3421_v5 }
 0xa6f   :  { %v9425_v28 = vand.u32 2147483647, %v9421_v16  ;;  %v9427_v32 = vadd.f32 %v7596_v6, %v2799_v11  ;;  %v3246_v11 = vsub.f32 0.0, %v9343_v22  ;;  %v3152_v21 = vadd.f32 1.4214138, %v3136_v23 }
 0xa70   :  { %vm3341_vm2 = vcmp.ge.f32.partialorder %v9421_v16, 0.0 }
 0xa71   :  { %11333 = vst [vmem:[#allocation17_spill] sm:$0xff] %v9427_v32  ;;  %v3005_v36 = vmul.f32 0.3275911, %v9425_v28  ;;  %6575 = vmatmul.msk.f32.gmra.mxu1 %vm134_vm0, %v9427_v32  ;;  %v3262_v58 = vmul.f32 %v3246_v11, %v9343_v22  ;;  %v3245_v18 = vsub.f32 0.0, %v9425_v28  ;;  %v3248_v32 = vsub.f32 0.0, %v9379_v50 }
 0xa73   :  { %v3021_v57 = vadd.f32 1.0, %v3005_v36  ;;  %v9457_v36 = vand.u32 2147483647, %v9450_v59  ;;  %v3279_v48 = vmul.f32 1.442695, %v3262_v58  ;;  %v3261_v11 = vmul.f32 %v3245_v18, %v9425_v28 }
 0xa74   :  { %v3214_v58 = vadd.f32 0.2548296, %v3198_v47  ;;  %v3168_v47 = vmul.f32 %v3152_v21, %v9446_v31  ;;  %v3264_v23 = vmul.f32 %v3248_v32, %v9379_v50 }
 0xa75   :  { %7206 = vrcp.f32 %v3021_v57  ;;  %v3012_v54 = vmul.f32 0.3275911, %v9457_v36  ;;  %v3277_v45 = vmul.f32 1.442695, %v3261_v11 }
 0xa76   :  { %7208 = vrcp.f32 %v3026_v4 }
 0xa77   :  { %7210 = vrcp.f32 %v3027_v53 }
 0xa78   :  { %7212 = vpow2.f32 %v3279_v48 }
 0xa7b   :  { %v7207_v46 = vpop.eup %7206 }
 0xa7c   :  { %v3053_v6 = vmul.f32 %v7207_v46, %v3021_v57  ;;  %v7209_v10 = vpop.eup %7208  ;;  %v3151_v57 = vadd.f32 1.4214138, %v3135_v15 }
 0xa7d   :  { %v3058_v39 = vmul.f32 %v7209_v10, %v3026_v4  ;;  %v7211_v51 = vpop.eup %7210 }
 0xa7e   :  { %v3069_v41 = vsub.f32 2.0, %v3053_v6  ;;  %v3247_v6 = vsub.f32 0.0, %v9361_v62  ;;  %v3167_v22 = vmul.f32 %v3151_v57, %v9429_v19  ;;  %v3121_v57 = vadd.f32 -1.4531521, %v3105_v24  ;;  %v7213_v48 = vpop.eup %7212 }
 0xa7f   :  { %v3074_v15 = vsub.f32 2.0, %v3058_v39  ;;  %v3059_v28 = vmul.f32 %v7211_v51, %v3027_v53 }
 0xa80   :  { %v3085_v17 = vmul.f32 %v7207_v46, %v3069_v41  ;;  %v3028_v46 = vadd.f32 1.0, %v3012_v54  ;;  %v3263_v4 = vmul.f32 %v3247_v6, %v9361_v62  ;;  %v3137_v6 = vmul.f32 %v3121_v57, %v9460_v2 }
 0xa81   :  { %v9471_v54 = vmul.f32 %v7209_v10, %v3074_v15  ;;  %v3283_v57 = vmul.f32 1.442695, %v3264_v23 }
 0xa82   :  { %v3101_v49 = vmul.f32 1.0614054, %v3085_v17  ;;  %7214 = vrcp.f32 %v3028_v46  ;;  %v3281_v35 = vmul.f32 1.442695, %v3263_v4  ;;  %v3153_v4 = vadd.f32 1.4214138, %v3137_v6 }
 0xa83   :  { %7216 = vpow2.f32 %v3277_v45  ;;  %v3106_v10 = vmul.f32 1.0614054, %v9471_v54 }
 0xa84   :  { %v3117_v5 = vadd.f32 -1.4531521, %v3101_v49  ;;  %v3183_v49 = vadd.f32 -0.28449672, %v3167_v22  ;;  %v3075_v22 = vsub.f32 2.0, %v3059_v28  ;;  %7218 = vpow2.f32 %v3281_v35 }
 0xa85   :  { %v3122_v21 = vadd.f32 -1.4531521, %v3106_v10  ;;  %v3169_v50 = vmul.f32 %v3153_v4, %v9460_v2  ;;  %7220 = vpow2.f32 %v3283_v57 }
 0xa86   :  { %v3133_v33 = vmul.f32 %v3117_v5, %v3085_v17  ;;  %v3230_v5 = vmul.f32 %v3214_v58, %v9403_v29  ;;  %v3199_v62 = vmul.f32 %v3183_v49, %v9429_v19  ;;  %v3184_v29 = vadd.f32 -0.28449672, %v3168_v47 }
 0xa87   :  { %v3185_v6 = vadd.f32 -0.28449672, %v3169_v50 }
 0xa88   :  { %v3149_v41 = vadd.f32 1.4214138, %v3133_v33  ;;  %v7215_v53 = vpop.eup %7214  ;;  %v3310_v15 = vmul.f32 %v7213_v48, %v3230_v5  ;;  %v3215_v33 = vadd.f32 0.2548296, %v3199_v62  ;;  %v3200_v20 = vmul.f32 %v3184_v29, %v9446_v31 }
 0xa89   :  { %v3060_v58 = vmul.f32 %v7215_v53, %v3028_v46  ;;  %v7217_v45 = vpop.eup %7216  ;;  %v3138_v5 = vmul.f32 %v3122_v21, %v9471_v54  ;;  %v3201_v16 = vmul.f32 %v3185_v6, %v9460_v2  ;;  %v3251_v6 = vsub.f32 0.0, %v9441_v30 }
 0xa8a   :  { %v3165_v18 = vmul.f32 %v3149_v41, %v3085_v17  ;;  %v9480_v41 = vmul.f32 %v7211_v51, %v3075_v22  ;;  %v7219_v48 = vpop.eup %7218 }
 0xa8b   :  { %v3076_v32 = vsub.f32 2.0, %v3060_v58  ;;  %v3154_v10 = vadd.f32 1.4214138, %v3138_v5 }
 0xa8c   :  { %v3181_v39 = vadd.f32 -0.28449672, %v3165_v18  ;;  %v3326_v18 = vsub.f32 1.0, %v3310_v15  ;;  %v3107_v51 = vmul.f32 1.0614054, %v9480_v41  ;;  %v2957_v15 = vmul.f32 0.5, %v9411_v42 }
 0xa8d   :  { %v9489_v22 = vmul.f32 %v7215_v53, %v3076_v32  ;;  %v3170_v53 = vmul.f32 %v3154_v10, %v9471_v54  ;;  %v3250_v42 = vsub.f32 0.0, %v9415_v55 }
 0xa8e   :  { %v3197_v11 = vmul.f32 %v3181_v39, %v3085_v17  ;;  %v3231_v39 = vmul.f32 %v3215_v33, %v9429_v19  ;;  %v3358_v62 = vsub.f32 0.0, %v3326_v18  ;;  %v3216_v19 = vadd.f32 0.2548296, %v3200_v20  ;;  %v7221_v20 = vpop.eup %7220 }
 0xa8f   :  { %v3123_v23 = vadd.f32 -1.4531521, %v3107_v51  ;;  %v3186_v50 = vadd.f32 -0.28449672, %v3170_v53  ;;  %v3252_v53 = vsub.f32 0.0, %v9457_v36 }
 0xa90   :  { %v3213_v24 = vadd.f32 0.2548296, %v3197_v11  ;;  %v3311_v47 = vmul.f32 %v7219_v48, %v3231_v39  ;;  %v3232_v58 = vmul.f32 %v3216_v19, %v9446_v31  ;;  %v3217_v39 = vadd.f32 0.2548296, %v3201_v16 }
 0xa91   :  { %v3139_v21 = vmul.f32 %v3123_v23, %v9480_v41 }
 0xa92   :  { %v3229_v49 = vmul.f32 %v3213_v24, %v3085_v17  ;;  %v3249_v17 = vsub.f32 0.0, %v9398_v14  ;;  %v3327_v4 = vsub.f32 1.0, %v3311_v47 }
 0xa93   :  { %v3155_v31 = vadd.f32 1.4214138, %v3139_v21 }
 0xa94   :  { %v3309_v28 = vmul.f32 %v7217_v45, %v3229_v49  ;;  %v3265_v24 = vmul.f32 %v3249_v17, %v9398_v14  ;;  %v3374_v49 = vsel %vm3342_vm3, %v3326_v18, %v3358_v62  ;;  %v3108_v45 = vmul.f32 1.0614054, %v9489_v22 }
 0xa95   :  { %v3390_v57 = vadd.f32 1.0, %v3374_v49  ;;  %v3359_v56 = vsub.f32 0.0, %v3327_v4  ;;  %v3266_v18 = vmul.f32 %v3250_v42, %v9415_v55  ;;  %v3233_v17 = vmul.f32 %v3217_v39, %v9460_v2 }
 0xa96   :  { %v3325_v35 = vsub.f32 1.0, %v3309_v28  ;;  %v3285_v14 = vmul.f32 1.442695, %v3265_v24  ;;  %v3312_v28 = vmul.f32 %v7221_v20, %v3232_v58  ;;  %v3124_v32 = vadd.f32 -1.4531521, %v3108_v45 }
 0xa97   :  { %v3375_v51 = vsel %vm3343_vm4, %v3327_v4, %v3359_v56  ;;  %v3171_v62 = vmul.f32 %v3155_v31, %v9480_v41  ;;  %v3287_v19 = vmul.f32 1.442695, %v3266_v18  ;;  %v3267_v2 = vmul.f32 %v3251_v6, %v9441_v30 }
 0xa98   :  { %v3357_v46 = vsub.f32 0.0, %v3325_v35  ;;  %7222 = vpow2.f32 %v3285_v14  ;;  %v3328_v48 = vsub.f32 1.0, %v3312_v28  ;;  %v3140_v47 = vmul.f32 %v3124_v32, %v9489_v22 }
 0xa99   :  { %v3187_v23 = vadd.f32 -0.28449672, %v3171_v62  ;;  %7224 = vpow2.f32 %v3287_v19  ;;  %v3289_v49 = vmul.f32 1.442695, %v3267_v2  ;;  %vm6017_vm4 = vcmask 1040384  }
 0xa9a   :  { %v3373_v11 = vsel %vm3341_vm2, %v3325_v35, %v3357_v46  ;;  %v2958_v35 = vmul.f32 0.5, %v9329_v9  ;;  %v3202_v46 = vmul.f32 %v3186_v50, %v9471_v54  ;;  %v3360_v55 = vsub.f32 0.0, %v3328_v48 }
 0xa9b   :  { %v3389_v33 = vadd.f32 1.0, %v3373_v11  ;;  %v3391_v11 = vadd.f32 1.0, %v3375_v51  ;;  %v3156_v24 = vadd.f32 1.4214138, %v3140_v47  ;;  %v3203_v16 = vmul.f32 %v3187_v23, %v9480_v41 }
 0xa9c   :  { %v3406_v5 = vmul.f32 %v3390_v57, %v2958_v35  ;;  %v3218_v0 = vadd.f32 0.2548296, %v3202_v46  ;;  %7226 = vpow2.f32 %v3289_v49  ;;  %v3268_v57 = vmul.f32 %v3252_v53, %v9457_v36  ;;  %v7597_v36 = vld [vmem:[#allocation4 + $0x48] sm:$0xff] }
 0xa9d   :  { %v3405_v29 = vmul.f32 %v3389_v33, %v2957_v15  ;;  %v2959_v15 = vmul.f32 0.5, %v9346_v52  ;;  %v3172_v20 = vmul.f32 %v3156_v24, %v9489_v22  ;;  %v3219_v30 = vadd.f32 0.2548296, %v3203_v16 }
 0xa9e   :  { %v7223_v9 = vpop.eup %7222  ;;  %v3234_v58 = vmul.f32 %v3218_v0, %v9471_v54  ;;  %v3291_v31 = vmul.f32 1.442695, %v3268_v57  ;;  %v2964_v53 = vmul.f32 0.5, %v9444_v26  ;;  %v3646_v57 = vld [vmem:[#allocation6 + $0x118] sm:$0xff] }
 0xa9f   :  { %3441 = vmatmul.f32.vlgmr.msra.gmra.mxu3 %v3405_v29  ;;  %v3313_v10 = vmul.f32 %v7223_v9, %v3233_v17  ;;  %v3407_v33 = vmul.f32 %v3391_v11, %v2959_v15  ;;  %v3376_v29 = vsel %vm3344_vm5, %v3328_v48, %v3360_v55  ;;  %v7225_v21 = vpop.eup %7224  ;;  %v3188_v42 = vadd.f32 -0.28449672, %v3172_v20  ;;  %3709 = vmatpush.msrb.mxu0 %v3646_v57 }
 0xaa0   :  { %v3392_v52 = vadd.f32 1.0, %v3376_v29  ;;  %v3314_v14 = vmul.f32 %v7225_v21, %v3234_v58  ;;  %v3235_v39 = vmul.f32 %v3219_v30, %v9480_v41  ;;  %v2961_v48 = vmul.f32 0.5, %v9383_v3  ;;  %v7601_v30 = vld [vmem:[#allocation4 + $0x68] sm:$0xff] }
 0xaa1   :  { %v3329_v4 = vsub.f32 1.0, %v3313_v10  ;;  %v3204_v50 = vmul.f32 %v3188_v42, %v9489_v22  ;;  %7228 = vpow2.f32 %v3291_v31  ;;  %v2962_v55 = vmul.f32 0.5, %v9401_v63  ;;  %v7598_v10 = vld [vmem:[#allocation4 + $0x50] sm:$0xff] }
 0xaa2   :  { %v3408_v54 = vmul.f32 %v3392_v52, %v2960_v38  ;;  %v3330_v28 = vsub.f32 1.0, %v3314_v14  ;;  %v7227_v32 = vpop.eup %7226  ;;  %v2963_v29 = vmul.f32 0.5, %v9418_v60  ;;  %v7600_v60 = vld [vmem:[#allocation4 + $0x60] sm:$0xff] }
 0xaa3   :  { %v3361_v45 = vsub.f32 0.0, %v3329_v4  ;;  %v3315_v51 = vmul.f32 %v7227_v32, %v3235_v39  ;;  %v3220_v12 = vadd.f32 0.2548296, %v3204_v50  ;;  %v7603_v50 = vld [vmem:[#allocation4 + $0x78] sm:$0xff] }
 0xaa5   :  { %v3377_v56 = vsel %vm3345_vm7, %v3329_v4, %v3361_v45  ;;  %v3331_v62 = vsub.f32 1.0, %v3315_v51  ;;  %v3236_v47 = vmul.f32 %v3220_v12, %v9489_v22 }
 0xaa6   :  { %v3393_v35 = vadd.f32 1.0, %v3377_v56 }
 0xaa7   :  { %3444 = vmatmul.f32.gmra.mxu3 %v3406_v5  ;;  %v3362_v5 = vsub.f32 0.0, %v3330_v28  ;;  %v7229_v19 = vpop.eup %7228  ;;  %v3363_v9 = vsub.f32 0.0, %v3331_v62 }
 0xaa8   :  { %v3409_v41 = vmul.f32 %v3393_v35, %v2961_v48  ;;  %v3316_v11 = vmul.f32 %v7229_v19, %v3236_v47  ;;  %v3643_v47 = vld [vmem:[#allocation6 + $0x28] sm:$0xff] }
 0xaa9   :  { %v3378_v46 = vsel %vm3346_vm8, %v3330_v28, %v3362_v5  ;;  %v3379_v22 = vsel %vm3347_vm9, %v3331_v62, %v3363_v9  ;;  %v3644_v62 = vld [vmem:[#allocation6 + $0x78] sm:$0xff] }
 0xaaa   :  { %v3394_v6 = vadd.f32 1.0, %v3378_v46  ;;  %v3332_v24 = vsub.f32 1.0, %v3316_v11  ;;  %v3395_v15 = vadd.f32 1.0, %v3379_v22 }
 0xaac   :  { %v3410_v23 = vmul.f32 %v3394_v6, %v2962_v55  ;;  %v3411_v58 = vmul.f32 %v3395_v15, %v2963_v29 }
 0xaaf   :  { %3447 = vmatmul.f32.gmra.mxu3 %v3407_v33  ;;  %v3364_v33 = vsub.f32 0.0, %v3332_v24 }
 0xab1   :  { %v3380_v16 = vsel %vm3348_vm10, %v3332_v24, %v3364_v33 }
 0xab2   :  { %v3396_v20 = vadd.f32 1.0, %v3380_v16  ;;  %v9564_v16 = vld [vmem:[#allocation7 + $0x5] ss:$0 sm:$0xff] }
 0xab4   :  { %v3412_v45 = vmul.f32 %v3396_v20, %v2964_v53 }
 0xab7   :  { %3450 = vmatmul.f32.gmra.mxu3 %v3408_v54  ;;  %v7602_v54 = vld [vmem:[#allocation4 + $0x70] sm:$0xff] }
 0xaba   :  { %v2801_v18 = vpop.f32.mrf.mxu2 }
 0xabb   :  { %v2802_v13 = vadd.f32 %v9295_v44, %v2801_v18 }
 0xabd   :  { %v9523_v17 = vadd.f32 %v7597_v36, %v2802_v13 }
 0xabf   :  { %6576 = vmatmul.msk.f32.gmra.mxu1 %vm134_vm0, %v9523_v17  ;;  %3453 = vmatmul.f32.gmra.mxu3 %v3409_v41  ;;  %v3645_v41 = vld [vmem:[#allocation6 + $0xc8] sm:$0xff] }
 0xac0   :  { %3710 = vmatpush.msrb.mxu0 %v3645_v41 }
 0xac2   :  { %v2804_v3 = vpop.f32.mrf.mxu2  ;;  %3711 = vmatpush.msrb.mxu0 %v3644_v62 }
 0xac3   :  { %v2805_v27 = vadd.f32 %v9295_v44, %v2804_v3 }
 0xac4   :  { %3712 = vmatpush.msrb.mxu0 %v3643_v47 }
 0xac5   :  { %v9531_v0 = vadd.f32 %v7598_v10, %v2805_v27 }
 0xac7   :  { %6577 = vmatmul.msk.f32.gmra.mxu1 %vm134_vm0, %v9531_v0  ;;  %3456 = vmatmul.f32.gmra.mxu3 %v3410_v23 }
 0xaca   :  { %v2807_v2 = vpop.f32.mrf.mxu2 }
 0xacb   :  { %v2808_v63 = vadd.f32 %v9295_v44, %v2807_v2 }
 0xacd   :  { %v9538_v4 = vadd.f32 %v7599_v40, %v2808_v63 }
 0xacf   :  { %6578 = vmatmul.msk.f32.gmra.mxu1 %vm134_vm0, %v9538_v4  ;;  %3459 = vmatmul.f32.gmra.mxu3 %v3411_v58 }
 0xad2   :  { %v2810_v49 = vpop.f32.mrf.mxu2 }
 0xad3   :  { %v2811_v21 = vadd.f32 %v9295_v44, %v2810_v49 }
 0xad5   :  { %v9544_v52 = vadd.f32 %v7600_v60, %v2811_v21 }
 0xad7   :  { %6579 = vmatmul.msk.f32.gmra.mxu1 %vm134_vm0, %v9544_v52  ;;  %3462 = vmatmul.f32.gmra.mxu3 %v3412_v45 }
 0xada   :  { %v2813_v59 = vpop.f32.mrf.mxu2 }
 0xadb   :  { %v2814_v14 = vadd.f32 %v9295_v44, %v2813_v59 }
 0xadd   :  { %v9549_v42 = vadd.f32 %v7601_v30, %v2814_v14 }
 0xadf   :  { %6580 = vmatmul.msk.f32.gmra.mxu1 %vm134_vm0, %v9549_v42 }
 0xae2   :  { %v2816_v26 = vpop.f32.mrf.mxu2 }
 0xae3   :  { %v2817_v38 = vadd.f32 %v9295_v44, %v2816_v26 }
 0xae5   :  { %v9554_v56 = vadd.f32 %v7602_v54, %v2817_v38 }
 0xae7   :  { %6581 = vmatmul.msk.f32.gmra.mxu1 %vm134_vm0, %v9554_v56 }
 0xaea   :  { %v2819_v28 = vpop.f32.mrf.mxu2 }
 0xaeb   :  { %v2820_v39 = vadd.f32 %v9295_v44, %v2819_v28 }
 0xaed   :  { %v9559_v31 = vadd.f32 %v7603_v50, %v2820_v39 }
 0xaee   :  { %v2933_v32 = vpop.f32.mrf.mxu1 }
 0xaef   :  { %v2934_v35 = vadd.f32 %v9319_v43, %v2933_v32  ;;  %6582 = vmatmul.msk.f32.gmra.mxu1 %vm134_vm0, %v9559_v31 }
 0xaf1   :  { %v2981_v18 = vmul.f32 0.70710677, %v2934_v35  ;;  %v2965_v40 = vmul.f32 0.5, %v2934_v35 }
 0xaf3   :  { %v2997_v5 = vand.u32 2147483647, %v2981_v18  ;;  %vm3349_vm11 = vcmp.ge.f32.partialorder %v2981_v18, 0.0 }
 0xaf5   :  { %v3013_v51 = vmul.f32 0.3275911, %v2997_v5  ;;  %v3253_v44 = vsub.f32 0.0, %v2997_v5 }
 0xaf7   :  { %v3029_v12 = vadd.f32 1.0, %v3013_v51  ;;  %v3269_v3 = vmul.f32 %v3253_v44, %v2997_v5 }
 0xaf9   :  { %7230 = vrcp.f32 %v3029_v12  ;;  %v3293_v55 = vmul.f32 1.442695, %v3269_v3  ;;  %v3527_v3 = vld [vmem:[#allocation6 + $0x110] sm:$0xff] }
 0xafa   :  { %3590 = vmatpush.msra.mxu2 %v3527_v3 }
 0xafb   :  { %7232 = vpow2.f32 %v3293_v55 }
 0xaff   :  { %v7231_v48 = vpop.eup %7230 }
 0xb00   :  { %v3061_v13 = vmul.f32 %v7231_v48, %v3029_v12 }
 0xb01   :  { %v7233_v15 = vpop.eup %7232 }
 0xb02   :  { %v3077_v36 = vsub.f32 2.0, %v3061_v13 }
 0xb04   :  { %v3093_v46 = vmul.f32 %v7231_v48, %v3077_v36 }
 0xb06   :  { %v3109_v19 = vmul.f32 1.0614054, %v3093_v46 }
 0xb08   :  { %v3125_v6 = vadd.f32 -1.4531521, %v3109_v19 }
 0xb0a   :  { %v3141_v9 = vmul.f32 %v3125_v6, %v3093_v46 }
 0xb0c   :  { %v3157_v11 = vadd.f32 1.4214138, %v3141_v9 }
 0xb0e   :  { %v3173_v27 = vmul.f32 %v3157_v11, %v3093_v46 }
 0xb10   :  { %v3189_v10 = vadd.f32 -0.28449672, %v3173_v27  ;;  %v3526_v27 = vld [vmem:[#allocation6 + $0xc0] sm:$0xff] }
 0xb11   :  { %3591 = vmatpush.msra.mxu2 %v3526_v27 }
 0xb12   :  { %v3205_v23 = vmul.f32 %v3189_v10, %v3093_v46 }
 0xb14   :  { %v3221_v22 = vadd.f32 0.2548296, %v3205_v23 }
 0xb16   :  { %v3237_v24 = vmul.f32 %v3221_v22, %v3093_v46 }
 0xb18   :  { %v3317_v2 = vmul.f32 %v7233_v15, %v3237_v24  ;;  %v3525_v15 = vld [vmem:[#allocation6 + $0x70] sm:$0xff] }
 0xb19   :  { %3592 = vmatpush.msra.mxu2 %v3525_v15 }
 0xb1a   :  { %v3333_v33 = vsub.f32 1.0, %v3317_v2 }
 0xb1c   :  { %v3365_v29 = vsub.f32 0.0, %v3333_v33 }
 0xb1e   :  { %v3381_v63 = vsel %vm3349_vm11, %v3333_v33, %v3365_v29 }
 0xb1f   :  { %v3397_v58 = vadd.f32 1.0, %v3381_v63 }
 0xb21   :  { %v3413_v20 = vmul.f32 %v3397_v58, %v2965_v40 }
 0xb22   :  { %v3442_v49 = vpop.f32.mrf.mxu3 }
 0xb23   :  { %v3490_v53 = vadd.f32 %v3442_v49, %v9300_v37  ;;  %3465 = vmatmul.f32.gmra.mxu3 %v3413_v20  ;;  %v3524_v49 = vld [vmem:[#allocation6 + $0x20] sm:$0xff] }
 0xb24   :  { %3593 = vmatpush.msra.mxu2 %v3524_v49  ;;  %v82_v49 = vld [vmem:[#allocation2 + $0x10] sm:$0xff] }
 0xb25   :  { %v3508_v21 = vadd.f32 %v9564_v16, %v3490_v53  ;;  %v80_v53 = vld [vmem:[#allocation2] sm:$0xff] }
 0xb26   :  { %6583 = vmatmul.msk.f32.vlgmr.msra.gmra.mxu2 %vm134_vm0, %v80_v53 }
 0xb27   :  { %6599 = vmatmul.msk.f32.vlgmr.msrb.gmra.mxu0 %vm134_vm0, %v3508_v21 }
 0xb2a   :  { %v3445_v60 = vpop.f32.mrf.mxu3 }
 0xb2b   :  { %v3491_v45 = vadd.f32 %v3445_v60, %v8794_v8 }
 0xb2d   :  { %v3509_v59 = vadd.f32 %v9564_v16, %v3491_v45 }
 0xb2f   :  { %6600 = vmatmul.msk.f32.gmra.mxu0 %vm134_vm0, %v3509_v59 }
 0xb32   :  { %v3448_v14 = vpop.f32.mrf.mxu3 }
 0xb33   :  { %v3492_v30 = vadd.f32 %v3448_v14, %v8806_v25 }
 0xb35   :  { %v3510_v26 = vadd.f32 %v9564_v16, %v3492_v30 }
 0xb37   :  { %6601 = vmatmul.msk.f32.gmra.mxu0 %vm134_vm0, %v3510_v26 }
 0xb3a   :  { %v3451_v37 = vpop.f32.mrf.mxu3 }
 0xb3b   :  { %v3493_v38 = vadd.f32 %v3451_v37, %v8818_v61 }
 0xb3c   :  { %v2936_v57 = vpop.f32.mrf.mxu1 }
 0xb3d   :  { %v3511_v54 = vadd.f32 %v9564_v16, %v3493_v38  ;;  %v9578_v28 = vadd.f32 %v9319_v43, %v2936_v57  ;;  %v11334_v57 = vld [vmem:[#allocation16_spill] sm:$0xff] }
 0xb3f   :  { %v9581_v8 = vmul.f32 0.70710677, %v9578_v28  ;;  %6602 = vmatmul.msk.f32.gmra.mxu0 %vm134_vm0, %v3511_v54 }
 0xb41   :  { %v2998_v25 = vand.u32 2147483647, %v9581_v8  ;;  %vm3350_vm12 = vcmp.ge.f32.partialorder %v9581_v8, 0.0 }
 0xb42   :  { %v3454_v39 = vpop.f32.mrf.mxu3 }
 0xb43   :  { %v3014_v50 = vmul.f32 0.3275911, %v2998_v25  ;;  %v3494_v32 = vadd.f32 %v3454_v39, %v8830_v34  ;;  %v3254_v11 = vsub.f32 0.0, %v2998_v25 }
 0xb44   :  { %v2939_v35 = vpop.f32.mrf.mxu1 }
 0xb45   :  { %v3030_v18 = vadd.f32 1.0, %v3014_v50  ;;  %v3512_v61 = vadd.f32 %v9564_v16, %v3494_v32  ;;  %v9588_v5 = vadd.f32 %v9319_v43, %v2939_v35  ;;  %v3270_v40 = vmul.f32 %v3254_v11, %v2998_v25 }
 0xb47   :  { %7234 = vrcp.f32 %v3030_v18  ;;  %v9591_v51 = vmul.f32 0.70710677, %v9588_v5  ;;  %6603 = vmatmul.msk.f32.gmra.mxu0 %vm134_vm0, %v3512_v61  ;;  %v3295_v14 = vmul.f32 1.442695, %v3270_v40 }
 0xb49   :  { %v2999_v12 = vand.u32 2147483647, %v9591_v51  ;;  %vm3351_vm13 = vcmp.ge.f32.partialorder %v9591_v51, 0.0 }
 0xb4a   :  { %v3457_v48 = vpop.f32.mrf.mxu3 }
 0xb4b   :  { %v3015_v13 = vmul.f32 0.3275911, %v2999_v12  ;;  %v3495_v36 = vadd.f32 %v3457_v48, %v8842_v1  ;;  %v3255_v45 = vsub.f32 0.0, %v2999_v12 }
 0xb4c   :  { %v2942_v34 = vpop.f32.mrf.mxu1 }
 0xb4d   :  { %v7235_v41 = vpop.eup %7234  ;;  %v3031_v46 = vadd.f32 1.0, %v3015_v13  ;;  %v3513_v44 = vadd.f32 %v9564_v16, %v3495_v36  ;;  %v9598_v62 = vadd.f32 %v9319_v43, %v2942_v34  ;;  %v3271_v35 = vmul.f32 %v3255_v45, %v2999_v12 }
 0xb4e   :  { %v3062_v47 = vmul.f32 %v7235_v41, %v3030_v18 }
 0xb4f   :  { %7236 = vrcp.f32 %v3031_v46  ;;  %v9601_v19 = vmul.f32 0.70710677, %v9598_v62  ;;  %6604 = vmatmul.msk.f32.gmra.mxu0 %vm134_vm0, %v3513_v44 }
 0xb50   :  { %v3078_v6 = vsub.f32 2.0, %v3062_v47 }
 0xb51   :  { %v9605_v9 = vand.u32 2147483647, %v9601_v19  ;;  %vm3352_vm14 = vcmp.ge.f32.partialorder %v9601_v19, 0.0 }
 0xb52   :  { %v9607_v1 = vmul.f32 %v7235_v41, %v3078_v6  ;;  %v3460_v55 = vpop.f32.mrf.mxu3 }
 0xb53   :  { %v3016_v10 = vmul.f32 0.3275911, %v9605_v9  ;;  %v3496_v23 = vadd.f32 %v3460_v55, %v8858_v7  ;;  %v3256_v6 = vsub.f32 0.0, %v9605_v9 }
 0xb54   :  { %v2945_v22 = vpop.f32.mrf.mxu1  ;;  %v3110_v24 = vmul.f32 1.0614054, %v9607_v1 }
 0xb55   :  { %v7237_v2 = vpop.eup %7236  ;;  %v3032_v33 = vadd.f32 1.0, %v3016_v10  ;;  %v3514_v29 = vadd.f32 %v9564_v16, %v3496_v23  ;;  %v9614_v63 = vadd.f32 %v9319_v43, %v2945_v22 }
 0xb56   :  { %v3063_v58 = vmul.f32 %v7237_v2, %v3031_v46  ;;  %v3126_v20 = vadd.f32 -1.4531521, %v3110_v24  ;;  %v81_v46 = vld [vmem:[#allocation2 + $0x8] sm:$0xff] }
 0xb57   :  { %7238 = vrcp.f32 %v3032_v33  ;;  %v9617_v7 = vmul.f32 0.70710677, %v9614_v63  ;;  %6605 = vmatmul.msk.f32.gmra.mxu0 %vm134_vm0, %v3514_v29  ;;  %6584 = vmatmul.msk.f32.gmra.mxu2 %vm134_vm0, %v81_v46  ;;  %v3272_v29 = vmul.f32 %v3256_v6, %v9605_v9  ;;  %v83_v6 = vld [vmem:[#allocation2 + $0x18] sm:$0xff] }
 0xb58   :  { %v3079_v21 = vsub.f32 2.0, %v3063_v58  ;;  %v3142_v60 = vmul.f32 %v3126_v20, %v9607_v1  ;;  %7240 = vpow2.f32 %v3295_v14  ;;  %v7604_v58 = vld [vmem:[#allocation7 + $0x4] ss:$0 sm:$0xff] }
 0xb59   :  { %v9623_v59 = vand.u32 2147483647, %v9617_v7  ;;  %v3299_v9 = vmul.f32 1.442695, %v3272_v29  ;;  %vm3353_vm15 = vcmp.ge.f32.partialorder %v9617_v7, 0.0 }
 0xb5a   :  { %v9625_v30 = vmul.f32 %v7237_v2, %v3079_v21  ;;  %v3463_v26 = vpop.f32.mrf.mxu3  ;;  %v3158_v37 = vadd.f32 1.4214138, %v3142_v60 }
 0xb5b   :  { %v3017_v38 = vmul.f32 0.3275911, %v9623_v59  ;;  %v3497_v54 = vadd.f32 %v3463_v26, %v11334_v57 }
 0xb5c   :  { %v2948_v25 = vpop.f32.mrf.mxu1  ;;  %v3174_v39 = vmul.f32 %v3158_v37, %v9607_v1  ;;  %v3111_v50 = vmul.f32 1.0614054, %v9625_v30 }
 0xb5d   :  { %v7239_v32 = vpop.eup %7238  ;;  %v3033_v18 = vadd.f32 1.0, %v3017_v38  ;;  %v3515_v61 = vadd.f32 %v9564_v16, %v3497_v54  ;;  %v9633_v48 = vadd.f32 %v9319_v43, %v2948_v25  ;;  %v3297_v43 = vmul.f32 1.442695, %v3271_v35 }
 0xb5e   :  { %v3064_v13 = vmul.f32 %v7239_v32, %v3032_v33  ;;  %v3190_v36 = vadd.f32 -0.28449672, %v3174_v39  ;;  %v3127_v34 = vadd.f32 -1.4531521, %v3111_v50  ;;  %v7241_v23 = vpop.eup %7240  ;;  %v2966_v35 = vmul.f32 0.5, %v9578_v28 }
 0xb5f   :  { %7242 = vrcp.f32 %v3033_v18  ;;  %v9636_v41 = vmul.f32 0.70710677, %v9633_v48  ;;  %6606 = vmatmul.msk.f32.gmra.mxu0 %vm134_vm0, %v3515_v61  ;;  %6585 = vmatmul.msk.f32.gmra.mxu2 %vm134_vm0, %v82_v49 }
 0xb60   :  { %v3080_v44 = vsub.f32 2.0, %v3064_v13  ;;  %v3206_v12 = vmul.f32 %v3190_v36, %v9607_v1  ;;  %v3143_v47 = vmul.f32 %v3127_v34, %v9625_v30  ;;  %7244 = vpow2.f32 %v3297_v43 }
 0xb61   :  { %v9644_v3 = vand.u32 2147483647, %v9636_v41  ;;  %vm3354_vm1 = vcmp.ge.f32.partialorder %v9636_v41, 0.0 }
 0xb62   :  { %v9646_v11 = vmul.f32 %v7239_v32, %v3080_v44  ;;  %v3222_v55 = vadd.f32 0.2548296, %v3206_v12  ;;  %v3159_v27 = vadd.f32 1.4214138, %v3143_v47 }
 0xb63   :  { %v3018_v10 = vmul.f32 0.3275911, %v9644_v3 }
 0xb64   :  { %v2951_v22 = vpop.f32.mrf.mxu1  ;;  %v3238_v24 = vmul.f32 %v3222_v55, %v9607_v1  ;;  %v3175_v15 = vmul.f32 %v3159_v27, %v9625_v30  ;;  %v3112_v2 = vmul.f32 1.0614054, %v9646_v11 }
 0xb65   :  { %v7243_v33 = vpop.eup %7242  ;;  %v3034_v40 = vadd.f32 1.0, %v3018_v10  ;;  %v9653_v20 = vadd.f32 %v7604_v58, %v2951_v22 }
 0xb66   :  { %v3065_v53 = vmul.f32 %v7243_v33, %v3033_v18  ;;  %v3318_v21 = vmul.f32 %v7241_v23, %v3238_v24  ;;  %v3191_v60 = vadd.f32 -0.28449672, %v3175_v15  ;;  %v3128_v45 = vadd.f32 -1.4531521, %v3112_v2  ;;  %v7245_v32 = vpop.eup %7244 }
 0xb67   :  { %7246 = vrcp.f32 %v3034_v40  ;;  %v9656_v1 = vmul.f32 0.70710677, %v9653_v20  ;;  %v3257_v18 = vsub.f32 0.0, %v9623_v59  ;;  %6586 = vmatmul.msk.f32.gmra.mxu2 %vm134_vm0, %v83_v6 }
 0xb68   :  { %v3081_v14 = vsub.f32 2.0, %v3065_v53  ;;  %v3334_v26 = vsub.f32 1.0, %v3318_v21  ;;  %v3207_v37 = vmul.f32 %v3191_v60, %v9625_v30  ;;  %v3144_v38 = vmul.f32 %v3128_v45, %v9646_v11 }
 0xb69   :  { %v9662_v57 = vand.u32 2147483647, %v9656_v1  ;;  %7248 = vpow2.f32 %v3299_v9  ;;  %v3273_v23 = vmul.f32 %v3257_v18, %v9623_v59  ;;  %v3258_v53 = vsub.f32 0.0, %v9644_v3 }
 0xb6a   :  { %v9664_v54 = vmul.f32 %v7243_v33, %v3081_v14  ;;  %v3366_v25 = vsub.f32 0.0, %v3334_v26  ;;  %v3223_v39 = vadd.f32 0.2548296, %v3207_v37  ;;  %v3160_v50 = vadd.f32 1.4214138, %v3144_v38 }
 0xb6b   :  { %v3019_v61 = vmul.f32 0.3275911, %v9662_v57  ;;  %v3301_v45 = vmul.f32 1.442695, %v3273_v23  ;;  %v2967_v9 = vmul.f32 0.5, %v9588_v5  ;;  %v2968_v23 = vmul.f32 0.5, %v9598_v62 }
 0xb6c   :  { %v2954_v13 = vpop.f32.mrf.mxu1  ;;  %v3382_v36 = vsel %vm3350_vm12, %v3334_v26, %v3366_v25  ;;  %v3239_v34 = vmul.f32 %v3223_v39, %v9625_v30  ;;  %v3176_v46 = vmul.f32 %v3160_v50, %v9646_v11  ;;  %v3113_v44 = vmul.f32 1.0614054, %v9664_v54 }
 0xb6d   :  { %v7247_v12 = vpop.eup %7246  ;;  %v3035_v47 = vadd.f32 1.0, %v3019_v61  ;;  %v9673_v43 = vadd.f32 %v7604_v58, %v2954_v13  ;;  %v3398_v28 = vadd.f32 1.0, %v3382_v36  ;;  %v3274_v61 = vmul.f32 %v3258_v53, %v9644_v3 }
 0xb6e   :  { %v3066_v8 = vmul.f32 %v7247_v12, %v3034_v40  ;;  %v3319_v55 = vmul.f32 %v7245_v32, %v3239_v34  ;;  %v3192_v27 = vadd.f32 -0.28449672, %v3176_v46  ;;  %v3129_v10 = vadd.f32 -1.4531521, %v3113_v44  ;;  %v84_v32 = vld [vmem:[#allocation2 + $0x20] sm:$0xff] }
 0xb6f   :  { %7250 = vrcp.f32 %v3035_v47  ;;  %v9677_v30 = vmul.f32 0.70710677, %v9673_v43  ;;  %v3414_v24 = vmul.f32 %v3398_v28, %v2966_v35  ;;  %v7249_v49 = vpop.eup %7248  ;;  %6587 = vmatmul.msk.f32.gmra.mxu2 %vm134_vm0, %v84_v32  ;;  %v3303_v3 = vmul.f32 1.442695, %v3274_v61 }
 0xb70   :  { %v3082_v22 = vsub.f32 2.0, %v3066_v8  ;;  %v3335_v15 = vsub.f32 1.0, %v3319_v55  ;;  %v3208_v2 = vmul.f32 %v3192_v27, %v9646_v11  ;;  %v3145_v29 = vmul.f32 %v3129_v10, %v9664_v54 }
 0xb71   :  { %v9682_v33 = vand.u32 2147483647, %v9677_v30  ;;  %3468 = vmatmul.f32.gmra.mxu3 %v3414_v24  ;;  %v3259_v28 = vsub.f32 0.0, %v9662_v57  ;;  %v2969_v32 = vmul.f32 0.5, %v9614_v63  ;;  %vm3355_vm2 = vcmp.ge.f32.partialorder %v9656_v1, 0.0 }
 0xb72   :  { %v9685_v40 = vmul.f32 %v7247_v12, %v3082_v22  ;;  %v3367_v59 = vsub.f32 0.0, %v3335_v15  ;;  %v3224_v58 = vadd.f32 0.2548296, %v3208_v2  ;;  %v3161_v60 = vadd.f32 1.4214138, %v3145_v29 }
 0xb73   :  { %v3020_v21 = vmul.f32 0.3275911, %v9682_v33  ;;  %vm3356_vm3 = vcmp.ge.f32.partialorder %v9677_v30, 0.0 }
 0xb74   :  { %v3383_v14 = vsel %vm3351_vm13, %v3335_v15, %v3367_v59  ;;  %v3240_v26 = vmul.f32 %v3224_v58, %v9646_v11  ;;  %v3114_v37 = vmul.f32 1.0614054, %v9685_v40  ;;  %v3177_v50 = vmul.f32 %v3161_v60, %v9664_v54  ;;  %v85_v15 = vld [vmem:[#allocation2 + $0x28] sm:$0xff] }
 0xb75   :  { %v7251_v38 = vpop.eup %7250  ;;  %v3036_v25 = vadd.f32 1.0, %v3020_v21  ;;  %v3399_v39 = vadd.f32 1.0, %v3383_v14  ;;  %v3275_v58 = vmul.f32 %v3259_v28, %v9662_v57 }
 0xb76   :  { %v3067_v51 = vmul.f32 %v7251_v38, %v3035_v47  ;;  %v3320_v35 = vmul.f32 %v7249_v49, %v3240_v26  ;;  %v3130_v18 = vadd.f32 -1.4531521, %v3114_v37  ;;  %v3193_v36 = vadd.f32 -0.28449672, %v3177_v50 }
 0xb77   :  { %7252 = vrcp.f32 %v3036_v25  ;;  %v3415_v13 = vmul.f32 %v3399_v39, %v2967_v9  ;;  %6588 = vmatmul.msk.f32.gmra.mxu2 %vm134_vm0, %v85_v15  ;;  %v3305_v37 = vmul.f32 1.442695, %v3275_v58 }
 0xb78   :  { %7254 = vpow2.f32 %v3301_v45  ;;  %v3083_v11 = vsub.f32 2.0, %v3067_v51  ;;  %v3336_v34 = vsub.f32 1.0, %v3320_v35  ;;  %v3146_v46 = vmul.f32 %v3130_v18, %v9685_v40 }
 0xb79   :  { %v3209_v5 = vmul.f32 %v3193_v36, %v9664_v54  ;;  %3471 = vmatmul.f32.gmra.mxu3 %v3415_v13  ;;  %7256 = vpow2.f32 %v3303_v3 }
 0xb7a   :  { %v9698_v44 = vmul.f32 %v7251_v38, %v3083_v11  ;;  %v3368_v12 = vsub.f32 0.0, %v3336_v34  ;;  %v3162_v47 = vadd.f32 1.4214138, %v3146_v46  ;;  %v3260_v38 = vsub.f32 0.0, %v9682_v33  ;;  %v86_v11 = vld [vmem:[#allocation2 + $0x30] sm:$0xff] }
 0xb7b   :  { %v3225_v6 = vadd.f32 0.2548296, %v3209_v5  ;;  %7258 = vpow2.f32 %v3305_v37 }
 0xb7c   :  { %v3384_v8 = vsel %vm3352_vm14, %v3336_v34, %v3368_v12  ;;  %v3178_v55 = vmul.f32 %v3162_v47, %v9685_v40  ;;  %v3115_v27 = vmul.f32 1.0614054, %v9698_v44  ;;  %v3276_v36 = vmul.f32 %v3260_v38, %v9682_v33 }
 0xb7d   :  { %v7253_v10 = vpop.eup %7252  ;;  %v3400_v22 = vadd.f32 1.0, %v3384_v8  ;;  %v3241_v24 = vmul.f32 %v3225_v6, %v9664_v54  ;;  %v2970_v8 = vmul.f32 0.5, %v9633_v48  ;;  %v2971_v48 = vmul.f32 0.5, %v9653_v20 }
 0xb7e   :  { %v7255_v2 = vpop.eup %7254  ;;  %v3068_v29 = vmul.f32 %v7253_v10, %v3036_v25  ;;  %v3194_v59 = vadd.f32 -0.28449672, %v3178_v55  ;;  %v3131_v19 = vadd.f32 -1.4531521, %v3115_v27  ;;  %v3307_v47 = vmul.f32 1.442695, %v3276_v36 }
 0xb7f   :  { %v3416_v49 = vmul.f32 %v3400_v22, %v2968_v23  ;;  %v3321_v53 = vmul.f32 %v7255_v2, %v3241_v24  ;;  %v7257_v50 = vpop.eup %7256  ;;  %6589 = vmatmul.msk.f32.gmra.mxu2 %vm134_vm0, %v86_v11  ;;  %v87_v22 = vld [vmem:[#allocation2 + $0x38] sm:$0xff] }
 0xb80   :  { %v3084_v21 = vsub.f32 2.0, %v3068_v29  ;;  %v3210_v60 = vmul.f32 %v3194_v59, %v9685_v40  ;;  %v3147_v45 = vmul.f32 %v3131_v19, %v9698_v44  ;;  %7260 = vpow2.f32 %v3307_v47 }
 0xb81   :  { %v3337_v62 = vsub.f32 1.0, %v3321_v53  ;;  %3474 = vmatmul.f32.gmra.mxu3 %v3416_v49  ;;  %v7259_v33 = vpop.eup %7258 }
 0xb82   :  { %v3100_v14 = vmul.f32 %v7253_v10, %v3084_v21  ;;  %v3226_v54 = vadd.f32 0.2548296, %v3210_v60  ;;  %v3163_v26 = vadd.f32 1.4214138, %v3147_v45  ;;  %v2972_v45 = vmul.f32 0.5, %v9673_v43 }
 0xb83   :  { %v3369_v9 = vsub.f32 0.0, %v3337_v62 }
 0xb84   :  { %v3242_v57 = vmul.f32 %v3226_v54, %v9685_v40  ;;  %v3179_v25 = vmul.f32 %v3163_v26, %v9698_v44  ;;  %v3116_v39 = vmul.f32 1.0614054, %v3100_v14 }
 0xb85   :  { %v3385_v51 = vsel %vm3353_vm15, %v3337_v62, %v3369_v9 }
 0xb86   :  { %v3401_v35 = vadd.f32 1.0, %v3385_v51  ;;  %v3322_v18 = vmul.f32 %v7257_v50, %v3242_v57  ;;  %v3195_v61 = vadd.f32 -0.28449672, %v3179_v25  ;;  %v3132_v13 = vadd.f32 -1.4531521, %v3116_v39  ;;  %v7261_v59 = vpop.eup %7260 }
 0xb87   :  { %6590 = vmatmul.msk.f32.gmra.mxu2 %vm134_vm0, %v87_v22  ;;  %v9729_v57 = vld [vmem:[#allocation7 + $0x7] ss:$0 sm:$0xff] }
 0xb88   :  { %v3417_v34 = vmul.f32 %v3401_v35, %v2969_v32  ;;  %v3338_v46 = vsub.f32 1.0, %v3322_v18  ;;  %v3211_v7 = vmul.f32 %v3195_v61, %v9698_v44  ;;  %v3148_v40 = vmul.f32 %v3132_v13, %v3100_v14 }
 0xb8a   :  { %3477 = vmatmul.f32.gmra.mxu3 %v3417_v34  ;;  %v3370_v5 = vsub.f32 0.0, %v3338_v46  ;;  %v3227_v12 = vadd.f32 0.2548296, %v3211_v7  ;;  %v3164_v63 = vadd.f32 1.4214138, %v3148_v40 }
 0xb8b   :  { %v9758_v40 = vld [vmem:[#allocation7 + $0x6] ss:$0 sm:$0xff] }
 0xb8c   :  { %v3386_v3 = vsel %vm3354_vm1, %v3338_v46, %v3370_v5  ;;  %v3243_v28 = vmul.f32 %v3227_v12, %v9698_v44  ;;  %v3180_v6 = vmul.f32 %v3164_v63, %v3100_v14 }
 0xb8d   :  { %v3402_v55 = vadd.f32 1.0, %v3386_v3 }
 0xb8e   :  { %v3323_v27 = vmul.f32 %v7259_v33, %v3243_v28  ;;  %v3196_v10 = vadd.f32 -0.28449672, %v3180_v6  ;;  %v11336_v33 = vld [vmem:[#allocation15_spill] sm:$0xff] }
 0xb8f   :  { %v3418_v23 = vmul.f32 %v3402_v55, %v2970_v8 }
 0xb90   :  { %v3339_v24 = vsub.f32 1.0, %v3323_v27  ;;  %v3212_v15 = vmul.f32 %v3196_v10, %v3100_v14 }
 0xb92   :  { %3480 = vmatmul.f32.gmra.mxu3 %v3418_v23  ;;  %v3371_v41 = vsub.f32 0.0, %v3339_v24  ;;  %v3228_v2 = vadd.f32 0.2548296, %v3212_v15 }
 0xb94   :  { %v3387_v44 = vsel %vm3355_vm2, %v3339_v24, %v3371_v41  ;;  %v3244_v29 = vmul.f32 %v3228_v2, %v3100_v14  ;;  %v11335_v14 = vld [vmem:[#allocation17_spill] sm:$0xff] }
 0xb95   :  { %v3403_v19 = vadd.f32 1.0, %v3387_v44 }
 0xb96   :  { %v3324_v58 = vmul.f32 %v7261_v59, %v3244_v29 }
 0xb97   :  { %v3419_v49 = vmul.f32 %v3403_v19, %v2971_v48 }
 0xb98   :  { %v3340_v53 = vsub.f32 1.0, %v3324_v58 }
 0xb9a   :  { %3483 = vmatmul.f32.gmra.mxu3 %v3419_v49  ;;  %v3372_v21 = vsub.f32 0.0, %v3340_v53 }
 0xb9c   :  { %v3388_v60 = vsel %vm3356_vm3, %v3340_v53, %v3372_v21 }
 0xb9d   :  { %v3404_v62 = vadd.f32 1.0, %v3388_v60 }
 0xb9f   :  { %v3420_v54 = vmul.f32 %v3404_v62, %v2972_v45 }
 0xba2   :  { %3486 = vmatmul.f32.gmra.mxu3 %v3420_v54 }
 0xba4   :  { %v3714_v1 = vpop.f32.mrf.mxu0 }
 0xba5   :  { %v9773_v28 = vadd.f32 %v9729_v57, %v3714_v1 }
 0xba6   :  { %v3466_v26 = vpop.f32.mrf.mxu3 }
 0xba7   :  { %v3498_v37 = vadd.f32 %v3466_v26, %v11335_v14 }
 0xba9   :  { %v3516_v20 = vadd.f32 %v9564_v16, %v3498_v37  ;;  %v3595_v46 = vpop.f32.mrf.mxu2 }
 0xbaa   :  { %v9767_v47 = vadd.f32 %v9758_v40, %v3595_v46 }
 0xbab   :  { %6607 = vmatmul.msk.f32.gmra.mxu0 %vm134_vm0, %v3516_v20 }
 0xbac   :  { %v3717_v38 = vpop.f32.mrf.mxu0  ;;  %v3767_v8 = vmul.f32 %v11336_v33, %v9767_v47 }
 0xbad   :  { %v9763_v5 = vadd.f32 %v9729_v57, %v3717_v38 }
 0xbb4   :  { %v3720_v9 = vpop.f32.mrf.mxu0 }
 0xbb5   :  { %v9732_v30 = vadd.f32 %v9729_v57, %v3720_v9 }
 0xbbc   :  { %v3723_v25 = vpop.f32.mrf.mxu0 }
 0xbbd   :  { %v9735_v43 = vadd.f32 %v9729_v57, %v3723_v25 }
 0xbbf   :  { %v6868_v39 = vpack.i.bf16 %v9732_v30, %v9735_v43 }
 0xbc4   :  { %v3726_v50 = vpop.f32.mrf.mxu0 }
 0xbc5   :  { %v9740_v51 = vadd.f32 %v9729_v57, %v3726_v50  ;;  %v11337_v50 = vld [vmem:[#allocation12_spill] sm:$0xff] }
 0xbcc   :  { %v3729_v32 = vpop.f32.mrf.mxu0 }
 0xbcd   :  { %v9743_v35 = vadd.f32 %v9729_v57, %v3729_v32  ;;  %v3775_v32 = vmul.f32 %v11337_v50, %v9767_v47 }
 0xbcf   :  { %v6863_v18 = vpack.i.bf16 %v9740_v51, %v9743_v35 }
 0xbd4   :  { %v3732_v61 = vpop.f32.mrf.mxu0 }
 0xbd5   :  { %v3733_v36 = vadd.f32 %v9729_v57, %v3732_v61 }
 0xbda   :  { %v3598_v7 = vpop.f32.mrf.mxu2 }
 0xbdb   :  { %v9783_v27 = vadd.f32 %v9758_v40, %v3598_v7 }
 0xbdc   :  { %v3735_v13 = vpop.f32.mrf.mxu0 }
 0xbdd   :  { %v3736_v11 = vadd.f32 %v9729_v57, %v3735_v13  ;;  %v3768_v23 = vmul.f32 %v11336_v33, %v9783_v27 }
 0xbdf   :  { %v6858_v34 = vpack.i.bf16 %v3733_v36, %v3736_v11  ;;  %6615 = vmatpush.xpose.msk.msrb.mxu1 %vm134_vm0, %v3736_v11 }
 0xbe1   :  { %6859 = vrot.lane.b32.xlu0 %v6858_v34, %s7733_s2 }
 0xbe2   :  { %v3601_v6 = vpop.f32.mrf.mxu2 }
 0xbe3   :  { %6616 = vmatpush.xpose.msk.msrb.mxu1 %vm134_vm0, %v3733_v36 }
 0xbe7   :  { %6617 = vmatpush.xpose.msk.msrb.mxu1 %vm134_vm0, %v9743_v35  ;;  %v94_v35 = vld [vmem:[#allocation2 + $0x70] sm:$0xff] }
 0xbea   :  { %v3604_v22 = vpop.f32.mrf.mxu2 }
 0xbeb   :  { %6618 = vmatpush.xpose.msk.msrb.mxu1 %vm134_vm0, %v9740_v51 }
 0xbef   :  { %6619 = vmatpush.xpose.msk.msrb.mxu1 %vm134_vm0, %v9735_v43 }
 0xbf2   :  { %v3607_v29 = vpop.f32.mrf.mxu2 }
 0xbf3   :  { %6620 = vmatpush.xpose.msk.msrb.mxu1 %vm134_vm0, %v9732_v30  ;;  %v9810_v53 = vadd.f32 %v9758_v40, %v3607_v29  ;;  %v6873_v30 = vpack.i.bf16 %v9773_v28, %v9763_v5 }
 0xbf4   :  { %v3469_v12 = vpop.f32.mrf.mxu3 }
 0xbf5   :  { %v3499_v63 = vadd.f32 %v3469_v12, %v9523_v17  ;;  %v3771_v60 = vmul.f32 %v11336_v33, %v9810_v53  ;;  %v3779_v46 = vmul.f32 %v11337_v50, %v9810_v53 }
 0xbf7   :  { %6621 = vmatpush.xpose.msk.msrb.mxu1 %vm134_vm0, %v9763_v5  ;;  %v3517_v3 = vadd.f32 %v9564_v16, %v3499_v63 }
 0xbf9   :  { %6608 = vmatmul.msk.f32.gmra.mxu0 %vm134_vm0, %v3517_v3 }
 0xbfb   :  { %6622 = vmatpush.xpose.msk.msrb.mxu1 %vm134_vm0, %v9773_v28 }
 0xbfc   :  { %v3472_v17 = vpop.f32.mrf.mxu3 }
 0xbfd   :  { %v3500_v55 = vadd.f32 %v3472_v17, %v9531_v0  ;;  %v9792_v0 = vadd.f32 %v9758_v40, %v3601_v6 }
 0xbfe   :  { %6623 = vmatmul.msk.f32.vlgmr.msrb.gmra.mxu1 %vm134_vm0, %v3767_v8 }
 0xbff   :  { %v3518_v10 = vadd.f32 %v9564_v16, %v3500_v55  ;;  %v3769_v2 = vmul.f32 %v11336_v33, %v9792_v0  ;;  %v3777_v61 = vmul.f32 %v11337_v50, %v9792_v0  ;;  %v11338_v55 = vld [vmem:[#allocation13_spill] sm:$0xff] }
 0xc01   :  { %6609 = vmatmul.msk.f32.gmra.mxu0 %vm134_vm0, %v3518_v10  ;;  %v3783_v10 = vmul.f32 %v11338_v55, %v9767_v47 }
 0xc04   :  { %v3475_v24 = vpop.f32.mrf.mxu3 }
 0xc05   :  { %v3501_v15 = vadd.f32 %v3475_v24, %v9538_v4  ;;  %v9801_v4 = vadd.f32 %v9758_v40, %v3604_v22 }
 0xc06   :  { %6624 = vmatmul.msk.f32.gmra.mxu1 %vm134_vm0, %v3768_v23 }
 0xc07   :  { %v3519_v41 = vadd.f32 %v9564_v16, %v3501_v15  ;;  %v3770_v19 = vmul.f32 %v11336_v33, %v9801_v4  ;;  %v3778_v11 = vmul.f32 %v11337_v50, %v9801_v4  ;;  %v3784_v15 = vmul.f32 %v11338_v55, %v9783_v27 }
 0xc09   :  { %6610 = vmatmul.msk.f32.gmra.mxu0 %vm134_vm0, %v3519_v41 }
 0xc0d   :  { %v3478_v44 = vpop.f32.mrf.mxu3 }
 0xc0e   :  { %v3502_v59 = vadd.f32 %v3478_v44, %v9544_v52  ;;  %6625 = vmatmul.msk.f32.gmra.mxu1 %vm134_vm0, %v3769_v2  ;;  %v3610_v52 = vpop.f32.mrf.mxu2 }
 0xc10   :  { %v3520_v48 = vadd.f32 %v9564_v16, %v3502_v59 }
 0xc12   :  { %6611 = vmatmul.msk.f32.gmra.mxu0 %vm134_vm0, %v3520_v48 }
 0xc15   :  { %v3481_v58 = vpop.f32.mrf.mxu3 }
 0xc16   :  { %v3503_v49 = vadd.f32 %v3481_v58, %v9549_v42  ;;  %6626 = vmatmul.msk.f32.gmra.mxu1 %vm134_vm0, %v3770_v19  ;;  %v9819_v42 = vadd.f32 %v9758_v40, %v3610_v52  ;;  %v3613_v1 = vpop.f32.mrf.mxu2  ;;  %v3785_v19 = vmul.f32 %v11338_v55, %v9792_v0 }
 0xc18   :  { %v3521_v21 = vadd.f32 %v9564_v16, %v3503_v49  ;;  %v3772_v26 = vmul.f32 %v11336_v33, %v9819_v42  ;;  %v3780_v7 = vmul.f32 %v11337_v50, %v9819_v42 }
 0xc1a   :  { %6612 = vmatmul.msk.f32.gmra.mxu0 %vm134_vm0, %v3521_v21  ;;  %v3786_v21 = vmul.f32 %v11338_v55, %v9801_v4 }
 0xc1d   :  { %v3484_v45 = vpop.f32.mrf.mxu3 }
 0xc1e   :  { %v3504_v62 = vadd.f32 %v3484_v45, %v9554_v56  ;;  %6627 = vmatmul.msk.f32.gmra.mxu1 %vm134_vm0, %v3771_v60  ;;  %v9828_v56 = vadd.f32 %v9758_v40, %v3613_v1  ;;  %v3616_v9 = vpop.f32.mrf.mxu2 }
 0xc1f   :  { %v9836_v25 = vadd.f32 %v9758_v40, %v3616_v9  ;;  %v3788_v9 = vmul.f32 %v11338_v55, %v9819_v42 }
 0xc20   :  { %v3522_v54 = vadd.f32 %v9564_v16, %v3504_v62  ;;  %v3773_v38 = vmul.f32 %v11336_v33, %v9828_v56  ;;  %v3781_v12 = vmul.f32 %v11337_v50, %v9828_v56 }
 0xc21   :  { %v3782_v3 = vmul.f32 %v11337_v50, %v9836_v25 }
 0xc22   :  { %6613 = vmatmul.msk.f32.gmra.mxu0 %vm134_vm0, %v3522_v54 }
 0xc25   :  { %v3487_v14 = vpop.f32.mrf.mxu3 }
 0xc26   :  { %v3505_v37 = vadd.f32 %v3487_v14, %v9559_v31  ;;  %6628 = vmatmul.msk.f32.gmra.mxu1 %vm134_vm0, %v3772_v26  ;;  %v3774_v31 = vmul.f32 %v11336_v33, %v9836_v25  ;;  %v3787_v14 = vmul.f32 %v11338_v55, %v9810_v53 }
 0xc28   :  { %v3523_v20 = vadd.f32 %v9564_v16, %v3505_v37  ;;  %v3776_v16 = vmul.f32 %v11337_v50, %v9783_v27  ;;  %v9862_v63 = vpop.f32.mrf.mxu0 }
 0xc2a   :  { %6614 = vmatmul.msk.f32.gmra.mxu0 %vm134_vm0, %v3523_v20 }
 0xc2e   :  { %6629 = vmatmul.msk.f32.gmra.mxu1 %vm134_vm0, %v3773_v38 }
 0xc36   :  { %6630 = vmatmul.msk.f32.gmra.mxu1 %vm134_vm0, %v3774_v31 }
 0xc3e   :  { %6631 = vmatmul.msk.f32.gmra.mxu1 %vm134_vm0, %v3775_v32 }
 0xc46   :  { %6632 = vmatmul.msk.f32.gmra.mxu1 %vm134_vm0, %v3776_v16 }
 0xc4e   :  { %6633 = vmatmul.msk.f32.gmra.mxu1 %vm134_vm0, %v3777_v61 }
 0xc53   :  { %v6860_v13 = vpop.permute.xlu0 %6859 }
 0xc54   :  { %v6861_v36 = vunpack.i.l.bf16 %v6860_v13  ;;  %v6862_v34 = vunpack.i.h.bf16 %v6860_v13 }
 0xc56   :  { %4608 = vmatpush.msrb.mxu3 %v6861_v36  ;;  %6634 = vmatmul.msk.f32.gmra.mxu1 %vm134_vm0, %v3778_v11  ;;  %v3789_v11 = vmul.f32 %v11338_v55, %v9828_v56 }
 0xc58   :  { %4609 = vmatpush.msrb.mxu3 %v6862_v34 }
 0xc5e   :  { %6635 = vmatmul.msk.f32.gmra.mxu1 %vm134_vm0, %v3779_v46 }
 0xc66   :  { %6636 = vmatmul.msk.f32.gmra.mxu1 %vm134_vm0, %v3780_v7  ;;  %v3790_v7 = vmul.f32 %v11338_v55, %v9836_v25 }
 0xc6e   :  { %6637 = vmatmul.msk.f32.gmra.mxu1 %vm134_vm0, %v3781_v12 }
 0xc76   :  { %6638 = vmatmul.msk.f32.gmra.mxu1 %vm134_vm0, %v3782_v3  ;;  %v9867_v6 = vpop.f32.mrf.mxu0 }
 0xc77   :  { %v9976_v43 = vadd.f32 %v9729_v57, %v9867_v6 }
 0xc7b   :  { %v9869_v8 = vpop.f32.mrf.mxu1 }
 0xc7c   :  { %v4032_v17 = vsel %vm935_vm6, %v9869_v8, -inf }
 0xc7d   :  { %4033 = vmax.xlane.f32.xlu1 %v4032_v17  ;;  %v11339_v17 = vld [vmem:[#allocation14_spill] sm:$0xff] }
 0xc7e   :  { %6639 = vmatmul.msk.f32.gmra.mxu1 %vm134_vm0, %v3783_v10  ;;  %v3744_v23 = vpop.f32.mrf.mxu0  ;;  %v3791_v10 = vmul.f32 %v11339_v17, %v9767_v47  ;;  %v3792_v47 = vmul.f32 %v11339_v17, %v9783_v27  ;;  %v3793_v5 = vmul.f32 %v11339_v17, %v9792_v0  ;;  %v3794_v28 = vmul.f32 %v11339_v17, %v9801_v4  ;;  %v88_v4 = vld [vmem:[#allocation2 + $0x40] sm:$0xff] }
 0xc7f   :  { %v9884_v2 = vadd.f32 %v9729_v57, %v3744_v23  ;;  %v3796_v27 = vmul.f32 %v11339_v17, %v9819_v42  ;;  %v3797_v0 = vmul.f32 %v11339_v17, %v9828_v56  ;;  %6591 = vmatmul.msk.f32.gmra.mxu2 %vm134_vm0, %v88_v4  ;;  %v3798_v42 = vmul.f32 %v11339_v17, %v9836_v25  ;;  %v90_v25 = vld [vmem:[#allocation2 + $0x50] sm:$0xff] }
 0xc83   :  { %v9876_v22 = vpop.f32.mrf.mxu1 }
 0xc84   :  { %v4035_v24 = vsel %vm935_vm6, %v9876_v22, -inf }
 0xc85   :  { %4036 = vmax.xlane.f32.xlu2 %v4035_v24 }
 0xc86   :  { %6640 = vmatmul.msk.f32.gmra.mxu1 %vm134_vm0, %v3784_v15  ;;  %v3747_v41 = vpop.f32.mrf.mxu0  ;;  %v89_v15 = vld [vmem:[#allocation2 + $0x48] sm:$0xff] }
 0xc87   :  { %v9887_v44 = vadd.f32 %v9729_v57, %v3747_v41  ;;  %6592 = vmatmul.msk.f32.gmra.mxu2 %vm134_vm0, %v89_v15 }
 0xc8b   :  { %v9891_v59 = vpop.f32.mrf.mxu1 }
 0xc8c   :  { %v4038_v48 = vsel %vm935_vm6, %v9891_v59, -inf }
 0xc8d   :  { %4039 = vmax.xlane.f32.xlu0 %v4038_v48 }
 0xc8e   :  { %6641 = vmatmul.msk.f32.gmra.mxu1 %vm134_vm0, %v3785_v19 }
 0xc8f   :  { %v3750_v58 = vpop.f32.mrf.mxu0  ;;  %6593 = vmatmul.msk.f32.gmra.mxu2 %vm134_vm0, %v90_v25 }
 0xc90   :  { %v9906_v45 = vadd.f32 %v9729_v57, %v3750_v58 }
 0xc93   :  { %v9898_v49 = vpop.f32.mrf.mxu1 }
 0xc94   :  { %v4041_v52 = vsel %vm935_vm6, %v9898_v49, -inf }
 0xc95   :  { %4042 = vmax.xlane.f32.xlu1 %v4041_v52 }
 0xc96   :  { %6642 = vmatmul.msk.f32.gmra.mxu1 %vm134_vm0, %v3786_v21 }
 0xc97   :  { %v3753_v60 = vpop.f32.mrf.mxu0 }
 0xc98   :  { %v9909_v62 = vadd.f32 %v9729_v57, %v3753_v60 }
 0xc9b   :  { %v9913_v1 = vpop.f32.mrf.mxu1 }
 0xc9c   :  { %v4044_v26 = vsel %vm935_vm6, %v9913_v1, -inf }
 0xc9d   :  { %4045 = vmax.xlane.f32.xlu2 %v4044_v26 }
 0xc9e   :  { %6643 = vmatmul.msk.f32.gmra.mxu1 %vm134_vm0, %v3787_v14 }
 0xc9f   :  { %v3756_v37 = vpop.f32.mrf.mxu0 }
 0xca0   :  { %v9928_v32 = vadd.f32 %v9729_v57, %v3756_v37  ;;  %v91_v37 = vld [vmem:[#allocation2 + $0x58] sm:$0xff] }
 0xca1   :  { %6594 = vmatmul.msk.f32.gmra.mxu2 %vm134_vm0, %v91_v37 }
 0xca3   :  { %v9920_v20 = vpop.f32.mrf.mxu1 }
 0xca4   :  { %v4047_v38 = vsel %vm935_vm6, %v9920_v20, -inf }
 0xca5   :  { %4048 = vmax.xlane.f32.xlu0 %v4047_v38 }
 0xca6   :  { %6644 = vmatmul.msk.f32.gmra.mxu1 %vm134_vm0, %v3788_v9 }
 0xca7   :  { %v3759_v31 = vpop.f32.mrf.mxu0 }
 0xca8   :  { %v9931_v16 = vadd.f32 %v9729_v57, %v3759_v31 }
 0xcaa   :  { %v6878_v61 = vpack.i.bf16 %v9928_v32, %v9931_v16  ;;  %6695 = vmatpush.xpose.msk.msra.mxu0 %vm134_vm0, %v9931_v16 }
 0xcab   :  { %v9937_v13 = vpop.f32.mrf.mxu1 }
 0xcac   :  { %v4050_v36 = vsel %vm935_vm6, %v9937_v13, -inf }
 0xcad   :  { %4051 = vmax.xlane.f32.xlu1 %v4050_v36 }
 0xcae   :  { %6696 = vmatpush.xpose.msk.msra.mxu0 %vm134_vm0, %v9928_v32  ;;  %6645 = vmatmul.msk.f32.gmra.mxu1 %vm134_vm0, %v3789_v11 }
 0xcb2   :  { %6697 = vmatpush.xpose.msk.msra.mxu0 %vm134_vm0, %v9909_v62 }
 0xcb3   :  { %v9948_v34 = vpop.f32.mrf.mxu1 }
 0xcb4   :  { %v4053_v46 = vsel %vm935_vm6, %v9948_v34, -inf }
 0xcb5   :  { %4054 = vmax.xlane.f32.xlu1 %v4053_v46  ;;  %v92_v46 = vld [vmem:[#allocation2 + $0x60] sm:$0xff] }
 0xcb6   :  { %6698 = vmatpush.xpose.msk.msra.mxu0 %vm134_vm0, %v9906_v45  ;;  %6646 = vmatmul.msk.f32.gmra.mxu1 %vm134_vm0, %v3790_v7 }
 0xcb7   :  { %6595 = vmatmul.msk.f32.gmra.mxu2 %vm134_vm0, %v92_v46 }
 0xcb9   :  { %6869 = vrot.lane.b32.xlu0 %v6868_v39, %s7733_s2  ;;  %v9983_v39 = vadd.f32 %v9729_v57, %v9862_v63  ;;  %v3795_v57 = vmul.f32 %v11339_v17, %v9810_v53 }
 0xcba   :  { %6699 = vmatpush.xpose.msk.msra.mxu0 %vm134_vm0, %v9887_v44 }
 0xcbb   :  { %v9963_v12 = vpop.f32.mrf.mxu1 }
 0xcbc   :  { %v4056_v3 = vsel %vm935_vm6, %v9963_v12, -inf }
 0xcbd   :  { %4057 = vmax.xlane.f32.xlu1 %v4056_v3 }
 0xcbe   :  { %6700 = vmatpush.xpose.msk.msra.mxu0 %vm134_vm0, %v9884_v2  ;;  %6647 = vmatmul.msk.f32.gmra.mxu1 %vm134_vm0, %v3791_v10 }
 0xcc1   :  { %6874 = vrot.lane.b32.xlu0 %v6873_v30, %s7733_s2 }
 0xcc2   :  { %6701 = vmatpush.xpose.msk.msra.mxu0 %vm134_vm0, %v9976_v43 }
 0xcc3   :  { %v10002_v63 = vpop.f32.mrf.mxu1 }
 0xcc6   :  { %6702 = vmatpush.xpose.msk.msra.mxu0 %vm134_vm0, %v9983_v39  ;;  %6648 = vmatmul.msk.f32.gmra.mxu1 %vm134_vm0, %v3792_v47  ;;  %v93_v47 = vld [vmem:[#allocation2 + $0x68] sm:$0xff] }
 0xcc7   :  { %6596 = vmatmul.msk.f32.gmra.mxu2 %vm134_vm0, %v93_v47 }
 0xccb   :  { %v10008_v23 = vpop.f32.mrf.mxu1 }
 0xccc   :  { %v4062_v30 = vsel %vm935_vm6, %v10008_v23, -inf }
 0xcce   :  { %6649 = vmatmul.msk.f32.gmra.mxu1 %vm134_vm0, %v3793_v5 }
 0xccf   :  { %6597 = vmatmul.msk.f32.gmra.mxu2 %vm134_vm0, %v94_v35 }
 0xcd3   :  { %v10018_v19 = vpop.f32.mrf.mxu1 }
 0xcd4   :  { %v4065_v51 = vsel %vm935_vm6, %v10018_v19, -inf }
 0xcd6   :  { %6650 = vmatmul.msk.f32.gmra.mxu1 %vm134_vm0, %v3794_v28 }
 0xcdb   :  { %v10028_v14 = vpop.f32.mrf.mxu1 }
 0xcde   :  { %6651 = vmatmul.msk.f32.gmra.mxu1 %vm134_vm0, %v3795_v57 }
 0xce3   :  { %v10036_v11 = vpop.f32.mrf.mxu1 }
 0xce6   :  { %6652 = vmatmul.msk.f32.gmra.mxu1 %vm134_vm0, %v3796_v27 }
 0xceb   :  { %v10051_v28 = vpop.f32.mrf.mxu1 }
 0xcec   :  { %v4074_v27 = vsel %vm935_vm6, %v10051_v28, -inf }
 0xcee   :  { %6653 = vmatmul.msk.f32.gmra.mxu1 %vm134_vm0, %v3797_v0 }
 0xcf0   :  { %v4034_v6 = vpop.xlane.xlu1 %4033 }
 0xcf1   :  { %v4128_v53 = vsub.f32 %v9869_v8, %v4034_v6 }
 0xcf3   :  { %v4160_v24 = vmul.f32 1.442695, %v4128_v53 }
 0xcf5   :  { %7262 = vpow2.f32 %v4160_v24 }
 0xcf6   :  { %6654 = vmatmul.msk.f32.gmra.mxu1 %vm134_vm0, %v3798_v42 }
 0xcf8   :  { %v4037_v41 = vpop.xlane.xlu2 %4036 }
 0xcf9   :  { %v4129_v56 = vsub.f32 %v9876_v22, %v4037_v41 }
 0xcfb   :  { %v10016_v48 = vpop.eup %7262  ;;  %v4162_v58 = vmul.f32 1.442695, %v4129_v56 }
 0xcfc   :  { %v4224_v8 = vsel %vm935_vm6, %v10016_v48, 0.0 }
 0xcfd   :  { %7264 = vpow2.f32 %v4162_v58  ;;  %4225 = vadd.xlane.f32.xlu2 %v4224_v8  ;;  %v4068_v58 = vsel %vm935_vm6, %v10028_v14, -inf }
 0xd00   :  { %v4040_v52 = vpop.xlane.xlu0 %4039 }
 0xd01   :  { %v4130_v21 = vsub.f32 %v9891_v59, %v4040_v52 }
 0xd03   :  { %v10024_v60 = vpop.eup %7264  ;;  %v4164_v26 = vmul.f32 1.442695, %v4130_v21  ;;  %v4071_v21 = vsel %vm935_vm6, %v10036_v11, -inf }
 0xd04   :  { %v4227_v22 = vsel %vm935_vm6, %v10024_v60, 0.0 }
 0xd05   :  { %7266 = vpow2.f32 %v4164_v26  ;;  %4228 = vadd.xlane.f32.xlu1 %v4227_v22  ;;  %v4059_v26 = vsel %vm935_vm6, %v10002_v63, -inf }
 0xd08   :  { %v4043_v38 = vpop.xlane.xlu1 %4042 }
 0xd09   :  { %v4131_v9 = vsub.f32 %v9898_v49, %v4043_v38 }
 0xd0b   :  { %v10032_v31 = vpop.eup %7266  ;;  %v4166_v36 = vmul.f32 1.442695, %v4131_v9 }
 0xd0c   :  { %v4230_v59 = vsel %vm935_vm6, %v10032_v31, 0.0 }
 0xd0d   :  { %7268 = vpow2.f32 %v4166_v36  ;;  %4231 = vadd.xlane.f32.xlu1 %v4230_v59 }
 0xd10   :  { %v4046_v7 = vpop.xlane.xlu2 %4045 }
 0xd11   :  { %v4132_v49 = vsub.f32 %v9913_v1, %v4046_v7 }
 0xd13   :  { %v10039_v3 = vpop.eup %7268  ;;  %v4168_v5 = vmul.f32 1.442695, %v4132_v49  ;;  %v3619_v49 = vpop.f32.mrf.mxu2 }
 0xd14   :  { %v4233_v10 = vsel %vm935_vm6, %v10039_v3, 0.0  ;;  %v10098_v47 = vadd.f32 %v9758_v40, %v3619_v49 }
 0xd15   :  { %6864 = vrot.lane.b32.xlu2 %v6863_v18, %s7733_s2  ;;  %4234 = vadd.xlane.f32.xlu0 %v4233_v10  ;;  %7270 = vpow2.f32 %v4168_v5 }
 0xd16   :  { %4063 = vmax.xlane.f32.xlu1 %v4062_v30  ;;  %v4843_v5 = vmul.f32 %v11336_v33, %v10098_v47 }
 0xd18   :  { %v4049_v57 = vpop.xlane.xlu0 %4048  ;;  %6703 = vmatmul.msk.f32.vlgmr.msra.gmra.mxu0 %vm134_vm0, %v4843_v5 }
 0xd19   :  { %v4133_v1 = vsub.f32 %v9920_v20, %v4049_v57  ;;  %v95_v20 = vld [vmem:[#allocation2 + $0x78] sm:$0xff] }
 0xd1a   :  { %6598 = vmatmul.msk.f32.gmra.mxu2 %vm134_vm0, %v95_v20 }
 0xd1b   :  { %v4170_v18 = vmul.f32 1.442695, %v4133_v1  ;;  %v10059_v4 = vpop.eup %7270 }
 0xd1c   :  { %v4236_v6 = vsel %vm935_vm6, %v10059_v4, 0.0 }
 0xd1d   :  { %4075 = vmax.xlane.f32.xlu0 %v4074_v27  ;;  %7272 = vpow2.f32 %v4170_v18 }
 0xd1e   :  { %4066 = vmax.xlane.f32.xlu1 %v4065_v51 }
 0xd20   :  { %v4052_v0 = vpop.xlane.xlu1 %4051 }
 0xd21   :  { %v4134_v41 = vsub.f32 %v9937_v13, %v4052_v0  ;;  %v10077_v13 = vpop.f32.mrf.mxu1  ;;  %v3622_v0 = vpop.f32.mrf.mxu2 }
 0xd22   :  { %v4077_v7 = vsel %vm935_vm6, %v10077_v13, -inf  ;;  %v10104_v20 = vadd.f32 %v9758_v40, %v3622_v0 }
 0xd23   :  { %v10064_v24 = vpop.eup %7272  ;;  %v4172_v8 = vmul.f32 1.442695, %v4134_v41 }
 0xd24   :  { %v4239_v42 = vsel %vm935_vm6, %v10064_v24, 0.0 }
 0xd25   :  { %7274 = vpow2.f32 %v4172_v8 }
 0xd26   :  { %4237 = vadd.xlane.f32.xlu1 %v4236_v6 }
 0xd28   :  { %v4055_v53 = vpop.xlane.xlu1 %4054 }
 0xd29   :  { %v4135_v52 = vsub.f32 %v9948_v34, %v4055_v53  ;;  %v10089_v36 = vpop.f32.mrf.mxu1 }
 0xd2a   :  { %v4080_v59 = vsel %vm935_vm6, %v10089_v36, -inf }
 0xd2b   :  { %v10079_v22 = vpop.eup %7274  ;;  %v6870_v30 = vpop.permute.xlu0 %6869 }
 0xd2c   :  { %v4242_v38 = vsel %vm935_vm6, %v10079_v22, 0.0  ;;  %v6871_v53 = vunpack.i.l.bf16 %v6870_v30 }
 0xd2e   :  { %4240 = vadd.xlane.f32.xlu1 %v4239_v42 }
 0xd30   :  { %v4058_v15 = vpop.xlane.xlu1 %4057 }
 0xd31   :  { %v4136_v56 = vsub.f32 %v9963_v12, %v4058_v15  ;;  %v4174_v12 = vmul.f32 1.442695, %v4135_v52  ;;  %v4844_v15 = vmul.f32 %v11336_v33, %v10104_v20 }
 0xd33   :  { %v4176_v25 = vmul.f32 1.442695, %v4136_v56  ;;  %v6875_v42 = vpop.permute.xlu0 %6874  ;;  %v6872_v56 = vunpack.i.h.bf16 %v6870_v30  ;;  %6704 = vmatmul.msk.f32.gmra.mxu0 %vm134_vm0, %v4844_v15 }
 0xd35   :  { %7276 = vpow2.f32 %v4176_v25 }
 0xd36   :  { %4069 = vmax.xlane.f32.xlu1 %v4068_v58  ;;  %7278 = vpow2.f32 %v4174_v12  ;;  %v10108_v58 = vpop.f32.mrf.mxu1  ;;  %v3625_v12 = vpop.f32.mrf.mxu2 }
 0xd3b   :  { %v10081_v37 = vpop.eup %7276 }
 0xd3c   :  { %v4248_v34 = vsel %vm935_vm6, %v10081_v37, 0.0  ;;  %v10087_v9 = vpop.eup %7278 }
 0xd3d   :  { %v4245_v46 = vsel %vm935_vm6, %v10087_v9, 0.0 }
 0xd3e   :  { %4072 = vmax.xlane.f32.xlu1 %v4071_v21  ;;  %4060 = vmax.xlane.f32.xlu2 %v4059_v26  ;;  %v6876_v21 = vunpack.i.l.bf16 %v6875_v42  ;;  %v6877_v26 = vunpack.i.h.bf16 %v6875_v42 }
 0xd46   :  { %4249 = vadd.xlane.f32.xlu1 %v4248_v34  ;;  %4243 = vadd.xlane.f32.xlu2 %v4242_v38 }
 0xd4e   :  { %4081 = vmax.xlane.f32.xlu1 %v4080_v59  ;;  %4246 = vadd.xlane.f32.xlu2 %v4245_v46  ;;  %v10113_v59 = vadd.f32 %v9758_v40, %v3625_v12 }
 0xd50   :  { %v4845_v46 = vmul.f32 %v11336_v33, %v10113_v59 }
 0xd52   :  { %6705 = vmatmul.msk.f32.gmra.mxu0 %vm134_vm0, %v4845_v46 }
 0xd56   :  { %4078 = vmax.xlane.f32.xlu2 %v4077_v7 }
 0xd70   :  { %v4226_v10 = vpop.xlane.xlu2 %4225 }
 0xd71   :  { %7280 = vrcp.f32 %v4226_v10 }
 0xd77   :  { %v7281_v57 = vpop.eup %7280 }
 0xd78   :  { %v4352_v1 = vmul.f32 %v7281_v57, %v4226_v10  ;;  %v6865_v27 = vpop.permute.xlu2 %6864  ;;  %v4229_v51 = vpop.xlane.xlu1 %4228 }
 0xd79   :  { %v6866_v35 = vunpack.i.l.bf16 %v6865_v27  ;;  %7282 = vrcp.f32 %v4229_v51  ;;  %v6867_v18 = vunpack.i.h.bf16 %v6865_v27 }
 0xd7a   :  { %v4384_v6 = vsub.f32 2.0, %v4352_v1  ;;  %v3628_v1 = vpop.f32.mrf.mxu2 }
 0xd7b   :  { %4610 = vmatpush.msrb.mxu3 %v6866_v35 }
 0xd7c   :  { %v4416_v8 = vmul.f32 %v7281_v57, %v4384_v6  ;;  %v10119_v57 = vpop.f32.mrf.mxu1 }
 0xd7d   :  { %4611 = vmatpush.msrb.mxu3 %v6867_v18  ;;  %v10124_v18 = vadd.f32 %v9758_v40, %v3628_v1 }
 0xd7e   :  { %v4448_v34 = vmul.f32 %v10016_v48, %v4416_v8 }
 0xd7f   :  { %v7283_v41 = vpop.eup %7282  ;;  %4612 = vmatpush.msrb.mxu3 %v6871_v53  ;;  %v4846_v0 = vmul.f32 %v11336_v33, %v10124_v18 }
 0xd80   :  { %v4353_v25 = vmul.f32 %v7283_v41, %v4229_v51  ;;  %v4232_v52 = vpop.xlane.xlu1 %4231 }
 0xd81   :  { %7284 = vrcp.f32 %v4232_v52  ;;  %4613 = vmatpush.msrb.mxu3 %v6872_v56  ;;  %6706 = vmatmul.msk.f32.gmra.mxu0 %vm134_vm0, %v4846_v0 }
 0xd82   :  { %v4385_v38 = vsub.f32 2.0, %v4353_v25 }
 0xd83   :  { %4614 = vmatpush.msrb.mxu3 %v6876_v21 }
 0xd84   :  { %v4417_v10 = vmul.f32 %v7283_v41, %v4385_v38  ;;  %v10133_v56 = vpop.f32.mrf.mxu1 }
 0xd85   :  { %4615 = vmatpush.msrb.mxu3 %v6877_v26 }
 0xd86   :  { %6655 = vmatmul.msk.f32.vlgmr.msrb.gmra.mxu3 %vm935_vm6, %v4448_v34  ;;  %v4449_v27 = vmul.f32 %v10024_v60, %v4417_v10  ;;  %v3631_v60 = vpop.f32.mrf.mxu2 }
 0xd87   :  { %v7285_v7 = vpop.eup %7284 }
 0xd88   :  { %v4354_v49 = vmul.f32 %v7285_v7, %v4232_v52  ;;  %v4235_v30 = vpop.xlane.xlu0 %4234  ;;  %v10137_v52 = vadd.f32 %v9758_v40, %v3631_v60 }
 0xd89   :  { %7286 = vrcp.f32 %v4235_v30  ;;  %v4064_v5 = vpop.xlane.xlu1 %4063 }
 0xd8a   :  { %v4138_v48 = vsub.f32 %v10008_v23, %v4064_v5  ;;  %v4386_v51 = vsub.f32 2.0, %v4354_v49  ;;  %v4086_v5 = vsel %vm935_vm6, %v10119_v57, -inf }
 0xd8c   :  { %v4180_v35 = vmul.f32 1.442695, %v4138_v48  ;;  %v4418_v53 = vmul.f32 %v7285_v7, %v4386_v51  ;;  %v10156_v48 = vpop.f32.mrf.mxu1 }
 0xd8e   :  { %7288 = vpow2.f32 %v4180_v35  ;;  %6656 = vmatmul.msk.f32.gmra.mxu3 %vm935_vm6, %v4449_v27  ;;  %v4450_v8 = vmul.f32 %v10032_v31, %v4418_v53  ;;  %v3634_v38 = vpop.f32.mrf.mxu2 }
 0xd8f   :  { %v7287_v6 = vpop.eup %7286  ;;  %v10149_v10 = vadd.f32 %v9758_v40, %v3634_v38 }
 0xd90   :  { %v4355_v42 = vmul.f32 %v7287_v6, %v4235_v30  ;;  %v4076_v31 = vpop.xlane.xlu0 %4075 }
 0xd91   :  { %v4067_v23 = vpop.xlane.xlu1 %4066  ;;  %v4142_v7 = vsub.f32 %v10051_v28, %v4076_v31  ;;  %v4848_v1 = vmul.f32 %v11336_v33, %v10149_v10 }
 0xd92   :  { %v4139_v15 = vsub.f32 %v10018_v19, %v4067_v23  ;;  %v4387_v21 = vsub.f32 2.0, %v4355_v42  ;;  %v4847_v19 = vmul.f32 %v11336_v33, %v10137_v52  ;;  %v4089_v42 = vsel %vm935_vm6, %v10133_v56, -inf }
 0xd93   :  { %v4188_v27 = vmul.f32 1.442695, %v4142_v7 }
 0xd94   :  { %v10131_v41 = vpop.eup %7288  ;;  %v4182_v25 = vmul.f32 1.442695, %v4139_v15  ;;  %6707 = vmatmul.msk.f32.gmra.mxu0 %vm134_vm0, %v4847_v19  ;;  %v4419_v12 = vmul.f32 %v7287_v6, %v4387_v21 }
 0xd95   :  { %v4254_v26 = vsel %vm935_vm6, %v10131_v41, 0.0 }
 0xd96   :  { %7290 = vpow2.f32 %v4182_v25  ;;  %4255 = vadd.xlane.f32.xlu2 %v4254_v26  ;;  %6657 = vmatmul.msk.f32.gmra.mxu3 %vm935_vm6, %v4450_v8  ;;  %v4451_v49 = vmul.f32 %v10039_v3, %v4419_v12  ;;  %v3637_v0 = vpop.f32.mrf.mxu2  ;;  %v10170_v8 = vpop.f32.mrf.mxu1 }
 0xd97   :  { %v10163_v6 = vadd.f32 %v9758_v40, %v3637_v0 }
 0xd99   :  { %v4238_v34 = vpop.xlane.xlu1 %4237  ;;  %v4849_v23 = vmul.f32 %v11336_v33, %v10163_v6 }
 0xd9a   :  { %7292 = vrcp.f32 %v4238_v34 }
 0xd9c   :  { %v10145_v46 = vpop.eup %7290  ;;  %6708 = vmatmul.msk.f32.gmra.mxu0 %vm134_vm0, %v4848_v1 }
 0xd9d   :  { %v4257_v30 = vsel %vm935_vm6, %v10145_v46, 0.0 }
 0xd9e   :  { %4258 = vadd.xlane.f32.xlu1 %v4257_v30  ;;  %4087 = vmax.xlane.f32.xlu2 %v4086_v5  ;;  %v3640_v12 = vpop.f32.mrf.mxu2  ;;  %v10186_v5 = vpop.f32.mrf.mxu1 }
 0xd9f   :  { %6658 = vmatmul.msk.f32.gmra.mxu3 %vm935_vm6, %v4451_v49 }
 0xda0   :  { %v7293_v28 = vpop.eup %7292 }
 0xda1   :  { %v4356_v3 = vmul.f32 %v7293_v28, %v4238_v34  ;;  %v4241_v51 = vpop.xlane.xlu1 %4240  ;;  %v10177_v34 = vadd.f32 %v9758_v40, %v3640_v12 }
 0xda2   :  { %7294 = vrcp.f32 %v4241_v51 }
 0xda3   :  { %v4388_v35 = vsub.f32 2.0, %v4356_v3  ;;  %7296 = vpow2.f32 %v4188_v27  ;;  %v4850_v38 = vmul.f32 %v11336_v33, %v10177_v34  ;;  %v4098_v3 = vsel %vm935_vm6, %v10186_v5, -inf }
 0xda4   :  { %6709 = vmatmul.msk.f32.gmra.mxu0 %vm134_vm0, %v4849_v23  ;;  %v4852_v23 = vmul.f32 %v11337_v50, %v10104_v20 }
 0xda5   :  { %v4420_v53 = vmul.f32 %v7293_v28, %v4388_v35 }
 0xda6   :  { %4090 = vmax.xlane.f32.xlu1 %v4089_v42 }
 0xda7   :  { %v4452_v15 = vmul.f32 %v10059_v4, %v4420_v53 }
 0xda8   :  { %v7295_v60 = vpop.eup %7294 }
 0xda9   :  { %v4357_v25 = vmul.f32 %v7295_v60, %v4241_v51  ;;  %6659 = vmatmul.msk.f32.gmra.mxu3 %vm935_vm6, %v4452_v15  ;;  %v4070_v21 = vpop.xlane.xlu1 %4069  ;;  %v10174_v26 = vpop.eup %7296 }
 0xdaa   :  { %v4266_v4 = vsel %vm935_vm6, %v10174_v26, 0.0 }
 0xdab   :  { %v4389_v19 = vsub.f32 2.0, %v4357_v25 }
 0xdac   :  { %6710 = vmatmul.msk.f32.gmra.mxu0 %vm134_vm0, %v4850_v38 }
 0xdad   :  { %v4421_v31 = vmul.f32 %v7295_v60, %v4389_v19 }
 0xdae   :  { %4267 = vadd.xlane.f32.xlu1 %v4266_v4  ;;  %v4095_v4 = vsel %vm935_vm6, %v10170_v8, -inf }
 0xdaf   :  { %v4453_v7 = vmul.f32 %v10064_v24, %v4421_v31  ;;  %v4851_v24 = vmul.f32 %v11337_v50, %v10098_v47 }
 0xdb1   :  { %6660 = vmatmul.msk.f32.gmra.mxu3 %vm935_vm6, %v4453_v7  ;;  %v4073_v49 = vpop.xlane.xlu1 %4072  ;;  %v4061_v30 = vpop.xlane.xlu2 %4060  ;;  %v4083_v7 = vsel %vm935_vm6, %v10108_v58, -inf }
 0xdb2   :  { %v4141_v40 = vsub.f32 %v10036_v11, %v4073_v49  ;;  %v4137_v1 = vsub.f32 %v10002_v63, %v4061_v30  ;;  %v4140_v63 = vsub.f32 %v10028_v14, %v4070_v21  ;;  %v4853_v49 = vmul.f32 %v11337_v50, %v10113_v59 }
 0xdb4   :  { %v4186_v28 = vmul.f32 1.442695, %v4141_v40  ;;  %v4178_v27 = vmul.f32 1.442695, %v4137_v1  ;;  %6711 = vmatmul.msk.f32.gmra.mxu0 %vm134_vm0, %v4851_v24  ;;  %v4184_v60 = vmul.f32 1.442695, %v4140_v63 }
 0xdb6   :  { %7298 = vpow2.f32 %v4186_v28  ;;  %4099 = vmax.xlane.f32.xlu1 %v4098_v3 }
 0xdb7   :  { %7300 = vpow2.f32 %v4178_v27 }
 0xdb9   :  { %v4250_v51 = vpop.xlane.xlu1 %4249  ;;  %v4244_v35 = vpop.xlane.xlu2 %4243 }
 0xdba   :  { %7302 = vrcp.f32 %v4244_v35 }
 0xdbc   :  { %v10195_v0 = vpop.eup %7298  ;;  %6712 = vmatmul.msk.f32.gmra.mxu0 %vm134_vm0, %v4852_v23 }
 0xdbd   :  { %v10197_v11 = vpop.eup %7300  ;;  %v4263_v53 = vsel %vm935_vm6, %v10195_v0, 0.0 }
 0xdbe   :  { %4264 = vadd.xlane.f32.xlu2 %v4263_v53  ;;  %v4251_v42 = vsel %vm935_vm6, %v10197_v11, 0.0 }
 0xdbf   :  { %4252 = vadd.xlane.f32.xlu0 %v4251_v42 }
 0xdc0   :  { %v7303_v15 = vpop.eup %7302 }
 0xdc1   :  { %v4082_v25 = vpop.xlane.xlu1 %4081  ;;  %v4247_v19 = vpop.xlane.xlu2 %4246  ;;  %v4358_v12 = vmul.f32 %v7303_v15, %v4244_v35 }
 0xdc2   :  { %v4144_v14 = vsub.f32 %v10089_v36, %v4082_v25  ;;  %7304 = vrcp.f32 %v4247_v19  ;;  %v10214_v36 = vpop.f32.mrf.mxu1 }
 0xdc3   :  { %7306 = vrcp.f32 %v4250_v51  ;;  %v4390_v21 = vsub.f32 2.0, %v4358_v12 }
 0xdc4   :  { %v4192_v31 = vmul.f32 1.442695, %v4144_v14  ;;  %7308 = vpow2.f32 %v4184_v60  ;;  %6713 = vmatmul.msk.f32.gmra.mxu0 %vm134_vm0, %v4853_v49  ;;  %v4092_v14 = vsel %vm935_vm6, %v10156_v48, -inf  ;;  %v4858_v49 = vmul.f32 %v11337_v50, %v10177_v34 }
 0xdc5   :  { %v4422_v38 = vmul.f32 %v7303_v15, %v4390_v21  ;;  %v4854_v15 = vmul.f32 %v11337_v50, %v10124_v18 }
 0xdc6   :  { %7310 = vpow2.f32 %v4192_v31  ;;  %4096 = vmax.xlane.f32.xlu2 %v4095_v4 }
 0xdc7   :  { %4084 = vmax.xlane.f32.xlu0 %v4083_v7  ;;  %v4454_v40 = vmul.f32 %v10079_v22, %v4422_v38  ;;  %v4856_v38 = vmul.f32 %v11337_v50, %v10149_v10  ;;  %v4101_v7 = vsel %vm935_vm6, %v10214_v36, -inf }
 0xdc8   :  { %v7305_v30 = vpop.eup %7304 }
 0xdc9   :  { %v7307_v1 = vpop.eup %7306  ;;  %v4359_v28 = vmul.f32 %v7305_v30, %v4247_v19  ;;  %6661 = vmatmul.msk.f32.gmra.mxu3 %vm935_vm6, %v4454_v40  ;;  %v4079_v27 = vpop.xlane.xlu2 %4078  ;;  %v4860_v40 = vmul.f32 %v11338_v55, %v10104_v20 }
 0xdca   :  { %v10219_v3 = vpop.eup %7308  ;;  %v4360_v63 = vmul.f32 %v7307_v1, %v4250_v51  ;;  %v4143_v42 = vsub.f32 %v10077_v13, %v4079_v27  ;;  %v10232_v19 = vpop.f32.mrf.mxu1 }
 0xdcb   :  { %v4391_v24 = vsub.f32 2.0, %v4359_v28  ;;  %v4260_v22 = vsel %vm935_vm6, %v10219_v3, 0.0  ;;  %v4104_v12 = vsel %vm935_vm6, %v10232_v19, -inf }
 0xdcc   :  { %v10221_v35 = vpop.eup %7310  ;;  %v4392_v25 = vsub.f32 2.0, %v4360_v63  ;;  %6714 = vmatmul.msk.f32.gmra.mxu0 %vm134_vm0, %v4854_v15  ;;  %v4190_v51 = vmul.f32 1.442695, %v4143_v42  ;;  %v4863_v15 = vmul.f32 %v11338_v55, %v10137_v52 }
 0xdcd   :  { %v4423_v53 = vmul.f32 %v7305_v30, %v4391_v24  ;;  %v4272_v23 = vsel %vm935_vm6, %v10221_v35, 0.0  ;;  %v4859_v30 = vmul.f32 %v11338_v55, %v10098_v47  ;;  %v4862_v24 = vmul.f32 %v11338_v55, %v10124_v18 }
 0xdce   :  { %4273 = vadd.xlane.f32.xlu2 %v4272_v23  ;;  %v4424_v13 = vmul.f32 %v7307_v1, %v4392_v25  ;;  %7312 = vpow2.f32 %v4190_v51  ;;  %v4861_v1 = vmul.f32 %v11338_v55, %v10113_v59 }
 0xdcf   :  { %v4455_v60 = vmul.f32 %v10087_v9, %v4423_v53  ;;  %4261 = vadd.xlane.f32.xlu0 %v4260_v22  ;;  %v4855_v9 = vmul.f32 %v11337_v50, %v10137_v52 }
 0xdd0   :  { %v4456_v21 = vmul.f32 %v10081_v37, %v4424_v13  ;;  %v4857_v37 = vmul.f32 %v11337_v50, %v10163_v6 }
 0xdd1   :  { %6662 = vmatmul.msk.f32.gmra.mxu3 %vm935_vm6, %v4455_v60 }
 0xdd2   :  { %v10267_v28 = vpop.f32.mrf.mxu1 }
 0xdd4   :  { %6715 = vmatmul.msk.f32.gmra.mxu0 %vm134_vm0, %v4855_v9  ;;  %v10244_v31 = vpop.eup %7312 }
 0xdd5   :  { %v4269_v4 = vsel %vm935_vm6, %v10244_v31, 0.0 }
 0xdd6   :  { %4105 = vmax.xlane.f32.xlu2 %v4104_v12 }
 0xdd7   :  { %4093 = vmax.xlane.f32.xlu0 %v4092_v14 }
 0xdd9   :  { %6663 = vmatmul.msk.f32.gmra.mxu3 %vm935_vm6, %v4456_v21 }
 0xdda   :  { %v10275_v42 = vpop.f32.mrf.mxu1 }
 0xddc   :  { %6716 = vmatmul.msk.f32.gmra.mxu0 %vm134_vm0, %v4856_v38 }
 0xddf   :  { %4270 = vadd.xlane.f32.xlu0 %v4269_v4  ;;  %v4110_v4 = vsel %vm935_vm6, %v10275_v42, -inf }
 0xde2   :  { %v10284_v13 = vpop.f32.mrf.mxu1 }
 0xde4   :  { %6717 = vmatmul.msk.f32.gmra.mxu0 %vm134_vm0, %v4857_v37 }
 0xde7   :  { %4102 = vmax.xlane.f32.xlu0 %v4101_v7  ;;  %v4865_v7 = vmul.f32 %v11338_v55, %v10163_v6 }
 0xdea   :  { %v10299_v38 = vpop.f32.mrf.mxu1 }
 0xdec   :  { %6718 = vmatmul.msk.f32.gmra.mxu0 %vm134_vm0, %v4858_v49 }
 0xdf4   :  { %6719 = vmatmul.msk.f32.gmra.mxu0 %vm134_vm0, %v4859_v30 }
 0xdfc   :  { %6720 = vmatmul.msk.f32.gmra.mxu0 %vm134_vm0, %v4860_v40  ;;  %v4113_v40 = vsel %vm935_vm6, %v10284_v13, -inf }
 0xe04   :  { %6721 = vmatmul.msk.f32.gmra.mxu0 %vm134_vm0, %v4861_v1  ;;  %v4866_v1 = vmul.f32 %v11338_v55, %v10177_v34 }
 0xe09   :  { %v4256_v27 = vpop.xlane.xlu2 %4255 }
 0xe0c   :  { %6722 = vmatmul.msk.f32.gmra.mxu0 %vm134_vm0, %v4862_v24  ;;  %v10309_v24 = vpop.f32.mrf.mxu1 }
 0xe11   :  { %v10273_v63 = vpop.xlane.xlu1 %4258  ;;  %v4088_v53 = vpop.xlane.xlu2 %4087 }
 0xe12   :  { %v4146_v23 = vsub.f32 %v10119_v57, %v4088_v53  ;;  %v4864_v57 = vmul.f32 %v11338_v55, %v10149_v10 }
 0xe14   :  { %v4196_v22 = vmul.f32 1.442695, %v4146_v23  ;;  %6723 = vmatmul.msk.f32.gmra.mxu0 %vm134_vm0, %v4863_v15  ;;  %v4867_v15 = vmul.f32 %v11339_v17, %v10098_v47 }
 0xe16   :  { %7314 = vpow2.f32 %v4196_v22 }
 0xe19   :  { %v4091_v60 = vpop.xlane.xlu1 %4090 }
 0xe1a   :  { %v4147_v25 = vsub.f32 %v10133_v56, %v4091_v60 }
 0xe1c   :  { %v10282_v51 = vpop.eup %7314  ;;  %v4198_v12 = vmul.f32 1.442695, %v4147_v25  ;;  %6724 = vmatmul.msk.f32.gmra.mxu0 %vm134_vm0, %v4864_v57  ;;  %v10320_v25 = vpop.f32.mrf.mxu0 }
 0xe1d   :  { %v4278_v14 = vsel %vm935_vm6, %v10282_v51, 0.0  ;;  %v10323_v57 = vpop.f32.mrf.mxu1 }
 0xe1e   :  { %7316 = vpow2.f32 %v4198_v12  ;;  %4279 = vadd.xlane.f32.xlu0 %v4278_v14 }
 0xe21   :  { %v10291_v9 = vpop.xlane.xlu1 %4267 }
 0xe24   :  { %v10293_v21 = vpop.eup %7316  ;;  %6725 = vmatmul.msk.f32.gmra.mxu0 %vm134_vm0, %v4865_v7 }
 0xe25   :  { %v4281_v56 = vsel %vm935_vm6, %v10293_v21, 0.0 }
 0xe26   :  { %4282 = vadd.xlane.f32.xlu2 %v4281_v56  ;;  %4111 = vmax.xlane.f32.xlu0 %v4110_v4 }
 0xe29   :  { %v4100_v37 = vpop.xlane.xlu1 %4099 }
 0xe2a   :  { %v4150_v49 = vsub.f32 %v10186_v5, %v4100_v37 }
 0xe2c   :  { %v4204_v30 = vmul.f32 1.442695, %v4150_v49  ;;  %6726 = vmatmul.msk.f32.gmra.mxu0 %vm134_vm0, %v4866_v1  ;;  %v4122_v1 = vsel %vm935_vm6, %v10323_v57, -inf }
 0xe2e   :  { %7318 = vpow2.f32 %v4204_v30  ;;  %4114 = vmax.xlane.f32.xlu2 %v4113_v40 }
 0xe2f   :  { %7320 = vrcp.f32 %v4256_v27 }
 0xe31   :  { %v10312_v53 = vpop.xlane.xlu2 %4264 }
 0xe32   :  { %v4253_v23 = vpop.xlane.xlu0 %4252 }
 0xe33   :  { %7322 = vrcp.f32 %v4253_v23 }
 0xe34   :  { %v10314_v22 = vpop.eup %7318  ;;  %6727 = vmatmul.msk.f32.gmra.mxu0 %vm134_vm0, %v4867_v15  ;;  %7324 = vrcp.f32 %v10273_v63 }
 0xe35   :  { %v4290_v5 = vsel %vm935_vm6, %v10314_v22, 0.0  ;;  %v7321_v60 = vpop.eup %7320 }
 0xe36   :  { %4291 = vadd.xlane.f32.xlu2 %v4290_v5  ;;  %v4362_v49 = vmul.f32 %v7321_v60, %v4256_v27 }
 0xe38   :  { %v4394_v15 = vsub.f32 2.0, %v4362_v49 }
 0xe39   :  { %v7323_v12 = vpop.eup %7322  ;;  %v4097_v14 = vpop.xlane.xlu2 %4096 }
 0xe3a   :  { %v4361_v56 = vmul.f32 %v7323_v12, %v4253_v23  ;;  %v4149_v4 = vsub.f32 %v10170_v8, %v4097_v14  ;;  %v4085_v7 = vpop.xlane.xlu0 %4084  ;;  %v7325_v8 = vpop.eup %7324 }
 0xe3b   :  { %v4145_v37 = vsub.f32 %v10108_v58, %v4085_v7 }
 0xe3c   :  { %v4393_v30 = vsub.f32 2.0, %v4361_v56  ;;  %v4202_v47 = vmul.f32 1.442695, %v4149_v4  ;;  %v4426_v56 = vmul.f32 %v7321_v60, %v4394_v15  ;;  %v4363_v4 = vmul.f32 %v7325_v8, %v10273_v63 }
 0xe3d   :  { %v4194_v40 = vmul.f32 1.442695, %v4145_v37 }
 0xe3e   :  { %v4425_v5 = vmul.f32 %v7323_v12, %v4393_v30  ;;  %7326 = vpow2.f32 %v4202_v47  ;;  %4123 = vmax.xlane.f32.xlu2 %v4122_v1  ;;  %v4458_v37 = vmul.f32 %v10131_v41, %v4426_v56  ;;  %v4395_v49 = vsub.f32 2.0, %v4363_v4  ;;  %v10352_v56 = vpop.f32.mrf.mxu0 }
 0xe3f   :  { %7328 = vpow2.f32 %v4194_v40  ;;  %v4868_v1 = vmul.f32 %v11339_v17, %v10104_v20  ;;  %v4119_v41 = vsel %vm935_vm6, %v10309_v24, -inf }
 0xe40   :  { %v4457_v23 = vmul.f32 %v10197_v11, %v4425_v5  ;;  %v4427_v5 = vmul.f32 %v7325_v8, %v4395_v49 }
 0xe41   :  { %v10331_v14 = vpop.xlane.xlu2 %4273  ;;  %6728 = vmatmul.msk.f32.gmra.mxu0 %vm134_vm0, %v4868_v1 }
 0xe42   :  { %6664 = vmatmul.msk.f32.gmra.mxu3 %vm935_vm6, %v4457_v23  ;;  %v4262_v58 = vpop.xlane.xlu0 %4261  ;;  %v4459_v20 = vmul.f32 %v10145_v46, %v4427_v5 }
 0xe43   :  { %7330 = vrcp.f32 %v4262_v58 }
 0xe44   :  { %v10334_v27 = vpop.eup %7326  ;;  %7332 = vrcp.f32 %v10312_v53 }
 0xe45   :  { %v10337_v7 = vpop.eup %7328  ;;  %v4287_v12 = vsel %vm935_vm6, %v10334_v27, 0.0 }
 0xe46   :  { %4288 = vadd.xlane.f32.xlu0 %v4287_v12  ;;  %v4275_v11 = vsel %vm935_vm6, %v10337_v7, 0.0 }
 0xe47   :  { %4276 = vadd.xlane.f32.xlu1 %v4275_v11 }
 0xe49   :  { %v7331_v30 = vpop.eup %7330  ;;  %v4106_v47 = vpop.xlane.xlu2 %4105 }
 0xe4a   :  { %v4152_v40 = vsub.f32 %v10232_v19, %v4106_v47  ;;  %6665 = vmatmul.msk.f32.gmra.mxu3 %vm935_vm6, %v4458_v37  ;;  %v4094_v63 = vpop.xlane.xlu0 %4093  ;;  %v4364_v15 = vmul.f32 %v7331_v30, %v4262_v58  ;;  %v4107_v19 = vsel %vm935_vm6, %v10267_v28, -inf  ;;  %v7333_v8 = vpop.eup %7332 }
 0xe4b   :  { %v4148_v60 = vsub.f32 %v10156_v48, %v4094_v63  ;;  %v4365_v11 = vmul.f32 %v7333_v8, %v10312_v53 }
 0xe4c   :  { %v4208_v23 = vmul.f32 1.442695, %v4152_v40  ;;  %v4396_v48 = vsub.f32 2.0, %v4364_v15 }
 0xe4d   :  { %v4200_v12 = vmul.f32 1.442695, %v4148_v60  ;;  %v4397_v40 = vsub.f32 2.0, %v4365_v11 }
 0xe4e   :  { %7334 = vpow2.f32 %v4208_v23  ;;  %4120 = vmax.xlane.f32.xlu0 %v4119_v41  ;;  %v4428_v37 = vmul.f32 %v7331_v30, %v4396_v48  ;;  %v4116_v23 = vsel %vm935_vm6, %v10299_v38, -inf }
 0xe4f   :  { %7336 = vpow2.f32 %v4200_v12  ;;  %4108 = vmax.xlane.f32.xlu1 %v4107_v19  ;;  %v4429_v5 = vmul.f32 %v7333_v8, %v4397_v40 }
 0xe50   :  { %7338 = vrcp.f32 %v10291_v9  ;;  %v4460_v63 = vmul.f32 %v10219_v3, %v4428_v37 }
 0xe51   :  { %v4461_v41 = vmul.f32 %v10195_v0, %v4429_v5  ;;  %v10384_v0 = vpop.f32.mrf.mxu1 }
 0xe52   :  { %6666 = vmatmul.msk.f32.gmra.mxu3 %vm935_vm6, %v4459_v20  ;;  %v4271_v58 = vpop.xlane.xlu0 %4270 }
 0xe53   :  { %7340 = vrcp.f32 %v4271_v58 }
 0xe54   :  { %v10360_v4 = vpop.eup %7334 }
 0xe55   :  { %v10363_v49 = vpop.eup %7336  ;;  %v4296_v47 = vsel %vm935_vm6, %v10360_v4, 0.0 }
 0xe56   :  { %4297 = vadd.xlane.f32.xlu0 %v4296_v47  ;;  %v4284_v46 = vsel %vm935_vm6, %v10363_v49, 0.0  ;;  %v7339_v60 = vpop.eup %7338 }
 0xe57   :  { %4285 = vadd.xlane.f32.xlu1 %v4284_v46  ;;  %v4366_v30 = vmul.f32 %v7339_v60, %v10291_v9 }
 0xe59   :  { %v4398_v12 = vsub.f32 2.0, %v4366_v30  ;;  %v7341_v3 = vpop.eup %7340 }
 0xe5a   :  { %6667 = vmatmul.msk.f32.gmra.mxu3 %vm935_vm6, %v4460_v63  ;;  %v4103_v1 = vpop.xlane.xlu0 %4102  ;;  %v4367_v20 = vmul.f32 %v7341_v3, %v4271_v58  ;;  %v4125_v58 = vsel %vm935_vm6, %v10384_v0, -inf }
 0xe5b   :  { %v4151_v53 = vsub.f32 %v10214_v36, %v4103_v1  ;;  %v4430_v19 = vmul.f32 %v7339_v60, %v4398_v12  ;;  %v10392_v60 = vpop.f32.mrf.mxu0  ;;  %v4869_v1 = vmul.f32 %v11339_v17, %v10113_v59 }
 0xe5c   :  { %v4399_v8 = vsub.f32 2.0, %v4367_v20 }
 0xe5d   :  { %v4206_v15 = vmul.f32 1.442695, %v4151_v53  ;;  %v4462_v48 = vmul.f32 %v10174_v26, %v4430_v19  ;;  %6729 = vmatmul.msk.f32.gmra.mxu0 %vm134_vm0, %v4869_v1 }
 0xe5e   :  { %v4431_v47 = vmul.f32 %v7341_v3, %v4399_v8  ;;  %v10430_v8 = vpop.f32.mrf.mxu3 }
 0xe5f   :  { %7342 = vpow2.f32 %v4206_v15  ;;  %4117 = vmax.xlane.f32.xlu1 %v4116_v23 }
 0xe60   :  { %7344 = vrcp.f32 %v10331_v14  ;;  %v4463_v40 = vmul.f32 %v10244_v31, %v4431_v47 }
 0xe62   :  { %6668 = vmatmul.msk.f32.gmra.mxu3 %vm935_vm6, %v4461_v41 }
 0xe63   :  { %v10400_v53 = vpop.f32.mrf.mxu0 }
 0xe65   :  { %v10378_v36 = vpop.eup %7342 }
 0xe66   :  { %v4293_v9 = vsel %vm935_vm6, %v10378_v36, 0.0  ;;  %v7345_v11 = vpop.eup %7344 }
 0xe67   :  { %4294 = vadd.xlane.f32.xlu1 %v4293_v9  ;;  %v4368_v37 = vmul.f32 %v7345_v11, %v10331_v14  ;;  %v4870_v14 = vmul.f32 %v11339_v17, %v10124_v18  ;;  %v4872_v18 = vmul.f32 %v11339_v17, %v10149_v10 }
 0xe69   :  { %v4400_v46 = vsub.f32 2.0, %v4368_v37  ;;  %6730 = vmatmul.msk.f32.gmra.mxu0 %vm134_vm0, %v4870_v14 }
 0xe6a   :  { %6669 = vmatmul.msk.f32.gmra.mxu3 %vm935_vm6, %v4462_v48  ;;  %v4874_v48 = vmul.f32 %v11339_v17, %v10177_v34 }
 0xe6b   :  { %v4432_v63 = vmul.f32 %v7345_v11, %v4400_v46  ;;  %v10403_v31 = vpop.f32.mrf.mxu0  ;;  %v10440_v46 = vpop.f32.mrf.mxu3 }
 0xe6d   :  { %v4464_v26 = vmul.f32 %v10221_v35, %v4432_v63  ;;  %v4871_v35 = vmul.f32 %v11339_v17, %v10137_v52  ;;  %v4873_v52 = vmul.f32 %v11339_v17, %v10163_v6 }
 0xe6f   :  { %4126 = vmax.xlane.f32.xlu1 %v4125_v58 }
 0xe71   :  { %6731 = vmatmul.msk.f32.gmra.mxu0 %vm134_vm0, %v4871_v35 }
 0xe72   :  { %6670 = vmatmul.msk.f32.gmra.mxu3 %vm935_vm6, %v4463_v40 }
 0xe73   :  { %v10408_v59 = vpop.f32.mrf.mxu0  ;;  %v10448_v1 = vpop.f32.mrf.mxu3 }
 0xe79   :  { %6732 = vmatmul.msk.f32.gmra.mxu0 %vm134_vm0, %v4872_v18 }
 0xe7a   :  { %6671 = vmatmul.msk.f32.gmra.mxu3 %vm935_vm6, %v4464_v26 }
 0xe7b   :  { %v10416_v3 = vpop.f32.mrf.mxu0 }
 0xe81   :  { %6733 = vmatmul.msk.f32.gmra.mxu0 %vm134_vm0, %v4873_v52 }
 0xe83   :  { %v10432_v6 = vpop.f32.mrf.mxu0 }
 0xe89   :  { %6734 = vmatmul.msk.f32.gmra.mxu0 %vm134_vm0, %v4874_v48 }
 0xe91   :  { %v4280_v30 = vpop.xlane.xlu0 %4279 }
 0xe99   :  { %v10410_v5 = vpop.xlane.xlu2 %4282  ;;  %v4112_v15 = vpop.xlane.xlu0 %4111 }
 0xe9a   :  { %v4154_v23 = vsub.f32 %v10275_v42, %v4112_v15 }
 0xe9c   :  { %v4212_v12 = vmul.f32 1.442695, %v4154_v23 }
 0xe9e   :  { %7346 = vpow2.f32 %v4212_v12 }
 0xea1   :  { %v4115_v41 = vpop.xlane.xlu2 %4114 }
 0xea2   :  { %v4155_v19 = vsub.f32 %v10284_v13, %v4115_v41  ;;  %v5111_v41 = vsel %vm935_vm6, %v10352_v56, -inf }
 0xea4   :  { %v10422_v20 = vpop.eup %7346  ;;  %v4214_v9 = vmul.f32 1.442695, %v4155_v19 }
 0xea5   :  { %v4302_v10 = vsel %vm935_vm6, %v10422_v20, 0.0 }
 0xea6   :  { %7348 = vpow2.f32 %v4214_v9  ;;  %4303 = vadd.xlane.f32.xlu0 %v4302_v10 }
 0xea9   :  { %v10426_v42 = vpop.xlane.xlu2 %4291 }
 0xeac   :  { %v10435_v13 = vpop.eup %7348 }
 0xead   :  { %v4305_v11 = vsel %vm935_vm6, %v10435_v13, 0.0 }
 0xeae   :  { %4306 = vadd.xlane.f32.xlu1 %v4305_v11 }
 0xeb1   :  { %v4124_v37 = vpop.xlane.xlu2 %4123 }
 0xeb2   :  { %v4158_v47 = vsub.f32 %v10323_v57, %v4124_v37 }
 0xeb4   :  { %v4220_v58 = vmul.f32 1.442695, %v4158_v47  ;;  %v10456_v47 = vpop.f32.mrf.mxu3 }
 0xeb6   :  { %7350 = vpow2.f32 %v4220_v58 }
 0xeb7   :  { %7352 = vrcp.f32 %v4280_v30 }
 0xeb9   :  { %v10442_v34 = vpop.xlane.xlu0 %4288 }
 0xeba   :  { %v4277_v40 = vpop.xlane.xlu1 %4276 }
 0xebb   :  { %7354 = vrcp.f32 %v4277_v40 }
 0xebc   :  { %v10444_v63 = vpop.eup %7350  ;;  %7356 = vrcp.f32 %v10410_v5 }
 0xebd   :  { %v4314_v26 = vsel %vm935_vm6, %v10444_v63, 0.0  ;;  %v7353_v14 = vpop.eup %7352 }
 0xebe   :  { %4315 = vadd.xlane.f32.xlu1 %v4314_v26  ;;  %v4370_v52 = vmul.f32 %v7353_v14, %v4280_v30  ;;  %v5120_v30 = vsel %vm935_vm6, %v10403_v31, -inf }
 0xec0   :  { %v4402_v11 = vsub.f32 2.0, %v4370_v52 }
 0xec1   :  { %v7355_v35 = vpop.eup %7354  ;;  %v4121_v57 = vpop.xlane.xlu0 %4120 }
 0xec2   :  { %v4369_v15 = vmul.f32 %v7355_v35, %v4277_v40  ;;  %v4157_v18 = vsub.f32 %v10309_v24, %v4121_v57  ;;  %v4109_v23 = vpop.xlane.xlu1 %4108  ;;  %v7357_v24 = vpop.eup %7356  ;;  %v4434_v40 = vmul.f32 %v7353_v14, %v4402_v11 }
 0xec3   :  { %v4153_v12 = vsub.f32 %v10267_v28, %v4109_v23  ;;  %v4371_v26 = vmul.f32 %v7357_v24, %v10410_v5 }
 0xec4   :  { %v4401_v19 = vsub.f32 2.0, %v4369_v15  ;;  %v4218_v9 = vmul.f32 1.442695, %v4157_v18  ;;  %v4466_v15 = vmul.f32 %v10282_v51, %v4434_v40 }
 0xec5   :  { %v4210_v10 = vmul.f32 1.442695, %v4153_v12  ;;  %v4403_v18 = vsub.f32 2.0, %v4371_v26  ;;  %v10471_v12 = vpop.f32.mrf.mxu3 }
 0xec6   :  { %v4433_v48 = vmul.f32 %v7355_v35, %v4401_v19  ;;  %7358 = vpow2.f32 %v4218_v9  ;;  %5112 = vmax.xlane.f32.xlu1 %v5111_v41  ;;  %v5108_v41 = vsel %vm935_vm6, %v10320_v25, -inf }
 0xec7   :  { %7360 = vpow2.f32 %v4210_v10  ;;  %v4435_v52 = vmul.f32 %v7357_v24, %v4403_v18  ;;  %v5126_v18 = vsel %vm935_vm6, %v10416_v3, -inf }
 0xec8   :  { %v4465_v37 = vmul.f32 %v10337_v7, %v4433_v48 }
 0xec9   :  { %v4467_v51 = vmul.f32 %v10293_v21, %v4435_v52  ;;  %v4298_v52 = vpop.xlane.xlu0 %4297 }
 0xeca   :  { %6672 = vmatmul.msk.f32.gmra.mxu3 %vm935_vm6, %v4465_v37  ;;  %v4286_v28 = vpop.xlane.xlu1 %4285 }
 0xecb   :  { %7362 = vrcp.f32 %v4286_v28 }
 0xecc   :  { %v10461_v58 = vpop.eup %7358  ;;  %7364 = vrcp.f32 %v10442_v34 }
 0xecd   :  { %v10464_v35 = vpop.eup %7360  ;;  %v4311_v7 = vsel %vm935_vm6, %v10461_v58, 0.0  ;;  %v10480_v37 = vpop.f32.mrf.mxu3 }
 0xece   :  { %4312 = vadd.xlane.f32.xlu0 %v4311_v7  ;;  %v4299_v57 = vsel %vm935_vm6, %v10464_v35, 0.0  ;;  %5121 = vmax.xlane.f32.xlu1 %v5120_v30 }
 0xecf   :  { %4300 = vadd.xlane.f32.xlu2 %v4299_v57 }
 0xed1   :  { %v7363_v23 = vpop.eup %7362 }
 0xed2   :  { %6673 = vmatmul.msk.f32.gmra.mxu3 %vm935_vm6, %v4466_v15  ;;  %v4118_v5 = vpop.xlane.xlu1 %4117  ;;  %v4372_v19 = vmul.f32 %v7363_v23, %v4286_v28  ;;  %v7365_v48 = vpop.eup %7364 }
 0xed3   :  { %v4156_v14 = vsub.f32 %v10299_v38, %v4118_v5  ;;  %v5117_v38 = vsel %vm935_vm6, %v10400_v53, -inf  ;;  %v4373_v24 = vmul.f32 %v7365_v48, %v10442_v34 }
 0xed4   :  { %v4404_v10 = vsub.f32 2.0, %v4372_v19 }
 0xed5   :  { %v4216_v9 = vmul.f32 1.442695, %v4156_v14  ;;  %v4405_v40 = vsub.f32 2.0, %v4373_v24  ;;  %v10492_v15 = vpop.f32.mrf.mxu3 }
 0xed6   :  { %5109 = vmax.xlane.f32.xlu0 %v5108_v41  ;;  %v4436_v28 = vmul.f32 %v7363_v23, %v4404_v10 }
 0xed7   :  { %7366 = vpow2.f32 %v4216_v9  ;;  %v4437_v5 = vmul.f32 %v7365_v48, %v4405_v40 }
 0xed8   :  { %7368 = vrcp.f32 %v10426_v42  ;;  %v4468_v26 = vmul.f32 %v10363_v49, %v4436_v28 }
 0xed9   :  { %v4469_v49 = vmul.f32 %v10334_v27, %v4437_v5 }
 0xeda   :  { %6674 = vmatmul.msk.f32.gmra.mxu3 %vm935_vm6, %v4467_v51  ;;  %v4295_v11 = vpop.xlane.xlu1 %4294 }
 0xedb   :  { %7370 = vrcp.f32 %v4295_v11 }
 0xedd   :  { %v10486_v30 = vpop.eup %7366 }
 0xede   :  { %5118 = vmax.xlane.f32.xlu0 %v5117_v38  ;;  %v4308_v21 = vsel %vm935_vm6, %v10486_v30, 0.0  ;;  %v7369_v7 = vpop.eup %7368 }
 0xedf   :  { %4309 = vadd.xlane.f32.xlu2 %v4308_v21  ;;  %v4374_v23 = vmul.f32 %v7369_v7, %v10426_v42  ;;  %v10504_v42 = vpop.f32.mrf.mxu3 }
 0xee1   :  { %v4406_v41 = vsub.f32 2.0, %v4374_v23  ;;  %v7371_v19 = vpop.eup %7370 }
 0xee2   :  { %6675 = vmatmul.msk.f32.gmra.mxu3 %vm935_vm6, %v4468_v26  ;;  %v4127_v57 = vpop.xlane.xlu1 %4126  ;;  %v4375_v51 = vmul.f32 %v7371_v19, %v4295_v11  ;;  %v5114_v11 = vsel %vm935_vm6, %v10392_v60, -inf }
 0xee3   :  { %v4159_v34 = vsub.f32 %v10384_v0, %v4127_v57  ;;  %v5129_v0 = vsel %vm935_vm6, %v10432_v6, -inf  ;;  %v4438_v9 = vmul.f32 %v7369_v7, %v4406_v41 }
 0xee4   :  { %v4407_v38 = vsub.f32 2.0, %v4375_v51 }
 0xee5   :  { %v4222_v14 = vmul.f32 1.442695, %v4159_v34  ;;  %v4470_v27 = vmul.f32 %v10314_v22, %v4438_v9  ;;  %v5123_v22 = vsel %vm935_vm6, %v10408_v59, -inf }
 0xee6   :  { %5127 = vmax.xlane.f32.xlu0 %v5126_v18  ;;  %v4439_v21 = vmul.f32 %v7371_v19, %v4407_v38 }
 0xee7   :  { %7372 = vpow2.f32 %v4222_v14  ;;  %v10512_v40 = vpop.f32.mrf.mxu3 }
 0xee8   :  { %7374 = vrcp.f32 %v4298_v52  ;;  %v4471_v7 = vmul.f32 %v10378_v36, %v4439_v21 }
 0xeea   :  { %6676 = vmatmul.msk.f32.gmra.mxu3 %vm935_vm6, %v4469_v49 }
 0xeed   :  { %v10502_v10 = vpop.eup %7372 }
 0xeee   :  { %v4317_v48 = vsel %vm935_vm6, %v10502_v10, 0.0  ;;  %5130 = vmax.xlane.f32.xlu0 %v5129_v0  ;;  %v7375_v24 = vpop.eup %7374 }
 0xeef   :  { %4318 = vadd.xlane.f32.xlu2 %v4317_v48  ;;  %v4376_v28 = vmul.f32 %v7375_v24, %v4298_v52  ;;  %v10518_v34 = vpop.f32.mrf.mxu3  ;;  %v10541_v48 = vpop.f32.mrf.mxu0 }
 0xef0   :  { %v5132_v32 = vsel %vm935_vm6, %v10541_v48, -inf }
 0xef1   :  { %v4408_v26 = vsub.f32 2.0, %v4376_v28 }
 0xef2   :  { %6677 = vmatmul.msk.f32.gmra.mxu3 %vm935_vm6, %v4470_v27 }
 0xef3   :  { %v4440_v57 = vmul.f32 %v7375_v24, %v4408_v26 }
 0xef5   :  { %v4472_v18 = vmul.f32 %v10360_v4, %v4440_v57 }
 0xef7   :  { %5115 = vmax.xlane.f32.xlu2 %v5114_v11  ;;  %v10522_v23 = vpop.f32.mrf.mxu3  ;;  %v10553_v11 = vpop.f32.mrf.mxu0 }
 0xefa   :  { %6678 = vmatmul.msk.f32.gmra.mxu3 %vm935_vm6, %v4471_v7 }
 0xeff   :  { %5124 = vmax.xlane.f32.xlu2 %v5123_v22  ;;  %v10524_v5 = vpop.f32.mrf.mxu3 }
 0xf02   :  { %6679 = vmatmul.msk.f32.gmra.mxu3 %vm935_vm6, %v4472_v18 }
 0xf07   :  { %v10530_v36 = vpop.f32.mrf.mxu3 }
 0xf0f   :  { %v10532_v14 = vpop.f32.mrf.mxu3 }
 0xf17   :  { %6879 = vrot.lane.b32.xlu2 %v6878_v61, %s7733_s2  ;;  %v10534_v49 = vpop.f32.mrf.mxu3 }
 0xf19   :  { %v4304_v4 = vpop.xlane.xlu0 %4303 }
 0xf1f   :  { %v10539_v9 = vpop.f32.mrf.mxu3 }
 0xf21   :  { %v4307_v41 = vpop.xlane.xlu1 %4306 }
 0xf27   :  { %v10549_v38 = vpop.f32.mrf.mxu3 }
 0xf31   :  { %v10536_v52 = vpop.xlane.xlu1 %4315 }
 0xf39   :  { %v5113_v19 = vpop.xlane.xlu1 %5112 }
 0xf3a   :  { %v5205_v0 = vsub.f32 %v10352_v56, %v5113_v19 }
 0xf3c   :  { %v5238_v51 = vmul.f32 1.442695, %v5205_v0 }
 0xf3e   :  { %7376 = vpow2.f32 %v5238_v51 }
 0xf3f   :  { %7378 = vrcp.f32 %v4304_v4 }
 0xf40   :  { %5133 = vmax.xlane.f32.xlu2 %v5132_v32 }
 0xf41   :  { %v10545_v16 = vpop.xlane.xlu0 %4312 }
 0xf42   :  { %v4301_v61 = vpop.xlane.xlu2 %4300 }
 0xf43   :  { %7380 = vrcp.f32 %v4301_v61 }
 0xf44   :  { %v10547_v27 = vpop.eup %7376  ;;  %7382 = vrcp.f32 %v4307_v41 }
 0xf45   :  { %v5303_v56 = vsel %vm935_vm6, %v10547_v27, 0.0  ;;  %v7379_v24 = vpop.eup %7378 }
 0xf46   :  { %5304 = vadd.xlane.f32.xlu0 %v5303_v56  ;;  %v4378_v57 = vmul.f32 %v7379_v24, %v4304_v4 }
 0xf48   :  { %v4410_v51 = vsub.f32 2.0, %v4378_v57  ;;  %v3765_v57 = vld [vmem:[#allocation6 + $0x120] sm:$0xff] }
 0xf49   :  { %v7381_v28 = vpop.eup %7380  ;;  %v5110_v21 = vpop.xlane.xlu0 %5109  ;;  %4806 = vmatpush.msrb.mxu2 %v3765_v57  ;;  %5881 = vmatpush.msra.mxu1 %v3765_v57 }
 0xf4a   :  { %v4377_v26 = vmul.f32 %v7381_v28, %v4301_v61  ;;  %v5204_v7 = vsub.f32 %v10320_v25, %v5110_v21  ;;  %v7383_v56 = vpop.eup %7382  ;;  %v4442_v4 = vmul.f32 %v7379_v24, %v4410_v51 }
 0xf4b   :  { %v4379_v21 = vmul.f32 %v7383_v56, %v4307_v41  ;;  %v3762_v41 = vld [vmem:[#allocation6 + $0x30] sm:$0xff] }
 0xf4c   :  { %v4409_v22 = vsub.f32 2.0, %v4377_v26  ;;  %v5236_v18 = vmul.f32 1.442695, %v5204_v7  ;;  %v10563_v26 = vpop.f32.mrf.mxu0 }
 0xf4d   :  { %v10556_v19 = vpop.f32.mrf.mxu3 }
 0xf4e   :  { %v4441_v0 = vmul.f32 %v7381_v28, %v4409_v22  ;;  %7384 = vpow2.f32 %v5236_v18  ;;  %v3764_v22 = vld [vmem:[#allocation6 + $0xd0] sm:$0xff]  ;;  %v3763_v18 = vld [vmem:[#allocation6 + $0x80] sm:$0xff] }
 0xf4f   :  { %4807 = vmatpush.msrb.mxu2 %v3764_v22  ;;  %5882 = vmatpush.msra.mxu1 %v3764_v22  ;;  %v5138_v22 = vsel %vm935_vm6, %v10563_v26, -inf }
 0xf50   :  { %v4473_v32 = vmul.f32 %v10464_v35, %v4441_v0 }
 0xf51   :  { %v5119_v54 = vpop.xlane.xlu0 %5118  ;;  %4808 = vmatpush.msrb.mxu2 %v3763_v18  ;;  %5883 = vmatpush.msra.mxu1 %v3763_v18 }
 0xf52   :  { %v5207_v29 = vsub.f32 %v10400_v53, %v5119_v54  ;;  %6680 = vmatmul.msk.f32.gmra.mxu3 %vm935_vm6, %v4473_v32  ;;  %v4310_v61 = vpop.xlane.xlu2 %4309  ;;  %v4474_v54 = vmul.f32 %v10422_v20, %v4442_v4  ;;  %v4411_v53 = vsub.f32 2.0, %v4379_v21 }
 0xf53   :  { %7386 = vrcp.f32 %v4310_v61  ;;  %4809 = vmatpush.msrb.mxu2 %v3762_v41  ;;  %5884 = vmatpush.msra.mxu1 %v3762_v41 }
 0xf54   :  { %v10561_v25 = vpop.eup %7384  ;;  %v5242_v7 = vmul.f32 1.442695, %v5207_v29  ;;  %v11340_v29 = vpack.i.bf16 %v9884_v2, %v9887_v44  ;;  %v4443_v20 = vmul.f32 %v7383_v56, %v4411_v53  ;;  %v10582_v21 = vpop.f32.mrf.mxu0 }
 0xf55   :  { %v10565_v28 = vpop.f32.mrf.mxu3  ;;  %v5300_v35 = vsel %vm935_vm6, %v10561_v25, 0.0 }
 0xf56   :  { %7388 = vpow2.f32 %v5242_v7  ;;  %5301 = vadd.xlane.f32.xlu1 %v5300_v35  ;;  %v4475_v2 = vmul.f32 %v10435_v13, %v4443_v20 }
 0xf57   :  { %7390 = vrcp.f32 %v10545_v16 }
 0xf58   :  { %7392 = vrcp.f32 %v10536_v52 }
 0xf59   :  { %v7387_v24 = vpop.eup %7386  ;;  %v5128_v35 = vpop.xlane.xlu0 %5127 }
 0xf5a   :  { %6681 = vmatmul.msk.f32.gmra.mxu3 %vm935_vm6, %v4474_v54  ;;  %6889 = vrot.lane.b32.xlu0 %v11340_v29, %s7733_s2  ;;  %v4380_v51 = vmul.f32 %v7387_v24, %v4310_v61  ;;  %v5210_v54 = vsub.f32 %v10416_v3, %v5128_v35 }
 0xf5c   :  { %v10576_v0 = vpop.eup %7388  ;;  %v4412_v44 = vsub.f32 2.0, %v4380_v51  ;;  %v10593_v18 = vpop.f32.mrf.mxu0  ;;  %v5248_v41 = vmul.f32 1.442695, %v5210_v54 }
 0xf5d   :  { %v10578_v32 = vpop.f32.mrf.mxu3  ;;  %v5309_v4 = vsel %vm935_vm6, %v10576_v0, 0.0  ;;  %v7391_v7 = vpop.eup %7390 }
 0xf5e   :  { %5310 = vadd.xlane.f32.xlu2 %v5309_v4  ;;  %v4381_v56 = vmul.f32 %v7391_v7, %v10545_v16  ;;  %v4444_v61 = vmul.f32 %v7387_v24, %v4412_v44  ;;  %v7393_v20 = vpop.eup %7392  ;;  %v5141_v4 = vsel %vm935_vm6, %v10582_v21, -inf }
 0xf5f   :  { %v4382_v16 = vmul.f32 %v7393_v20, %v10536_v52 }
 0xf60   :  { %v4413_v13 = vsub.f32 2.0, %v4381_v56  ;;  %v4476_v29 = vmul.f32 %v10486_v30, %v4444_v61  ;;  %v11341_v30 = vpack.i.bf16 %v9906_v45, %v9909_v62 }
 0xf62   :  { %v4319_v57 = vpop.xlane.xlu2 %4318  ;;  %6682 = vmatmul.msk.f32.gmra.mxu3 %vm935_vm6, %v4475_v2  ;;  %v4445_v3 = vmul.f32 %v7391_v7, %v4413_v13  ;;  %v4414_v2 = vsub.f32 2.0, %v4382_v16  ;;  %v6893_v13 = vpack.i.bf16 %v9983_v39, %v9976_v43 }
 0xf63   :  { %7394 = vrcp.f32 %v4319_v57 }
 0xf64   :  { %7396 = vpow2.f32 %v5248_v41  ;;  %v4477_v44 = vmul.f32 %v10461_v58, %v4445_v3  ;;  %v10609_v52 = vpop.f32.mrf.mxu0  ;;  %v4446_v54 = vmul.f32 %v7393_v20, %v4414_v2  ;;  %v4721_v2 = vmul.f32 %v11337_v50, %v10512_v40 }
 0xf65   :  { %v10589_v53 = vpop.f32.mrf.mxu3 }
 0xf66   :  { %5139 = vmax.xlane.f32.xlu2 %v5138_v22 }
 0xf69   :  { %v7395_v35 = vpop.eup %7394 }
 0xf6a   :  { %v5116_v51 = vpop.xlane.xlu2 %5115  ;;  %6683 = vmatmul.msk.f32.gmra.mxu3 %vm935_vm6, %v4476_v29  ;;  %v10607_v56 = vpop.eup %7396  ;;  %v4383_v22 = vmul.f32 %v7395_v35, %v4319_v57 }
 0xf6b   :  { %v5206_v7 = vsub.f32 %v10392_v60, %v5116_v51  ;;  %v5318_v62 = vsel %vm935_vm6, %v10607_v56, 0.0  ;;  %v5122_v29 = vpop.xlane.xlu1 %5121  ;;  %v4478_v60 = vmul.f32 %v10444_v63, %v4446_v54 }
 0xf6c   :  { %v4415_v41 = vsub.f32 2.0, %v4383_v22  ;;  %v5208_v57 = vsub.f32 %v10403_v31, %v5122_v29  ;;  %v10623_v39 = vpop.f32.mrf.mxu0 }
 0xf6d   :  { %v10598_v24 = vpop.f32.mrf.mxu3  ;;  %v5240_v58 = vmul.f32 1.442695, %v5206_v7 }
 0xf6e   :  { %5142 = vmax.xlane.f32.xlu2 %v5141_v4  ;;  %v4447_v20 = vmul.f32 %v7395_v35, %v4415_v41  ;;  %v5150_v4 = vsel %vm935_vm6, %v10623_v39, -inf  ;;  %v5244_v63 = vmul.f32 1.442695, %v5208_v57  ;;  %v4729_v35 = vmul.f32 %v11338_v55, %v10549_v38 }
 0xf6f   :  { %6884 = vrot.lane.b32.xlu1 %v11341_v30, %s7733_s2  ;;  %7398 = vpow2.f32 %v5240_v58 }
 0xf70   :  { %v4479_v31 = vmul.f32 %v10502_v10, %v4447_v20  ;;  %7400 = vpow2.f32 %v5244_v63 }
 0xf72   :  { %v5125_v61 = vpop.xlane.xlu2 %5124  ;;  %6684 = vmatmul.msk.f32.gmra.mxu3 %vm935_vm6, %v4477_v44  ;;  %v4713_v44 = vmul.f32 %v11336_v33, %v10430_v8 }
 0xf73   :  { %v5209_v41 = vsub.f32 %v10408_v59, %v5125_v61  ;;  %v5147_v61 = vsel %vm935_vm6, %v10609_v52, -inf }
 0xf74   :  { %v4745_v54 = vadd.f32 %v4721_v2, %v4713_v44  ;;  %v10657_v20 = vpop.f32.mrf.mxu0 }
 0xf75   :  { %v10615_v45 = vpop.f32.mrf.mxu3  ;;  %v10629_v30 = vpop.eup %7398  ;;  %v5246_v57 = vmul.f32 1.442695, %v5209_v41 }
 0xf76   :  { %5319 = vadd.xlane.f32.xlu2 %v5318_v62  ;;  %v5306_v7 = vsel %vm935_vm6, %v10629_v30, 0.0  ;;  %v5131_v62 = vpop.xlane.xlu0 %5130  ;;  %v10642_v10 = vpop.eup %7400 }
 0xf77   :  { %6894 = vrot.lane.b32.xlu1 %v6893_v13, %s7733_s2  ;;  %v4753_v13 = vadd.f32 %v4745_v54, %v4729_v35  ;;  %v5211_v8 = vsub.f32 %v10432_v6, %v5131_v62  ;;  %v5312_v38 = vsel %vm935_vm6, %v10642_v10, 0.0  ;;  %v5135_v6 = vsel %vm935_vm6, %v10553_v11, -inf }
 0xf79   :  { %v5250_v29 = vmul.f32 1.442695, %v5211_v8 }
 0xf7a   :  { %v6880_v51 = vpop.permute.xlu2 %6879  ;;  %6685 = vmatmul.msk.f32.gmra.mxu3 %vm935_vm6, %v4478_v60  ;;  %v5144_v60 = vsel %vm935_vm6, %v10593_v18, -inf }
 0xf7b   :  { %v6881_v43 = vunpack.i.l.bf16 %v6880_v51  ;;  %v6882_v16 = vunpack.i.h.bf16 %v6880_v51  ;;  %7402 = vpow2.f32 %v5250_v29 }
 0xf7c   :  { %7404 = vpow2.f32 %v5246_v57 }
 0xf7d   :  { %v10625_v3 = vpop.f32.mrf.mxu3  ;;  %5684 = vmatpush.msra.mxu2 %v6881_v43 }
 0xf7e   :  { %5151 = vmax.xlane.f32.xlu2 %v5150_v4 }
 0xf7f   :  { %5685 = vmatpush.msra.mxu2 %v6882_v16  ;;  %v5153_v16 = vsel %vm935_vm6, %v10657_v20, -inf }
 0xf81   :  { %v10651_v51 = vpop.eup %7402 }
 0xf82   :  { %6686 = vmatmul.msk.f32.gmra.mxu3 %vm935_vm6, %v4479_v31  ;;  %v5321_v43 = vsel %vm935_vm6, %v10651_v51, 0.0  ;;  %v10661_v4 = vpop.eup %7404 }
 0xf83   :  { %v5315_v59 = vsel %vm935_vm6, %v10661_v4, 0.0 }
 0xf84   :  { %5307 = vadd.xlane.f32.xlu0 %v5306_v7  ;;  %v10672_v7 = vpop.f32.mrf.mxu0 }
 0xf85   :  { %v4689_v22 = vpop.f32.mrf.mxu3  ;;  %v5156_v54 = vsel %vm935_vm6, %v10672_v7, -inf }
 0xf86   :  { %v4737_v40 = vmul.f32 %v11339_v17, %v4689_v22  ;;  %v4722_v22 = vmul.f32 %v11337_v50, %v10518_v34 }
 0xf88   :  { %v4761_v58 = vadd.f32 %v4753_v13, %v4737_v40  ;;  %v4730_v40 = vmul.f32 %v11338_v55, %v10556_v19  ;;  %v4731_v19 = vmul.f32 %v11338_v55, %v10565_v28 }
 0xf8a   :  { %6687 = vmatmul.msk.f32.vlgmr.msrb.gmra.mxu2 %vm134_vm0, %v4761_v58 }
 0xf8c   :  { %5313 = vadd.xlane.f32.xlu0 %v5312_v38  ;;  %v10684_v62 = vpop.f32.mrf.mxu0 }
 0xf94   :  { %5145 = vmax.xlane.f32.xlu0 %v5144_v60  ;;  %v4723_v60 = vmul.f32 %v11337_v50, %v10522_v23 }
 0xf9c   :  { %5322 = vadd.xlane.f32.xlu0 %v5321_v43 }
 0xfa1   :  { %5136 = vmax.xlane.f32.xlu1 %v5135_v6 }
 0xfa4   :  { %5154 = vmax.xlane.f32.xlu0 %v5153_v16 }
 0xfa9   :  { %5316 = vadd.xlane.f32.xlu1 %v5315_v59  ;;  %v10699_v59 = vpop.f32.mrf.mxu0 }
 0xfb1   :  { %5148 = vmax.xlane.f32.xlu1 %v5147_v61 }
 0xfb3   :  { %v5134_v63 = vpop.xlane.xlu2 %5133 }
 0xfb4   :  { %v5212_v2 = vsub.f32 %v10541_v48, %v5134_v63  ;;  %v4714_v48 = vmul.f32 %v11336_v33, %v10440_v46  ;;  %v4715_v46 = vmul.f32 %v11336_v33, %v10448_v1  ;;  %v4724_v1 = vmul.f32 %v11337_v50, %v10524_v5 }
 0xfb6   :  { %v5252_v31 = vmul.f32 1.442695, %v5212_v2  ;;  %v4746_v58 = vadd.f32 %v4722_v22, %v4714_v48  ;;  %v4747_v16 = vadd.f32 %v4723_v60, %v4715_v46 }
 0xfb8   :  { %7406 = vpow2.f32 %v5252_v31  ;;  %v4754_v38 = vadd.f32 %v4746_v58, %v4730_v40  ;;  %v4755_v63 = vadd.f32 %v4747_v16, %v4731_v19 }
 0xfb9   :  { %v10697_v6 = vpop.xlane.xlu0 %5304 }
 0xfbe   :  { %v10668_v44 = vpop.eup %7406 }
 0xfbf   :  { %v5324_v35 = vsel %vm935_vm6, %v10668_v44, 0.0 }
 0xfc0   :  { %5325 = vadd.xlane.f32.xlu1 %v5324_v35 }
 0xfc8   :  { %5157 = vmax.xlane.f32.xlu1 %v5156_v54  ;;  %v4732_v54 = vmul.f32 %v11338_v55, %v10578_v32 }
 0xfc9   :  { %v10689_v34 = vpop.xlane.xlu1 %5301 }
 0xfcc   :  { %v6890_v40 = vpop.permute.xlu0 %6889 }
 0xfcd   :  { %v6891_v32 = vunpack.i.l.bf16 %v6890_v40  ;;  %v6892_v19 = vunpack.i.h.bf16 %v6890_v40  ;;  %v4718_v40 = vmul.f32 %v11336_v33, %v10480_v37  ;;  %v4727_v37 = vmul.f32 %v11337_v50, %v10534_v49 }
 0xfd1   :  { %v10678_v13 = vpop.xlane.xlu2 %5310 }
 0xfd5   :  { %v4692_v8 = vpop.f32.mrf.mxu3 }
 0xfd6   :  { %v4738_v29 = vmul.f32 %v11339_v17, %v4692_v8 }
 0xfd8   :  { %v4762_v41 = vadd.f32 %v4754_v38, %v4738_v29 }
 0xfd9   :  { %v5140_v57 = vpop.xlane.xlu2 %5139 }
 0xfda   :  { %v5214_v43 = vsub.f32 %v10563_v26, %v5140_v57  ;;  %6688 = vmatmul.msk.f32.gmra.mxu2 %vm134_vm0, %v4762_v41  ;;  %v4716_v26 = vmul.f32 %v11336_v33, %v10456_v47  ;;  %v10714_v41 = vpop.f32.mrf.mxu0  ;;  %v4725_v57 = vmul.f32 %v11337_v50, %v10530_v36 }
 0xfdc   :  { %v5256_v23 = vmul.f32 1.442695, %v5214_v43  ;;  %v4748_v8 = vadd.f32 %v4724_v1, %v4716_v26 }
 0xfdd   :  { %v4695_v61 = vpop.f32.mrf.mxu3 }
 0xfde   :  { %7408 = vpow2.f32 %v5256_v23  ;;  %v4739_v2 = vmul.f32 %v11339_v17, %v4695_v61  ;;  %v4756_v47 = vadd.f32 %v4748_v8, %v4732_v54  ;;  %v4717_v23 = vmul.f32 %v11336_v33, %v10471_v12 }
 0xfdf   :  { %v4733_v61 = vmul.f32 %v11338_v55, %v10589_v53  ;;  %v4726_v53 = vmul.f32 %v11337_v50, %v10532_v14  ;;  %v4734_v8 = vmul.f32 %v11338_v55, %v10598_v24  ;;  %v5165_v14 = vsel %vm935_vm6, %v10714_v41, -inf }
 0xfe0   :  { %v4763_v31 = vadd.f32 %v4755_v63, %v4739_v2  ;;  %v4749_v1 = vadd.f32 %v4725_v57, %v4717_v23  ;;  %v4719_v24 = vmul.f32 %v11336_v33, %v10492_v15  ;;  %v4728_v15 = vmul.f32 %v11337_v50, %v10539_v9 }
 0xfe1   :  { %v5143_v28 = vpop.xlane.xlu2 %5142  ;;  %v6885_v35 = vpop.permute.xlu1 %6884 }
 0xfe2   :  { %v5215_v22 = vsub.f32 %v10582_v21, %v5143_v28  ;;  %v6886_v48 = vunpack.i.l.bf16 %v6885_v35  ;;  %6689 = vmatmul.msk.f32.gmra.mxu2 %vm134_vm0, %v4763_v31  ;;  %v6887_v5 = vunpack.i.h.bf16 %v6885_v35  ;;  %v5162_v35 = vsel %vm935_vm6, %v10699_v59, -inf  ;;  %v10735_v54 = vpop.f32.mrf.mxu0 }
 0xfe3   :  { %v4757_v12 = vadd.f32 %v4749_v1, %v4733_v61  ;;  %v4720_v1 = vmul.f32 %v11336_v33, %v10504_v42 }
 0xfe4   :  { %v10710_v58 = vpop.eup %7408  ;;  %v5258_v38 = vmul.f32 1.442695, %v5215_v22  ;;  %5686 = vmatpush.msra.mxu2 %v6886_v48 }
 0xfe5   :  { %v4698_v29 = vpop.f32.mrf.mxu3  ;;  %v5330_v60 = vsel %vm935_vm6, %v10710_v58, 0.0 }
 0xfe6   :  { %7410 = vpow2.f32 %v5258_v38  ;;  %v4740_v21 = vmul.f32 %v11339_v17, %v4698_v29  ;;  %5331 = vadd.xlane.f32.xlu0 %v5330_v60  ;;  %5687 = vmatpush.msra.mxu2 %v6887_v5  ;;  %v4750_v5 = vadd.f32 %v4726_v53, %v4718_v40 }
 0xfe8   :  { %v4764_v46 = vadd.f32 %v4756_v47, %v4740_v21  ;;  %5688 = vmatpush.msra.mxu2 %v6891_v32  ;;  %v4758_v47 = vadd.f32 %v4750_v5, %v4734_v8 }
 0xfe9   :  { %v10719_v43 = vpop.xlane.xlu2 %5319  ;;  %v6895_v16 = vpop.permute.xlu1 %6894 }
 0xfea   :  { %v6896_v63 = vunpack.i.l.bf16 %v6895_v16  ;;  %6690 = vmatmul.msk.f32.gmra.mxu2 %vm134_vm0, %v4764_v46  ;;  %v6897_v36 = vunpack.i.h.bf16 %v6895_v16  ;;  %v10752_v57 = vpop.f32.mrf.mxu0 }
 0xfeb   :  { %5689 = vmatpush.msra.mxu2 %v6892_v19  ;;  %v4751_v19 = vadd.f32 %v4727_v37, %v4719_v24 }
 0xfec   :  { %v10726_v2 = vpop.eup %7410 }
 0xfed   :  { %5690 = vmatpush.msra.mxu2 %v6896_v63  ;;  %v4701_v31 = vpop.f32.mrf.mxu3  ;;  %v5333_v28 = vsel %vm935_vm6, %v10726_v2, 0.0 }
 0xfee   :  { %v4741_v26 = vmul.f32 %v11339_v17, %v4701_v31  ;;  %5334 = vadd.xlane.f32.xlu1 %v5333_v28  ;;  %5163 = vmax.xlane.f32.xlu0 %v5162_v35  ;;  %v4752_v31 = vadd.f32 %v4728_v15, %v4720_v1 }
 0xfef   :  { %5691 = vmatpush.msra.mxu2 %v6897_v36  ;;  %v4736_v36 = vmul.f32 %v11338_v55, %v10625_v3 }
 0xff0   :  { %v4765_v22 = vadd.f32 %v4757_v12, %v4741_v26 }
 0xff1   :  { %v5152_v48 = vpop.xlane.xlu2 %5151  ;;  %v4760_v53 = vadd.f32 %v4752_v31, %v4736_v36 }
 0xff2   :  { %v5218_v38 = vsub.f32 %v10623_v39, %v5152_v48  ;;  %6691 = vmatmul.msk.f32.gmra.mxu2 %vm134_vm0, %v4765_v22  ;;  %v4735_v39 = vmul.f32 %v11338_v55, %v10615_v45  ;;  %v10769_v28 = vpop.f32.mrf.mxu0 }
 0xff3   :  { %v5174_v9 = vsel %vm935_vm6, %v10769_v28, -inf }
 0xff4   :  { %v5264_v29 = vmul.f32 1.442695, %v5218_v38  ;;  %v4759_v23 = vadd.f32 %v4751_v19, %v4735_v39 }
 0xff5   :  { %v4704_v60 = vpop.f32.mrf.mxu3 }
 0xff6   :  { %7412 = vpow2.f32 %v5264_v29  ;;  %v4742_v32 = vmul.f32 %v11339_v17, %v4704_v60  ;;  %5166 = vmax.xlane.f32.xlu1 %v5165_v14 }
 0xff7   :  { %7414 = vrcp.f32 %v10689_v34  ;;  %v5308_v12 = vpop.xlane.xlu0 %5307 }
 0xff8   :  { %v4766_v21 = vadd.f32 %v4758_v47, %v4742_v32  ;;  %7416 = vrcp.f32 %v10697_v6 }
 0xff9   :  { %7418 = vrcp.f32 %v5308_v12 }
 0xffa   :  { %6692 = vmatmul.msk.f32.gmra.mxu2 %vm134_vm0, %v4766_v21  ;;  %7420 = vrcp.f32 %v10678_v13 }
 0xffc   :  { %v10756_v46 = vpop.eup %7412 }
 0xffd   :  { %v4707_v16 = vpop.f32.mrf.mxu3  ;;  %v5342_v49 = vsel %vm935_vm6, %v10756_v46, 0.0  ;;  %v7415_v63 = vpop.eup %7414 }
 0xffe   :  { %v4743_v61 = vmul.f32 %v11339_v17, %v4707_v16  ;;  %5343 = vadd.xlane.f32.xlu1 %v5342_v49  ;;  %v5428_v35 = vmul.f32 %v7415_v63, %v10689_v34  ;;  %v7417_v48 = vpop.eup %7416 }
 0xfff   :  { %v5429_v40 = vmul.f32 %v7417_v48, %v10697_v6  ;;  %v5314_v38 = vpop.xlane.xlu0 %5313  ;;  %v7419_v29 = vpop.eup %7418 }
0x1000   :  { %v4767_v45 = vadd.f32 %v4759_v23, %v4743_v61  ;;  %v5460_v22 = vsub.f32 2.0, %v5428_v35  ;;  %v5430_v14 = vmul.f32 %v7419_v29, %v5308_v12  ;;  %v7421_v39 = vpop.eup %7420  ;;  %v5159_v12 = vsel %vm935_vm6, %v10684_v62, -inf }
0x1001   :  { %v5461_v34 = vsub.f32 2.0, %v5429_v40 }
0x1002   :  { %6693 = vmatmul.msk.f32.gmra.mxu2 %vm134_vm0, %v4767_v45  ;;  %v5492_v8 = vmul.f32 %v7415_v63, %v5460_v22  ;;  %v5462_v24 = vsub.f32 2.0, %v5430_v14  ;;  %v5168_v14 = vsel %vm935_vm6, %v10735_v54, -inf }
0x1003   :  { %v5493_v60 = vmul.f32 %v7417_v48, %v5461_v34 }
0x1004   :  { %v5524_v5 = vmul.f32 %v10561_v25, %v5492_v8  ;;  %v5431_v25 = vmul.f32 %v7421_v39, %v10678_v13  ;;  %v5494_v19 = vmul.f32 %v7419_v29, %v5462_v24 }
0x1005   :  { %v4710_v26 = vpop.f32.mrf.mxu3  ;;  %v5525_v21 = vmul.f32 %v10547_v27, %v5493_v60 }
0x1006   :  { %v4744_v42 = vmul.f32 %v11339_v17, %v4710_v26  ;;  %5175 = vmax.xlane.f32.xlu1 %v5174_v9  ;;  %v5463_v61 = vsub.f32 2.0, %v5431_v25 }
0x1007   :  { %v5146_v6 = vpop.xlane.xlu0 %5145 }
0x1008   :  { %v4768_v3 = vadd.f32 %v4760_v53, %v4744_v42  ;;  %v5216_v23 = vsub.f32 %v10593_v18, %v5146_v6  ;;  %v5495_v13 = vmul.f32 %v7421_v39, %v5463_v61 }
0x100a   :  { %6694 = vmatmul.msk.f32.gmra.mxu2 %vm134_vm0, %v4768_v3  ;;  %v5260_v63 = vmul.f32 1.442695, %v5216_v23  ;;  %v5527_v35 = vmul.f32 %v10576_v0, %v5495_v13  ;;  %v10821_v23 = vpop.f32.mrf.mxu0 }
0x100f   :  { %v5323_v45 = vpop.xlane.xlu0 %5322 }
0x1012   :  { %6735 = vmatmul.msk.f32.vlgmr.msra.gmra.mxu2 %vm935_vm6, %v5524_v5 }
0x1014   :  { %v5137_v47 = vpop.xlane.xlu1 %5136 }
0x1015   :  { %v5213_v32 = vsub.f32 %v10553_v11, %v5137_v47  ;;  %v5526_v11 = vmul.f32 %v10629_v30, %v5494_v19  ;;  %v5171_v47 = vsel %vm935_vm6, %v10752_v57, -inf }
0x1017   :  { %v5254_v37 = vmul.f32 1.442695, %v5213_v32  ;;  %v5155_v53 = vpop.xlane.xlu0 %5154 }
0x1018   :  { %v5219_v0 = vsub.f32 %v10657_v20, %v5155_v53 }
0x1019   :  { %7422 = vpow2.f32 %v5254_v37 }
0x101a   :  { %6736 = vmatmul.msk.f32.gmra.mxu2 %vm935_vm6, %v5525_v21  ;;  %7424 = vrcp.f32 %v5314_v38  ;;  %v5266_v34 = vmul.f32 1.442695, %v5219_v0 }
0x101c   :  { %v5317_v16 = vpop.xlane.xlu1 %5316 }
0x101d   :  { %7426 = vrcp.f32 %v5317_v16 }
0x101e   :  { %7428 = vpow2.f32 %v5260_v63  ;;  %v10832_v63 = vpop.f32.mrf.mxu0 }
0x101f   :  { %v10784_v49 = vpop.eup %7422 }
0x1020   :  { %v5327_v27 = vsel %vm935_vm6, %v10784_v49, 0.0  ;;  %v7425_v15 = vpop.eup %7424 }
0x1021   :  { %5328 = vadd.xlane.f32.xlu2 %v5327_v27  ;;  %v5432_v1 = vmul.f32 %v7425_v15, %v5314_v38 }
0x1022   :  { %6737 = vmatmul.msk.f32.gmra.mxu2 %vm935_vm6, %v5526_v11 }
0x1023   :  { %v5464_v30 = vsub.f32 2.0, %v5432_v1  ;;  %v7427_v26 = vpop.eup %7426  ;;  %v5180_v1 = vsel %vm935_vm6, %v10832_v63, -inf }
0x1024   :  { %v5149_v36 = vpop.xlane.xlu1 %5148  ;;  %v5433_v42 = vmul.f32 %v7427_v26, %v5317_v16  ;;  %v10797_v22 = vpop.eup %7428 }
0x1025   :  { %v5217_v31 = vsub.f32 %v10609_v52, %v5149_v36  ;;  %v5496_v9 = vmul.f32 %v7425_v15, %v5464_v30  ;;  %v5336_v40 = vsel %vm935_vm6, %v10797_v22, 0.0 }
0x1026   :  { %v5465_v48 = vsub.f32 2.0, %v5433_v42 }
0x1027   :  { %v5262_v18 = vmul.f32 1.442695, %v5217_v31  ;;  %v5528_v3 = vmul.f32 %v10642_v10, %v5496_v9 }
0x1028   :  { %v5497_v20 = vmul.f32 %v7427_v26, %v5465_v48 }
0x1029   :  { %7430 = vpow2.f32 %v5262_v18  ;;  %5160 = vmax.xlane.f32.xlu2 %v5159_v12  ;;  %v10840_v18 = vpop.f32.mrf.mxu0 }
0x102a   :  { %6738 = vmatmul.msk.f32.gmra.mxu2 %vm935_vm6, %v5527_v35  ;;  %7432 = vrcp.f32 %v10719_v43  ;;  %v5529_v60 = vmul.f32 %v10661_v4, %v5497_v20 }
0x102b   :  { %7434 = vrcp.f32 %v5323_v45 }
0x102c   :  { %7436 = vpow2.f32 %v5266_v34 }
0x102f   :  { %v10799_v52 = vpop.eup %7430 }
0x1030   :  { %v5339_v8 = vsel %vm935_vm6, %v10799_v52, 0.0  ;;  %v7433_v38 = vpop.eup %7432 }
0x1031   :  { %5337 = vadd.xlane.f32.xlu2 %v5336_v40  ;;  %5340 = vadd.xlane.f32.xlu0 %v5339_v8  ;;  %v5434_v29 = vmul.f32 %v7433_v38, %v10719_v43  ;;  %v7435_v32 = vpop.eup %7434  ;;  %v10845_v9 = vpop.f32.mrf.mxu0 }
0x1032   :  { %6739 = vmatmul.msk.f32.gmra.mxu2 %vm935_vm6, %v5528_v3  ;;  %v5435_v43 = vmul.f32 %v7435_v32, %v5323_v45  ;;  %v10816_v6 = vpop.eup %7436  ;;  %v5177_v45 = vsel %vm935_vm6, %v10821_v23, -inf }
0x1033   :  { %v5326_v5 = vpop.xlane.xlu1 %5325  ;;  %v5466_v10 = vsub.f32 2.0, %v5434_v29  ;;  %v5345_v19 = vsel %vm935_vm6, %v10816_v6, 0.0  ;;  %v5186_v29 = vsel %vm935_vm6, %v10845_v9, -inf }
0x1034   :  { %7438 = vrcp.f32 %v5326_v5  ;;  %v5467_v25 = vsub.f32 2.0, %v5435_v43  ;;  %v5941_v43 = vld [vmem:[#allocation6 + $0xe8] sm:$0xff] }
0x1035   :  { %v5498_v21 = vmul.f32 %v7433_v38, %v5466_v10 }
0x1036   :  { %v5499_v61 = vmul.f32 %v7435_v32, %v5467_v25  ;;  %v10871_v25 = vld [vmem:[#allocation7 + $0x8] ss:$0 sm:$0xff] }
0x1037   :  { %v5530_v39 = vmul.f32 %v10607_v56, %v5498_v21 }
0x1038   :  { %v5531_v56 = vmul.f32 %v10651_v51, %v5499_v61  ;;  %v4811_v51 = vpop.f32.mrf.mxu2 }
0x1039   :  { %5169 = vmax.xlane.f32.xlu2 %v5168_v14  ;;  %5172 = vmax.xlane.f32.xlu0 %v5171_v47  ;;  %v10852_v38 = vpop.f32.mrf.mxu0 }
0x103a   :  { %6740 = vmatmul.msk.f32.gmra.mxu2 %vm935_vm6, %v5529_v60  ;;  %v7439_v16 = vpop.eup %7438  ;;  %v5189_v32 = vsel %vm935_vm6, %v10852_v38, -inf }
0x103b   :  { %v5158_v37 = vpop.xlane.xlu1 %5157  ;;  %v5436_v11 = vmul.f32 %v7439_v16, %v5326_v5 }
0x103c   :  { %v5220_v24 = vsub.f32 %v10672_v7, %v5158_v37  ;;  %v5942_v37 = vld [vmem:[#allocation6 + $0x138] sm:$0xff] }
0x103d   :  { %v5468_v15 = vsub.f32 2.0, %v5436_v11  ;;  %5958 = vmatpush.msra.mxu3 %v5942_v37  ;;  %v7612_v37 = vld [vmem:[#allocation2 + $0x38] sm:$0xff] }
0x103e   :  { %v5268_v4 = vmul.f32 1.442695, %v5220_v24  ;;  %v5940_v24 = vld [vmem:[#allocation6 + $0x98] sm:$0xff] }
0x103f   :  { %v5500_v13 = vmul.f32 %v7439_v16, %v5468_v15  ;;  %5959 = vmatpush.msra.mxu3 %v5941_v43 }
0x1040   :  { %7440 = vpow2.f32 %v5268_v4  ;;  %v5939_v4 = vld [vmem:[#allocation6 + $0x48] sm:$0xff] }
0x1041   :  { %5346 = vadd.xlane.f32.xlu2 %v5345_v19  ;;  %v5532_v36 = vmul.f32 %v10668_v44, %v5500_v13  ;;  %v10862_v20 = vpop.f32.mrf.mxu0  ;;  %5960 = vmatpush.msra.mxu3 %v5940_v24 }
0x1042   :  { %6741 = vmatmul.msk.f32.gmra.mxu2 %vm935_vm6, %v5530_v39 }
0x1043   :  { %5961 = vmatpush.msra.mxu3 %v5939_v4 }
0x1046   :  { %v10824_v27 = vpop.eup %7440 }
0x1047   :  { %v5348_v7 = vsel %vm935_vm6, %v10824_v27, 0.0 }
0x1048   :  { %5349 = vadd.xlane.f32.xlu0 %v5348_v7 }
0x1049   :  { %5178 = vmax.xlane.f32.xlu2 %v5177_v45  ;;  %v10867_v21 = vpop.f32.mrf.mxu0 }
0x104a   :  { %6742 = vmatmul.msk.f32.gmra.mxu2 %vm935_vm6, %v5531_v56  ;;  %v4812_v56 = vadd.f32 %v10871_v25, %v4811_v51 }
0x1050   :  { %5181 = vmax.xlane.f32.xlu0 %v5180_v1  ;;  %v7605_v1 = vld [vmem:[#allocation2 + $0x28] sm:$0xff] }
0x1051   :  { %v10880_v15 = vpop.f32.mrf.mxu0 }
0x1052   :  { %6743 = vmatmul.msk.f32.gmra.mxu2 %vm935_vm6, %v5532_v36 }
0x1059   :  { %v10838_v31 = vpop.xlane.xlu0 %5331 }
0x105d   :  { %v4814_v35 = vpop.f32.mrf.mxu2 }
0x105e   :  { %v4815_v61 = vadd.f32 %v10871_v25, %v4814_v35 }
0x1061   :  { %v5164_v30 = vpop.xlane.xlu0 %5163  ;;  %v10842_v12 = vpop.xlane.xlu1 %5334 }
0x1062   :  { %v5222_v26 = vsub.f32 %v10699_v59, %v5164_v30  ;;  %v7606_v30 = vld [vmem:[#allocation2 + $0x8] sm:$0xff] }
0x1064   :  { %v5272_v53 = vmul.f32 1.442695, %v5222_v26  ;;  %v10886_v26 = vadd.f32 %v7606_v30, %v4815_v61 }
0x1065   :  { %v4817_v42 = vpop.f32.mrf.mxu2 }
0x1066   :  { %7442 = vpow2.f32 %v5272_v53  ;;  %v4818_v45 = vadd.f32 %v10871_v25, %v4817_v42  ;;  %v7607_v53 = vld [vmem:[#allocation2 + $0x20] sm:$0xff]  ;;  %v5198_v42 = vsel %vm935_vm6, %v10880_v15, -inf }
0x1069   :  { %v5167_v44 = vpop.xlane.xlu1 %5166 }
0x106a   :  { %v5223_v0 = vsub.f32 %v10714_v41, %v5167_v44  ;;  %v7608_v44 = vld [vmem:[#allocation2 + $0x30] sm:$0xff] }
0x106c   :  { %v10848_v3 = vpop.eup %7442  ;;  %v5274_v48 = vmul.f32 1.442695, %v5223_v0 }
0x106d   :  { %v4820_v40 = vpop.f32.mrf.mxu2  ;;  %v5354_v8 = vsel %vm935_vm6, %v10848_v3, 0.0 }
0x106e   :  { %7444 = vpow2.f32 %v5274_v48  ;;  %5355 = vadd.xlane.f32.xlu2 %v5354_v8  ;;  %v4821_v13 = vadd.f32 %v10871_v25, %v4820_v40  ;;  %v7609_v48 = vld [vmem:[#allocation2] sm:$0xff]  ;;  %v7610_v40 = vld [vmem:[#allocation2 + $0x10] sm:$0xff] }
0x106f   :  { %v10892_v51 = vadd.f32 %v7609_v48, %v4812_v56 }
0x1071   :  { %v10854_v59 = vpop.xlane.xlu1 %5343  ;;  %v5918_v4 = vsel %vm134_vm0, %v10892_v51, -inf }
0x1074   :  { %v10856_v34 = vpop.eup %7444 }
0x1075   :  { %v4823_v5 = vpop.f32.mrf.mxu2  ;;  %v5357_v41 = vsel %vm935_vm6, %v10856_v34, 0.0 }
0x1076   :  { %5187 = vmax.xlane.f32.xlu2 %v5186_v29  ;;  %5358 = vadd.xlane.f32.xlu0 %v5357_v41  ;;  %v4824_v11 = vadd.f32 %v10871_v25, %v4823_v5  ;;  %v10896_v5 = vadd.f32 %v7610_v40, %v4818_v45  ;;  %v7611_v29 = vld [vmem:[#allocation2 + $0x18] sm:$0xff] }
0x1077   :  { %v10898_v41 = vadd.f32 %v7611_v29, %v4821_v13 }
0x1078   :  { %v10888_v35 = vadd.f32 %v7607_v53, %v4824_v11 }
0x1079   :  { %v5176_v10 = vpop.xlane.xlu1 %5175 }
0x107a   :  { %v5226_v60 = vsub.f32 %v10769_v28, %v5176_v10 }
0x107c   :  { %v5280_v14 = vmul.f32 1.442695, %v5226_v60 }
0x107d   :  { %v4826_v47 = vpop.f32.mrf.mxu2 }
0x107e   :  { %7446 = vpow2.f32 %v5280_v14  ;;  %5190 = vmax.xlane.f32.xlu0 %v5189_v32  ;;  %v4827_v16 = vadd.f32 %v10871_v25, %v4826_v47  ;;  %v5919_v14 = vsel %vm134_vm0, %v10886_v26, -inf  ;;  %v5922_v47 = vsel %vm134_vm0, %v10888_v35, -inf }
0x107f   :  { %v5923_v61 = vmax.f32 %v5918_v4, %v5922_v47  ;;  %7448 = vrcp.f32 %v10838_v31 }
0x1080   :  { %v10884_v36 = vadd.f32 %v7605_v1, %v4827_v16 }
0x1082   :  { %v5924_v10 = vsel %vm134_vm0, %v10884_v36, -inf }
0x1083   :  { %v5925_v24 = vmax.f32 %v5919_v14, %v5924_v10 }
0x1084   :  { %v10869_v39 = vpop.eup %7446 }
0x1085   :  { %v4829_v28 = vpop.f32.mrf.mxu2  ;;  %v5366_v19 = vsel %vm935_vm6, %v10869_v39, 0.0  ;;  %v5930_v45 = vmax.f32 %v5923_v61, %v5925_v24  ;;  %v7449_v53 = vpop.eup %7448 }
0x1086   :  { %5367 = vadd.xlane.f32.xlu0 %v5366_v19  ;;  %v4830_v7 = vadd.f32 %v10871_v25, %v4829_v28  ;;  %v5920_v28 = vsel %vm134_vm0, %v10896_v5, -inf  ;;  %v5921_v19 = vsel %vm134_vm0, %v10898_v41, -inf  ;;  %v5438_v10 = vmul.f32 %v7449_v53, %v10838_v31 }
0x1088   :  { %v10890_v0 = vadd.f32 %v7608_v44, %v4830_v7  ;;  %v5470_v24 = vsub.f32 2.0, %v5438_v10 }
0x108a   :  { %v5926_v32 = vsel %vm134_vm0, %v10890_v0, -inf }
0x108b   :  { %v5927_v11 = vmax.f32 %v5920_v28, %v5926_v32 }
0x108d   :  { %v4832_v8 = vpop.f32.mrf.mxu2 }
0x108e   :  { %v4833_v60 = vadd.f32 %v10871_v25, %v4832_v8  ;;  %5199 = vmax.xlane.f32.xlu0 %v5198_v42 }
0x1090   :  { %v10909_v43 = vadd.f32 %v7612_v37, %v4833_v60 }
0x1092   :  { %v5928_v16 = vsel %vm134_vm0, %v10909_v43, -inf }
0x1093   :  { %v5929_v7 = vmax.f32 %v5921_v19, %v5928_v16 }
0x1094   :  { %v5329_v56 = vpop.xlane.xlu2 %5328 }
0x1095   :  { %v5931_v13 = vmax.f32 %v5927_v11, %v5929_v7  ;;  %7450 = vrcp.f32 %v5329_v56 }
0x1096   :  { %7452 = vrcp.f32 %v10842_v12 }
0x1097   :  { %v5932_v1 = vmax.f32 %v5930_v45, %v5931_v13 }
0x1099   :  { %v5933_v30 = vrot.slane %v5932_v1, 4 }
0x109b   :  { %v7451_v44 = vpop.eup %7450  ;;  %v5934_v48 = vmax.f32 %v5932_v1, %v5933_v30 }
0x109c   :  { %v5437_v8 = vmul.f32 %v7451_v44, %v5329_v56  ;;  %v5161_v42 = vpop.xlane.xlu2 %5160  ;;  %v7453_v28 = vpop.eup %7452 }
0x109d   :  { %v5935_v40 = vrot.slane %v5934_v48, 2  ;;  %v5221_v29 = vsub.f32 %v10684_v62, %v5161_v42  ;;  %v5502_v62 = vmul.f32 %v7449_v53, %v5470_v24  ;;  %v5439_v31 = vmul.f32 %v7453_v28, %v10842_v12 }
0x109e   :  { %v5469_v60 = vsub.f32 2.0, %v5437_v8  ;;  %v5183_v42 = vsel %vm935_vm6, %v10840_v18, -inf }
0x109f   :  { %v5270_v14 = vmul.f32 1.442695, %v5221_v29  ;;  %v5936_v47 = vmax.f32 %v5934_v48, %v5935_v40  ;;  %v5471_v56 = vsub.f32 2.0, %v5439_v31  ;;  %v5192_v31 = vsel %vm935_vm6, %v10862_v20, -inf }
0x10a0   :  { %v5501_v32 = vmul.f32 %v7451_v44, %v5469_v60 }
0x10a1   :  { %7454 = vpow2.f32 %v5270_v14  ;;  %v5937_v37 = vrot.slane %v5936_v47, 1  ;;  %v5503_v12 = vmul.f32 %v7453_v28, %v5471_v56 }
0x10a2   :  { %v5533_v4 = vmul.f32 %v10784_v49, %v5501_v32  ;;  %v5534_v49 = vmul.f32 %v10710_v58, %v5502_v62 }
0x10a3   :  { %v5938_v19 = vmax.f32 %v5936_v47, %v5937_v37  ;;  %v5535_v58 = vmul.f32 %v10726_v2, %v5503_v12 }
0x10a4   :  { %v5338_v16 = vpop.xlane.xlu2 %5337  ;;  %v5341_v61 = vpop.xlane.xlu0 %5340  ;;  %6744 = vmatmul.msk.f32.gmra.mxu2 %vm935_vm6, %v5533_v4 }
0x10a5   :  { %7456 = vrcp.f32 %v5338_v16  ;;  %6775 = vmatmul.msk.f32.vlgmr.msra.gmra.mxu3 %vm134_vm0, %v5938_v19 }
0x10a6   :  { %7458 = vrcp.f32 %v5341_v61 }
0x10a7   :  { %v10927_v11 = vpop.eup %7454 }
0x10a8   :  { %v5351_v7 = vsel %vm935_vm6, %v10927_v11, 0.0 }
0x10a9   :  { %5352 = vadd.xlane.f32.xlu1 %v5351_v7 }
0x10ab   :  { %v7457_v45 = vpop.eup %7456 }
0x10ac   :  { %v5170_v13 = vpop.xlane.xlu2 %5169  ;;  %v5173_v1 = vpop.xlane.xlu0 %5172  ;;  %6745 = vmatmul.msk.f32.gmra.mxu2 %vm935_vm6, %v5534_v49  ;;  %v5440_v44 = vmul.f32 %v7457_v45, %v5338_v16 }
0x10ad   :  { %v5224_v30 = vsub.f32 %v10735_v54, %v5170_v13  ;;  %v5225_v53 = vsub.f32 %v10752_v57, %v5173_v1  ;;  %v7459_v29 = vpop.eup %7458 }
0x10ae   :  { %v5472_v40 = vsub.f32 2.0, %v5440_v44  ;;  %v5441_v57 = vmul.f32 %v7459_v29, %v5341_v61 }
0x10af   :  { %v5276_v48 = vmul.f32 1.442695, %v5224_v30  ;;  %v5278_v8 = vmul.f32 1.442695, %v5225_v53 }
0x10b0   :  { %v5504_v54 = vmul.f32 %v7457_v45, %v5472_v40  ;;  %v5473_v37 = vsub.f32 2.0, %v5441_v57 }
0x10b1   :  { %7460 = vpow2.f32 %v5276_v48  ;;  %5184 = vmax.xlane.f32.xlu1 %v5183_v42 }
0x10b2   :  { %7462 = vpow2.f32 %v5278_v8  ;;  %v5536_v32 = vmul.f32 %v10797_v22, %v5504_v54  ;;  %v5505_v61 = vmul.f32 %v7459_v29, %v5473_v37  ;;  %v5195_v22 = vsel %vm935_vm6, %v10867_v21, -inf }
0x10b3   :  { %7464 = vrcp.f32 %v10854_v59 }
0x10b4   :  { %v5347_v10 = vpop.xlane.xlu2 %5346  ;;  %6746 = vmatmul.msk.f32.gmra.mxu2 %vm935_vm6, %v5535_v58  ;;  %v5537_v49 = vmul.f32 %v10799_v52, %v5505_v61 }
0x10b5   :  { %7466 = vrcp.f32 %v5347_v10 }
0x10b7   :  { %v10940_v60 = vpop.eup %7460 }
0x10b8   :  { %v10942_v14 = vpop.eup %7462  ;;  %v5360_v47 = vsel %vm935_vm6, %v10940_v60, 0.0 }
0x10b9   :  { %5361 = vadd.xlane.f32.xlu1 %v5360_v47  ;;  %v5363_v2 = vsel %vm935_vm6, %v10942_v14, 0.0  ;;  %v7465_v24 = vpop.eup %7464 }
0x10ba   :  { %5364 = vadd.xlane.f32.xlu2 %v5363_v2  ;;  %v5442_v16 = vmul.f32 %v7465_v24, %v10854_v59 }
0x10bb   :  { %v5350_v4 = vpop.xlane.xlu0 %5349  ;;  %v7467_v56 = vpop.eup %7466 }
0x10bc   :  { %v5179_v28 = vpop.xlane.xlu2 %5178  ;;  %6747 = vmatmul.msk.f32.gmra.mxu2 %vm935_vm6, %v5536_v32  ;;  %v5474_v7 = vsub.f32 2.0, %v5442_v16  ;;  %v5443_v13 = vmul.f32 %v7467_v56, %v5347_v10 }
0x10bd   :  { %v5227_v19 = vsub.f32 %v10821_v23, %v5179_v28 }
0x10be   :  { %v5506_v59 = vmul.f32 %v7465_v24, %v5474_v7  ;;  %v5475_v12 = vsub.f32 2.0, %v5443_v13 }
0x10bf   :  { %v5282_v62 = vmul.f32 1.442695, %v5227_v19 }
0x10c0   :  { %v5538_v52 = vmul.f32 %v10756_v46, %v5506_v59  ;;  %v5507_v8 = vmul.f32 %v7467_v56, %v5475_v12 }
0x10c1   :  { %7468 = vpow2.f32 %v5282_v62  ;;  %5193 = vmax.xlane.f32.xlu1 %v5192_v31  ;;  %v10990_v31 = vpop.f32.mrf.mxu2 }
0x10c2   :  { %5196 = vmax.xlane.f32.xlu2 %v5195_v22  ;;  %7470 = vrcp.f32 %v5350_v4  ;;  %v5539_v46 = vmul.f32 %v10816_v6, %v5507_v8 }
0x10c3   :  { %v5182_v45 = vpop.xlane.xlu0 %5181 }
0x10c4   :  { %v5228_v23 = vsub.f32 %v10832_v63, %v5182_v45  ;;  %6748 = vmatmul.msk.f32.gmra.mxu2 %vm935_vm6, %v5537_v49  ;;  %v10965_v63 = vpop.f32.mrf.mxu0 }
0x10c5   :  { %v5201_v40 = vsel %vm935_vm6, %v10965_v63, -inf }
0x10c6   :  { %v5284_v1 = vmul.f32 1.442695, %v5228_v23 }
0x10c7   :  { %v10959_v30 = vpop.eup %7468 }
0x10c8   :  { %7472 = vpow2.f32 %v5284_v1  ;;  %v5369_v53 = vsel %vm935_vm6, %v10959_v30, 0.0  ;;  %v7471_v44 = vpop.eup %7470 }
0x10c9   :  { %5370 = vadd.xlane.f32.xlu1 %v5369_v53  ;;  %v5444_v42 = vmul.f32 %v7471_v44, %v5350_v4  ;;  %v10996_v49 = vpop.f32.mrf.mxu2 }
0x10cb   :  { %v5476_v29 = vsub.f32 2.0, %v5444_v42 }
0x10cc   :  { %6749 = vmatmul.msk.f32.gmra.mxu2 %vm935_vm6, %v5538_v52 }
0x10cd   :  { %v5508_v10 = vmul.f32 %v7471_v44, %v5476_v29 }
0x10ce   :  { %v10967_v48 = vpop.eup %7472 }
0x10cf   :  { %v5372_v58 = vsel %vm935_vm6, %v10967_v48, 0.0  ;;  %v5540_v54 = vmul.f32 %v10824_v27, %v5508_v10 }
0x10d0   :  { %5373 = vadd.xlane.f32.xlu2 %v5372_v58 }
0x10d1   :  { %5202 = vmax.xlane.f32.xlu1 %v5201_v40  ;;  %v10998_v45 = vpop.f32.mrf.mxu2 }
0x10d4   :  { %6750 = vmatmul.msk.f32.gmra.mxu2 %vm935_vm6, %v5539_v46 }
0x10d9   :  { %v11001_v12 = vpop.f32.mrf.mxu2 }
0x10dc   :  { %6751 = vmatmul.msk.f32.gmra.mxu2 %vm935_vm6, %v5540_v54 }
0x10e1   :  { %v5356_v57 = vpop.xlane.xlu2 %5355 }
0x10e9   :  { %v5188_v47 = vpop.xlane.xlu2 %5187  ;;  %v5359_v2 = vpop.xlane.xlu0 %5358 }
0x10ea   :  { %v5230_v32 = vsub.f32 %v10845_v9, %v5188_v47 }
0x10ec   :  { %v5288_v37 = vmul.f32 1.442695, %v5230_v32 }
0x10ee   :  { %7474 = vpow2.f32 %v5288_v37 }
0x10f1   :  { %v5191_v24 = vpop.xlane.xlu0 %5190 }
0x10f2   :  { %v5231_v4 = vsub.f32 %v10852_v38, %v5191_v24 }
0x10f4   :  { %v10979_v28 = vpop.eup %7474  ;;  %v5290_v6 = vmul.f32 1.442695, %v5231_v4 }
0x10f5   :  { %v5378_v19 = vsel %vm935_vm6, %v10979_v28, 0.0 }
0x10f6   :  { %7476 = vpow2.f32 %v5290_v6  ;;  %5379 = vadd.xlane.f32.xlu2 %v5378_v19 }
0x10f9   :  { %v10983_v27 = vpop.xlane.xlu0 %5367 }
0x10fc   :  { %v10985_v16 = vpop.eup %7476 }
0x10fd   :  { %v5381_v9 = vsel %vm935_vm6, %v10985_v16, 0.0 }
0x10fe   :  { %5382 = vadd.xlane.f32.xlu1 %v5381_v9 }
0x1101   :  { %v5200_v61 = vpop.xlane.xlu0 %5199 }
0x1102   :  { %v5234_v62 = vsub.f32 %v10880_v15, %v5200_v61 }
0x1104   :  { %v5296_v38 = vmul.f32 1.442695, %v5234_v62 }
0x1106   :  { %7478 = vpow2.f32 %v5296_v38 }
0x1107   :  { %7480 = vrcp.f32 %v5356_v57 }
0x110c   :  { %v10992_v22 = vpop.eup %7478 }
0x110d   :  { %v5390_v7 = vsel %vm935_vm6, %v10992_v22, 0.0  ;;  %v7481_v23 = vpop.eup %7480 }
0x110e   :  { %5391 = vadd.xlane.f32.xlu1 %v5390_v7  ;;  %v5446_v53 = vmul.f32 %v7481_v23, %v5356_v57  ;;  %v11009_v57 = vpop.f32.mrf.mxu2 }
0x1110   :  { %v5478_v42 = vsub.f32 2.0, %v5446_v53 }
0x1112   :  { %v5510_v10 = vmul.f32 %v7481_v23, %v5478_v42 }
0x1114   :  { %v5542_v32 = vmul.f32 %v10848_v3, %v5510_v10 }
0x111c   :  { %v5353_v56 = vpop.xlane.xlu1 %5352 }
0x111d   :  { %7482 = vrcp.f32 %v5353_v56 }
0x111e   :  { %7484 = vrcp.f32 %v5359_v2 }
0x1123   :  { %v7483_v59 = vpop.eup %7482 }
0x1124   :  { %v5445_v15 = vmul.f32 %v7483_v59, %v5353_v56  ;;  %v5185_v13 = vpop.xlane.xlu1 %5184  ;;  %v7485_v40 = vpop.eup %7484 }
0x1125   :  { %v5229_v1 = vsub.f32 %v10840_v18, %v5185_v13  ;;  %v5447_v54 = vmul.f32 %v7485_v40, %v5359_v2  ;;  %v11016_v56 = vpop.f32.mrf.mxu2 }
0x1126   :  { %v5477_v52 = vsub.f32 2.0, %v5445_v15 }
0x1127   :  { %v5286_v44 = vmul.f32 1.442695, %v5229_v1  ;;  %v5479_v37 = vsub.f32 2.0, %v5447_v54 }
0x1128   :  { %v5509_v8 = vmul.f32 %v7483_v59, %v5477_v52 }
0x1129   :  { %7486 = vpow2.f32 %v5286_v44  ;;  %v5511_v2 = vmul.f32 %v7485_v40, %v5479_v37 }
0x112a   :  { %v5541_v58 = vmul.f32 %v10927_v11, %v5509_v8 }
0x112b   :  { %v5543_v38 = vmul.f32 %v10856_v34, %v5511_v2 }
0x112c   :  { %v5362_v46 = vpop.xlane.xlu1 %5361  ;;  %6752 = vmatmul.msk.f32.gmra.mxu2 %vm935_vm6, %v5541_v58 }
0x112d   :  { %v5365_v29 = vpop.xlane.xlu2 %5364  ;;  %7488 = vrcp.f32 %v5362_v46  ;;  %v11030_v8 = vpop.f32.mrf.mxu2 }
0x112e   :  { %7490 = vrcp.f32 %v5365_v29 }
0x112f   :  { %v11005_v47 = vpop.eup %7486 }
0x1130   :  { %v5375_v18 = vsel %vm935_vm6, %v11005_v47, 0.0 }
0x1131   :  { %5376 = vadd.xlane.f32.xlu0 %v5375_v18 }
0x1133   :  { %v7489_v11 = vpop.eup %7488 }
0x1134   :  { %v5194_v24 = vpop.xlane.xlu1 %5193  ;;  %6753 = vmatmul.msk.f32.gmra.mxu2 %vm935_vm6, %v5542_v32  ;;  %v5448_v19 = vmul.f32 %v7489_v11, %v5362_v46  ;;  %v7491_v3 = vpop.eup %7490 }
0x1135   :  { %v5197_v4 = vpop.xlane.xlu2 %5196  ;;  %v5232_v6 = vsub.f32 %v10862_v20, %v5194_v24  ;;  %v5449_v20 = vmul.f32 %v7491_v3, %v5365_v29 }
0x1136   :  { %v5233_v9 = vsub.f32 %v10867_v21, %v5197_v4  ;;  %v5480_v7 = vsub.f32 2.0, %v5448_v19 }
0x1137   :  { %v5292_v61 = vmul.f32 1.442695, %v5232_v6  ;;  %v5481_v1 = vsub.f32 2.0, %v5449_v20 }
0x1138   :  { %v5294_v62 = vmul.f32 1.442695, %v5233_v9  ;;  %v5512_v59 = vmul.f32 %v7489_v11, %v5480_v7  ;;  %v11038_v11 = vpop.f32.mrf.mxu2 }
0x1139   :  { %7492 = vpow2.f32 %v5292_v61  ;;  %v5513_v40 = vmul.f32 %v7491_v3, %v5481_v1 }
0x113a   :  { %7494 = vpow2.f32 %v5294_v62  ;;  %v5544_v53 = vmul.f32 %v10940_v60, %v5512_v59 }
0x113b   :  { %7496 = vrcp.f32 %v10983_v27  ;;  %v5545_v10 = vmul.f32 %v10942_v14, %v5513_v40 }
0x113c   :  { %v5371_v23 = vpop.xlane.xlu1 %5370  ;;  %6754 = vmatmul.msk.f32.gmra.mxu2 %vm935_vm6, %v5543_v38 }
0x113d   :  { %7498 = vrcp.f32 %v5371_v23 }
0x113f   :  { %v11020_v15 = vpop.eup %7492 }
0x1140   :  { %v11022_v21 = vpop.eup %7494  ;;  %v5384_v13 = vsel %vm935_vm6, %v11020_v15, 0.0  ;;  %v11044_v2 = vpop.f32.mrf.mxu2 }
0x1141   :  { %v5387_v34 = vsel %vm935_vm6, %v11022_v21, 0.0  ;;  %5385 = vadd.xlane.f32.xlu0 %v5384_v13  ;;  %v7497_v52 = vpop.eup %7496 }
0x1142   :  { %5388 = vadd.xlane.f32.xlu2 %v5387_v34  ;;  %v5450_v58 = vmul.f32 %v7497_v52, %v10983_v27 }
0x1143   :  { %v5374_v54 = vpop.xlane.xlu2 %5373  ;;  %v7499_v60 = vpop.eup %7498 }
0x1144   :  { %v5203_v44 = vpop.xlane.xlu1 %5202  ;;  %6755 = vmatmul.msk.f32.gmra.mxu2 %vm935_vm6, %v5544_v53  ;;  %v5482_v29 = vsub.f32 2.0, %v5450_v58  ;;  %v5451_v32 = vmul.f32 %v7499_v60, %v5371_v23 }
0x1145   :  { %v5235_v42 = vsub.f32 %v10965_v63, %v5203_v44 }
0x1146   :  { %v5514_v18 = vmul.f32 %v7497_v52, %v5482_v29  ;;  %v5483_v24 = vsub.f32 2.0, %v5451_v32 }
0x1147   :  { %v5298_v46 = vmul.f32 1.442695, %v5235_v42  ;;  %v5790_v42 = vmul.f32 %v11336_v33, %v10996_v49  ;;  %v5791_v49 = vmul.f32 %v11336_v33, %v10998_v45  ;;  %v5792_v45 = vmul.f32 %v11336_v33, %v11001_v12 }
0x1148   :  { %v5546_v27 = vmul.f32 %v10869_v39, %v5514_v18  ;;  %v5515_v14 = vmul.f32 %v7499_v60, %v5483_v24  ;;  %v5720_v62 = vpop.f32.mrf.mxu2  ;;  %v5793_v12 = vmul.f32 %v11336_v33, %v11009_v57  ;;  %v5794_v57 = vmul.f32 %v11336_v33, %v11016_v56 }
0x1149   :  { %7500 = vpow2.f32 %v5298_v46  ;;  %v5798_v52 = vmul.f32 %v11337_v50, %v5720_v62 }
0x114a   :  { %7502 = vrcp.f32 %v5374_v54  ;;  %v5547_v19 = vmul.f32 %v10959_v30, %v5515_v14 }
0x114b   :  { %v5822_v29 = vadd.f32 %v5798_v52, %v5790_v42 }
0x114c   :  { %6756 = vmatmul.msk.f32.gmra.mxu2 %vm935_vm6, %v5545_v10 }
0x114f   :  { %v11036_v37 = vpop.eup %7500 }
0x1150   :  { %v5393_v63 = vsel %vm935_vm6, %v11036_v37, 0.0  ;;  %v7503_v4 = vpop.eup %7502  ;;  %v5723_v39 = vpop.f32.mrf.mxu2 }
0x1151   :  { %5394 = vadd.xlane.f32.xlu0 %v5393_v63  ;;  %v5452_v6 = vmul.f32 %v7503_v4, %v5374_v54 }
0x1153   :  { %v5484_v9 = vsub.f32 2.0, %v5452_v6 }
0x1154   :  { %6757 = vmatmul.msk.f32.gmra.mxu2 %vm935_vm6, %v5546_v27  ;;  %v5799_v27 = vmul.f32 %v11337_v50, %v5723_v39 }
0x1155   :  { %v5516_v61 = vmul.f32 %v7503_v4, %v5484_v9 }
0x1157   :  { %v5548_v38 = vmul.f32 %v10967_v48, %v5516_v61 }
0x1158   :  { %v5726_v7 = vpop.f32.mrf.mxu2 }
0x115c   :  { %6758 = vmatmul.msk.f32.gmra.mxu2 %vm935_vm6, %v5547_v19  ;;  %v5823_v19 = vadd.f32 %v5799_v27, %v5791_v49 }
0x1160   :  { %v5729_v3 = vpop.f32.mrf.mxu2 }
0x1164   :  { %6759 = vmatmul.msk.f32.gmra.mxu2 %vm935_vm6, %v5548_v38 }
0x1168   :  { %v11050_v23 = vpop.f32.mrf.mxu2 }
0x1169   :  { %v5380_v13 = vpop.xlane.xlu2 %5379 }
0x116a   :  { %7504 = vrcp.f32 %v5380_v13 }
0x1170   :  { %v11052_v20 = vpop.f32.mrf.mxu2  ;;  %v7505_v1 = vpop.eup %7504 }
0x1171   :  { %v5383_v53 = vpop.xlane.xlu1 %5382  ;;  %v5454_v58 = vmul.f32 %v7505_v1, %v5380_v13  ;;  %v5800_v13 = vmul.f32 %v11337_v50, %v5726_v7  ;;  %v5801_v7 = vmul.f32 %v11337_v50, %v5729_v3  ;;  %v5802_v3 = vmul.f32 %v11337_v50, %v11050_v23 }
0x1172   :  { %v5803_v23 = vmul.f32 %v11337_v50, %v11052_v20  ;;  %v5796_v20 = vmul.f32 %v11336_v33, %v11038_v11 }
0x1173   :  { %v5486_v60 = vsub.f32 2.0, %v5454_v58 }
0x1175   :  { %v5518_v4 = vmul.f32 %v7505_v1, %v5486_v60 }
0x1178   :  { %v11054_v59 = vpop.f32.mrf.mxu2 }
0x1180   :  { %v11056_v34 = vpop.f32.mrf.mxu2 }
0x11a4   :  { %v5377_v30 = vpop.xlane.xlu0 %5376 }
0x11a5   :  { %7506 = vrcp.f32 %v5377_v30 }
0x11a6   :  { %7508 = vrcp.f32 %v5383_v53 }
0x11ab   :  { %v7507_v48 = vpop.eup %7506 }
0x11ac   :  { %v5453_v44 = vmul.f32 %v7507_v48, %v5377_v30  ;;  %v7509_v63 = vpop.eup %7508 }
0x11ad   :  { %v5455_v14 = vmul.f32 %v7509_v63, %v5383_v53 }
0x11ae   :  { %v5485_v40 = vsub.f32 2.0, %v5453_v44  ;;  %v5392_v44 = vpop.xlane.xlu1 %5391 }
0x11af   :  { %v5744_v46 = vpop.f32.mrf.mxu2  ;;  %v5487_v61 = vsub.f32 2.0, %v5455_v14 }
0x11b0   :  { %v5517_v10 = vmul.f32 %v7507_v48, %v5485_v40  ;;  %v5806_v54 = vmul.f32 %v11338_v55, %v5744_v46  ;;  %v5824_v48 = vadd.f32 %v5800_v13, %v5792_v45 }
0x11b1   :  { %v5519_v30 = vmul.f32 %v7509_v63, %v5487_v61 }
0x11b2   :  { %v5549_v18 = vmul.f32 %v11005_v47, %v5517_v10  ;;  %v11063_v32 = vadd.f32 %v5822_v29, %v5806_v54  ;;  %v5550_v47 = vmul.f32 %v10979_v28, %v5518_v4  ;;  %v5825_v54 = vadd.f32 %v5801_v7, %v5793_v12 }
0x11b3   :  { %v5551_v28 = vmul.f32 %v10985_v16, %v5519_v30  ;;  %v5789_v7 = vmul.f32 %v11336_v33, %v10990_v31 }
0x11b4   :  { %v5386_v24 = vpop.xlane.xlu0 %5385  ;;  %6760 = vmatmul.msk.f32.gmra.mxu2 %vm935_vm6, %v5549_v18 }
0x11b5   :  { %7510 = vrcp.f32 %v5386_v24  ;;  %v5389_v62 = vpop.xlane.xlu2 %5388 }
0x11b6   :  { %7512 = vrcp.f32 %v5389_v62 }
0x11b7   :  { %v5747_v6 = vpop.f32.mrf.mxu2  ;;  %7514 = vrcp.f32 %v5392_v44 }
0x11b8   :  { %v5807_v9 = vmul.f32 %v11338_v55, %v5747_v6  ;;  %v5826_v6 = vadd.f32 %v5802_v3, %v5794_v57 }
0x11ba   :  { %v11071_v38 = vadd.f32 %v5823_v19, %v5807_v9 }
0x11bb   :  { %v7511_v39 = vpop.eup %7510 }
0x11bc   :  { %6761 = vmatmul.msk.f32.gmra.mxu2 %vm935_vm6, %v5550_v47  ;;  %v5456_v1 = vmul.f32 %v7511_v39, %v5386_v24  ;;  %v7513_v40 = vpop.eup %7512 }
0x11bd   :  { %v5457_v46 = vmul.f32 %v7513_v40, %v5389_v62  ;;  %v7515_v24 = vpop.eup %7514  ;;  %v5795_v62 = vmul.f32 %v11336_v33, %v11030_v8 }
0x11be   :  { %v5488_v42 = vsub.f32 2.0, %v5456_v1  ;;  %v5458_v49 = vmul.f32 %v7515_v24, %v5392_v44 }
0x11bf   :  { %v5750_v53 = vpop.f32.mrf.mxu2  ;;  %v5489_v16 = vsub.f32 2.0, %v5457_v46  ;;  %v5827_v45 = vadd.f32 %v5803_v23, %v5795_v62  ;;  %v5969_v23 = vsel %vm134_vm0, %v10896_v5, 0.0 }
0x11c0   :  { %v5808_v52 = vmul.f32 %v11338_v55, %v5750_v53  ;;  %v5520_v29 = vmul.f32 %v7511_v39, %v5488_v42  ;;  %v5490_v9 = vsub.f32 2.0, %v5458_v49  ;;  %v5797_v42 = vmul.f32 %v11337_v50, %v11044_v2 }
0x11c1   :  { %v5521_v4 = vmul.f32 %v7513_v40, %v5489_v16 }
0x11c2   :  { %v11079_v58 = vadd.f32 %v5824_v48, %v5808_v52  ;;  %v5552_v18 = vmul.f32 %v11020_v15, %v5520_v29  ;;  %v5522_v56 = vmul.f32 %v7515_v24, %v5490_v9  ;;  %v5804_v48 = vmul.f32 %v11337_v50, %v11054_v59 }
0x11c3   :  { %v5553_v15 = vmul.f32 %v11022_v21, %v5521_v4  ;;  %v5805_v59 = vmul.f32 %v11338_v55, %v11056_v34  ;;  %v5821_v11 = vadd.f32 %v5797_v42, %v5789_v7  ;;  %v6019_v7 = vld [vmem:[#allocation6 + $0x40] sm:$0xff] }
0x11c4   :  { %6762 = vmatmul.msk.f32.gmra.mxu2 %vm935_vm6, %v5551_v28  ;;  %v5395_v63 = vpop.xlane.xlu0 %5394  ;;  %v5554_v1 = vmul.f32 %v10992_v22, %v5522_v56  ;;  %v5828_v28 = vadd.f32 %v5804_v48, %v5796_v20 }
0x11c5   :  { %7516 = vrcp.f32 %v5395_v63  ;;  %v5829_v46 = vadd.f32 %v5821_v11, %v5805_v59  ;;  %v5979_v59 = vsel %vm134_vm0, %v10909_v43, 0.0  ;;  %v7614_v11 = vld [vmem:[#allocation2 + $0x40] sm:$0xff] }
0x11c7   :  { %v5753_v10 = vpop.f32.mrf.mxu2 }
0x11c8   :  { %v5809_v60 = vmul.f32 %v11338_v55, %v5753_v10 }
0x11ca   :  { %v5833_v27 = vadd.f32 %v5825_v54, %v5809_v60 }
0x11cb   :  { %v7517_v61 = vpop.eup %7516 }
0x11cc   :  { %6763 = vmatmul.msk.f32.gmra.mxu2 %vm935_vm6, %v5552_v18  ;;  %v5459_v39 = vmul.f32 %v7517_v61, %v5395_v63 }
0x11ce   :  { %v5491_v53 = vsub.f32 2.0, %v5459_v39  ;;  %v5973_v39 = vsel %vm134_vm0, %v10888_v35, 0.0 }
0x11cf   :  { %v5756_v14 = vpop.f32.mrf.mxu2 }
0x11d0   :  { %v5810_v19 = vmul.f32 %v11338_v55, %v5756_v14  ;;  %v5523_v52 = vmul.f32 %v7517_v61, %v5491_v53  ;;  %v5966_v61 = vsel %vm134_vm0, %v10892_v51, 0.0  ;;  %v5975_v53 = vsel %vm134_vm0, %v10884_v36, 0.0 }
0x11d2   :  { %v5834_v47 = vadd.f32 %v5826_v6, %v5810_v19  ;;  %v5555_v22 = vmul.f32 %v11036_v37, %v5523_v52  ;;  %v6021_v52 = vld [vmem:[#allocation6 + $0xe0] sm:$0xff] }
0x11d4   :  { %6764 = vmatmul.msk.f32.gmra.mxu2 %vm935_vm6, %v5553_v15 }
0x11d7   :  { %v5759_v13 = vpop.f32.mrf.mxu2 }
0x11d8   :  { %v5811_v30 = vmul.f32 %v11338_v55, %v5759_v13 }
0x11da   :  { %v5835_v21 = vadd.f32 %v5827_v45, %v5811_v30 }
0x11dc   :  { %6765 = vmatmul.msk.f32.gmra.mxu2 %vm935_vm6, %v5554_v1  ;;  %v6022_v1 = vld [vmem:[#allocation6 + $0x130] sm:$0xff] }
0x11dd   :  { %6038 = vmatpush.msrb.mxu3 %v6022_v1  ;;  %v7620_v1 = vld [vmem:[#allocation2 + $0x78] sm:$0xff] }
0x11df   :  { %v5762_v8 = vpop.f32.mrf.mxu2  ;;  %6039 = vmatpush.msrb.mxu3 %v6021_v52 }
0x11e0   :  { %v5812_v44 = vmul.f32 %v11338_v55, %v5762_v8  ;;  %v6020_v8 = vld [vmem:[#allocation6 + $0x90] sm:$0xff] }
0x11e1   :  { %6040 = vmatpush.msrb.mxu3 %v6020_v8 }
0x11e2   :  { %v5836_v40 = vadd.f32 %v5828_v28, %v5812_v44  ;;  %v5977_v28 = vsel %vm134_vm0, %v10890_v0, 0.0  ;;  %v7613_v44 = vld [vmem:[#allocation2 + $0x48] sm:$0xff] }
0x11e3   :  { %6041 = vmatpush.msrb.mxu3 %v6019_v7 }
0x11e4   :  { %6766 = vmatmul.msk.f32.gmra.mxu2 %vm935_vm6, %v5555_v22 }
0x11e7   :  { %v5765_v12 = vpop.f32.mrf.mxu2 }
0x11e8   :  { %v5813_v29 = vmul.f32 %v11339_v17, %v5765_v12 }
0x11ea   :  { %v5837_v10 = vadd.f32 %v5829_v46, %v5813_v29  ;;  %v7615_v46 = vld [vmem:[#allocation2 + $0x50] sm:$0xff] }
0x11ec   :  { %6767 = vmatmul.msk.f32.vlgmr.msra.gmra.mxu1 %vm134_vm0, %v5837_v10 }
0x1237   :  { %v5768_v50 = vpop.f32.mrf.mxu2 }
0x1238   :  { %v5814_v37 = vmul.f32 %v11339_v17, %v5768_v50 }
0x123a   :  { %v5838_v2 = vadd.f32 %v11063_v32, %v5814_v37 }
0x123c   :  { %6768 = vmatmul.msk.f32.gmra.mxu1 %vm134_vm0, %v5838_v2  ;;  %v7616_v2 = vld [vmem:[#allocation2 + $0x58] sm:$0xff] }
0x123f   :  { %v5771_v33 = vpop.f32.mrf.mxu2 }
0x1240   :  { %v5815_v55 = vmul.f32 %v11339_v17, %v5771_v33 }
0x1242   :  { %v5839_v31 = vadd.f32 %v11071_v38, %v5815_v55 }
0x1244   :  { %6769 = vmatmul.msk.f32.gmra.mxu1 %vm134_vm0, %v5839_v31  ;;  %v6051_v31 = vld [vmem:[#allocation6 + $0x128] sm:$0xff] }
0x1245   :  { %6112 = vmatpush.msra.mxu3 %v6051_v31 }
0x1247   :  { %v5774_v34 = vpop.f32.mrf.mxu2 }
0x1248   :  { %v5816_v54 = vmul.f32 %v11339_v17, %v5774_v34  ;;  %v6050_v34 = vld [vmem:[#allocation6 + $0xd8] sm:$0xff] }
0x1249   :  { %6113 = vmatpush.msra.mxu3 %v6050_v34  ;;  %v5963_v34 = vpop.f32.mrf.mxu3 }
0x124a   :  { %v5840_v60 = vadd.f32 %v11079_v58, %v5816_v54 }
0x124c   :  { %6770 = vmatmul.msk.f32.gmra.mxu1 %vm134_vm0, %v5840_v60 }
0x124f   :  { %v5777_v16 = vpop.f32.mrf.mxu2 }
0x1250   :  { %v5817_v18 = vmul.f32 %v11339_v17, %v5777_v16  ;;  %v7735_v16 = vmov 64.0  }
0x1251   :  { %7518 = vrcp.f32 %v7735_v16 }
0x1252   :  { %v5841_v32 = vadd.f32 %v5833_v27, %v5817_v18 }
0x1254   :  { %6771 = vmatmul.msk.f32.gmra.mxu1 %vm134_vm0, %v5841_v32 }
0x1257   :  { %v5780_v63 = vpop.f32.mrf.mxu2 }
0x1258   :  { %v5818_v24 = vmul.f32 %v11339_v17, %v5780_v63  ;;  %v7617_v63 = vld [vmem:[#allocation2 + $0x60] sm:$0xff] }
0x125a   :  { %v5842_v3 = vadd.f32 %v5834_v47, %v5818_v24  ;;  %v5967_v47 = vsel %vm134_vm0, %v10886_v26, 0.0 }
0x125b   :  { %v5968_v62 = vadd.f32 %v5967_v47, %v5966_v61  ;;  %v7519_v47 = vpop.eup %7518 }
0x125c   :  { %6772 = vmatmul.msk.f32.gmra.mxu1 %vm134_vm0, %v5842_v3  ;;  %vm5992_vm6 = vweird.f32 %v7519_v47 }
0x125d   :  { %v5970_v56 = vadd.f32 %v5969_v23, %v5968_v62 }
0x125f   :  { %v5783_v38 = vpop.f32.mrf.mxu2 }
0x1260   :  { %v5819_v57 = vmul.f32 %v11339_v17, %v5783_v38  ;;  %v6049_v38 = vld [vmem:[#allocation6 + $0x88] sm:$0xff] }
0x1261   :  { %6114 = vmatpush.msra.mxu3 %v6049_v38 }
0x1262   :  { %v5843_v49 = vadd.f32 %v5835_v21, %v5819_v57 }
0x1264   :  { %6773 = vmatmul.msk.f32.gmra.mxu1 %vm134_vm0, %v5843_v49 }
0x1267   :  { %v5786_v58 = vpop.f32.mrf.mxu2 }
0x1268   :  { %v5820_v4 = vmul.f32 %v11339_v17, %v5786_v58  ;;  %v5971_v17 = vsel %vm134_vm0, %v10898_v41, 0.0  ;;  %v7618_v58 = vld [vmem:[#allocation2 + $0x68] sm:$0xff] }
0x1269   :  { %v5886_v27 = vpop.f32.mrf.mxu1  ;;  %v5972_v45 = vadd.f32 %v5971_v17, %v5970_v56 }
0x126a   :  { %v5844_v14 = vadd.f32 %v5836_v40, %v5820_v4  ;;  %v5887_v21 = vadd.f32 %v10871_v25, %v5886_v27 }
0x126b   :  { %v5974_v20 = vadd.f32 %v5973_v39, %v5972_v45  ;;  %v5988_v45 = vmul.f32 64.0, %v7519_v47 }
0x126c   :  { %6774 = vmatmul.msk.f32.gmra.mxu1 %vm134_vm0, %v5844_v14  ;;  %v11156_v12 = vadd.f32 %v7614_v11, %v5887_v21  ;;  %v6048_v14 = vld [vmem:[#allocation6 + $0x38] sm:$0xff] }
0x126d   :  { %v5976_v40 = vadd.f32 %v5975_v53, %v5974_v20  ;;  %6115 = vmatpush.msra.mxu3 %v6048_v14  ;;  %v5989_v52 = vsub.f32 1.0, %v5988_v45 }
0x126e   :  { %v5995_v18 = vsel %vm134_vm0, %v11156_v12, 0.0 }
0x126f   :  { %v5978_v50 = vadd.f32 %v5977_v28, %v5976_v40 }
0x1271   :  { %v5980_v54 = vadd.f32 %v5979_v59, %v5978_v50 }
0x1273   :  { %v5981_v27 = vrot.slane %v5980_v54, 4 }
0x1275   :  { %v5982_v62 = vadd.f32 %v5981_v27, %v5980_v54 }
0x1277   :  { %v5983_v21 = vrot.slane %v5982_v62, 2 }
0x1279   :  { %v5984_v28 = vadd.f32 %v5983_v21, %v5982_v62 }
0x127b   :  { %v5985_v59 = vrot.slane %v5984_v28, 1 }
0x12b9   :  { %v5889_v6 = vpop.f32.mrf.mxu1 }
0x12ba   :  { %v5890_v13 = vadd.f32 %v10871_v25, %v5889_v6 }
0x12bc   :  { %v11151_v42 = vadd.f32 %v7613_v44, %v5890_v13 }
0x12be   :  { %v5996_v37 = vsel %vm134_vm0, %v11151_v42, 0.0 }
0x12bf   :  { %v5997_v57 = vadd.f32 %v5996_v37, %v5995_v18  ;;  %v11228_v18 = vperm.slane %v5963_v34, 0 }
0x12c1   :  { %v5892_v19 = vpop.f32.mrf.mxu1 }
0x12c2   :  { %v5893_v48 = vadd.f32 %v10871_v25, %v5892_v19 }
0x12c4   :  { %v11158_v29 = vadd.f32 %v7615_v46, %v5893_v48 }
0x12c6   :  { %v5998_v32 = vsel %vm134_vm0, %v11158_v29, 0.0 }
0x12c7   :  { %v5999_v6 = vadd.f32 %v5998_v32, %v5997_v57 }
0x12c9   :  { %v5895_v9 = vpop.f32.mrf.mxu1 }
0x12ca   :  { %v5896_v22 = vadd.f32 %v10871_v25, %v5895_v9  ;;  %v7619_v9 = vld [vmem:[#allocation2 + $0x70] sm:$0xff] }
0x12cc   :  { %v11163_v33 = vadd.f32 %v7616_v2, %v5896_v22  ;;  %v5990_v22 = vmul.f32 %v7519_v47, %v5989_v52 }
0x12ce   :  { %v6000_v49 = vsel %vm134_vm0, %v11163_v33, 0.0  ;;  %v5991_v11 = vadd.f32 %v7519_v47, %v5990_v22 }
0x12cf   :  { %v6001_v61 = vadd.f32 %v6000_v49, %v5999_v6 }
0x12d0   :  { %v5993_v50 = vsel %vm5992_vm6, %v7519_v47, %v5991_v11 }
0x12d1   :  { %v5898_v15 = vpop.f32.mrf.mxu1 }
0x12d2   :  { %v5899_v10 = vadd.f32 %v10871_v25, %v5898_v15 }
0x12d4   :  { %v11170_v24 = vadd.f32 %v7617_v63, %v5899_v10  ;;  %v5986_v10 = vadd.f32 %v5985_v59, %v5984_v28  ;;  %v11231_v63 = vld [vmem:[#allocation7 + $0x9] ss:$0 sm:$0xff] }
0x12d6   :  { %v6002_v19 = vsel %vm134_vm0, %v11170_v24, 0.0  ;;  %v5994_v2 = vmul.f32 %v5993_v50, %v5986_v10 }
0x12d7   :  { %v6003_v17 = vadd.f32 %v6002_v19, %v6001_v61 }
0x12d9   :  { %v5901_v30 = vpop.f32.mrf.mxu1 }
0x12da   :  { %v5902_v55 = vadd.f32 %v10871_v25, %v5901_v30 }
0x12dc   :  { %v11175_v4 = vadd.f32 %v7618_v58, %v5902_v55 }
0x12de   :  { %v6004_v23 = vsel %vm134_vm0, %v11175_v4, 0.0 }
0x12df   :  { %v6005_v30 = vadd.f32 %v6004_v23, %v6003_v17 }
0x12e1   :  { %v5904_v60 = vpop.f32.mrf.mxu1 }
0x12e2   :  { %v5905_v3 = vadd.f32 %v10871_v25, %v5904_v60 }
0x12e4   :  { %v11179_v15 = vadd.f32 %v7619_v9, %v5905_v3 }
0x12e6   :  { %v6006_v39 = vsel %vm134_vm0, %v11179_v15, 0.0 }
0x12e7   :  { %v6007_v48 = vadd.f32 %v6006_v39, %v6005_v30 }
0x12e9   :  { %v5907_v56 = vpop.f32.mrf.mxu1 }
0x12ea   :  { %v5908_v13 = vadd.f32 %v10871_v25, %v5907_v56 }
0x12ec   :  { %v11186_v53 = vadd.f32 %v7620_v1, %v5908_v13 }
0x12ee   :  { %v6008_v20 = vsel %vm134_vm0, %v11186_v53, 0.0 }
0x12ef   :  { %v6009_v8 = vadd.f32 %v6008_v20, %v6007_v48 }
0x12f1   :  { %v6010_v44 = vrot.slane %v6009_v8, 4 }
0x12f3   :  { %v6011_v40 = vadd.f32 %v6010_v44, %v6009_v8 }
0x12f5   :  { %v6012_v7 = vrot.slane %v6011_v40, 2 }
0x12f7   :  { %v6013_v25 = vadd.f32 %v6012_v7, %v6011_v40 }
0x12f9   :  { %v6014_v46 = vrot.slane %v6013_v25, 1 }
0x12fb   :  { %v6015_v37 = vadd.f32 %v6014_v46, %v6013_v25 }
0x12fd   :  { %v6016_v55 = vmul.f32 %v6015_v37, %v5993_v50 }
0x12ff   :  { %v6018_v31 = vsel %vm6017_vm4, %v5994_v2, %v6016_v55 }
0x1300   :  { %6776 = vmatmul.msk.f32.vlgmr.msrb.gmra.mxu3 %vm134_vm0, %v6018_v31 }
0x1308   :  { %6777 = vmatmul.msk.f32.vlgmr.msra.gmra.mxu3 %vm134_vm0, %v10892_v51 }
0x1310   :  { %6778 = vmatmul.msk.f32.gmra.mxu3 %vm134_vm0, %v10886_v26 }
0x1318   :  { %6779 = vmatmul.msk.f32.gmra.mxu3 %vm134_vm0, %v10896_v5 }
0x1320   :  { %6780 = vmatmul.msk.f32.gmra.mxu3 %vm134_vm0, %v10898_v41 }
0x1328   :  { %6781 = vmatmul.msk.f32.gmra.mxu3 %vm134_vm0, %v10888_v35 }
0x1330   :  { %6782 = vmatmul.msk.f32.gmra.mxu3 %vm134_vm0, %v10884_v36 }
0x1338   :  { %6783 = vmatmul.msk.f32.gmra.mxu3 %vm134_vm0, %v10890_v0 }
0x1340   :  { %6784 = vmatmul.msk.f32.gmra.mxu3 %vm134_vm0, %v10909_v43 }
0x1348   :  { %6785 = vmatmul.msk.f32.gmra.mxu3 %vm134_vm0, %v11156_v12 }
0x1350   :  { %6786 = vmatmul.msk.f32.gmra.mxu3 %vm134_vm0, %v11151_v42 }
0x1358   :  { %6787 = vmatmul.msk.f32.gmra.mxu3 %vm134_vm0, %v11158_v29 }
0x1360   :  { %6788 = vmatmul.msk.f32.gmra.mxu3 %vm134_vm0, %v11163_v33 }
0x1368   :  { %6789 = vmatmul.msk.f32.gmra.mxu3 %vm134_vm0, %v11170_v24 }
0x1370   :  { %6790 = vmatmul.msk.f32.gmra.mxu3 %vm134_vm0, %v11175_v4 }
0x1378   :  { %6791 = vmatmul.msk.f32.gmra.mxu3 %vm134_vm0, %v11179_v15 }
0x1380   :  { %6792 = vmatmul.msk.f32.gmra.mxu3 %vm134_vm0, %v11186_v53 }
0x1383   :  { %v11223_v54 = vpop.f32.mrf.mxu3 }
0x1384   :  { %v11226_v60 = vperm.slane %v11223_v54, 0 }
0x138b   :  { %v6117_v16 = vpop.f32.mrf.mxu3 }
0x138c   :  { %v6118_v32 = vadd.f32 %v6117_v16, %v11226_v60 }
0x138e   :  { %v6166_v3 = vadd.f32 %v11228_v18, %v6118_v32 }
0x1390   :  { %v6184_v38 = vadd.f32 %v11231_v63, %v6166_v3 }
0x1392   :  { %v6200_v57 = vsub.f32 0.0, %v6184_v38 }
0x1393   :  { %v6120_v49 = vpop.f32.mrf.mxu3 }
0x1394   :  { %v6216_v58 = vmul.f32 1.442695, %v6200_v57  ;;  %v6121_v14 = vadd.f32 %v6120_v49, %v11226_v60 }
0x1396   :  { %7520 = vpow2.f32 %v6216_v58  ;;  %v6167_v27 = vadd.f32 %v11228_v18, %v6121_v14 }
0x1398   :  { %v6185_v6 = vadd.f32 %v11231_v63, %v6167_v27 }
0x139a   :  { %v6201_v19 = vsub.f32 0.0, %v6185_v6 }
0x139b   :  { %v6123_v9 = vpop.f32.mrf.mxu3 }
0x139c   :  { %v7521_v47 = vpop.eup %7520  ;;  %v6218_v61 = vmul.f32 1.442695, %v6201_v19  ;;  %v6124_v23 = vadd.f32 %v6123_v9, %v11226_v60 }
0x139d   :  { %v6248_v62 = vadd.f32 1.0, %v7521_v47 }
0x139e   :  { %7522 = vpow2.f32 %v6218_v61  ;;  %v6168_v17 = vadd.f32 %v11228_v18, %v6124_v23 }
0x139f   :  { %7524 = vrcp.f32 %v6248_v62 }
0x13a0   :  { %v6186_v56 = vadd.f32 %v11231_v63, %v6168_v17 }
0x13a2   :  { %v6202_v39 = vsub.f32 0.0, %v6186_v56 }
0x13a3   :  { %v6126_v13 = vpop.f32.mrf.mxu3 }
0x13a4   :  { %v7523_v45 = vpop.eup %7522  ;;  %v6220_v30 = vmul.f32 1.442695, %v6202_v39  ;;  %v6127_v1 = vadd.f32 %v6126_v13, %v11226_v60 }
0x13a5   :  { %v7525_v21 = vpop.eup %7524  ;;  %v6249_v48 = vadd.f32 1.0, %v7523_v45 }
0x13a6   :  { %7526 = vpow2.f32 %v6220_v30  ;;  %v6169_v20 = vadd.f32 %v11228_v18, %v6127_v1  ;;  %v6280_v52 = vmul.f32 %v7525_v21, %v6248_v62 }
0x13a7   :  { %7528 = vrcp.f32 %v6249_v48 }
0x13a8   :  { %v6187_v8 = vadd.f32 %v11231_v63, %v6169_v20  ;;  %v6296_v28 = vsub.f32 2.0, %v6280_v52 }
0x13aa   :  { %v6203_v44 = vsub.f32 0.0, %v6187_v8  ;;  %v6312_v22 = vmul.f32 %v7525_v21, %v6296_v28 }
0x13ab   :  { %v6129_v40 = vpop.f32.mrf.mxu3 }
0x13ac   :  { %v7527_v7 = vpop.eup %7526  ;;  %v6222_v59 = vmul.f32 1.442695, %v6203_v44  ;;  %v6130_v11 = vadd.f32 %v6129_v40, %v11226_v60  ;;  %v6328_v25 = vmul.f32 %v6312_v22, %v10892_v51 }
0x13ad   :  { %v7529_v46 = vpop.eup %7528  ;;  %v6250_v10 = vadd.f32 1.0, %v7527_v7 }
0x13ae   :  { %7530 = vpow2.f32 %v6222_v59  ;;  %v6170_v50 = vadd.f32 %v11228_v18, %v6130_v11  ;;  %6344 = vxpose.xlu2.b32.start [1/16] (narrow) %v6328_v25, 32  ;;  %v6281_v37 = vmul.f32 %v7529_v46, %v6249_v48  ;;  %v11261_v11 = vperm.slane %v11223_v54, 1 }
0x13af   :  { %7532 = vrcp.f32 %v6250_v10 }
0x13b0   :  { %v6188_v2 = vadd.f32 %v11231_v63, %v6170_v50  ;;  %v6297_v55 = vsub.f32 2.0, %v6281_v37 }
0x13b2   :  { %v6204_v31 = vsub.f32 0.0, %v6188_v2  ;;  %v6313_v34 = vmul.f32 %v7529_v46, %v6297_v55 }
0x13b3   :  { %v6132_v16 = vpop.f32.mrf.mxu3 }
0x13b4   :  { %v7531_v32 = vpop.eup %7530  ;;  %v6224_v3 = vmul.f32 1.442695, %v6204_v31  ;;  %v6133_v38 = vadd.f32 %v6132_v16, %v11226_v60  ;;  %v6329_v51 = vmul.f32 %v6313_v34, %v10886_v26 }
0x13b5   :  { %v7533_v57 = vpop.eup %7532  ;;  %v6251_v49 = vadd.f32 1.0, %v7531_v32 }
0x13b6   :  { %7534 = vpow2.f32 %v6224_v3  ;;  %v6171_v58 = vadd.f32 %v11228_v18, %v6133_v38  ;;  %6345 = vxpose.xlu2.b32.cont [2/16] (narrow) %v6329_v51, 32  ;;  %v6282_v14 = vmul.f32 %v7533_v57, %v6250_v10 }
0x13b7   :  { %7536 = vrcp.f32 %v6251_v49 }
0x13b8   :  { %v6189_v27 = vadd.f32 %v11231_v63, %v6171_v58  ;;  %v6298_v6 = vsub.f32 2.0, %v6282_v14 }
0x13ba   :  { %v6205_v19 = vsub.f32 0.0, %v6189_v27  ;;  %v6314_v9 = vmul.f32 %v7533_v57, %v6298_v6 }
0x13bb   :  { %v6135_v47 = vpop.f32.mrf.mxu3 }
0x13bc   :  { %v7535_v61 = vpop.eup %7534  ;;  %v6226_v23 = vmul.f32 1.442695, %v6205_v19  ;;  %v6136_v62 = vadd.f32 %v6135_v47, %v11226_v60  ;;  %v6330_v26 = vmul.f32 %v6314_v9, %v10896_v5 }
0x13bd   :  { %v7537_v17 = vpop.eup %7536  ;;  %v6252_v56 = vadd.f32 1.0, %v7535_v61 }
0x13be   :  { %7538 = vpow2.f32 %v6226_v23  ;;  %v6172_v39 = vadd.f32 %v11228_v18, %v6136_v62  ;;  %6346 = vxpose.xlu2.b32.cont [3/16] (narrow) %v6330_v26, 32  ;;  %v6283_v13 = vmul.f32 %v7537_v17, %v6251_v49 }
0x13bf   :  { %7540 = vrcp.f32 %v6252_v56 }
0x13c0   :  { %v6190_v45 = vadd.f32 %v11231_v63, %v6172_v39  ;;  %v6299_v30 = vsub.f32 2.0, %v6283_v13 }
0x13c2   :  { %v6206_v1 = vsub.f32 0.0, %v6190_v45  ;;  %v6315_v21 = vmul.f32 %v7537_v17, %v6299_v30 }
0x13c3   :  { %v6138_v48 = vpop.f32.mrf.mxu3 }
0x13c4   :  { %v7539_v20 = vpop.eup %7538  ;;  %v6228_v52 = vmul.f32 1.442695, %v6206_v1  ;;  %v6139_v8 = vadd.f32 %v6138_v48, %v11226_v60  ;;  %v6331_v5 = vmul.f32 %v6315_v21, %v10898_v41 }
0x13c5   :  { %v7541_v28 = vpop.eup %7540  ;;  %v6253_v44 = vadd.f32 1.0, %v7539_v20 }
0x13c6   :  { %7542 = vpow2.f32 %v6228_v52  ;;  %v6173_v22 = vadd.f32 %v11228_v18, %v6139_v8  ;;  %6347 = vxpose.xlu2.b32.cont [4/16] (narrow) %v6331_v5, 32  ;;  %v6284_v40 = vmul.f32 %v7541_v28, %v6252_v56 }
0x13c7   :  { %7544 = vrcp.f32 %v6253_v44 }
0x13c8   :  { %v6191_v7 = vadd.f32 %v11231_v63, %v6173_v22  ;;  %v6300_v59 = vsub.f32 2.0, %v6284_v40 }
0x13ca   :  { %v6207_v25 = vsub.f32 0.0, %v6191_v7  ;;  %v6316_v46 = vmul.f32 %v7541_v28, %v6300_v59 }
0x13cb   :  { %v6141_v10 = vpop.f32.mrf.mxu3 }
0x13cc   :  { %v7543_v60 = vpop.eup %7542  ;;  %v6230_v50 = vmul.f32 1.442695, %v6207_v25  ;;  %v6142_v41 = vadd.f32 %v6141_v10, %v11261_v11  ;;  %v6332_v37 = vmul.f32 %v6316_v46, %v10888_v35 }
0x13cd   :  { %v7545_v2 = vpop.eup %7544  ;;  %v6254_v55 = vadd.f32 1.0, %v7543_v60 }
0x13ce   :  { %7546 = vpow2.f32 %v6230_v50  ;;  %v6174_v31 = vadd.f32 %v11228_v18, %v6142_v41  ;;  %6348 = vxpose.xlu2.b32.cont [5/16] (narrow) %v6332_v37, 32  ;;  %v6285_v34 = vmul.f32 %v7545_v2, %v6253_v44 }
0x13cf   :  { %7548 = vrcp.f32 %v6254_v55 }
0x13d0   :  { %v6192_v54 = vadd.f32 %v11231_v63, %v6174_v31  ;;  %v6301_v16 = vsub.f32 2.0, %v6285_v34 }
0x13d2   :  { %v6208_v32 = vsub.f32 0.0, %v6192_v54  ;;  %v6317_v3 = vmul.f32 %v7545_v2, %v6301_v16 }
0x13d3   :  { %v6144_v38 = vpop.f32.mrf.mxu3 }
0x13d4   :  { %v7547_v51 = vpop.eup %7546  ;;  %v6232_v57 = vmul.f32 1.442695, %v6208_v32  ;;  %v6145_v49 = vadd.f32 %v6144_v38, %v11261_v11  ;;  %v6333_v35 = vmul.f32 %v6317_v3, %v10884_v36 }
0x13d5   :  { %v7549_v58 = vpop.eup %7548  ;;  %v6255_v14 = vadd.f32 1.0, %v7547_v51 }
0x13d6   :  { %7550 = vpow2.f32 %v6232_v57  ;;  %v6175_v27 = vadd.f32 %v11228_v18, %v6145_v49  ;;  %6349 = vxpose.xlu2.b32.cont [6/16] (narrow) %v6333_v35, 32  ;;  %v6286_v6 = vmul.f32 %v7549_v58, %v6254_v55 }
0x13d7   :  { %7552 = vrcp.f32 %v6255_v14 }
0x13d8   :  { %v6193_v19 = vadd.f32 %v11231_v63, %v6175_v27  ;;  %v6302_v9 = vsub.f32 2.0, %v6286_v6 }
0x13da   :  { %v6209_v47 = vsub.f32 0.0, %v6193_v19  ;;  %v6318_v61 = vmul.f32 %v7549_v58, %v6302_v9 }
0x13db   :  { %v6147_v23 = vpop.f32.mrf.mxu3 }
0x13dc   :  { %v7551_v62 = vpop.eup %7550  ;;  %v6234_v26 = vmul.f32 1.442695, %v6209_v47  ;;  %v6148_v17 = vadd.f32 %v6147_v23, %v11261_v11  ;;  %v6334_v36 = vmul.f32 %v6318_v61, %v10890_v0 }
0x13dd   :  { %v7553_v56 = vpop.eup %7552  ;;  %v6256_v39 = vadd.f32 1.0, %v7551_v62 }
0x13de   :  { %7554 = vpow2.f32 %v6234_v26  ;;  %v6176_v13 = vadd.f32 %v11228_v18, %v6148_v17  ;;  %6350 = vxpose.xlu2.b32.cont [7/16] (narrow) %v6334_v36, 32  ;;  %v6287_v45 = vmul.f32 %v7553_v56, %v6255_v14 }
0x13df   :  { %7556 = vrcp.f32 %v6256_v39 }
0x13e0   :  { %v6194_v30 = vadd.f32 %v11231_v63, %v6176_v13  ;;  %v6303_v1 = vsub.f32 2.0, %v6287_v45 }
0x13e2   :  { %v6210_v21 = vsub.f32 0.0, %v6194_v30  ;;  %v6319_v48 = vmul.f32 %v7553_v56, %v6303_v1 }
0x13e3   :  { %v6150_v20 = vpop.f32.mrf.mxu3 }
0x13e4   :  { %v7555_v52 = vpop.eup %7554  ;;  %v6236_v8 = vmul.f32 1.442695, %v6210_v21  ;;  %v6151_v5 = vadd.f32 %v6150_v20, %v11261_v11  ;;  %v6335_v0 = vmul.f32 %v6319_v48, %v10909_v43 }
0x13e5   :  { %v7557_v28 = vpop.eup %7556  ;;  %v6257_v44 = vadd.f32 1.0, %v7555_v52 }
0x13e6   :  { %7558 = vpow2.f32 %v6236_v8  ;;  %v6177_v22 = vadd.f32 %v11228_v18, %v6151_v5  ;;  %6351 = vxpose.xlu2.b32.cont [8/16] (narrow) %v6335_v0, 32  ;;  %v6288_v40 = vmul.f32 %v7557_v28, %v6256_v39 }
0x13e7   :  { %7560 = vrcp.f32 %v6257_v44 }
0x13e8   :  { %v6195_v7 = vadd.f32 %v11231_v63, %v6177_v22  ;;  %v6304_v59 = vsub.f32 2.0, %v6288_v40 }
0x13ea   :  { %v6211_v25 = vsub.f32 0.0, %v6195_v7  ;;  %v6320_v46 = vmul.f32 %v7557_v28, %v6304_v59 }
0x13eb   :  { %v6153_v10 = vpop.f32.mrf.mxu3 }
0x13ec   :  { %v7559_v60 = vpop.eup %7558  ;;  %v6238_v50 = vmul.f32 1.442695, %v6211_v25  ;;  %v6154_v41 = vadd.f32 %v6153_v10, %v11261_v11  ;;  %v6336_v43 = vmul.f32 %v6320_v46, %v11156_v12 }
0x13ed   :  { %v7561_v37 = vpop.eup %7560  ;;  %v6258_v2 = vadd.f32 1.0, %v7559_v60 }
0x13ee   :  { %7562 = vpow2.f32 %v6238_v50  ;;  %v6178_v55 = vadd.f32 %v11228_v18, %v6154_v41  ;;  %6352 = vxpose.xlu2.b32.cont [9/16] (narrow) %v6336_v43, 32  ;;  %v6289_v31 = vmul.f32 %v7561_v37, %v6257_v44 }
0x13ef   :  { %7564 = vrcp.f32 %v6258_v2 }
0x13f0   :  { %v6196_v34 = vadd.f32 %v11231_v63, %v6178_v55  ;;  %v6305_v54 = vsub.f32 2.0, %v6289_v31 }
0x13f2   :  { %v6212_v16 = vsub.f32 0.0, %v6196_v34  ;;  %v6321_v32 = vmul.f32 %v7561_v37, %v6305_v54 }
0x13f3   :  { %v6156_v3 = vpop.f32.mrf.mxu3 }
0x13f4   :  { %v7563_v38 = vpop.eup %7562  ;;  %v6240_v51 = vmul.f32 1.442695, %v6212_v16  ;;  %v6157_v57 = vadd.f32 %v6156_v3, %v11261_v11  ;;  %v6337_v12 = vmul.f32 %v6321_v32, %v11151_v42 }
0x13f5   :  { %v7565_v49 = vpop.eup %7564  ;;  %v6259_v35 = vadd.f32 1.0, %v7563_v38 }
0x13f6   :  { %7566 = vpow2.f32 %v6240_v51  ;;  %v6179_v58 = vadd.f32 %v11228_v18, %v6157_v57  ;;  %6353 = vxpose.xlu2.b32.cont [10/16] (narrow) %v6337_v12, 32  ;;  %v6290_v14 = vmul.f32 %v7565_v49, %v6258_v2 }
0x13f7   :  { %7568 = vrcp.f32 %v6259_v35 }
0x13f8   :  { %v6197_v27 = vadd.f32 %v11231_v63, %v6179_v58  ;;  %v6306_v6 = vsub.f32 2.0, %v6290_v14 }
0x13fa   :  { %v6213_v19 = vsub.f32 0.0, %v6197_v27  ;;  %v6322_v9 = vmul.f32 %v7565_v49, %v6306_v6 }
0x13fb   :  { %v6159_v47 = vpop.f32.mrf.mxu3 }
0x13fc   :  { %v7567_v61 = vpop.eup %7566  ;;  %v6242_v23 = vmul.f32 1.442695, %v6213_v19  ;;  %v6160_v62 = vadd.f32 %v6159_v47, %v11261_v11  ;;  %v6338_v42 = vmul.f32 %v6322_v9, %v11158_v29 }
0x13fd   :  { %v7569_v26 = vpop.eup %7568  ;;  %v6260_v17 = vadd.f32 1.0, %v7567_v61 }
0x13fe   :  { %7570 = vpow2.f32 %v6242_v23  ;;  %v6180_v36 = vadd.f32 %v11228_v18, %v6160_v62  ;;  %6354 = vxpose.xlu2.b32.cont [11/16] (narrow) %v6338_v42, 32  ;;  %v6291_v56 = vmul.f32 %v7569_v26, %v6259_v35 }
0x13ff   :  { %7572 = vrcp.f32 %v6260_v17 }
0x1400   :  { %v6198_v39 = vadd.f32 %v11231_v63, %v6180_v36  ;;  %v6307_v13 = vsub.f32 2.0, %v6291_v56 }
0x1402   :  { %v6214_v45 = vsub.f32 0.0, %v6198_v39  ;;  %v6323_v30 = vmul.f32 %v7569_v26, %v6307_v13 }
0x1403   :  { %v6162_v1 = vpop.f32.mrf.mxu3 }
0x1404   :  { %v7571_v21 = vpop.eup %7570  ;;  %v6244_v48 = vmul.f32 1.442695, %v6214_v45  ;;  %v6163_v20 = vadd.f32 %v6162_v1, %v11261_v11  ;;  %v6339_v29 = vmul.f32 %v6323_v30, %v11163_v33 }
0x1405   :  { %v7573_v52 = vpop.eup %7572  ;;  %v6261_v8 = vadd.f32 1.0, %v7571_v21 }
0x1406   :  { %7574 = vpow2.f32 %v6244_v48  ;;  %v6181_v5 = vadd.f32 %v11228_v18, %v6163_v20  ;;  %6355 = vxpose.xlu2.b32.cont [12/16] (narrow) %v6339_v29, 32  ;;  %v6292_v0 = vmul.f32 %v7573_v52, %v6260_v17 }
0x1407   :  { %7576 = vrcp.f32 %v6261_v8 }
0x1408   :  { %v6199_v28 = vadd.f32 %v11231_v63, %v6181_v5  ;;  %v6308_v44 = vsub.f32 2.0, %v6292_v0 }
0x140a   :  { %v6215_v22 = vsub.f32 0.0, %v6199_v28  ;;  %v6324_v40 = vmul.f32 %v7573_v52, %v6308_v44 }
0x140c   :  { %v7575_v7 = vpop.eup %7574  ;;  %v6246_v59 = vmul.f32 1.442695, %v6215_v22  ;;  %v6340_v25 = vmul.f32 %v6324_v40, %v11170_v24 }
0x140d   :  { %v7577_v11 = vpop.eup %7576  ;;  %v6262_v46 = vadd.f32 1.0, %v7575_v7 }
0x140e   :  { %7578 = vpow2.f32 %v6246_v59  ;;  %6356 = vxpose.xlu2.b32.cont [13/16] (narrow) %v6340_v25, 32  ;;  %v6293_v33 = vmul.f32 %v7577_v11, %v6261_v8 }
0x140f   :  { %7580 = vrcp.f32 %v6262_v46 }
0x1410   :  { %v6309_v10 = vsub.f32 2.0, %v6293_v33 }
0x1412   :  { %v6325_v18 = vmul.f32 %v7577_v11, %v6309_v10 }
0x1414   :  { %v7579_v60 = vpop.eup %7578  ;;  %v6341_v50 = vmul.f32 %v6325_v18, %v11175_v4 }
0x1415   :  { %v7581_v41 = vpop.eup %7580  ;;  %v6263_v63 = vadd.f32 1.0, %v7579_v60 }
0x1416   :  { %6357 = vxpose.xlu2.b32.cont [14/16] (narrow) %v6341_v50, 32  ;;  %v6294_v43 = vmul.f32 %v7581_v41, %v6262_v46 }
0x1417   :  { %7582 = vrcp.f32 %v6263_v63 }
0x1418   :  { %v6310_v37 = vsub.f32 2.0, %v6294_v43 }
0x141a   :  { %v6326_v2 = vmul.f32 %v7581_v41, %v6310_v37 }
0x141c   :  { %v6342_v24 = vmul.f32 %v6326_v2, %v11179_v15 }
0x141d   :  { %v7583_v55 = vpop.eup %7582 }
0x141e   :  { %6358 = vxpose.xlu2.b32.cont [15/16] (narrow) %v6342_v24, 32  ;;  %v6295_v31 = vmul.f32 %v7583_v55, %v6263_v63 }
0x1420   :  { %v6311_v34 = vsub.f32 2.0, %v6295_v31 }
0x1422   :  { %v6327_v54 = vmul.f32 %v7583_v55, %v6311_v34 }
0x1424   :  { %v6343_v16 = vmul.f32 %v6327_v54, %v11186_v53 }
0x1426   :  { %6359 = vxpose.xlu2.b32.end [16/16] (narrow) %v6343_v16, 32 }
0x1447   :  { %v6360_v32 = vpop.trf.xlu2 }
0x1448   :  { %6376 = vst [vmem:[%s11315_s4] sm:$0xff] %v6360_v32 }
0x144f   :  { %v6361_v4 = vpop.trf.xlu2 }
0x1450   :  { %6377 = vst [vmem:[%s11315_s4 + $0x8] sm:$0xff] %v6361_v4 }
0x1457   :  { %v6362_v3 = vpop.trf.xlu2 }
0x1458   :  { %6378 = vst [vmem:[%s11315_s4 + $0x10] sm:$0xff] %v6362_v3 }
0x145f   :  { %v6363_v15 = vpop.trf.xlu2 }
0x1460   :  { %6379 = vst [vmem:[%s11315_s4 + $0x18] sm:$0xff] %v6363_v15 }
0x1461   :  { %6384 = vsyncpa [#allocation3], 1 }
0x1462   :  { %6385 = vsyncpa [#allocation5], 1 }
0x1463   :  { %6386 = vsyncpa [#allocation8], 1 }

</bundles_post_ra>
